<compile_context>
chip_gen: v7x
topology: tpu7x:2x2x1
jax: 0.10.0
libtpu: 0.0.40
codegen_flags: <defaults>
</compile_context>

<pallas_src>
import functools
import math

import jax
import jax.numpy as jnp
from jax.experimental import pallas as pl
from jax.experimental.pallas import tpu as pltpu


# ----------------------------- in-kernel helpers -----------------------------

def _layer_norm(x, g, b):
    mean = jnp.mean(x, axis=-1, keepdims=True)
    var = jnp.mean(jnp.square(x - mean), axis=-1, keepdims=True)
    return (x - mean) * jax.lax.rsqrt(var + 1e-5) * g + b


def _ffn(x, w1, b1, w2, b2):
    h = jnp.dot(x, w1[...], preferred_element_type=jnp.float32) + b1[...]
    h = jnp.maximum(h, 0.0)
    return jnp.dot(h, w2[...], preferred_element_type=jnp.float32) + b2[...]


def _attention(x_q, x_kv, wq, bq, wk, bk, wv, bv, wo, bo, *, B, scale):
    """Multi-head attention on batch-major slabs.

    x_q:(B*Sq,E), x_kv:(B*Sk,E) values; wq/wk/wv:(H,E,Dh), bq/bk/bv:(H,1,Dh),
    wo:(H,Dh,E), bo:(1,E) refs.  Returns (B*Sq, E).
    """
    H = wq.shape[0]
    E = x_q.shape[-1]
    Sq = x_q.shape[0] // B
    Sk = x_kv.shape[0] // B
    acc = jnp.zeros((x_q.shape[0], E), jnp.float32)
    for h in range(H):
        q_h = jnp.dot(x_q, wq[h], preferred_element_type=jnp.float32) + bq[h]
        k_h = jnp.dot(x_kv, wk[h], preferred_element_type=jnp.float32) + bk[h]
        v_h = jnp.dot(x_kv, wv[h], preferred_element_type=jnp.float32) + bv[h]
        o_rows = []
        for b in range(B):
            q = q_h[b * Sq:(b + 1) * Sq]
            k = k_h[b * Sk:(b + 1) * Sk]
            v = v_h[b * Sk:(b + 1) * Sk]
            s = jax.lax.dot_general(q, k, (((1,), (1,)), ((), ())),
                                    preferred_element_type=jnp.float32) * scale
            m = jnp.max(s, axis=-1, keepdims=True)
            p = jnp.exp(s - m)
            p = p * pl.reciprocal(jnp.sum(p, axis=-1, keepdims=True), approx=True)
            o_rows.append(jnp.dot(p, v, preferred_element_type=jnp.float32))
        o_h = jnp.concatenate(o_rows, axis=0)                       # (B*Sq, Dh)
        acc = acc + jnp.dot(o_h, wo[h], preferred_element_type=jnp.float32)
    return acc + bo[...]


# ------------------------------- Pallas kernels -------------------------------

def _encoder_kernel(x_ref, wq, bq, wk, bk, wv, bv, wo, bo, ln1g, ln1b,
                    w1, b1, w2, b2, ln2g, ln2b, fng, fnb,
                    mem_ref, x_buf, *, B, H):
    l = pl.program_id(1)

    @pl.when(l == 0)
    def _():
        x_buf[...] = x_ref[...]

    E = x_buf.shape[-1]
    scale = 1.0 / math.sqrt(E // H)
    x = x_buf[...]

    attn = _attention(x, x, wq, bq, wk, bk, wv, bv, wo, bo, B=B, scale=scale)
    x = _layer_norm(x + attn, ln1g[...], ln1b[...])
    x = _layer_norm(x + _ffn(x, w1, b1, w2, b2), ln2g[...], ln2b[...])
    x_buf[...] = x

    @pl.when(l == pl.num_programs(1) - 1)
    def _():
        mem_ref[...] = _layer_norm(x, fng[...], fnb[...])


def _decoder_kernel(tgt_ref, mem_ref,
                    swq, sbq, swk, sbk, swv, sbv, swo, sbo, ln1g, ln1b,
                    cwq, cbq, cwk, cbk, cwv, cbv, cwo, cbo, ln2g, ln2b,
                    w1, b1, w2, b2, ln3g, ln3b,
                    fng, fnb, fcw, fcb,
                    out_ref, x_buf, *, B, H):
    l = pl.program_id(1)

    @pl.when(l == 0)
    def _():
        x_buf[...] = tgt_ref[...]

    E = x_buf.shape[-1]
    scale = 1.0 / math.sqrt(E // H)
    x = x_buf[...]
    mem = mem_ref[...]

    sa = _attention(x, x, swq, sbq, swk, sbk, swv, sbv, swo, sbo,
                    B=B, scale=scale)
    x = _layer_norm(x + sa, ln1g[...], ln1b[...])

    ca = _attention(x, mem, cwq, cbq, cwk, cbk, cwv, cbv, cwo, cbo,
                    B=B, scale=scale)
    x = _layer_norm(x + ca, ln2g[...], ln2b[...])

    x = _layer_norm(x + _ffn(x, w1, b1, w2, b2), ln3g[...], ln3b[...])
    x_buf[...] = x

    @pl.when(l == pl.num_programs(1) - 1)
    def _():
        y = _layer_norm(x, fng[...], fnb[...])
        out_ref[...] = (jnp.dot(y, fcw[...], preferred_element_type=jnp.float32)
                        + fcb[...])


# ------------------------------ BlockSpec helpers ------------------------------

def _layer_spec(arr):
    """Stacked (Q, L, ...) param: squeeze q & layer dims, index by (q, l)."""
    nd = arr.ndim
    block = (None, None) + tuple(arr.shape[2:])
    return pl.BlockSpec(block, lambda q, l, _n=nd: (q, l) + (0,) * (_n - 2))


def _quant_spec(arr):
    """Stacked (Q, ...) array: squeeze q dim, constant across the layer axis."""
    nd = arr.ndim
    block = (None,) + tuple(arr.shape[1:])
    return pl.BlockSpec(block, lambda q, l, _n=nd: (q,) + (0,) * (_n - 1))


# ------------------------------- stack wrappers --------------------------------

def encoder_stack_fwd(x, p, *, B, H):
    Q, M, E = x.shape
    L = p["wq"].shape[1]
    layer_args = (p["wq"], p["bq"], p["wk"], p["bk"], p["wv"], p["bv"],
                  p["wo"], p["bo"], p["ln1g"], p["ln1b"],
                  p["w1"], p["b1"], p["w2"], p["b2"], p["ln2g"], p["ln2b"])
    quant_args = (p["fng"], p["fnb"])
    in_specs = ([_quant_spec(x)]
                + [_layer_spec(a) for a in layer_args]
                + [_quant_spec(a) for a in quant_args])
    return pl.pallas_call(
        functools.partial(_encoder_kernel, B=B, H=H),
        out_shape=jax.ShapeDtypeStruct((Q, M, E), jnp.float32),
        grid_spec=pltpu.PrefetchScalarGridSpec(
            num_scalar_prefetch=0,
            grid=(Q, L),
            in_specs=in_specs,
            out_specs=pl.BlockSpec((None, M, E), lambda q, l: (q, 0, 0)),
            scratch_shapes=[pltpu.VMEM((M, E), jnp.float32)]),
        compiler_params=pltpu.CompilerParams(
            dimension_semantics=("parallel", "arbitrary")),
    )(x, *layer_args, *quant_args)


def decoder_stack_fwd(tgt, mem, p, *, B, H):
    Q, M, E = tgt.shape
    L = p["s_wq"].shape[1]
    VP = p["fcw"].shape[-1]
    layer_args = (p["s_wq"], p["s_bq"], p["s_wk"], p["s_bk"],
                  p["s_wv"], p["s_bv"], p["s_wo"], p["s_bo"],
                  p["ln1g"], p["ln1b"],
                  p["c_wq"], p["c_bq"], p["c_wk"], p["c_bk"],
                  p["c_wv"], p["c_bv"], p["c_wo"], p["c_bo"],
                  p["ln2g"], p["ln2b"],
                  p["w1"], p["b1"], p["w2"], p["b2"], p["ln3g"], p["ln3b"])
    quant_args = (p["fng"], p["fnb"], p["fcw"], p["fcb"])
    in_specs = ([_quant_spec(tgt), _quant_spec(mem)]
                + [_layer_spec(a) for a in layer_args]
                + [_quant_spec(a) for a in quant_args])
    return pl.pallas_call(
        functools.partial(_decoder_kernel, B=B, H=H),
        out_shape=jax.ShapeDtypeStruct((Q, M, VP), jnp.float32),
        grid_spec=pltpu.PrefetchScalarGridSpec(
            num_scalar_prefetch=0,
            grid=(Q, L),
            in_specs=in_specs,
            out_specs=pl.BlockSpec((None, M, VP), lambda q, l: (q, 0, 0)),
            scratch_shapes=[pltpu.VMEM((M, E), jnp.float32)]),
        compiler_params=pltpu.CompilerParams(
            dimension_semantics=("parallel", "arbitrary")),
    )(tgt, mem, *layer_args, *quant_args)


# --------------------------------- model forward --------------------------------

def nar_transformer_fwd(params, phonemes, acoustic_prompt, prev_quantizer_tokens,
                        *, num_heads, vocab_size):
    del acoustic_prompt  # reference embeds it but never uses the result (dead gather dropped)
    S, B = phonemes.shape
    emb = params["phoneme_emb"]
    E = emb.shape[1]
    Q = params["acoustic_embs"].shape[0]

    # Embedding lookups are data-dependent gathers -> plain-JAX glue.
    phoneme_embeds = jnp.take(emb, phonemes, axis=0)                 # (S, B, E)

    xs = [phoneme_embeds]
    for i in range(1, Q):
        prev = jnp.take(params["acoustic_embs"][i - 1],
                        prev_quantizer_tokens[i - 1], axis=0)        # (S, B, E)
        xs.append(phoneme_embeds + prev)
    x = jnp.stack(xs, axis=0)                                         # (Q, S, B, E)
    x = x.transpose(0, 2, 1, 3).reshape(Q, B * S, E)                  # batch-major slabs

    mem = encoder_stack_fwd(x, params["enc"], B=B, H=num_heads)       # (Q, B*S, E)
    logits_p = decoder_stack_fwd(x, mem, params["dec"], B=B, H=num_heads)  # (Q, B*S, VP)

    V = vocab_size
    logits = logits_p[:, :, :V].reshape(Q, B, S, V).transpose(0, 2, 1, 3)  # (Q, S, B, V)
    return [logits[i] for i in range(Q)]


# ------------------------- deterministic param init ------------------------

class ParamGen:
    def __init__(self, key):
        self._key = key

    def normal(self, shape, scale=0.02):
        self._key, sub = jax.random.split(self._key)
        return scale * jax.random.normal(sub, shape, jnp.float32)


def _init_attn(pg, Q, L, H, E):
    Dh = E // H
    z = lambda s: jnp.zeros(s, jnp.float32)
    return dict(
        wq=pg.normal((Q, L, H, E, Dh)), bq=z((Q, L, H, 1, Dh)),
        wk=pg.normal((Q, L, H, E, Dh)), bk=z((Q, L, H, 1, Dh)),
        wv=pg.normal((Q, L, H, E, Dh)), bv=z((Q, L, H, 1, Dh)),
        wo=pg.normal((Q, L, H, Dh, E)), bo=z((Q, L, 1, E)),
    )


def init_params(key, *, embed, heads, num_layers, num_dec_layers, num_q, vocab, ff):
    pg = ParamGen(key)
    E, H, F, Q, V = embed, heads, ff, num_q, vocab
    VP = ((V + 127) // 128) * 128
    Le, Ld = num_layers, num_dec_layers
    ones = lambda s: jnp.ones(s, jnp.float32)
    z = lambda s: jnp.zeros(s, jnp.float32)

    sa = _init_attn(pg, Q, Le, H, E)
    enc = dict(
        wq=sa["wq"], bq=sa["bq"], wk=sa["wk"], bk=sa["bk"],
        wv=sa["wv"], bv=sa["bv"], wo=sa["wo"], bo=sa["bo"],
        ln1g=ones((Q, Le, 1, E)), ln1b=z((Q, Le, 1, E)),
        w1=pg.normal((Q, Le, E, F)), b1=z((Q, Le, 1, F)),
        w2=pg.normal((Q, Le, F, E)), b2=z((Q, Le, 1, E)),
        ln2g=ones((Q, Le, 1, E)), ln2b=z((Q, Le, 1, E)),
        fng=ones((Q, 1, E)), fnb=z((Q, 1, E)),
    )

    sad = _init_attn(pg, Q, Ld, H, E)
    cad = _init_attn(pg, Q, Ld, H, E)
    fcw = jnp.pad(pg.normal((Q, E, V)), ((0, 0), (0, 0), (0, VP - V)))
    dec = dict(
        s_wq=sad["wq"], s_bq=sad["bq"], s_wk=sad["wk"], s_bk=sad["bk"],
        s_wv=sad["wv"], s_bv=sad["bv"], s_wo=sad["wo"], s_bo=sad["bo"],
        ln1g=ones((Q, Ld, 1, E)), ln1b=z((Q, Ld, 1, E)),
        c_wq=cad["wq"], c_bq=cad["bq"], c_wk=cad["wk"], c_bk=cad["bk"],
        c_wv=cad["wv"], c_bv=cad["bv"], c_wo=cad["wo"], c_bo=cad["bo"],
        ln2g=ones((Q, Ld, 1, E)), ln2b=z((Q, Ld, 1, E)),
        w1=pg.normal((Q, Ld, E, F)), b1=z((Q, Ld, 1, F)),
        w2=pg.normal((Q, Ld, F, E)), b2=z((Q, Ld, 1, E)),
        ln3g=ones((Q, Ld, 1, E)), ln3b=z((Q, Ld, 1, E)),
        fng=ones((Q, 1, E)), fnb=z((Q, 1, E)),
        fcw=fcw, fcb=z((Q, 1, VP)),
    )

    return dict(
        phoneme_emb=pg.normal((V, E)),
        acoustic_embs=pg.normal((Q, V, E)),
        enc=enc,
        dec=dec,
    )


# ----------------------------------- main -----------------------------------

if __name__ == "__main__":
    EMBED, HEADS, LAYERS, QUANT, VOCAB = 32, 4, 1, 2, 50
    FF = 2048         # nn.Transformer default dim_feedforward
    DEC_LAYERS = 6    # nn.Transformer default num_decoder_layers
    S, B = 8, 2

    params = init_params(jax.random.PRNGKey(42), embed=EMBED, heads=HEADS,
                         num_layers=LAYERS, num_dec_layers=DEC_LAYERS,
                         num_q=QUANT, vocab=VOCAB, ff=FF)

    k1, k2, k3 = jax.random.split(jax.random.PRNGKey(0), 3)
    phonemes = jax.random.randint(k1, (S, B), 0, VOCAB, dtype=jnp.int32)
    acoustic_prompt = jax.random.randint(k2, (S, B), 0, VOCAB, dtype=jnp.int32)
    prev_quantizer_tokens = jax.random.randint(k3, (QUANT, S, B), 0, VOCAB,
                                               dtype=jnp.int32)

    fwd = jax.jit(functools.partial(nar_transformer_fwd,
                                    num_heads=HEADS, vocab_size=VOCAB))
    outputs = fwd(params, phonemes, acoustic_prompt, prev_quantizer_tokens)
    outputs = jax.block_until_ready(outputs)

    assert len(outputs) == QUANT
    for o in outputs:
        assert o.shape == (S, B, VOCAB) and o.dtype == jnp.float32
        assert bool(jnp.all(jnp.isfinite(o)))
    print("KERNEL_OK")
</pallas_src>

<mosaic_0001>
module attributes {stable_mosaic.version = 11 : i64} {
  func.func @_encoder_kernel(%arg0: i32, %arg1: i32, %arg2: memref<1x16x32xf32, #tpu.memory_space<vmem>>, %arg3: memref<1x1x4x32x8xf32, #tpu.memory_space<vmem>>, %arg4: memref<1x1x4x1x8xf32, #tpu.memory_space<vmem>>, %arg5: memref<1x1x4x32x8xf32, #tpu.memory_space<vmem>>, %arg6: memref<1x1x4x1x8xf32, #tpu.memory_space<vmem>>, %arg7: memref<1x1x4x32x8xf32, #tpu.memory_space<vmem>>, %arg8: memref<1x1x4x1x8xf32, #tpu.memory_space<vmem>>, %arg9: memref<1x1x4x8x32xf32, #tpu.memory_space<vmem>>, %arg10: memref<1x1x1x32xf32, #tpu.memory_space<vmem>>, %arg11: memref<1x1x1x32xf32, #tpu.memory_space<vmem>>, %arg12: memref<1x1x1x32xf32, #tpu.memory_space<vmem>>, %arg13: memref<1x1x32x2048xf32, #tpu.memory_space<vmem>>, %arg14: memref<1x1x1x2048xf32, #tpu.memory_space<vmem>>, %arg15: memref<1x1x2048x32xf32, #tpu.memory_space<vmem>>, %arg16: memref<1x1x1x32xf32, #tpu.memory_space<vmem>>, %arg17: memref<1x1x1x32xf32, #tpu.memory_space<vmem>>, %arg18: memref<1x1x1x32xf32, #tpu.memory_space<vmem>>, %arg19: memref<1x1x32xf32, #tpu.memory_space<vmem>>, %arg20: memref<1x1x32xf32, #tpu.memory_space<vmem>>, %arg21: memref<1x16x32xf32, #tpu.memory_space<vmem>>, %arg22: memref<16x32xf32, #tpu.memory_space<vmem>>) attributes {dimension_semantics = [#tpu.dimension_semantics<parallel>, #tpu.dimension_semantics<arbitrary>], iteration_bounds = array<i64: 2, 1>, scalar_prefetch = 0 : i64, scratch_operands = 1 : i64, tpu.core_type = #tpu.core_type<tc>, window_params = [{transform_indices = @transform_0, window_bounds = array<i64: 1, 16, 32>}, {transform_indices = @transform_1, window_bounds = array<i64: 1, 1, 4, 32, 8>}, {transform_indices = @transform_2, window_bounds = array<i64: 1, 1, 4, 1, 8>}, {transform_indices = @transform_3, window_bounds = array<i64: 1, 1, 4, 32, 8>}, {transform_indices = @transform_4, window_bounds = array<i64: 1, 1, 4, 1, 8>}, {transform_indices = @transform_5, window_bounds = array<i64: 1, 1, 4, 32, 8>}, {transform_indices = @transform_6, window_bounds = array<i64: 1, 1, 4, 1, 8>}, {transform_indices = @transform_7, window_bounds = array<i64: 1, 1, 4, 8, 32>}, {transform_indices = @transform_8, window_bounds = array<i64: 1, 1, 1, 32>}, {transform_indices = @transform_9, window_bounds = array<i64: 1, 1, 1, 32>}, {transform_indices = @transform_10, window_bounds = array<i64: 1, 1, 1, 32>}, {transform_indices = @transform_11, window_bounds = array<i64: 1, 1, 32, 2048>}, {transform_indices = @transform_12, window_bounds = array<i64: 1, 1, 1, 2048>}, {transform_indices = @transform_13, window_bounds = array<i64: 1, 1, 2048, 32>}, {transform_indices = @transform_14, window_bounds = array<i64: 1, 1, 1, 32>}, {transform_indices = @transform_15, window_bounds = array<i64: 1, 1, 1, 32>}, {transform_indices = @transform_16, window_bounds = array<i64: 1, 1, 1, 32>}, {transform_indices = @transform_17, window_bounds = array<i64: 1, 1, 32>}, {transform_indices = @transform_18, window_bounds = array<i64: 1, 1, 32>}, {transform_indices = @transform_19, window_bounds = array<i64: 1, 16, 32>}]} {
    %c0_i32 = arith.constant 0 : i32
    %0 = arith.cmpi eq, %arg1, %c0_i32 : i32
    %1 = arith.extui %0 : i1 to i32
    %c0_i32_0 = arith.constant 0 : i32
    %2 = arith.cmpi ne, %1, %c0_i32_0 : i32
    scf.if %2 {
      %c0_248 = arith.constant 0 : index
      %c0_249 = arith.constant 0 : index
      %c0_250 = arith.constant 0 : index
      %323 = vector.load %arg2[%c0_248, %c0_249, %c0_250] : memref<1x16x32xf32, #tpu.memory_space<vmem>>, vector<1x16x32xf32>
      %324 = vector.shape_cast %323 : vector<1x16x32xf32> to vector<16x32xf32>
      %c0_251 = arith.constant 0 : index
      %c0_252 = arith.constant 0 : index
      %325 = vector.load %arg22[%c0_251, %c0_252] : memref<16x32xf32, #tpu.memory_space<vmem>>, vector<16x32xf32>
      tpu.vector_store %arg22[%c0_251, %c0_252], %324 {strides = array<i32>} : memref<16x32xf32, #tpu.memory_space<vmem>>, vector<16x32xf32>,
    } else {
    }
    %c0 = arith.constant 0 : index
    %c0_1 = arith.constant 0 : index
    %3 = vector.load %arg22[%c0, %c0_1] : memref<16x32xf32, #tpu.memory_space<vmem>>, vector<16x32xf32>
    %cst = arith.constant 0.000000e+00 : f32
    %4 = vector.broadcast %cst : f32 to vector<16x32xf32>
    %c0_2 = arith.constant 0 : index
    %c0_3 = arith.constant 0 : index
    %c0_4 = arith.constant 0 : index
    %c0_5 = arith.constant 0 : index
    %c0_6 = arith.constant 0 : index
    %5 = vector.load %arg3[%c0_2, %c0_3, %c0_4, %c0_5, %c0_6] : memref<1x1x4x32x8xf32, #tpu.memory_space<vmem>>, vector<1x1x1x32x8xf32>
    %6 = vector.shape_cast %5 : vector<1x1x1x32x8xf32> to vector<32x8xf32>
    %cst_7 = arith.constant dense<0.000000e+00> : vector<16x8xf32>
    %7 = tpu.matmul %3, %6, %cst_7 {dimension_numbers = #tpu.dot_dimension_numbers<[1], [0], [0], [1], [0, 0, 1, 1], [], []>} : vector<16x32xf32>, vector<32x8xf32>, vector<16x8xf32> -> vector<16x8xf32>
    %c0_8 = arith.constant 0 : index
    %c0_9 = arith.constant 0 : index
    %c0_10 = arith.constant 0 : index
    %c0_11 = arith.constant 0 : index
    %c0_12 = arith.constant 0 : index
    %8 = vector.load %arg4[%c0_8, %c0_9, %c0_10, %c0_11, %c0_12] : memref<1x1x4x1x8xf32, #tpu.memory_space<vmem>>, vector<1x1x1x1x8xf32>
    %9 = vector.shape_cast %8 : vector<1x1x1x1x8xf32> to vector<1x8xf32>
    %10 = vector.broadcast %9 : vector<1x8xf32> to vector<16x8xf32>
    %11 = arith.addf %7, %10 : vector<16x8xf32>
    %c0_13 = arith.constant 0 : index
    %c0_14 = arith.constant 0 : index
    %c0_15 = arith.constant 0 : index
    %c0_16 = arith.constant 0 : index
    %c0_17 = arith.constant 0 : index
    %12 = vector.load %arg5[%c0_13, %c0_14, %c0_15, %c0_16, %c0_17] : memref<1x1x4x32x8xf32, #tpu.memory_space<vmem>>, vector<1x1x1x32x8xf32>
    %13 = vector.shape_cast %12 : vector<1x1x1x32x8xf32> to vector<32x8xf32>
    %cst_18 = arith.constant dense<0.000000e+00> : vector<16x8xf32>
    %14 = tpu.matmul %3, %13, %cst_18 {dimension_numbers = #tpu.dot_dimension_numbers<[1], [0], [0], [1], [0, 0, 1, 1], [], []>} : vector<16x32xf32>, vector<32x8xf32>, vector<16x8xf32> -> vector<16x8xf32>
    %c0_19 = arith.constant 0 : index
    %c0_20 = arith.constant 0 : index
    %c0_21 = arith.constant 0 : index
    %c0_22 = arith.constant 0 : index
    %c0_23 = arith.constant 0 : index
    %15 = vector.load %arg6[%c0_19, %c0_20, %c0_21, %c0_22, %c0_23] : memref<1x1x4x1x8xf32, #tpu.memory_space<vmem>>, vector<1x1x1x1x8xf32>
    %16 = vector.shape_cast %15 : vector<1x1x1x1x8xf32> to vector<1x8xf32>
    %17 = vector.broadcast %16 : vector<1x8xf32> to vector<16x8xf32>
    %18 = arith.addf %14, %17 : vector<16x8xf32>
    %c0_24 = arith.constant 0 : index
    %c0_25 = arith.constant 0 : index
    %c0_26 = arith.constant 0 : index
    %c0_27 = arith.constant 0 : index
    %c0_28 = arith.constant 0 : index
    %19 = vector.load %arg7[%c0_24, %c0_25, %c0_26, %c0_27, %c0_28] : memref<1x1x4x32x8xf32, #tpu.memory_space<vmem>>, vector<1x1x1x32x8xf32>
    %20 = vector.shape_cast %19 : vector<1x1x1x32x8xf32> to vector<32x8xf32>
    %cst_29 = arith.constant dense<0.000000e+00> : vector<16x8xf32>
    %21 = tpu.matmul %3, %20, %cst_29 {dimension_numbers = #tpu.dot_dimension_numbers<[1], [0], [0], [1], [0, 0, 1, 1], [], []>} : vector<16x32xf32>, vector<32x8xf32>, vector<16x8xf32> -> vector<16x8xf32>
    %c0_30 = arith.constant 0 : index
    %c0_31 = arith.constant 0 : index
    %c0_32 = arith.constant 0 : index
    %c0_33 = arith.constant 0 : index
    %c0_34 = arith.constant 0 : index
    %22 = vector.load %arg8[%c0_30, %c0_31, %c0_32, %c0_33, %c0_34] : memref<1x1x4x1x8xf32, #tpu.memory_space<vmem>>, vector<1x1x1x1x8xf32>
    %23 = vector.shape_cast %22 : vector<1x1x1x1x8xf32> to vector<1x8xf32>
    %24 = vector.broadcast %23 : vector<1x8xf32> to vector<16x8xf32>
    %25 = arith.addf %21, %24 : vector<16x8xf32>
    %26 = vector.extract_strided_slice %11 {offsets = [0, 0], sizes = [8, 8], strides = [1, 1]} : vector<16x8xf32> to vector<8x8xf32>
    %27 = vector.extract_strided_slice %18 {offsets = [0, 0], sizes = [8, 8], strides = [1, 1]} : vector<16x8xf32> to vector<8x8xf32>
    %28 = vector.extract_strided_slice %25 {offsets = [0, 0], sizes = [8, 8], strides = [1, 1]} : vector<16x8xf32> to vector<8x8xf32>
    %cst_35 = arith.constant dense<0.000000e+00> : vector<8x8xf32>
    %29 = tpu.matmul %26, %27, %cst_35 {dimension_numbers = #tpu.dot_dimension_numbers<[1], [1], [0], [0], [0, 0, 1, 0], [], []>} : vector<8x8xf32>, vector<8x8xf32>, vector<8x8xf32> -> vector<8x8xf32>
    %cst_36 = arith.constant 0.353553385 : f32
    %30 = vector.broadcast %cst_36 : f32 to vector<8x8xf32>
    %31 = arith.mulf %29, %30 : vector<8x8xf32>
    %cst_37 = arith.constant dense<0xFF800000> : vector<8xf32>
    %32 = vector.multi_reduction <maximumf>, %31, %cst_37 [1] : vector<8x8xf32> to vector<8xf32>
    %33 = vector.shape_cast %32 : vector<8xf32> to vector<8x1xf32>
    %34 = vector.broadcast %33 : vector<8x1xf32> to vector<8x8xf32>
    %35 = arith.subf %31, %34 : vector<8x8xf32>
    %36 = math.exp %35 : vector<8x8xf32>
    %cst_38 = arith.constant dense<0.000000e+00> : vector<8xf32>
    %37 = vector.multi_reduction <add>, %36, %cst_38 [1] : vector<8x8xf32> to vector<8xf32>
    %38 = vector.shape_cast %37 : vector<8xf32> to vector<8x1xf32>
    %39 = tpu.reciprocal %38 {approx = true} : vector<8x1xf32> -> vector<8x1xf32>
    %40 = vector.broadcast %39 : vector<8x1xf32> to vector<8x8xf32>
    %41 = arith.mulf %36, %40 : vector<8x8xf32>
    %cst_39 = arith.constant dense<0.000000e+00> : vector<8x8xf32>
    %42 = tpu.matmul %41, %28, %cst_39 {dimension_numbers = #tpu.dot_dimension_numbers<[1], [0], [0], [1], [0, 0, 1, 1], [], []>} : vector<8x8xf32>, vector<8x8xf32>, vector<8x8xf32> -> vector<8x8xf32>
    %43 = vector.extract_strided_slice %11 {offsets = [8, 0], sizes = [8, 8], strides = [1, 1]} : vector<16x8xf32> to vector<8x8xf32>
    %44 = vector.extract_strided_slice %18 {offsets = [8, 0], sizes = [8, 8], strides = [1, 1]} : vector<16x8xf32> to vector<8x8xf32>
    %45 = vector.extract_strided_slice %25 {offsets = [8, 0], sizes = [8, 8], strides = [1, 1]} : vector<16x8xf32> to vector<8x8xf32>
    %cst_40 = arith.constant dense<0.000000e+00> : vector<8x8xf32>
    %46 = tpu.matmul %43, %44, %cst_40 {dimension_numbers = #tpu.dot_dimension_numbers<[1], [1], [0], [0], [0, 0, 1, 0], [], []>} : vector<8x8xf32>, vector<8x8xf32>, vector<8x8xf32> -> vector<8x8xf32>
    %cst_41 = arith.constant 0.353553385 : f32
    %47 = vector.broadcast %cst_41 : f32 to vector<8x8xf32>
    %48 = arith.mulf %46, %47 : vector<8x8xf32>
    %cst_42 = arith.constant dense<0xFF800000> : vector<8xf32>
    %49 = vector.multi_reduction <maximumf>, %48, %cst_42 [1] : vector<8x8xf32> to vector<8xf32>
    %50 = vector.shape_cast %49 : vector<8xf32> to vector<8x1xf32>
    %51 = vector.broadcast %50 : vector<8x1xf32> to vector<8x8xf32>
    %52 = arith.subf %48, %51 : vector<8x8xf32>
    %53 = math.exp %52 : vector<8x8xf32>
    %cst_43 = arith.constant dense<0.000000e+00> : vector<8xf32>
    %54 = vector.multi_reduction <add>, %53, %cst_43 [1] : vector<8x8xf32> to vector<8xf32>
    %55 = vector.shape_cast %54 : vector<8xf32> to vector<8x1xf32>
    %56 = tpu.reciprocal %55 {approx = true} : vector<8x1xf32> -> vector<8x1xf32>
    %57 = vector.broadcast %56 : vector<8x1xf32> to vector<8x8xf32>
    %58 = arith.mulf %53, %57 : vector<8x8xf32>
    %cst_44 = arith.constant dense<0.000000e+00> : vector<8x8xf32>
    %59 = tpu.matmul %58, %45, %cst_44 {dimension_numbers = #tpu.dot_dimension_numbers<[1], [0], [0], [1], [0, 0, 1, 1], [], []>} : vector<8x8xf32>, vector<8x8xf32>, vector<8x8xf32> -> vector<8x8xf32>
    %60 = tpu.concatenate %42, %59 in 0 : vector<8x8xf32>, vector<8x8xf32> -> vector<16x8xf32>
    %c0_45 = arith.constant 0 : index
    %c0_46 = arith.constant 0 : index
    %c0_47 = arith.constant 0 : index
    %c0_48 = arith.constant 0 : index
    %c0_49 = arith.constant 0 : index
    %61 = vector.load %arg9[%c0_45, %c0_46, %c0_47, %c0_48, %c0_49] : memref<1x1x4x8x32xf32, #tpu.memory_space<vmem>>, vector<1x1x1x8x32xf32>
    %62 = vector.shape_cast %61 : vector<1x1x1x8x32xf32> to vector<8x32xf32>
    %cst_50 = arith.constant dense<0.000000e+00> : vector<16x32xf32>
    %63 = tpu.matmul %60, %62, %cst_50 {dimension_numbers = #tpu.dot_dimension_numbers<[1], [0], [0], [1], [0, 0, 1, 1], [], []>} : vector<16x8xf32>, vector<8x32xf32>, vector<16x32xf32> -> vector<16x32xf32>
    %64 = arith.addf %4, %63 : vector<16x32xf32>
    %c0_51 = arith.constant 0 : index
    %c0_52 = arith.constant 0 : index
    %c1 = arith.constant 1 : index
    %c0_53 = arith.constant 0 : index
    %c0_54 = arith.constant 0 : index
    %65 = vector.load %arg3[%c0_51, %c0_52, %c1, %c0_53, %c0_54] : memref<1x1x4x32x8xf32, #tpu.memory_space<vmem>>, vector<1x1x1x32x8xf32>
    %66 = vector.shape_cast %65 : vector<1x1x1x32x8xf32> to vector<32x8xf32>
    %cst_55 = arith.constant dense<0.000000e+00> : vector<16x8xf32>
    %67 = tpu.matmul %3, %66, %cst_55 {dimension_numbers = #tpu.dot_dimension_numbers<[1], [0], [0], [1], [0, 0, 1, 1], [], []>} : vector<16x32xf32>, vector<32x8xf32>, vector<16x8xf32> -> vector<16x8xf32>
    %c0_56 = arith.constant 0 : index
    %c0_57 = arith.constant 0 : index
    %c1_58 = arith.constant 1 : index
    %c0_59 = arith.constant 0 : index
    %c0_60 = arith.constant 0 : index
    %68 = vector.load %arg4[%c0_56, %c0_57, %c1_58, %c0_59, %c0_60] : memref<1x1x4x1x8xf32, #tpu.memory_space<vmem>>, vector<1x1x1x1x8xf32>
    %69 = vector.shape_cast %68 : vector<1x1x1x1x8xf32> to vector<1x8xf32>
    %70 = vector.broadcast %69 : vector<1x8xf32> to vector<16x8xf32>
    %71 = arith.addf %67, %70 : vector<16x8xf32>
    %c0_61 = arith.constant 0 : index
    %c0_62 = arith.constant 0 : index
    %c1_63 = arith.constant 1 : index
    %c0_64 = arith.constant 0 : index
    %c0_65 = arith.constant 0 : index
    %72 = vector.load %arg5[%c0_61, %c0_62, %c1_63, %c0_64, %c0_65] : memref<1x1x4x32x8xf32, #tpu.memory_space<vmem>>, vector<1x1x1x32x8xf32>
    %73 = vector.shape_cast %72 : vector<1x1x1x32x8xf32> to vector<32x8xf32>
    %cst_66 = arith.constant dense<0.000000e+00> : vector<16x8xf32>
    %74 = tpu.matmul %3, %73, %cst_66 {dimension_numbers = #tpu.dot_dimension_numbers<[1], [0], [0], [1], [0, 0, 1, 1], [], []>} : vector<16x32xf32>, vector<32x8xf32>, vector<16x8xf32> -> vector<16x8xf32>
    %c0_67 = arith.constant 0 : index
    %c0_68 = arith.constant 0 : index
    %c1_69 = arith.constant 1 : index
    %c0_70 = arith.constant 0 : index
    %c0_71 = arith.constant 0 : index
    %75 = vector.load %arg6[%c0_67, %c0_68, %c1_69, %c0_70, %c0_71] : memref<1x1x4x1x8xf32, #tpu.memory_space<vmem>>, vector<1x1x1x1x8xf32>
    %76 = vector.shape_cast %75 : vector<1x1x1x1x8xf32> to vector<1x8xf32>
    %77 = vector.broadcast %76 : vector<1x8xf32> to vector<16x8xf32>
    %78 = arith.addf %74, %77 : vector<16x8xf32>
    %c0_72 = arith.constant 0 : index
    %c0_73 = arith.constant 0 : index
    %c1_74 = arith.constant 1 : index
    %c0_75 = arith.constant 0 : index
    %c0_76 = arith.constant 0 : index
    %79 = vector.load %arg7[%c0_72, %c0_73, %c1_74, %c0_75, %c0_76] : memref<1x1x4x32x8xf32, #tpu.memory_space<vmem>>, vector<1x1x1x32x8xf32>
    %80 = vector.shape_cast %79 : vector<1x1x1x32x8xf32> to vector<32x8xf32>
    %cst_77 = arith.constant dense<0.000000e+00> : vector<16x8xf32>
    %81 = tpu.matmul %3, %80, %cst_77 {dimension_numbers = #tpu.dot_dimension_numbers<[1], [0], [0], [1], [0, 0, 1, 1], [], []>} : vector<16x32xf32>, vector<32x8xf32>, vector<16x8xf32> -> vector<16x8xf32>
    %c0_78 = arith.constant 0 : index
    %c0_79 = arith.constant 0 : index
    %c1_80 = arith.constant 1 : index
    %c0_81 = arith.constant 0 : index
    %c0_82 = arith.constant 0 : index
    %82 = vector.load %arg8[%c0_78, %c0_79, %c1_80, %c0_81, %c0_82] : memref<1x1x4x1x8xf32, #tpu.memory_space<vmem>>, vector<1x1x1x1x8xf32>
    %83 = vector.shape_cast %82 : vector<1x1x1x1x8xf32> to vector<1x8xf32>
    %84 = vector.broadcast %83 : vector<1x8xf32> to vector<16x8xf32>
    %85 = arith.addf %81, %84 : vector<16x8xf32>
    %86 = vector.extract_strided_slice %71 {offsets = [0, 0], sizes = [8, 8], strides = [1, 1]} : vector<16x8xf32> to vector<8x8xf32>
    %87 = vector.extract_strided_slice %78 {offsets = [0, 0], sizes = [8, 8], strides = [1, 1]} : vector<16x8xf32> to vector<8x8xf32>
    %88 = vector.extract_strided_slice %85 {offsets = [0, 0], sizes = [8, 8], strides = [1, 1]} : vector<16x8xf32> to vector<8x8xf32>
    %cst_83 = arith.constant dense<0.000000e+00> : vector<8x8xf32>
    %89 = tpu.matmul %86, %87, %cst_83 {dimension_numbers = #tpu.dot_dimension_numbers<[1], [1], [0], [0], [0, 0, 1, 0], [], []>} : vector<8x8xf32>, vector<8x8xf32>, vector<8x8xf32> -> vector<8x8xf32>
    %cst_84 = arith.constant 0.353553385 : f32
    %90 = vector.broadcast %cst_84 : f32 to vector<8x8xf32>
    %91 = arith.mulf %89, %90 : vector<8x8xf32>
    %cst_85 = arith.constant dense<0xFF800000> : vector<8xf32>
    %92 = vector.multi_reduction <maximumf>, %91, %cst_85 [1] : vector<8x8xf32> to vector<8xf32>
    %93 = vector.shape_cast %92 : vector<8xf32> to vector<8x1xf32>
    %94 = vector.broadcast %93 : vector<8x1xf32> to vector<8x8xf32>
    %95 = arith.subf %91, %94 : vector<8x8xf32>
    %96 = math.exp %95 : vector<8x8xf32>
    %cst_86 = arith.constant dense<0.000000e+00> : vector<8xf32>
    %97 = vector.multi_reduction <add>, %96, %cst_86 [1] : vector<8x8xf32> to vector<8xf32>
    %98 = vector.shape_cast %97 : vector<8xf32> to vector<8x1xf32>
    %99 = tpu.reciprocal %98 {approx = true} : vector<8x1xf32> -> vector<8x1xf32>
    %100 = vector.broadcast %99 : vector<8x1xf32> to vector<8x8xf32>
    %101 = arith.mulf %96, %100 : vector<8x8xf32>
    %cst_87 = arith.constant dense<0.000000e+00> : vector<8x8xf32>
    %102 = tpu.matmul %101, %88, %cst_87 {dimension_numbers = #tpu.dot_dimension_numbers<[1], [0], [0], [1], [0, 0, 1, 1], [], []>} : vector<8x8xf32>, vector<8x8xf32>, vector<8x8xf32> -> vector<8x8xf32>
    %103 = vector.extract_strided_slice %71 {offsets = [8, 0], sizes = [8, 8], strides = [1, 1]} : vector<16x8xf32> to vector<8x8xf32>
    %104 = vector.extract_strided_slice %78 {offsets = [8, 0], sizes = [8, 8], strides = [1, 1]} : vector<16x8xf32> to vector<8x8xf32>
    %105 = vector.extract_strided_slice %85 {offsets = [8, 0], sizes = [8, 8], strides = [1, 1]} : vector<16x8xf32> to vector<8x8xf32>
    %cst_88 = arith.constant dense<0.000000e+00> : vector<8x8xf32>
    %106 = tpu.matmul %103, %104, %cst_88 {dimension_numbers = #tpu.dot_dimension_numbers<[1], [1], [0], [0], [0, 0, 1, 0], [], []>} : vector<8x8xf32>, vector<8x8xf32>, vector<8x8xf32> -> vector<8x8xf32>
    %cst_89 = arith.constant 0.353553385 : f32
    %107 = vector.broadcast %cst_89 : f32 to vector<8x8xf32>
    %108 = arith.mulf %106, %107 : vector<8x8xf32>
    %cst_90 = arith.constant dense<0xFF800000> : vector<8xf32>
    %109 = vector.multi_reduction <maximumf>, %108, %cst_90 [1] : vector<8x8xf32> to vector<8xf32>
    %110 = vector.shape_cast %109 : vector<8xf32> to vector<8x1xf32>
    %111 = vector.broadcast %110 : vector<8x1xf32> to vector<8x8xf32>
    %112 = arith.subf %108, %111 : vector<8x8xf32>
    %113 = math.exp %112 : vector<8x8xf32>
    %cst_91 = arith.constant dense<0.000000e+00> : vector<8xf32>
    %114 = vector.multi_reduction <add>, %113, %cst_91 [1] : vector<8x8xf32> to vector<8xf32>
    %115 = vector.shape_cast %114 : vector<8xf32> to vector<8x1xf32>
    %116 = tpu.reciprocal %115 {approx = true} : vector<8x1xf32> -> vector<8x1xf32>
    %117 = vector.broadcast %116 : vector<8x1xf32> to vector<8x8xf32>
    %118 = arith.mulf %113, %117 : vector<8x8xf32>
    %cst_92 = arith.constant dense<0.000000e+00> : vector<8x8xf32>
    %119 = tpu.matmul %118, %105, %cst_92 {dimension_numbers = #tpu.dot_dimension_numbers<[1], [0], [0], [1], [0, 0, 1, 1], [], []>} : vector<8x8xf32>, vector<8x8xf32>, vector<8x8xf32> -> vector<8x8xf32>
    %120 = tpu.concatenate %102, %119 in 0 : vector<8x8xf32>, vector<8x8xf32> -> vector<16x8xf32>
    %c0_93 = arith.constant 0 : index
    %c0_94 = arith.constant 0 : index
    %c1_95 = arith.constant 1 : index
    %c0_96 = arith.constant 0 : index
    %c0_97 = arith.constant 0 : index
    %121 = vector.load %arg9[%c0_93, %c0_94, %c1_95, %c0_96, %c0_97] : memref<1x1x4x8x32xf32, #tpu.memory_space<vmem>>, vector<1x1x1x8x32xf32>
    %122 = vector.shape_cast %121 : vector<1x1x1x8x32xf32> to vector<8x32xf32>
    %cst_98 = arith.constant dense<0.000000e+00> : vector<16x32xf32>
    %123 = tpu.matmul %120, %122, %cst_98 {dimension_numbers = #tpu.dot_dimension_numbers<[1], [0], [0], [1], [0, 0, 1, 1], [], []>} : vector<16x8xf32>, vector<8x32xf32>, vector<16x32xf32> -> vector<16x32xf32>
    %124 = arith.addf %64, %123 : vector<16x32xf32>
    %c0_99 = arith.constant 0 : index
    %c0_100 = arith.constant 0 : index
    %c2 = arith.constant 2 : index
    %c0_101 = arith.constant 0 : index
    %c0_102 = arith.constant 0 : index
    %125 = vector.load %arg3[%c0_99, %c0_100, %c2, %c0_101, %c0_102] : memref<1x1x4x32x8xf32, #tpu.memory_space<vmem>>, vector<1x1x1x32x8xf32>
    %126 = vector.shape_cast %125 : vector<1x1x1x32x8xf32> to vector<32x8xf32>
    %cst_103 = arith.constant dense<0.000000e+00> : vector<16x8xf32>
    %127 = tpu.matmul %3, %126, %cst_103 {dimension_numbers = #tpu.dot_dimension_numbers<[1], [0], [0], [1], [0, 0, 1, 1], [], []>} : vector<16x32xf32>, vector<32x8xf32>, vector<16x8xf32> -> vector<16x8xf32>
    %c0_104 = arith.constant 0 : index
    %c0_105 = arith.constant 0 : index
    %c2_106 = arith.constant 2 : index
    %c0_107 = arith.constant 0 : index
    %c0_108 = arith.constant 0 : index
    %128 = vector.load %arg4[%c0_104, %c0_105, %c2_106, %c0_107, %c0_108] : memref<1x1x4x1x8xf32, #tpu.memory_space<vmem>>, vector<1x1x1x1x8xf32>
    %129 = vector.shape_cast %128 : vector<1x1x1x1x8xf32> to vector<1x8xf32>
    %130 = vector.broadcast %129 : vector<1x8xf32> to vector<16x8xf32>
    %131 = arith.addf %127, %130 : vector<16x8xf32>
    %c0_109 = arith.constant 0 : index
    %c0_110 = arith.constant 0 : index
    %c2_111 = arith.constant 2 : index
    %c0_112 = arith.constant 0 : index
    %c0_113 = arith.constant 0 : index
    %132 = vector.load %arg5[%c0_109, %c0_110, %c2_111, %c0_112, %c0_113] : memref<1x1x4x32x8xf32, #tpu.memory_space<vmem>>, vector<1x1x1x32x8xf32>
    %133 = vector.shape_cast %132 : vector<1x1x1x32x8xf32> to vector<32x8xf32>
    %cst_114 = arith.constant dense<0.000000e+00> : vector<16x8xf32>
    %134 = tpu.matmul %3, %133, %cst_114 {dimension_numbers = #tpu.dot_dimension_numbers<[1], [0], [0], [1], [0, 0, 1, 1], [], []>} : vector<16x32xf32>, vector<32x8xf32>, vector<16x8xf32> -> vector<16x8xf32>
    %c0_115 = arith.constant 0 : index
    %c0_116 = arith.constant 0 : index
    %c2_117 = arith.constant 2 : index
    %c0_118 = arith.constant 0 : index
    %c0_119 = arith.constant 0 : index
    %135 = vector.load %arg6[%c0_115, %c0_116, %c2_117, %c0_118, %c0_119] : memref<1x1x4x1x8xf32, #tpu.memory_space<vmem>>, vector<1x1x1x1x8xf32>
    %136 = vector.shape_cast %135 : vector<1x1x1x1x8xf32> to vector<1x8xf32>
    %137 = vector.broadcast %136 : vector<1x8xf32> to vector<16x8xf32>
    %138 = arith.addf %134, %137 : vector<16x8xf32>
    %c0_120 = arith.constant 0 : index
    %c0_121 = arith.constant 0 : index
    %c2_122 = arith.constant 2 : index
    %c0_123 = arith.constant 0 : index
    %c0_124 = arith.constant 0 : index
    %139 = vector.load %arg7[%c0_120, %c0_121, %c2_122, %c0_123, %c0_124] : memref<1x1x4x32x8xf32, #tpu.memory_space<vmem>>, vector<1x1x1x32x8xf32>
    %140 = vector.shape_cast %139 : vector<1x1x1x32x8xf32> to vector<32x8xf32>
    %cst_125 = arith.constant dense<0.000000e+00> : vector<16x8xf32>
    %141 = tpu.matmul %3, %140, %cst_125 {dimension_numbers = #tpu.dot_dimension_numbers<[1], [0], [0], [1], [0, 0, 1, 1], [], []>} : vector<16x32xf32>, vector<32x8xf32>, vector<16x8xf32> -> vector<16x8xf32>
    %c0_126 = arith.constant 0 : index
    %c0_127 = arith.constant 0 : index
    %c2_128 = arith.constant 2 : index
    %c0_129 = arith.constant 0 : index
    %c0_130 = arith.constant 0 : index
    %142 = vector.load %arg8[%c0_126, %c0_127, %c2_128, %c0_129, %c0_130] : memref<1x1x4x1x8xf32, #tpu.memory_space<vmem>>, vector<1x1x1x1x8xf32>
    %143 = vector.shape_cast %142 : vector<1x1x1x1x8xf32> to vector<1x8xf32>
    %144 = vector.broadcast %143 : vector<1x8xf32> to vector<16x8xf32>
    %145 = arith.addf %141, %144 : vector<16x8xf32>
    %146 = vector.extract_strided_slice %131 {offsets = [0, 0], sizes = [8, 8], strides = [1, 1]} : vector<16x8xf32> to vector<8x8xf32>
    %147 = vector.extract_strided_slice %138 {offsets = [0, 0], sizes = [8, 8], strides = [1, 1]} : vector<16x8xf32> to vector<8x8xf32>
    %148 = vector.extract_strided_slice %145 {offsets = [0, 0], sizes = [8, 8], strides = [1, 1]} : vector<16x8xf32> to vector<8x8xf32>
    %cst_131 = arith.constant dense<0.000000e+00> : vector<8x8xf32>
    %149 = tpu.matmul %146, %147, %cst_131 {dimension_numbers = #tpu.dot_dimension_numbers<[1], [1], [0], [0], [0, 0, 1, 0], [], []>} : vector<8x8xf32>, vector<8x8xf32>, vector<8x8xf32> -> vector<8x8xf32>
    %cst_132 = arith.constant 0.353553385 : f32
    %150 = vector.broadcast %cst_132 : f32 to vector<8x8xf32>
    %151 = arith.mulf %149, %150 : vector<8x8xf32>
    %cst_133 = arith.constant dense<0xFF800000> : vector<8xf32>
    %152 = vector.multi_reduction <maximumf>, %151, %cst_133 [1] : vector<8x8xf32> to vector<8xf32>
    %153 = vector.shape_cast %152 : vector<8xf32> to vector<8x1xf32>
    %154 = vector.broadcast %153 : vector<8x1xf32> to vector<8x8xf32>
    %155 = arith.subf %151, %154 : vector<8x8xf32>
    %156 = math.exp %155 : vector<8x8xf32>
    %cst_134 = arith.constant dense<0.000000e+00> : vector<8xf32>
    %157 = vector.multi_reduction <add>, %156, %cst_134 [1] : vector<8x8xf32> to vector<8xf32>
    %158 = vector.shape_cast %157 : vector<8xf32> to vector<8x1xf32>
    %159 = tpu.reciprocal %158 {approx = true} : vector<8x1xf32> -> vector<8x1xf32>
    %160 = vector.broadcast %159 : vector<8x1xf32> to vector<8x8xf32>
    %161 = arith.mulf %156, %160 : vector<8x8xf32>
    %cst_135 = arith.constant dense<0.000000e+00> : vector<8x8xf32>
    %162 = tpu.matmul %161, %148, %cst_135 {dimension_numbers = #tpu.dot_dimension_numbers<[1], [0], [0], [1], [0, 0, 1, 1], [], []>} : vector<8x8xf32>, vector<8x8xf32>, vector<8x8xf32> -> vector<8x8xf32>
    %163 = vector.extract_strided_slice %131 {offsets = [8, 0], sizes = [8, 8], strides = [1, 1]} : vector<16x8xf32> to vector<8x8xf32>
    %164 = vector.extract_strided_slice %138 {offsets = [8, 0], sizes = [8, 8], strides = [1, 1]} : vector<16x8xf32> to vector<8x8xf32>
    %165 = vector.extract_strided_slice %145 {offsets = [8, 0], sizes = [8, 8], strides = [1, 1]} : vector<16x8xf32> to vector<8x8xf32>
    %cst_136 = arith.constant dense<0.000000e+00> : vector<8x8xf32>
    %166 = tpu.matmul %163, %164, %cst_136 {dimension_numbers = #tpu.dot_dimension_numbers<[1], [1], [0], [0], [0, 0, 1, 0], [], []>} : vector<8x8xf32>, vector<8x8xf32>, vector<8x8xf32> -> vector<8x8xf32>
    %cst_137 = arith.constant 0.353553385 : f32
    %167 = vector.broadcast %cst_137 : f32 to vector<8x8xf32>
    %168 = arith.mulf %166, %167 : vector<8x8xf32>
    %cst_138 = arith.constant dense<0xFF800000> : vector<8xf32>
    %169 = vector.multi_reduction <maximumf>, %168, %cst_138 [1] : vector<8x8xf32> to vector<8xf32>
    %170 = vector.shape_cast %169 : vector<8xf32> to vector<8x1xf32>
    %171 = vector.broadcast %170 : vector<8x1xf32> to vector<8x8xf32>
    %172 = arith.subf %168, %171 : vector<8x8xf32>
    %173 = math.exp %172 : vector<8x8xf32>
    %cst_139 = arith.constant dense<0.000000e+00> : vector<8xf32>
    %174 = vector.multi_reduction <add>, %173, %cst_139 [1] : vector<8x8xf32> to vector<8xf32>
    %175 = vector.shape_cast %174 : vector<8xf32> to vector<8x1xf32>
    %176 = tpu.reciprocal %175 {approx = true} : vector<8x1xf32> -> vector<8x1xf32>
    %177 = vector.broadcast %176 : vector<8x1xf32> to vector<8x8xf32>
    %178 = arith.mulf %173, %177 : vector<8x8xf32>
    %cst_140 = arith.constant dense<0.000000e+00> : vector<8x8xf32>
    %179 = tpu.matmul %178, %165, %cst_140 {dimension_numbers = #tpu.dot_dimension_numbers<[1], [0], [0], [1], [0, 0, 1, 1], [], []>} : vector<8x8xf32>, vector<8x8xf32>, vector<8x8xf32> -> vector<8x8xf32>
    %180 = tpu.concatenate %162, %179 in 0 : vector<8x8xf32>, vector<8x8xf32> -> vector<16x8xf32>
    %c0_141 = arith.constant 0 : index
    %c0_142 = arith.constant 0 : index
    %c2_143 = arith.constant 2 : index
    %c0_144 = arith.constant 0 : index
    %c0_145 = arith.constant 0 : index
    %181 = vector.load %arg9[%c0_141, %c0_142, %c2_143, %c0_144, %c0_145] : memref<1x1x4x8x32xf32, #tpu.memory_space<vmem>>, vector<1x1x1x8x32xf32>
    %182 = vector.shape_cast %181 : vector<1x1x1x8x32xf32> to vector<8x32xf32>
    %cst_146 = arith.constant dense<0.000000e+00> : vector<16x32xf32>
    %183 = tpu.matmul %180, %182, %cst_146 {dimension_numbers = #tpu.dot_dimension_numbers<[1], [0], [0], [1], [0, 0, 1, 1], [], []>} : vector<16x8xf32>, vector<8x32xf32>, vector<16x32xf32> -> vector<16x32xf32>
    %184 = arith.addf %124, %183 : vector<16x32xf32>
    %c0_147 = arith.constant 0 : index
    %c0_148 = arith.constant 0 : index
    %c3 = arith.constant 3 : index
    %c0_149 = arith.constant 0 : index
    %c0_150 = arith.constant 0 : index
    %185 = vector.load %arg3[%c0_147, %c0_148, %c3, %c0_149, %c0_150] : memref<1x1x4x32x8xf32, #tpu.memory_space<vmem>>, vector<1x1x1x32x8xf32>
    %186 = vector.shape_cast %185 : vector<1x1x1x32x8xf32> to vector<32x8xf32>
    %cst_151 = arith.constant dense<0.000000e+00> : vector<16x8xf32>
    %187 = tpu.matmul %3, %186, %cst_151 {dimension_numbers = #tpu.dot_dimension_numbers<[1], [0], [0], [1], [0, 0, 1, 1], [], []>} : vector<16x32xf32>, vector<32x8xf32>, vector<16x8xf32> -> vector<16x8xf32>
    %c0_152 = arith.constant 0 : index
    %c0_153 = arith.constant 0 : index
    %c3_154 = arith.constant 3 : index
    %c0_155 = arith.constant 0 : index
    %c0_156 = arith.constant 0 : index
    %188 = vector.load %arg4[%c0_152, %c0_153, %c3_154, %c0_155, %c0_156] : memref<1x1x4x1x8xf32, #tpu.memory_space<vmem>>, vector<1x1x1x1x8xf32>
    %189 = vector.shape_cast %188 : vector<1x1x1x1x8xf32> to vector<1x8xf32>
    %190 = vector.broadcast %189 : vector<1x8xf32> to vector<16x8xf32>
    %191 = arith.addf %187, %190 : vector<16x8xf32>
    %c0_157 = arith.constant 0 : index
    %c0_158 = arith.constant 0 : index
    %c3_159 = arith.constant 3 : index
    %c0_160 = arith.constant 0 : index
    %c0_161 = arith.constant 0 : index
    %192 = vector.load %arg5[%c0_157, %c0_158, %c3_159, %c0_160, %c0_161] : memref<1x1x4x32x8xf32, #tpu.memory_space<vmem>>, vector<1x1x1x32x8xf32>
    %193 = vector.shape_cast %192 : vector<1x1x1x32x8xf32> to vector<32x8xf32>
    %cst_162 = arith.constant dense<0.000000e+00> : vector<16x8xf32>
    %194 = tpu.matmul %3, %193, %cst_162 {dimension_numbers = #tpu.dot_dimension_numbers<[1], [0], [0], [1], [0, 0, 1, 1], [], []>} : vector<16x32xf32>, vector<32x8xf32>, vector<16x8xf32> -> vector<16x8xf32>
    %c0_163 = arith.constant 0 : index
    %c0_164 = arith.constant 0 : index
    %c3_165 = arith.constant 3 : index
    %c0_166 = arith.constant 0 : index
    %c0_167 = arith.constant 0 : index
    %195 = vector.load %arg6[%c0_163, %c0_164, %c3_165, %c0_166, %c0_167] : memref<1x1x4x1x8xf32, #tpu.memory_space<vmem>>, vector<1x1x1x1x8xf32>
    %196 = vector.shape_cast %195 : vector<1x1x1x1x8xf32> to vector<1x8xf32>
    %197 = vector.broadcast %196 : vector<1x8xf32> to vector<16x8xf32>
    %198 = arith.addf %194, %197 : vector<16x8xf32>
    %c0_168 = arith.constant 0 : index
    %c0_169 = arith.constant 0 : index
    %c3_170 = arith.constant 3 : index
    %c0_171 = arith.constant 0 : index
    %c0_172 = arith.constant 0 : index
    %199 = vector.load %arg7[%c0_168, %c0_169, %c3_170, %c0_171, %c0_172] : memref<1x1x4x32x8xf32, #tpu.memory_space<vmem>>, vector<1x1x1x32x8xf32>
    %200 = vector.shape_cast %199 : vector<1x1x1x32x8xf32> to vector<32x8xf32>
    %cst_173 = arith.constant dense<0.000000e+00> : vector<16x8xf32>
    %201 = tpu.matmul %3, %200, %cst_173 {dimension_numbers = #tpu.dot_dimension_numbers<[1], [0], [0], [1], [0, 0, 1, 1], [], []>} : vector<16x32xf32>, vector<32x8xf32>, vector<16x8xf32> -> vector<16x8xf32>
    %c0_174 = arith.constant 0 : index
    %c0_175 = arith.constant 0 : index
    %c3_176 = arith.constant 3 : index
    %c0_177 = arith.constant 0 : index
    %c0_178 = arith.constant 0 : index
    %202 = vector.load %arg8[%c0_174, %c0_175, %c3_176, %c0_177, %c0_178] : memref<1x1x4x1x8xf32, #tpu.memory_space<vmem>>, vector<1x1x1x1x8xf32>
    %203 = vector.shape_cast %202 : vector<1x1x1x1x8xf32> to vector<1x8xf32>
    %204 = vector.broadcast %203 : vector<1x8xf32> to vector<16x8xf32>
    %205 = arith.addf %201, %204 : vector<16x8xf32>
    %206 = vector.extract_strided_slice %191 {offsets = [0, 0], sizes = [8, 8], strides = [1, 1]} : vector<16x8xf32> to vector<8x8xf32>
    %207 = vector.extract_strided_slice %198 {offsets = [0, 0], sizes = [8, 8], strides = [1, 1]} : vector<16x8xf32> to vector<8x8xf32>
    %208 = vector.extract_strided_slice %205 {offsets = [0, 0], sizes = [8, 8], strides = [1, 1]} : vector<16x8xf32> to vector<8x8xf32>
    %cst_179 = arith.constant dense<0.000000e+00> : vector<8x8xf32>
    %209 = tpu.matmul %206, %207, %cst_179 {dimension_numbers = #tpu.dot_dimension_numbers<[1], [1], [0], [0], [0, 0, 1, 0], [], []>} : vector<8x8xf32>, vector<8x8xf32>, vector<8x8xf32> -> vector<8x8xf32>
    %cst_180 = arith.constant 0.353553385 : f32
    %210 = vector.broadcast %cst_180 : f32 to vector<8x8xf32>
    %211 = arith.mulf %209, %210 : vector<8x8xf32>
    %cst_181 = arith.constant dense<0xFF800000> : vector<8xf32>
    %212 = vector.multi_reduction <maximumf>, %211, %cst_181 [1] : vector<8x8xf32> to vector<8xf32>
    %213 = vector.shape_cast %212 : vector<8xf32> to vector<8x1xf32>
    %214 = vector.broadcast %213 : vector<8x1xf32> to vector<8x8xf32>
    %215 = arith.subf %211, %214 : vector<8x8xf32>
    %216 = math.exp %215 : vector<8x8xf32>
    %cst_182 = arith.constant dense<0.000000e+00> : vector<8xf32>
    %217 = vector.multi_reduction <add>, %216, %cst_182 [1] : vector<8x8xf32> to vector<8xf32>
    %218 = vector.shape_cast %217 : vector<8xf32> to vector<8x1xf32>
    %219 = tpu.reciprocal %218 {approx = true} : vector<8x1xf32> -> vector<8x1xf32>
    %220 = vector.broadcast %219 : vector<8x1xf32> to vector<8x8xf32>
    %221 = arith.mulf %216, %220 : vector<8x8xf32>
    %cst_183 = arith.constant dense<0.000000e+00> : vector<8x8xf32>
    %222 = tpu.matmul %221, %208, %cst_183 {dimension_numbers = #tpu.dot_dimension_numbers<[1], [0], [0], [1], [0, 0, 1, 1], [], []>} : vector<8x8xf32>, vector<8x8xf32>, vector<8x8xf32> -> vector<8x8xf32>
    %223 = vector.extract_strided_slice %191 {offsets = [8, 0], sizes = [8, 8], strides = [1, 1]} : vector<16x8xf32> to vector<8x8xf32>
    %224 = vector.extract_strided_slice %198 {offsets = [8, 0], sizes = [8, 8], strides = [1, 1]} : vector<16x8xf32> to vector<8x8xf32>
    %225 = vector.extract_strided_slice %205 {offsets = [8, 0], sizes = [8, 8], strides = [1, 1]} : vector<16x8xf32> to vector<8x8xf32>
    %cst_184 = arith.constant dense<0.000000e+00> : vector<8x8xf32>
    %226 = tpu.matmul %223, %224, %cst_184 {dimension_numbers = #tpu.dot_dimension_numbers<[1], [1], [0], [0], [0, 0, 1, 0], [], []>} : vector<8x8xf32>, vector<8x8xf32>, vector<8x8xf32> -> vector<8x8xf32>
    %cst_185 = arith.constant 0.353553385 : f32
    %227 = vector.broadcast %cst_185 : f32 to vector<8x8xf32>
    %228 = arith.mulf %226, %227 : vector<8x8xf32>
    %cst_186 = arith.constant dense<0xFF800000> : vector<8xf32>
    %229 = vector.multi_reduction <maximumf>, %228, %cst_186 [1] : vector<8x8xf32> to vector<8xf32>
    %230 = vector.shape_cast %229 : vector<8xf32> to vector<8x1xf32>
    %231 = vector.broadcast %230 : vector<8x1xf32> to vector<8x8xf32>
    %232 = arith.subf %228, %231 : vector<8x8xf32>
    %233 = math.exp %232 : vector<8x8xf32>
    %cst_187 = arith.constant dense<0.000000e+00> : vector<8xf32>
    %234 = vector.multi_reduction <add>, %233, %cst_187 [1] : vector<8x8xf32> to vector<8xf32>
    %235 = vector.shape_cast %234 : vector<8xf32> to vector<8x1xf32>
    %236 = tpu.reciprocal %235 {approx = true} : vector<8x1xf32> -> vector<8x1xf32>
    %237 = vector.broadcast %236 : vector<8x1xf32> to vector<8x8xf32>
    %238 = arith.mulf %233, %237 : vector<8x8xf32>
    %cst_188 = arith.constant dense<0.000000e+00> : vector<8x8xf32>
    %239 = tpu.matmul %238, %225, %cst_188 {dimension_numbers = #tpu.dot_dimension_numbers<[1], [0], [0], [1], [0, 0, 1, 1], [], []>} : vector<8x8xf32>, vector<8x8xf32>, vector<8x8xf32> -> vector<8x8xf32>
    %240 = tpu.concatenate %222, %239 in 0 : vector<8x8xf32>, vector<8x8xf32> -> vector<16x8xf32>
    %c0_189 = arith.constant 0 : index
    %c0_190 = arith.constant 0 : index
    %c3_191 = arith.constant 3 : index
    %c0_192 = arith.constant 0 : index
    %c0_193 = arith.constant 0 : index
    %241 = vector.load %arg9[%c0_189, %c0_190, %c3_191, %c0_192, %c0_193] : memref<1x1x4x8x32xf32, #tpu.memory_space<vmem>>, vector<1x1x1x8x32xf32>
    %242 = vector.shape_cast %241 : vector<1x1x1x8x32xf32> to vector<8x32xf32>
    %cst_194 = arith.constant dense<0.000000e+00> : vector<16x32xf32>
    %243 = tpu.matmul %240, %242, %cst_194 {dimension_numbers = #tpu.dot_dimension_numbers<[1], [0], [0], [1], [0, 0, 1, 1], [], []>} : vector<16x8xf32>, vector<8x32xf32>, vector<16x32xf32> -> vector<16x32xf32>
    %244 = arith.addf %184, %243 : vector<16x32xf32>
    %c0_195 = arith.constant 0 : index
    %c0_196 = arith.constant 0 : index
    %c0_197 = arith.constant 0 : index
    %c0_198 = arith.constant 0 : index
    %245 = vector.load %arg10[%c0_195, %c0_196, %c0_197, %c0_198] : memref<1x1x1x32xf32, #tpu.memory_space<vmem>>, vector<1x1x1x32xf32>
    %246 = vector.shape_cast %245 : vector<1x1x1x32xf32> to vector<1x32xf32>
    %247 = vector.broadcast %246 : vector<1x32xf32> to vector<16x32xf32>
    %248 = arith.addf %244, %247 : vector<16x32xf32>
    %249 = arith.addf %3, %248 : vector<16x32xf32>
    %c0_199 = arith.constant 0 : index
    %c0_200 = arith.constant 0 : index
    %c0_201 = arith.constant 0 : index
    %c0_202 = arith.constant 0 : index
    %250 = vector.load %arg11[%c0_199, %c0_200, %c0_201, %c0_202] : memref<1x1x1x32xf32, #tpu.memory_space<vmem>>, vector<1x1x1x32xf32>
    %251 = vector.shape_cast %250 : vector<1x1x1x32xf32> to vector<1x32xf32>
    %c0_203 = arith.constant 0 : index
    %c0_204 = arith.constant 0 : index
    %c0_205 = arith.constant 0 : index
    %c0_206 = arith.constant 0 : index
    %252 = vector.load %arg12[%c0_203, %c0_204, %c0_205, %c0_206] : memref<1x1x1x32xf32, #tpu.memory_space<vmem>>, vector<1x1x1x32xf32>
    %253 = vector.shape_cast %252 : vector<1x1x1x32xf32> to vector<1x32xf32>
    %cst_207 = arith.constant dense<0.000000e+00> : vector<16xf32>
    %254 = vector.multi_reduction <add>, %249, %cst_207 [1] : vector<16x32xf32> to vector<16xf32>
    %255 = vector.shape_cast %254 : vector<16xf32> to vector<16x1xf32>
    %cst_208 = arith.constant 3.200000e+01 : f32
    %256 = vector.broadcast %cst_208 : f32 to vector<16x1xf32>
    %257 = arith.divf %255, %256 : vector<16x1xf32>
    %258 = vector.broadcast %257 : vector<16x1xf32> to vector<16x32xf32>
    %259 = arith.subf %249, %258 : vector<16x32xf32>
    %260 = arith.mulf %259, %259 : vector<16x32xf32>
    %cst_209 = arith.constant dense<0.000000e+00> : vector<16xf32>
    %261 = vector.multi_reduction <add>, %260, %cst_209 [1] : vector<16x32xf32> to vector<16xf32>
    %262 = vector.shape_cast %261 : vector<16xf32> to vector<16x1xf32>
    %cst_210 = arith.constant 3.200000e+01 : f32
    %263 = vector.broadcast %cst_210 : f32 to vector<16x1xf32>
    %264 = arith.divf %262, %263 : vector<16x1xf32>
    %265 = vector.broadcast %257 : vector<16x1xf32> to vector<16x32xf32>
    %266 = arith.subf %249, %265 : vector<16x32xf32>
    %cst_211 = arith.constant 9.99999974E-6 : f32
    %267 = vector.broadcast %cst_211 : f32 to vector<16x1xf32>
    %268 = arith.addf %264, %267 : vector<16x1xf32>
    %269 = math.rsqrt %268 : vector<16x1xf32>
    %270 = vector.broadcast %269 : vector<16x1xf32> to vector<16x32xf32>
    %271 = arith.mulf %266, %270 : vector<16x32xf32>
    %272 = vector.broadcast %251 : vector<1x32xf32> to vector<16x32xf32>
    %273 = arith.mulf %271, %272 : vector<16x32xf32>
    %274 = vector.broadcast %253 : vector<1x32xf32> to vector<16x32xf32>
    %275 = arith.addf %273, %274 : vector<16x32xf32>
    %c0_212 = arith.constant 0 : index
    %c0_213 = arith.constant 0 : index
    %c0_214 = arith.constant 0 : index
    %c0_215 = arith.constant 0 : index
    %276 = vector.load %arg13[%c0_212, %c0_213, %c0_214, %c0_215] : memref<1x1x32x2048xf32, #tpu.memory_space<vmem>>, vector<1x1x32x2048xf32>
    %277 = vector.shape_cast %276 : vector<1x1x32x2048xf32> to vector<32x2048xf32>
    %cst_216 = arith.constant dense<0.000000e+00> : vector<16x2048xf32>
    %278 = tpu.matmul %275, %277, %cst_216 {dimension_numbers = #tpu.dot_dimension_numbers<[1], [0], [0], [1], [0, 0, 1, 1], [], []>} : vector<16x32xf32>, vector<32x2048xf32>, vector<16x2048xf32> -> vector<16x2048xf32>
    %c0_217 = arith.constant 0 : index
    %c0_218 = arith.constant 0 : index
    %c0_219 = arith.constant 0 : index
    %c0_220 = arith.constant 0 : index
    %279 = vector.load %arg14[%c0_217, %c0_218, %c0_219, %c0_220] : memref<1x1x1x2048xf32, #tpu.memory_space<vmem>>, vector<1x1x1x2048xf32>
    %280 = vector.shape_cast %279 : vector<1x1x1x2048xf32> to vector<1x2048xf32>
    %281 = vector.broadcast %280 : vector<1x2048xf32> to vector<16x2048xf32>
    %282 = arith.addf %278, %281 : vector<16x2048xf32>
    %cst_221 = arith.constant 0.000000e+00 : f32
    %283 = vector.broadcast %cst_221 : f32 to vector<16x2048xf32>
    %284 = arith.maximumf %282, %283 : vector<16x2048xf32>
    %c0_222 = arith.constant 0 : index
    %c0_223 = arith.constant 0 : index
    %c0_224 = arith.constant 0 : index
    %c0_225 = arith.constant 0 : index
    %285 = vector.load %arg15[%c0_222, %c0_223, %c0_224, %c0_225] : memref<1x1x2048x32xf32, #tpu.memory_space<vmem>>, vector<1x1x2048x32xf32>
    %286 = vector.shape_cast %285 : vector<1x1x2048x32xf32> to vector<2048x32xf32>
    %cst_226 = arith.constant dense<0.000000e+00> : vector<16x32xf32>
    %287 = tpu.matmul %284, %286, %cst_226 {dimension_numbers = #tpu.dot_dimension_numbers<[1], [0], [0], [1], [0, 0, 1, 1], [], []>} : vector<16x2048xf32>, vector<2048x32xf32>, vector<16x32xf32> -> vector<16x32xf32>
    %c0_227 = arith.constant 0 : index
    %c0_228 = arith.constant 0 : index
    %c0_229 = arith.constant 0 : index
    %c0_230 = arith.constant 0 : index
    %288 = vector.load %arg16[%c0_227, %c0_228, %c0_229, %c0_230] : memref<1x1x1x32xf32, #tpu.memory_space<vmem>>, vector<1x1x1x32xf32>
    %289 = vector.shape_cast %288 : vector<1x1x1x32xf32> to vector<1x32xf32>
    %290 = vector.broadcast %289 : vector<1x32xf32> to vector<16x32xf32>
    %291 = arith.addf %287, %290 : vector<16x32xf32>
    %292 = arith.addf %275, %291 : vector<16x32xf32>
    %c0_231 = arith.constant 0 : index
    %c0_232 = arith.constant 0 : index
    %c0_233 = arith.constant 0 : index
    %c0_234 = arith.constant 0 : index
    %293 = vector.load %arg17[%c0_231, %c0_232, %c0_233, %c0_234] : memref<1x1x1x32xf32, #tpu.memory_space<vmem>>, vector<1x1x1x32xf32>
    %294 = vector.shape_cast %293 : vector<1x1x1x32xf32> to vector<1x32xf32>
    %c0_235 = arith.constant 0 : index
    %c0_236 = arith.constant 0 : index
    %c0_237 = arith.constant 0 : index
    %c0_238 = arith.constant 0 : index
    %295 = vector.load %arg18[%c0_235, %c0_236, %c0_237, %c0_238] : memref<1x1x1x32xf32, #tpu.memory_space<vmem>>, vector<1x1x1x32xf32>
    %296 = vector.shape_cast %295 : vector<1x1x1x32xf32> to vector<1x32xf32>
    %cst_239 = arith.constant dense<0.000000e+00> : vector<16xf32>
    %297 = vector.multi_reduction <add>, %292, %cst_239 [1] : vector<16x32xf32> to vector<16xf32>
    %298 = vector.shape_cast %297 : vector<16xf32> to vector<16x1xf32>
    %cst_240 = arith.constant 3.200000e+01 : f32
    %299 = vector.broadcast %cst_240 : f32 to vector<16x1xf32>
    %300 = arith.divf %298, %299 : vector<16x1xf32>
    %301 = vector.broadcast %300 : vector<16x1xf32> to vector<16x32xf32>
    %302 = arith.subf %292, %301 : vector<16x32xf32>
    %303 = arith.mulf %302, %302 : vector<16x32xf32>
    %cst_241 = arith.constant dense<0.000000e+00> : vector<16xf32>
    %304 = vector.multi_reduction <add>, %303, %cst_241 [1] : vector<16x32xf32> to vector<16xf32>
    %305 = vector.shape_cast %304 : vector<16xf32> to vector<16x1xf32>
    %cst_242 = arith.constant 3.200000e+01 : f32
    %306 = vector.broadcast %cst_242 : f32 to vector<16x1xf32>
    %307 = arith.divf %305, %306 : vector<16x1xf32>
    %308 = vector.broadcast %300 : vector<16x1xf32> to vector<16x32xf32>
    %309 = arith.subf %292, %308 : vector<16x32xf32>
    %cst_243 = arith.constant 9.99999974E-6 : f32
    %310 = vector.broadcast %cst_243 : f32 to vector<16x1xf32>
    %311 = arith.addf %307, %310 : vector<16x1xf32>
    %312 = math.rsqrt %311 : vector<16x1xf32>
    %313 = vector.broadcast %312 : vector<16x1xf32> to vector<16x32xf32>
    %314 = arith.mulf %309, %313 : vector<16x32xf32>
    %315 = vector.broadcast %294 : vector<1x32xf32> to vector<16x32xf32>
    %316 = arith.mulf %314, %315 : vector<16x32xf32>
    %317 = vector.broadcast %296 : vector<1x32xf32> to vector<16x32xf32>
    %318 = arith.addf %316, %317 : vector<16x32xf32>
    %c0_244 = arith.constant 0 : index
    %c0_245 = arith.constant 0 : index
    %319 = vector.load %arg22[%c0_244, %c0_245] : memref<16x32xf32, #tpu.memory_space<vmem>>, vector<16x32xf32>
    tpu.vector_store %arg22[%c0_244, %c0_245], %318 {strides = array<i32>} : memref<16x32xf32, #tpu.memory_space<vmem>>, vector<16x32xf32>,
    %c0_i32_246 = arith.constant 0 : i32
    %320 = arith.cmpi eq, %arg1, %c0_i32_246 : i32
    %321 = arith.extui %320 : i1 to i32
    %c0_i32_247 = arith.constant 0 : i32
    %322 = arith.cmpi ne, %321, %c0_i32_247 : i32
    scf.if %322 {
      %c0_248 = arith.constant 0 : index
      %c0_249 = arith.constant 0 : index
      %c0_250 = arith.constant 0 : index
      %323 = vector.load %arg19[%c0_248, %c0_249, %c0_250] : memref<1x1x32xf32, #tpu.memory_space<vmem>>, vector<1x1x32xf32>
      %324 = vector.shape_cast %323 : vector<1x1x32xf32> to vector<1x32xf32>
      %c0_251 = arith.constant 0 : index
      %c0_252 = arith.constant 0 : index
      %c0_253 = arith.constant 0 : index
      %325 = vector.load %arg20[%c0_251, %c0_252, %c0_253] : memref<1x1x32xf32, #tpu.memory_space<vmem>>, vector<1x1x32xf32>
      %326 = vector.shape_cast %325 : vector<1x1x32xf32> to vector<1x32xf32>
      %cst_254 = arith.constant dense<0.000000e+00> : vector<16xf32>
      %327 = vector.multi_reduction <add>, %318, %cst_254 [1] : vector<16x32xf32> to vector<16xf32>
      %328 = vector.shape_cast %327 : vector<16xf32> to vector<16x1xf32>
      %cst_255 = arith.constant 3.200000e+01 : f32
      %329 = vector.broadcast %cst_255 : f32 to vector<16x1xf32>
      %330 = arith.divf %328, %329 : vector<16x1xf32>
      %331 = vector.broadcast %330 : vector<16x1xf32> to vector<16x32xf32>
      %332 = arith.subf %318, %331 : vector<16x32xf32>
      %333 = arith.mulf %332, %332 : vector<16x32xf32>
      %cst_256 = arith.constant dense<0.000000e+00> : vector<16xf32>
      %334 = vector.multi_reduction <add>, %333, %cst_256 [1] : vector<16x32xf32> to vector<16xf32>
      %335 = vector.shape_cast %334 : vector<16xf32> to vector<16x1xf32>
      %cst_257 = arith.constant 3.200000e+01 : f32
      %336 = vector.broadcast %cst_257 : f32 to vector<16x1xf32>
      %337 = arith.divf %335, %336 : vector<16x1xf32>
      %338 = vector.broadcast %330 : vector<16x1xf32> to vector<16x32xf32>
      %339 = arith.subf %318, %338 : vector<16x32xf32>
      %cst_258 = arith.constant 9.99999974E-6 : f32
      %340 = vector.broadcast %cst_258 : f32 to vector<16x1xf32>
      %341 = arith.addf %337, %340 : vector<16x1xf32>
      %342 = math.rsqrt %341 : vector<16x1xf32>
      %343 = vector.broadcast %342 : vector<16x1xf32> to vector<16x32xf32>
      %344 = arith.mulf %339, %343 : vector<16x32xf32>
      %345 = vector.broadcast %324 : vector<1x32xf32> to vector<16x32xf32>
      %346 = arith.mulf %344, %345 : vector<16x32xf32>
      %347 = vector.broadcast %326 : vector<1x32xf32> to vector<16x32xf32>
      %348 = arith.addf %346, %347 : vector<16x32xf32>
      %c0_259 = arith.constant 0 : index
      %c0_260 = arith.constant 0 : index
      %c0_261 = arith.constant 0 : index
      %349 = vector.load %arg21[%c0_259, %c0_260, %c0_261] : memref<1x16x32xf32, #tpu.memory_space<vmem>>, vector<1x16x32xf32>
      %350 = vector.shape_cast %349 : vector<1x16x32xf32> to vector<16x32xf32>
      %351 = vector.shape_cast %348 : vector<16x32xf32> to vector<1x16x32xf32>
      tpu.vector_store %arg21[%c0_259, %c0_260, %c0_261], %351 {strides = array<i32>} : memref<1x16x32xf32, #tpu.memory_space<vmem>>, vector<1x16x32xf32>,
    } else {
    }
    return
  }
  func.func @transform_0(%arg0: i32, %arg1: i32) -> (i32, i32, i32) {
    %c0_i32 = arith.constant 0 : i32
    %c0_i32_0 = arith.constant 0 : i32
    %c0_i32_1 = arith.constant 0 : i32
    return %arg0, %c0_i32, %c0_i32_0 : i32, i32, i32
  }
  func.func @transform_1(%arg0: i32, %arg1: i32) -> (i32, i32, i32, i32, i32) {
    %c0_i32 = arith.constant 0 : i32
    %c0_i32_0 = arith.constant 0 : i32
    %c0_i32_1 = arith.constant 0 : i32
    %c0_i32_2 = arith.constant 0 : i32
    return %arg0, %arg1, %c0_i32, %c0_i32_0, %c0_i32_1 : i32, i32, i32, i32, i32
  }
  func.func @transform_2(%arg0: i32, %arg1: i32) -> (i32, i32, i32, i32, i32) {
    %c0_i32 = arith.constant 0 : i32
    %c0_i32_0 = arith.constant 0 : i32
    %c0_i32_1 = arith.constant 0 : i32
    %c0_i32_2 = arith.constant 0 : i32
    return %arg0, %arg1, %c0_i32, %c0_i32_0, %c0_i32_1 : i32, i32, i32, i32, i32
  }
  func.func @transform_3(%arg0: i32, %arg1: i32) -> (i32, i32, i32, i32, i32) {
    %c0_i32 = arith.constant 0 : i32
    %c0_i32_0 = arith.constant 0 : i32
    %c0_i32_1 = arith.constant 0 : i32
    %c0_i32_2 = arith.constant 0 : i32
    return %arg0, %arg1, %c0_i32, %c0_i32_0, %c0_i32_1 : i32, i32, i32, i32, i32
  }
  func.func @transform_4(%arg0: i32, %arg1: i32) -> (i32, i32, i32, i32, i32) {
    %c0_i32 = arith.constant 0 : i32
    %c0_i32_0 = arith.constant 0 : i32
    %c0_i32_1 = arith.constant 0 : i32
    %c0_i32_2 = arith.constant 0 : i32
    return %arg0, %arg1, %c0_i32, %c0_i32_0, %c0_i32_1 : i32, i32, i32, i32, i32
  }
  func.func @transform_5(%arg0: i32, %arg1: i32) -> (i32, i32, i32, i32, i32) {
    %c0_i32 = arith.constant 0 : i32
    %c0_i32_0 = arith.constant 0 : i32
    %c0_i32_1 = arith.constant 0 : i32
    %c0_i32_2 = arith.constant 0 : i32
    return %arg0, %arg1, %c0_i32, %c0_i32_0, %c0_i32_1 : i32, i32, i32, i32, i32
  }
  func.func @transform_6(%arg0: i32, %arg1: i32) -> (i32, i32, i32, i32, i32) {
    %c0_i32 = arith.constant 0 : i32
    %c0_i32_0 = arith.constant 0 : i32
    %c0_i32_1 = arith.constant 0 : i32
    %c0_i32_2 = arith.constant 0 : i32
    return %arg0, %arg1, %c0_i32, %c0_i32_0, %c0_i32_1 : i32, i32, i32, i32, i32
  }
  func.func @transform_7(%arg0: i32, %arg1: i32) -> (i32, i32, i32, i32, i32) {
    %c0_i32 = arith.constant 0 : i32
    %c0_i32_0 = arith.constant 0 : i32
    %c0_i32_1 = arith.constant 0 : i32
    %c0_i32_2 = arith.constant 0 : i32
    return %arg0, %arg1, %c0_i32, %c0_i32_0, %c0_i32_1 : i32, i32, i32, i32, i32
  }
  func.func @transform_8(%arg0: i32, %arg1: i32) -> (i32, i32, i32, i32) {
    %c0_i32 = arith.constant 0 : i32
    %c0_i32_0 = arith.constant 0 : i32
    %c0_i32_1 = arith.constant 0 : i32
    return %arg0, %arg1, %c0_i32, %c0_i32_0 : i32, i32, i32, i32
  }
  func.func @transform_9(%arg0: i32, %arg1: i32) -> (i32, i32, i32, i32) {
    %c0_i32 = arith.constant 0 : i32
    %c0_i32_0 = arith.constant 0 : i32
    %c0_i32_1 = arith.constant 0 : i32
    return %arg0, %arg1, %c0_i32, %c0_i32_0 : i32, i32, i32, i32
  }
  func.func @transform_10(%arg0: i32, %arg1: i32) -> (i32, i32, i32, i32) {
    %c0_i32 = arith.constant 0 : i32
    %c0_i32_0 = arith.constant 0 : i32
    %c0_i32_1 = arith.constant 0 : i32
    return %arg0, %arg1, %c0_i32, %c0_i32_0 : i32, i32, i32, i32
  }
  func.func @transform_11(%arg0: i32, %arg1: i32) -> (i32, i32, i32, i32) {
    %c0_i32 = arith.constant 0 : i32
    %c0_i32_0 = arith.constant 0 : i32
    %c0_i32_1 = arith.constant 0 : i32
    return %arg0, %arg1, %c0_i32, %c0_i32_0 : i32, i32, i32, i32
  }
  func.func @transform_12(%arg0: i32, %arg1: i32) -> (i32, i32, i32, i32) {
    %c0_i32 = arith.constant 0 : i32
    %c0_i32_0 = arith.constant 0 : i32
    %c0_i32_1 = arith.constant 0 : i32
    return %arg0, %arg1, %c0_i32, %c0_i32_0 : i32, i32, i32, i32
  }
  func.func @transform_13(%arg0: i32, %arg1: i32) -> (i32, i32, i32, i32) {
    %c0_i32 = arith.constant 0 : i32
    %c0_i32_0 = arith.constant 0 : i32
    %c0_i32_1 = arith.constant 0 : i32
    return %arg0, %arg1, %c0_i32, %c0_i32_0 : i32, i32, i32, i32
  }
  func.func @transform_14(%arg0: i32, %arg1: i32) -> (i32, i32, i32, i32) {
    %c0_i32 = arith.constant 0 : i32
    %c0_i32_0 = arith.constant 0 : i32
    %c0_i32_1 = arith.constant 0 : i32
    return %arg0, %arg1, %c0_i32, %c0_i32_0 : i32, i32, i32, i32
  }
  func.func @transform_15(%arg0: i32, %arg1: i32) -> (i32, i32, i32, i32) {
    %c0_i32 = arith.constant 0 : i32
    %c0_i32_0 = arith.constant 0 : i32
    %c0_i32_1 = arith.constant 0 : i32
    return %arg0, %arg1, %c0_i32, %c0_i32_0 : i32, i32, i32, i32
  }
  func.func @transform_16(%arg0: i32, %arg1: i32) -> (i32, i32, i32, i32) {
    %c0_i32 = arith.constant 0 : i32
    %c0_i32_0 = arith.constant 0 : i32
    %c0_i32_1 = arith.constant 0 : i32
    return %arg0, %arg1, %c0_i32, %c0_i32_0 : i32, i32, i32, i32
  }
  func.func @transform_17(%arg0: i32, %arg1: i32) -> (i32, i32, i32) {
    %c0_i32 = arith.constant 0 : i32
    %c0_i32_0 = arith.constant 0 : i32
    %c0_i32_1 = arith.constant 0 : i32
    return %arg0, %c0_i32, %c0_i32_0 : i32, i32, i32
  }
  func.func @transform_18(%arg0: i32, %arg1: i32) -> (i32, i32, i32) {
    %c0_i32 = arith.constant 0 : i32
    %c0_i32_0 = arith.constant 0 : i32
    %c0_i32_1 = arith.constant 0 : i32
    return %arg0, %c0_i32, %c0_i32_0 : i32, i32, i32
  }
  func.func @transform_19(%arg0: i32, %arg1: i32) -> (i32, i32, i32) {
    %c0_i32 = arith.constant 0 : i32
    %c0_i32_0 = arith.constant 0 : i32
    %c0_i32_1 = arith.constant 0 : i32
    return %arg0, %c0_i32, %c0_i32_0 : i32, i32, i32
  }
}

module attributes {stable_mosaic.version = 11 : i64} {
  func.func @_decoder_kernel(%arg0: i32, %arg1: i32, %arg2: memref<1x16x32xf32, #tpu.memory_space<vmem>>, %arg3: memref<1x16x32xf32, #tpu.memory_space<vmem>>, %arg4: memref<1x1x4x32x8xf32, #tpu.memory_space<vmem>>, %arg5: memref<1x1x4x1x8xf32, #tpu.memory_space<vmem>>, %arg6: memref<1x1x4x32x8xf32, #tpu.memory_space<vmem>>, %arg7: memref<1x1x4x1x8xf32, #tpu.memory_space<vmem>>, %arg8: memref<1x1x4x32x8xf32, #tpu.memory_space<vmem>>, %arg9: memref<1x1x4x1x8xf32, #tpu.memory_space<vmem>>, %arg10: memref<1x1x4x8x32xf32, #tpu.memory_space<vmem>>, %arg11: memref<1x1x1x32xf32, #tpu.memory_space<vmem>>, %arg12: memref<1x1x1x32xf32, #tpu.memory_space<vmem>>, %arg13: memref<1x1x1x32xf32, #tpu.memory_space<vmem>>, %arg14: memref<1x1x4x32x8xf32, #tpu.memory_space<vmem>>, %arg15: memref<1x1x4x1x8xf32, #tpu.memory_space<vmem>>, %arg16: memref<1x1x4x32x8xf32, #tpu.memory_space<vmem>>, %arg17: memref<1x1x4x1x8xf32, #tpu.memory_space<vmem>>, %arg18: memref<1x1x4x32x8xf32, #tpu.memory_space<vmem>>, %arg19: memref<1x1x4x1x8xf32, #tpu.memory_space<vmem>>, %arg20: memref<1x1x4x8x32xf32, #tpu.memory_space<vmem>>, %arg21: memref<1x1x1x32xf32, #tpu.memory_space<vmem>>, %arg22: memref<1x1x1x32xf32, #tpu.memory_space<vmem>>, %arg23: memref<1x1x1x32xf32, #tpu.memory_space<vmem>>, %arg24: memref<1x1x32x2048xf32, #tpu.memory_space<vmem>>, %arg25: memref<1x1x1x2048xf32, #tpu.memory_space<vmem>>, %arg26: memref<1x1x2048x32xf32, #tpu.memory_space<vmem>>, %arg27: memref<1x1x1x32xf32, #tpu.memory_space<vmem>>, %arg28: memref<1x1x1x32xf32, #tpu.memory_space<vmem>>, %arg29: memref<1x1x1x32xf32, #tpu.memory_space<vmem>>, %arg30: memref<1x1x32xf32, #tpu.memory_space<vmem>>, %arg31: memref<1x1x32xf32, #tpu.memory_space<vmem>>, %arg32: memref<1x32x128xf32, #tpu.memory_space<vmem>>, %arg33: memref<1x1x128xf32, #tpu.memory_space<vmem>>, %arg34: memref<1x16x128xf32, #tpu.memory_space<vmem>>, %arg35: memref<16x32xf32, #tpu.memory_space<vmem>>) attributes {dimension_semantics = [#tpu.dimension_semantics<parallel>, #tpu.dimension_semantics<arbitrary>], iteration_bounds = array<i64: 2, 6>, scalar_prefetch = 0 : i64, scratch_operands = 1 : i64, tpu.core_type = #tpu.core_type<tc>, window_params = [{transform_indices = @transform_0, window_bounds = array<i64: 1, 16, 32>}, {transform_indices = @transform_1, window_bounds = array<i64: 1, 16, 32>}, {transform_indices = @transform_2, window_bounds = array<i64: 1, 1, 4, 32, 8>}, {transform_indices = @transform_3, window_bounds = array<i64: 1, 1, 4, 1, 8>}, {transform_indices = @transform_4, window_bounds = array<i64: 1, 1, 4, 32, 8>}, {transform_indices = @transform_5, window_bounds = array<i64: 1, 1, 4, 1, 8>}, {transform_indices = @transform_6, window_bounds = array<i64: 1, 1, 4, 32, 8>}, {transform_indices = @transform_7, window_bounds = array<i64: 1, 1, 4, 1, 8>}, {transform_indices = @transform_8, window_bounds = array<i64: 1, 1, 4, 8, 32>}, {transform_indices = @transform_9, window_bounds = array<i64: 1, 1, 1, 32>}, {transform_indices = @transform_10, window_bounds = array<i64: 1, 1, 1, 32>}, {transform_indices = @transform_11, window_bounds = array<i64: 1, 1, 1, 32>}, {transform_indices = @transform_12, window_bounds = array<i64: 1, 1, 4, 32, 8>}, {transform_indices = @transform_13, window_bounds = array<i64: 1, 1, 4, 1, 8>}, {transform_indices = @transform_14, window_bounds = array<i64: 1, 1, 4, 32, 8>}, {transform_indices = @transform_15, window_bounds = array<i64: 1, 1, 4, 1, 8>}, {transform_indices = @transform_16, window_bounds = array<i64: 1, 1, 4, 32, 8>}, {transform_indices = @transform_17, window_bounds = array<i64: 1, 1, 4, 1, 8>}, {transform_indices = @transform_18, window_bounds = array<i64: 1, 1, 4, 8, 32>}, {transform_indices = @transform_19, window_bounds = array<i64: 1, 1, 1, 32>}, {transform_indices = @transform_20, window_bounds = array<i64: 1, 1, 1, 32>}, {transform_indices = @transform_21, window_bounds = array<i64: 1, 1, 1, 32>}, {transform_indices = @transform_22, window_bounds = array<i64: 1, 1, 32, 2048>}, {transform_indices = @transform_23, window_bounds = array<i64: 1, 1, 1, 2048>}, {transform_indices = @transform_24, window_bounds = array<i64: 1, 1, 2048, 32>}, {transform_indices = @transform_25, window_bounds = array<i64: 1, 1, 1, 32>}, {transform_indices = @transform_26, window_bounds = array<i64: 1, 1, 1, 32>}, {transform_indices = @transform_27, window_bounds = array<i64: 1, 1, 1, 32>}, {transform_indices = @transform_28, window_bounds = array<i64: 1, 1, 32>}, {transform_indices = @transform_29, window_bounds = array<i64: 1, 1, 32>}, {transform_indices = @transform_30, window_bounds = array<i64: 1, 32, 128>}, {transform_indices = @transform_31, window_bounds = array<i64: 1, 1, 128>}, {transform_indices = @transform_32, window_bounds = array<i64: 1, 16, 128>}]} {
    %c0_i32 = arith.constant 0 : i32
    %0 = arith.cmpi eq, %arg1, %c0_i32 : i32
    %1 = arith.extui %0 : i1 to i32
    %c0_i32_0 = arith.constant 0 : i32
    %2 = arith.cmpi ne, %1, %c0_i32_0 : i32
    scf.if %2 {
      %c0_464 = arith.constant 0 : index
      %c0_465 = arith.constant 0 : index
      %c0_466 = arith.constant 0 : index
      %597 = vector.load %arg2[%c0_464, %c0_465, %c0_466] : memref<1x16x32xf32, #tpu.memory_space<vmem>>, vector<1x16x32xf32>
      %598 = vector.shape_cast %597 : vector<1x16x32xf32> to vector<16x32xf32>
      %c0_467 = arith.constant 0 : index
      %c0_468 = arith.constant 0 : index
      %599 = vector.load %arg35[%c0_467, %c0_468] : memref<16x32xf32, #tpu.memory_space<vmem>>, vector<16x32xf32>
      tpu.vector_store %arg35[%c0_467, %c0_468], %598 {strides = array<i32>} : memref<16x32xf32, #tpu.memory_space<vmem>>, vector<16x32xf32>,
    } else {
    }
    %c0 = arith.constant 0 : index
    %c0_1 = arith.constant 0 : index
    %3 = vector.load %arg35[%c0, %c0_1] : memref<16x32xf32, #tpu.memory_space<vmem>>, vector<16x32xf32>
    %c0_2 = arith.constant 0 : index
    %c0_3 = arith.constant 0 : index
    %c0_4 = arith.constant 0 : index
    %4 = vector.load %arg3[%c0_2, %c0_3, %c0_4] : memref<1x16x32xf32, #tpu.memory_space<vmem>>, vector<1x16x32xf32>
    %5 = vector.shape_cast %4 : vector<1x16x32xf32> to vector<16x32xf32>
    %cst = arith.constant 0.000000e+00 : f32
    %6 = vector.broadcast %cst : f32 to vector<16x32xf32>
    %c0_5 = arith.constant 0 : index
    %c0_6 = arith.constant 0 : index
    %c0_7 = arith.constant 0 : index
    %c0_8 = arith.constant 0 : index
    %c0_9 = arith.constant 0 : index
    %7 = vector.load %arg4[%c0_5, %c0_6, %c0_7, %c0_8, %c0_9] : memref<1x1x4x32x8xf32, #tpu.memory_space<vmem>>, vector<1x1x1x32x8xf32>
    %8 = vector.shape_cast %7 : vector<1x1x1x32x8xf32> to vector<32x8xf32>
    %cst_10 = arith.constant dense<0.000000e+00> : vector<16x8xf32>
    %9 = tpu.matmul %3, %8, %cst_10 {dimension_numbers = #tpu.dot_dimension_numbers<[1], [0], [0], [1], [0, 0, 1, 1], [], []>} : vector<16x32xf32>, vector<32x8xf32>, vector<16x8xf32> -> vector<16x8xf32>
    %c0_11 = arith.constant 0 : index
    %c0_12 = arith.constant 0 : index
    %c0_13 = arith.constant 0 : index
    %c0_14 = arith.constant 0 : index
    %c0_15 = arith.constant 0 : index
    %10 = vector.load %arg5[%c0_11, %c0_12, %c0_13, %c0_14, %c0_15] : memref<1x1x4x1x8xf32, #tpu.memory_space<vmem>>, vector<1x1x1x1x8xf32>
    %11 = vector.shape_cast %10 : vector<1x1x1x1x8xf32> to vector<1x8xf32>
    %12 = vector.broadcast %11 : vector<1x8xf32> to vector<16x8xf32>
    %13 = arith.addf %9, %12 : vector<16x8xf32>
    %c0_16 = arith.constant 0 : index
    %c0_17 = arith.constant 0 : index
    %c0_18 = arith.constant 0 : index
    %c0_19 = arith.constant 0 : index
    %c0_20 = arith.constant 0 : index
    %14 = vector.load %arg6[%c0_16, %c0_17, %c0_18, %c0_19, %c0_20] : memref<1x1x4x32x8xf32, #tpu.memory_space<vmem>>, vector<1x1x1x32x8xf32>
    %15 = vector.shape_cast %14 : vector<1x1x1x32x8xf32> to vector<32x8xf32>
    %cst_21 = arith.constant dense<0.000000e+00> : vector<16x8xf32>
    %16 = tpu.matmul %3, %15, %cst_21 {dimension_numbers = #tpu.dot_dimension_numbers<[1], [0], [0], [1], [0, 0, 1, 1], [], []>} : vector<16x32xf32>, vector<32x8xf32>, vector<16x8xf32> -> vector<16x8xf32>
    %c0_22 = arith.constant 0 : index
    %c0_23 = arith.constant 0 : index
    %c0_24 = arith.constant 0 : index
    %c0_25 = arith.constant 0 : index
    %c0_26 = arith.constant 0 : index
    %17 = vector.load %arg7[%c0_22, %c0_23, %c0_24, %c0_25, %c0_26] : memref<1x1x4x1x8xf32, #tpu.memory_space<vmem>>, vector<1x1x1x1x8xf32>
    %18 = vector.shape_cast %17 : vector<1x1x1x1x8xf32> to vector<1x8xf32>
    %19 = vector.broadcast %18 : vector<1x8xf32> to vector<16x8xf32>
    %20 = arith.addf %16, %19 : vector<16x8xf32>
    %c0_27 = arith.constant 0 : index
    %c0_28 = arith.constant 0 : index
    %c0_29 = arith.constant 0 : index
    %c0_30 = arith.constant 0 : index
    %c0_31 = arith.constant 0 : index
    %21 = vector.load %arg8[%c0_27, %c0_28, %c0_29, %c0_30, %c0_31] : memref<1x1x4x32x8xf32, #tpu.memory_space<vmem>>, vector<1x1x1x32x8xf32>
    %22 = vector.shape_cast %21 : vector<1x1x1x32x8xf32> to vector<32x8xf32>
    %cst_32 = arith.constant dense<0.000000e+00> : vector<16x8xf32>
    %23 = tpu.matmul %3, %22, %cst_32 {dimension_numbers = #tpu.dot_dimension_numbers<[1], [0], [0], [1], [0, 0, 1, 1], [], []>} : vector<16x32xf32>, vector<32x8xf32>, vector<16x8xf32> -> vector<16x8xf32>
    %c0_33 = arith.constant 0 : index
    %c0_34 = arith.constant 0 : index
    %c0_35 = arith.constant 0 : index
    %c0_36 = arith.constant 0 : index
    %c0_37 = arith.constant 0 : index
    %24 = vector.load %arg9[%c0_33, %c0_34, %c0_35, %c0_36, %c0_37] : memref<1x1x4x1x8xf32, #tpu.memory_space<vmem>>, vector<1x1x1x1x8xf32>
    %25 = vector.shape_cast %24 : vector<1x1x1x1x8xf32> to vector<1x8xf32>
    %26 = vector.broadcast %25 : vector<1x8xf32> to vector<16x8xf32>
    %27 = arith.addf %23, %26 : vector<16x8xf32>
    %28 = vector.extract_strided_slice %13 {offsets = [0, 0], sizes = [8, 8], strides = [1, 1]} : vector<16x8xf32> to vector<8x8xf32>
    %29 = vector.extract_strided_slice %20 {offsets = [0, 0], sizes = [8, 8], strides = [1, 1]} : vector<16x8xf32> to vector<8x8xf32>
    %30 = vector.extract_strided_slice %27 {offsets = [0, 0], sizes = [8, 8], strides = [1, 1]} : vector<16x8xf32> to vector<8x8xf32>
    %cst_38 = arith.constant dense<0.000000e+00> : vector<8x8xf32>
    %31 = tpu.matmul %28, %29, %cst_38 {dimension_numbers = #tpu.dot_dimension_numbers<[1], [1], [0], [0], [0, 0, 1, 0], [], []>} : vector<8x8xf32>, vector<8x8xf32>, vector<8x8xf32> -> vector<8x8xf32>
    %cst_39 = arith.constant 0.353553385 : f32
    %32 = vector.broadcast %cst_39 : f32 to vector<8x8xf32>
    %33 = arith.mulf %31, %32 : vector<8x8xf32>
    %cst_40 = arith.constant dense<0xFF800000> : vector<8xf32>
    %34 = vector.multi_reduction <maximumf>, %33, %cst_40 [1] : vector<8x8xf32> to vector<8xf32>
    %35 = vector.shape_cast %34 : vector<8xf32> to vector<8x1xf32>
    %36 = vector.broadcast %35 : vector<8x1xf32> to vector<8x8xf32>
    %37 = arith.subf %33, %36 : vector<8x8xf32>
    %38 = math.exp %37 : vector<8x8xf32>
    %cst_41 = arith.constant dense<0.000000e+00> : vector<8xf32>
    %39 = vector.multi_reduction <add>, %38, %cst_41 [1] : vector<8x8xf32> to vector<8xf32>
    %40 = vector.shape_cast %39 : vector<8xf32> to vector<8x1xf32>
    %41 = tpu.reciprocal %40 {approx = true} : vector<8x1xf32> -> vector<8x1xf32>
    %42 = vector.broadcast %41 : vector<8x1xf32> to vector<8x8xf32>
    %43 = arith.mulf %38, %42 : vector<8x8xf32>
    %cst_42 = arith.constant dense<0.000000e+00> : vector<8x8xf32>
    %44 = tpu.matmul %43, %30, %cst_42 {dimension_numbers = #tpu.dot_dimension_numbers<[1], [0], [0], [1], [0, 0, 1, 1], [], []>} : vector<8x8xf32>, vector<8x8xf32>, vector<8x8xf32> -> vector<8x8xf32>
    %45 = vector.extract_strided_slice %13 {offsets = [8, 0], sizes = [8, 8], strides = [1, 1]} : vector<16x8xf32> to vector<8x8xf32>
    %46 = vector.extract_strided_slice %20 {offsets = [8, 0], sizes = [8, 8], strides = [1, 1]} : vector<16x8xf32> to vector<8x8xf32>
    %47 = vector.extract_strided_slice %27 {offsets = [8, 0], sizes = [8, 8], strides = [1, 1]} : vector<16x8xf32> to vector<8x8xf32>
    %cst_43 = arith.constant dense<0.000000e+00> : vector<8x8xf32>
    %48 = tpu.matmul %45, %46, %cst_43 {dimension_numbers = #tpu.dot_dimension_numbers<[1], [1], [0], [0], [0, 0, 1, 0], [], []>} : vector<8x8xf32>, vector<8x8xf32>, vector<8x8xf32> -> vector<8x8xf32>
    %cst_44 = arith.constant 0.353553385 : f32
    %49 = vector.broadcast %cst_44 : f32 to vector<8x8xf32>
    %50 = arith.mulf %48, %49 : vector<8x8xf32>
    %cst_45 = arith.constant dense<0xFF800000> : vector<8xf32>
    %51 = vector.multi_reduction <maximumf>, %50, %cst_45 [1] : vector<8x8xf32> to vector<8xf32>
    %52 = vector.shape_cast %51 : vector<8xf32> to vector<8x1xf32>
    %53 = vector.broadcast %52 : vector<8x1xf32> to vector<8x8xf32>
    %54 = arith.subf %50, %53 : vector<8x8xf32>
    %55 = math.exp %54 : vector<8x8xf32>
    %cst_46 = arith.constant dense<0.000000e+00> : vector<8xf32>
    %56 = vector.multi_reduction <add>, %55, %cst_46 [1] : vector<8x8xf32> to vector<8xf32>
    %57 = vector.shape_cast %56 : vector<8xf32> to vector<8x1xf32>
    %58 = tpu.reciprocal %57 {approx = true} : vector<8x1xf32> -> vector<8x1xf32>
    %59 = vector.broadcast %58 : vector<8x1xf32> to vector<8x8xf32>
    %60 = arith.mulf %55, %59 : vector<8x8xf32>
    %cst_47 = arith.constant dense<0.000000e+00> : vector<8x8xf32>
    %61 = tpu.matmul %60, %47, %cst_47 {dimension_numbers = #tpu.dot_dimension_numbers<[1], [0], [0], [1], [0, 0, 1, 1], [], []>} : vector<8x8xf32>, vector<8x8xf32>, vector<8x8xf32> -> vector<8x8xf32>
    %62 = tpu.concatenate %44, %61 in 0 : vector<8x8xf32>, vector<8x8xf32> -> vector<16x8xf32>
    %c0_48 = arith.constant 0 : index
    %c0_49 = arith.constant 0 : index
    %c0_50 = arith.constant 0 : index
    %c0_51 = arith.constant 0 : index
    %c0_52 = arith.constant 0 : index
    %63 = vector.load %arg10[%c0_48, %c0_49, %c0_50, %c0_51, %c0_52] : memref<1x1x4x8x32xf32, #tpu.memory_space<vmem>>, vector<1x1x1x8x32xf32>
    %64 = vector.shape_cast %63 : vector<1x1x1x8x32xf32> to vector<8x32xf32>
    %cst_53 = arith.constant dense<0.000000e+00> : vector<16x32xf32>
    %65 = tpu.matmul %62, %64, %cst_53 {dimension_numbers = #tpu.dot_dimension_numbers<[1], [0], [0], [1], [0, 0, 1, 1], [], []>} : vector<16x8xf32>, vector<8x32xf32>, vector<16x32xf32> -> vector<16x32xf32>
    %66 = arith.addf %6, %65 : vector<16x32xf32>
    %c0_54 = arith.constant 0 : index
    %c0_55 = arith.constant 0 : index
    %c1 = arith.constant 1 : index
    %c0_56 = arith.constant 0 : index
    %c0_57 = arith.constant 0 : index
    %67 = vector.load %arg4[%c0_54, %c0_55, %c1, %c0_56, %c0_57] : memref<1x1x4x32x8xf32, #tpu.memory_space<vmem>>, vector<1x1x1x32x8xf32>
    %68 = vector.shape_cast %67 : vector<1x1x1x32x8xf32> to vector<32x8xf32>
    %cst_58 = arith.constant dense<0.000000e+00> : vector<16x8xf32>
    %69 = tpu.matmul %3, %68, %cst_58 {dimension_numbers = #tpu.dot_dimension_numbers<[1], [0], [0], [1], [0, 0, 1, 1], [], []>} : vector<16x32xf32>, vector<32x8xf32>, vector<16x8xf32> -> vector<16x8xf32>
    %c0_59 = arith.constant 0 : index
    %c0_60 = arith.constant 0 : index
    %c1_61 = arith.constant 1 : index
    %c0_62 = arith.constant 0 : index
    %c0_63 = arith.constant 0 : index
    %70 = vector.load %arg5[%c0_59, %c0_60, %c1_61, %c0_62, %c0_63] : memref<1x1x4x1x8xf32, #tpu.memory_space<vmem>>, vector<1x1x1x1x8xf32>
    %71 = vector.shape_cast %70 : vector<1x1x1x1x8xf32> to vector<1x8xf32>
    %72 = vector.broadcast %71 : vector<1x8xf32> to vector<16x8xf32>
    %73 = arith.addf %69, %72 : vector<16x8xf32>
    %c0_64 = arith.constant 0 : index
    %c0_65 = arith.constant 0 : index
    %c1_66 = arith.constant 1 : index
    %c0_67 = arith.constant 0 : index
    %c0_68 = arith.constant 0 : index
    %74 = vector.load %arg6[%c0_64, %c0_65, %c1_66, %c0_67, %c0_68] : memref<1x1x4x32x8xf32, #tpu.memory_space<vmem>>, vector<1x1x1x32x8xf32>
    %75 = vector.shape_cast %74 : vector<1x1x1x32x8xf32> to vector<32x8xf32>
    %cst_69 = arith.constant dense<0.000000e+00> : vector<16x8xf32>
    %76 = tpu.matmul %3, %75, %cst_69 {dimension_numbers = #tpu.dot_dimension_numbers<[1], [0], [0], [1], [0, 0, 1, 1], [], []>} : vector<16x32xf32>, vector<32x8xf32>, vector<16x8xf32> -> vector<16x8xf32>
    %c0_70 = arith.constant 0 : index
    %c0_71 = arith.constant 0 : index
    %c1_72 = arith.constant 1 : index
    %c0_73 = arith.constant 0 : index
    %c0_74 = arith.constant 0 : index
    %77 = vector.load %arg7[%c0_70, %c0_71, %c1_72, %c0_73, %c0_74] : memref<1x1x4x1x8xf32, #tpu.memory_space<vmem>>, vector<1x1x1x1x8xf32>
    %78 = vector.shape_cast %77 : vector<1x1x1x1x8xf32> to vector<1x8xf32>
    %79 = vector.broadcast %78 : vector<1x8xf32> to vector<16x8xf32>
    %80 = arith.addf %76, %79 : vector<16x8xf32>
    %c0_75 = arith.constant 0 : index
    %c0_76 = arith.constant 0 : index
    %c1_77 = arith.constant 1 : index
    %c0_78 = arith.constant 0 : index
    %c0_79 = arith.constant 0 : index
    %81 = vector.load %arg8[%c0_75, %c0_76, %c1_77, %c0_78, %c0_79] : memref<1x1x4x32x8xf32, #tpu.memory_space<vmem>>, vector<1x1x1x32x8xf32>
    %82 = vector.shape_cast %81 : vector<1x1x1x32x8xf32> to vector<32x8xf32>
    %cst_80 = arith.constant dense<0.000000e+00> : vector<16x8xf32>
    %83 = tpu.matmul %3, %82, %cst_80 {dimension_numbers = #tpu.dot_dimension_numbers<[1], [0], [0], [1], [0, 0, 1, 1], [], []>} : vector<16x32xf32>, vector<32x8xf32>, vector<16x8xf32> -> vector<16x8xf32>
    %c0_81 = arith.constant 0 : index
    %c0_82 = arith.constant 0 : index
    %c1_83 = arith.constant 1 : index
    %c0_84 = arith.constant 0 : index
    %c0_85 = arith.constant 0 : index
    %84 = vector.load %arg9[%c0_81, %c0_82, %c1_83, %c0_84, %c0_85] : memref<1x1x4x1x8xf32, #tpu.memory_space<vmem>>, vector<1x1x1x1x8xf32>
    %85 = vector.shape_cast %84 : vector<1x1x1x1x8xf32> to vector<1x8xf32>
    %86 = vector.broadcast %85 : vector<1x8xf32> to vector<16x8xf32>
    %87 = arith.addf %83, %86 : vector<16x8xf32>
    %88 = vector.extract_strided_slice %73 {offsets = [0, 0], sizes = [8, 8], strides = [1, 1]} : vector<16x8xf32> to vector<8x8xf32>
    %89 = vector.extract_strided_slice %80 {offsets = [0, 0], sizes = [8, 8], strides = [1, 1]} : vector<16x8xf32> to vector<8x8xf32>
    %90 = vector.extract_strided_slice %87 {offsets = [0, 0], sizes = [8, 8], strides = [1, 1]} : vector<16x8xf32> to vector<8x8xf32>
    %cst_86 = arith.constant dense<0.000000e+00> : vector<8x8xf32>
    %91 = tpu.matmul %88, %89, %cst_86 {dimension_numbers = #tpu.dot_dimension_numbers<[1], [1], [0], [0], [0, 0, 1, 0], [], []>} : vector<8x8xf32>, vector<8x8xf32>, vector<8x8xf32> -> vector<8x8xf32>
    %cst_87 = arith.constant 0.353553385 : f32
    %92 = vector.broadcast %cst_87 : f32 to vector<8x8xf32>
    %93 = arith.mulf %91, %92 : vector<8x8xf32>
    %cst_88 = arith.constant dense<0xFF800000> : vector<8xf32>
    %94 = vector.multi_reduction <maximumf>, %93, %cst_88 [1] : vector<8x8xf32> to vector<8xf32>
    %95 = vector.shape_cast %94 : vector<8xf32> to vector<8x1xf32>
    %96 = vector.broadcast %95 : vector<8x1xf32> to vector<8x8xf32>
    %97 = arith.subf %93, %96 : vector<8x8xf32>
    %98 = math.exp %97 : vector<8x8xf32>
    %cst_89 = arith.constant dense<0.000000e+00> : vector<8xf32>
    %99 = vector.multi_reduction <add>, %98, %cst_89 [1] : vector<8x8xf32> to vector<8xf32>
    %100 = vector.shape_cast %99 : vector<8xf32> to vector<8x1xf32>
    %101 = tpu.reciprocal %100 {approx = true} : vector<8x1xf32> -> vector<8x1xf32>
    %102 = vector.broadcast %101 : vector<8x1xf32> to vector<8x8xf32>
    %103 = arith.mulf %98, %102 : vector<8x8xf32>
    %cst_90 = arith.constant dense<0.000000e+00> : vector<8x8xf32>
    %104 = tpu.matmul %103, %90, %cst_90 {dimension_numbers = #tpu.dot_dimension_numbers<[1], [0], [0], [1], [0, 0, 1, 1], [], []>} : vector<8x8xf32>, vector<8x8xf32>, vector<8x8xf32> -> vector<8x8xf32>
    %105 = vector.extract_strided_slice %73 {offsets = [8, 0], sizes = [8, 8], strides = [1, 1]} : vector<16x8xf32> to vector<8x8xf32>
    %106 = vector.extract_strided_slice %80 {offsets = [8, 0], sizes = [8, 8], strides = [1, 1]} : vector<16x8xf32> to vector<8x8xf32>
    %107 = vector.extract_strided_slice %87 {offsets = [8, 0], sizes = [8, 8], strides = [1, 1]} : vector<16x8xf32> to vector<8x8xf32>
    %cst_91 = arith.constant dense<0.000000e+00> : vector<8x8xf32>
    %108 = tpu.matmul %105, %106, %cst_91 {dimension_numbers = #tpu.dot_dimension_numbers<[1], [1], [0], [0], [0, 0, 1, 0], [], []>} : vector<8x8xf32>, vector<8x8xf32>, vector<8x8xf32> -> vector<8x8xf32>
    %cst_92 = arith.constant 0.353553385 : f32
    %109 = vector.broadcast %cst_92 : f32 to vector<8x8xf32>
    %110 = arith.mulf %108, %109 : vector<8x8xf32>
    %cst_93 = arith.constant dense<0xFF800000> : vector<8xf32>
    %111 = vector.multi_reduction <maximumf>, %110, %cst_93 [1] : vector<8x8xf32> to vector<8xf32>
    %112 = vector.shape_cast %111 : vector<8xf32> to vector<8x1xf32>
    %113 = vector.broadcast %112 : vector<8x1xf32> to vector<8x8xf32>
    %114 = arith.subf %110, %113 : vector<8x8xf32>
    %115 = math.exp %114 : vector<8x8xf32>
    %cst_94 = arith.constant dense<0.000000e+00> : vector<8xf32>
    %116 = vector.multi_reduction <add>, %115, %cst_94 [1] : vector<8x8xf32> to vector<8xf32>
    %117 = vector.shape_cast %116 : vector<8xf32> to vector<8x1xf32>
    %118 = tpu.reciprocal %117 {approx = true} : vector<8x1xf32> -> vector<8x1xf32>
    %119 = vector.broadcast %118 : vector<8x1xf32> to vector<8x8xf32>
    %120 = arith.mulf %115, %119 : vector<8x8xf32>
    %cst_95 = arith.constant dense<0.000000e+00> : vector<8x8xf32>
    %121 = tpu.matmul %120, %107, %cst_95 {dimension_numbers = #tpu.dot_dimension_numbers<[1], [0], [0], [1], [0, 0, 1, 1], [], []>} : vector<8x8xf32>, vector<8x8xf32>, vector<8x8xf32> -> vector<8x8xf32>
    %122 = tpu.concatenate %104, %121 in 0 : vector<8x8xf32>, vector<8x8xf32> -> vector<16x8xf32>
    %c0_96 = arith.constant 0 : index
    %c0_97 = arith.constant 0 : index
    %c1_98 = arith.constant 1 : index
    %c0_99 = arith.constant 0 : index
    %c0_100 = arith.constant 0 : index
    %123 = vector.load %arg10[%c0_96, %c0_97, %c1_98, %c0_99, %c0_100] : memref<1x1x4x8x32xf32, #tpu.memory_space<vmem>>, vector<1x1x1x8x32xf32>
    %124 = vector.shape_cast %123 : vector<1x1x1x8x32xf32> to vector<8x32xf32>
    %cst_101 = arith.constant dense<0.000000e+00> : vector<16x32xf32>
    %125 = tpu.matmul %122, %124, %cst_101 {dimension_numbers = #tpu.dot_dimension_numbers<[1], [0], [0], [1], [0, 0, 1, 1], [], []>} : vector<16x8xf32>, vector<8x32xf32>, vector<16x32xf32> -> vector<16x32xf32>
    %126 = arith.addf %66, %125 : vector<16x32xf32>
    %c0_102 = arith.constant 0 : index
    %c0_103 = arith.constant 0 : index
    %c2 = arith.constant 2 : index
    %c0_104 = arith.constant 0 : index
    %c0_105 = arith.constant 0 : index
    %127 = vector.load %arg4[%c0_102, %c0_103, %c2, %c0_104, %c0_105] : memref<1x1x4x32x8xf32, #tpu.memory_space<vmem>>, vector<1x1x1x32x8xf32>
    %128 = vector.shape_cast %127 : vector<1x1x1x32x8xf32> to vector<32x8xf32>
    %cst_106 = arith.constant dense<0.000000e+00> : vector<16x8xf32>
    %129 = tpu.matmul %3, %128, %cst_106 {dimension_numbers = #tpu.dot_dimension_numbers<[1], [0], [0], [1], [0, 0, 1, 1], [], []>} : vector<16x32xf32>, vector<32x8xf32>, vector<16x8xf32> -> vector<16x8xf32>
    %c0_107 = arith.constant 0 : index
    %c0_108 = arith.constant 0 : index
    %c2_109 = arith.constant 2 : index
    %c0_110 = arith.constant 0 : index
    %c0_111 = arith.constant 0 : index
    %130 = vector.load %arg5[%c0_107, %c0_108, %c2_109, %c0_110, %c0_111] : memref<1x1x4x1x8xf32, #tpu.memory_space<vmem>>, vector<1x1x1x1x8xf32>
    %131 = vector.shape_cast %130 : vector<1x1x1x1x8xf32> to vector<1x8xf32>
    %132 = vector.broadcast %131 : vector<1x8xf32> to vector<16x8xf32>
    %133 = arith.addf %129, %132 : vector<16x8xf32>
    %c0_112 = arith.constant 0 : index
    %c0_113 = arith.constant 0 : index
    %c2_114 = arith.constant 2 : index
    %c0_115 = arith.constant 0 : index
    %c0_116 = arith.constant 0 : index
    %134 = vector.load %arg6[%c0_112, %c0_113, %c2_114, %c0_115, %c0_116] : memref<1x1x4x32x8xf32, #tpu.memory_space<vmem>>, vector<1x1x1x32x8xf32>
    %135 = vector.shape_cast %134 : vector<1x1x1x32x8xf32> to vector<32x8xf32>
    %cst_117 = arith.constant dense<0.000000e+00> : vector<16x8xf32>
    %136 = tpu.matmul %3, %135, %cst_117 {dimension_numbers = #tpu.dot_dimension_numbers<[1], [0], [0], [1], [0, 0, 1, 1], [], []>} : vector<16x32xf32>, vector<32x8xf32>, vector<16x8xf32> -> vector<16x8xf32>
    %c0_118 = arith.constant 0 : index
    %c0_119 = arith.constant 0 : index
    %c2_120 = arith.constant 2 : index
    %c0_121 = arith.constant 0 : index
    %c0_122 = arith.constant 0 : index
    %137 = vector.load %arg7[%c0_118, %c0_119, %c2_120, %c0_121, %c0_122] : memref<1x1x4x1x8xf32, #tpu.memory_space<vmem>>, vector<1x1x1x1x8xf32>
    %138 = vector.shape_cast %137 : vector<1x1x1x1x8xf32> to vector<1x8xf32>
    %139 = vector.broadcast %138 : vector<1x8xf32> to vector<16x8xf32>
    %140 = arith.addf %136, %139 : vector<16x8xf32>
    %c0_123 = arith.constant 0 : index
    %c0_124 = arith.constant 0 : index
    %c2_125 = arith.constant 2 : index
    %c0_126 = arith.constant 0 : index
    %c0_127 = arith.constant 0 : index
    %141 = vector.load %arg8[%c0_123, %c0_124, %c2_125, %c0_126, %c0_127] : memref<1x1x4x32x8xf32, #tpu.memory_space<vmem>>, vector<1x1x1x32x8xf32>
    %142 = vector.shape_cast %141 : vector<1x1x1x32x8xf32> to vector<32x8xf32>
    %cst_128 = arith.constant dense<0.000000e+00> : vector<16x8xf32>
    %143 = tpu.matmul %3, %142, %cst_128 {dimension_numbers = #tpu.dot_dimension_numbers<[1], [0], [0], [1], [0, 0, 1, 1], [], []>} : vector<16x32xf32>, vector<32x8xf32>, vector<16x8xf32> -> vector<16x8xf32>
    %c0_129 = arith.constant 0 : index
    %c0_130 = arith.constant 0 : index
    %c2_131 = arith.constant 2 : index
    %c0_132 = arith.constant 0 : index
    %c0_133 = arith.constant 0 : index
    %144 = vector.load %arg9[%c0_129, %c0_130, %c2_131, %c0_132, %c0_133] : memref<1x1x4x1x8xf32, #tpu.memory_space<vmem>>, vector<1x1x1x1x8xf32>
    %145 = vector.shape_cast %144 : vector<1x1x1x1x8xf32> to vector<1x8xf32>
    %146 = vector.broadcast %145 : vector<1x8xf32> to vector<16x8xf32>
    %147 = arith.addf %143, %146 : vector<16x8xf32>
    %148 = vector.extract_strided_slice %133 {offsets = [0, 0], sizes = [8, 8], strides = [1, 1]} : vector<16x8xf32> to vector<8x8xf32>
    %149 = vector.extract_strided_slice %140 {offsets = [0, 0], sizes = [8, 8], strides = [1, 1]} : vector<16x8xf32> to vector<8x8xf32>
    %150 = vector.extract_strided_slice %147 {offsets = [0, 0], sizes = [8, 8], strides = [1, 1]} : vector<16x8xf32> to vector<8x8xf32>
    %cst_134 = arith.constant dense<0.000000e+00> : vector<8x8xf32>
    %151 = tpu.matmul %148, %149, %cst_134 {dimension_numbers = #tpu.dot_dimension_numbers<[1], [1], [0], [0], [0, 0, 1, 0], [], []>} : vector<8x8xf32>, vector<8x8xf32>, vector<8x8xf32> -> vector<8x8xf32>
    %cst_135 = arith.constant 0.353553385 : f32
    %152 = vector.broadcast %cst_135 : f32 to vector<8x8xf32>
    %153 = arith.mulf %151, %152 : vector<8x8xf32>
    %cst_136 = arith.constant dense<0xFF800000> : vector<8xf32>
    %154 = vector.multi_reduction <maximumf>, %153, %cst_136 [1] : vector<8x8xf32> to vector<8xf32>
    %155 = vector.shape_cast %154 : vector<8xf32> to vector<8x1xf32>
    %156 = vector.broadcast %155 : vector<8x1xf32> to vector<8x8xf32>
    %157 = arith.subf %153, %156 : vector<8x8xf32>
    %158 = math.exp %157 : vector<8x8xf32>
    %cst_137 = arith.constant dense<0.000000e+00> : vector<8xf32>
    %159 = vector.multi_reduction <add>, %158, %cst_137 [1] : vector<8x8xf32> to vector<8xf32>
    %160 = vector.shape_cast %159 : vector<8xf32> to vector<8x1xf32>
    %161 = tpu.reciprocal %160 {approx = true} : vector<8x1xf32> -> vector<8x1xf32>
    %162 = vector.broadcast %161 : vector<8x1xf32> to vector<8x8xf32>
    %163 = arith.mulf %158, %162 : vector<8x8xf32>
    %cst_138 = arith.constant dense<0.000000e+00> : vector<8x8xf32>
    %164 = tpu.matmul %163, %150, %cst_138 {dimension_numbers = #tpu.dot_dimension_numbers<[1], [0], [0], [1], [0, 0, 1, 1], [], []>} : vector<8x8xf32>, vector<8x8xf32>, vector<8x8xf32> -> vector<8x8xf32>
    %165 = vector.extract_strided_slice %133 {offsets = [8, 0], sizes = [8, 8], strides = [1, 1]} : vector<16x8xf32> to vector<8x8xf32>
    %166 = vector.extract_strided_slice %140 {offsets = [8, 0], sizes = [8, 8], strides = [1, 1]} : vector<16x8xf32> to vector<8x8xf32>
    %167 = vector.extract_strided_slice %147 {offsets = [8, 0], sizes = [8, 8], strides = [1, 1]} : vector<16x8xf32> to vector<8x8xf32>
    %cst_139 = arith.constant dense<0.000000e+00> : vector<8x8xf32>
    %168 = tpu.matmul %165, %166, %cst_139 {dimension_numbers = #tpu.dot_dimension_numbers<[1], [1], [0], [0], [0, 0, 1, 0], [], []>} : vector<8x8xf32>, vector<8x8xf32>, vector<8x8xf32> -> vector<8x8xf32>
    %cst_140 = arith.constant 0.353553385 : f32
    %169 = vector.broadcast %cst_140 : f32 to vector<8x8xf32>
    %170 = arith.mulf %168, %169 : vector<8x8xf32>
    %cst_141 = arith.constant dense<0xFF800000> : vector<8xf32>
    %171 = vector.multi_reduction <maximumf>, %170, %cst_141 [1] : vector<8x8xf32> to vector<8xf32>
    %172 = vector.shape_cast %171 : vector<8xf32> to vector<8x1xf32>
    %173 = vector.broadcast %172 : vector<8x1xf32> to vector<8x8xf32>
    %174 = arith.subf %170, %173 : vector<8x8xf32>
    %175 = math.exp %174 : vector<8x8xf32>
    %cst_142 = arith.constant dense<0.000000e+00> : vector<8xf32>
    %176 = vector.multi_reduction <add>, %175, %cst_142 [1] : vector<8x8xf32> to vector<8xf32>
    %177 = vector.shape_cast %176 : vector<8xf32> to vector<8x1xf32>
    %178 = tpu.reciprocal %177 {approx = true} : vector<8x1xf32> -> vector<8x1xf32>
    %179 = vector.broadcast %178 : vector<8x1xf32> to vector<8x8xf32>
    %180 = arith.mulf %175, %179 : vector<8x8xf32>
    %cst_143 = arith.constant dense<0.000000e+00> : vector<8x8xf32>
    %181 = tpu.matmul %180, %167, %cst_143 {dimension_numbers = #tpu.dot_dimension_numbers<[1], [0], [0], [1], [0, 0, 1, 1], [], []>} : vector<8x8xf32>, vector<8x8xf32>, vector<8x8xf32> -> vector<8x8xf32>
    %182 = tpu.concatenate %164, %181 in 0 : vector<8x8xf32>, vector<8x8xf32> -> vector<16x8xf32>
    %c0_144 = arith.constant 0 : index
    %c0_145 = arith.constant 0 : index
    %c2_146 = arith.constant 2 : index
    %c0_147 = arith.constant 0 : index
    %c0_148 = arith.constant 0 : index
    %183 = vector.load %arg10[%c0_144, %c0_145, %c2_146, %c0_147, %c0_148] : memref<1x1x4x8x32xf32, #tpu.memory_space<vmem>>, vector<1x1x1x8x32xf32>
    %184 = vector.shape_cast %183 : vector<1x1x1x8x32xf32> to vector<8x32xf32>
    %cst_149 = arith.constant dense<0.000000e+00> : vector<16x32xf32>
    %185 = tpu.matmul %182, %184, %cst_149 {dimension_numbers = #tpu.dot_dimension_numbers<[1], [0], [0], [1], [0, 0, 1, 1], [], []>} : vector<16x8xf32>, vector<8x32xf32>, vector<16x32xf32> -> vector<16x32xf32>
    %186 = arith.addf %126, %185 : vector<16x32xf32>
    %c0_150 = arith.constant 0 : index
    %c0_151 = arith.constant 0 : index
    %c3 = arith.constant 3 : index
    %c0_152 = arith.constant 0 : index
    %c0_153 = arith.constant 0 : index
    %187 = vector.load %arg4[%c0_150, %c0_151, %c3, %c0_152, %c0_153] : memref<1x1x4x32x8xf32, #tpu.memory_space<vmem>>, vector<1x1x1x32x8xf32>
    %188 = vector.shape_cast %187 : vector<1x1x1x32x8xf32> to vector<32x8xf32>
    %cst_154 = arith.constant dense<0.000000e+00> : vector<16x8xf32>
    %189 = tpu.matmul %3, %188, %cst_154 {dimension_numbers = #tpu.dot_dimension_numbers<[1], [0], [0], [1], [0, 0, 1, 1], [], []>} : vector<16x32xf32>, vector<32x8xf32>, vector<16x8xf32> -> vector<16x8xf32>
    %c0_155 = arith.constant 0 : index
    %c0_156 = arith.constant 0 : index
    %c3_157 = arith.constant 3 : index
    %c0_158 = arith.constant 0 : index
    %c0_159 = arith.constant 0 : index
    %190 = vector.load %arg5[%c0_155, %c0_156, %c3_157, %c0_158, %c0_159] : memref<1x1x4x1x8xf32, #tpu.memory_space<vmem>>, vector<1x1x1x1x8xf32>
    %191 = vector.shape_cast %190 : vector<1x1x1x1x8xf32> to vector<1x8xf32>
    %192 = vector.broadcast %191 : vector<1x8xf32> to vector<16x8xf32>
    %193 = arith.addf %189, %192 : vector<16x8xf32>
    %c0_160 = arith.constant 0 : index
    %c0_161 = arith.constant 0 : index
    %c3_162 = arith.constant 3 : index
    %c0_163 = arith.constant 0 : index
    %c0_164 = arith.constant 0 : index
    %194 = vector.load %arg6[%c0_160, %c0_161, %c3_162, %c0_163, %c0_164] : memref<1x1x4x32x8xf32, #tpu.memory_space<vmem>>, vector<1x1x1x32x8xf32>
    %195 = vector.shape_cast %194 : vector<1x1x1x32x8xf32> to vector<32x8xf32>
    %cst_165 = arith.constant dense<0.000000e+00> : vector<16x8xf32>
    %196 = tpu.matmul %3, %195, %cst_165 {dimension_numbers = #tpu.dot_dimension_numbers<[1], [0], [0], [1], [0, 0, 1, 1], [], []>} : vector<16x32xf32>, vector<32x8xf32>, vector<16x8xf32> -> vector<16x8xf32>
    %c0_166 = arith.constant 0 : index
    %c0_167 = arith.constant 0 : index
    %c3_168 = arith.constant 3 : index
    %c0_169 = arith.constant 0 : index
    %c0_170 = arith.constant 0 : index
    %197 = vector.load %arg7[%c0_166, %c0_167, %c3_168, %c0_169, %c0_170] : memref<1x1x4x1x8xf32, #tpu.memory_space<vmem>>, vector<1x1x1x1x8xf32>
    %198 = vector.shape_cast %197 : vector<1x1x1x1x8xf32> to vector<1x8xf32>
    %199 = vector.broadcast %198 : vector<1x8xf32> to vector<16x8xf32>
    %200 = arith.addf %196, %199 : vector<16x8xf32>
    %c0_171 = arith.constant 0 : index
    %c0_172 = arith.constant 0 : index
    %c3_173 = arith.constant 3 : index
    %c0_174 = arith.constant 0 : index
    %c0_175 = arith.constant 0 : index
    %201 = vector.load %arg8[%c0_171, %c0_172, %c3_173, %c0_174, %c0_175] : memref<1x1x4x32x8xf32, #tpu.memory_space<vmem>>, vector<1x1x1x32x8xf32>
    %202 = vector.shape_cast %201 : vector<1x1x1x32x8xf32> to vector<32x8xf32>
    %cst_176 = arith.constant dense<0.000000e+00> : vector<16x8xf32>
    %203 = tpu.matmul %3, %202, %cst_176 {dimension_numbers = #tpu.dot_dimension_numbers<[1], [0], [0], [1], [0, 0, 1, 1], [], []>} : vector<16x32xf32>, vector<32x8xf32>, vector<16x8xf32> -> vector<16x8xf32>
    %c0_177 = arith.constant 0 : index
    %c0_178 = arith.constant 0 : index
    %c3_179 = arith.constant 3 : index
    %c0_180 = arith.constant 0 : index
    %c0_181 = arith.constant 0 : index
    %204 = vector.load %arg9[%c0_177, %c0_178, %c3_179, %c0_180, %c0_181] : memref<1x1x4x1x8xf32, #tpu.memory_space<vmem>>, vector<1x1x1x1x8xf32>
    %205 = vector.shape_cast %204 : vector<1x1x1x1x8xf32> to vector<1x8xf32>
    %206 = vector.broadcast %205 : vector<1x8xf32> to vector<16x8xf32>
    %207 = arith.addf %203, %206 : vector<16x8xf32>
    %208 = vector.extract_strided_slice %193 {offsets = [0, 0], sizes = [8, 8], strides = [1, 1]} : vector<16x8xf32> to vector<8x8xf32>
    %209 = vector.extract_strided_slice %200 {offsets = [0, 0], sizes = [8, 8], strides = [1, 1]} : vector<16x8xf32> to vector<8x8xf32>
    %210 = vector.extract_strided_slice %207 {offsets = [0, 0], sizes = [8, 8], strides = [1, 1]} : vector<16x8xf32> to vector<8x8xf32>
    %cst_182 = arith.constant dense<0.000000e+00> : vector<8x8xf32>
    %211 = tpu.matmul %208, %209, %cst_182 {dimension_numbers = #tpu.dot_dimension_numbers<[1], [1], [0], [0], [0, 0, 1, 0], [], []>} : vector<8x8xf32>, vector<8x8xf32>, vector<8x8xf32> -> vector<8x8xf32>
    %cst_183 = arith.constant 0.353553385 : f32
    %212 = vector.broadcast %cst_183 : f32 to vector<8x8xf32>
    %213 = arith.mulf %211, %212 : vector<8x8xf32>
    %cst_184 = arith.constant dense<0xFF800000> : vector<8xf32>
    %214 = vector.multi_reduction <maximumf>, %213, %cst_184 [1] : vector<8x8xf32> to vector<8xf32>
    %215 = vector.shape_cast %214 : vector<8xf32> to vector<8x1xf32>
    %216 = vector.broadcast %215 : vector<8x1xf32> to vector<8x8xf32>
    %217 = arith.subf %213, %216 : vector<8x8xf32>
    %218 = math.exp %217 : vector<8x8xf32>
    %cst_185 = arith.constant dense<0.000000e+00> : vector<8xf32>
    %219 = vector.multi_reduction <add>, %218, %cst_185 [1] : vector<8x8xf32> to vector<8xf32>
    %220 = vector.shape_cast %219 : vector<8xf32> to vector<8x1xf32>
    %221 = tpu.reciprocal %220 {approx = true} : vector<8x1xf32> -> vector<8x1xf32>
    %222 = vector.broadcast %221 : vector<8x1xf32> to vector<8x8xf32>
    %223 = arith.mulf %218, %222 : vector<8x8xf32>
    %cst_186 = arith.constant dense<0.000000e+00> : vector<8x8xf32>
    %224 = tpu.matmul %223, %210, %cst_186 {dimension_numbers = #tpu.dot_dimension_numbers<[1], [0], [0], [1], [0, 0, 1, 1], [], []>} : vector<8x8xf32>, vector<8x8xf32>, vector<8x8xf32> -> vector<8x8xf32>
    %225 = vector.extract_strided_slice %193 {offsets = [8, 0], sizes = [8, 8], strides = [1, 1]} : vector<16x8xf32> to vector<8x8xf32>
    %226 = vector.extract_strided_slice %200 {offsets = [8, 0], sizes = [8, 8], strides = [1, 1]} : vector<16x8xf32> to vector<8x8xf32>
    %227 = vector.extract_strided_slice %207 {offsets = [8, 0], sizes = [8, 8], strides = [1, 1]} : vector<16x8xf32> to vector<8x8xf32>
    %cst_187 = arith.constant dense<0.000000e+00> : vector<8x8xf32>
    %228 = tpu.matmul %225, %226, %cst_187 {dimension_numbers = #tpu.dot_dimension_numbers<[1], [1], [0], [0], [0, 0, 1, 0], [], []>} : vector<8x8xf32>, vector<8x8xf32>, vector<8x8xf32> -> vector<8x8xf32>
    %cst_188 = arith.constant 0.353553385 : f32
    %229 = vector.broadcast %cst_188 : f32 to vector<8x8xf32>
    %230 = arith.mulf %228, %229 : vector<8x8xf32>
    %cst_189 = arith.constant dense<0xFF800000> : vector<8xf32>
    %231 = vector.multi_reduction <maximumf>, %230, %cst_189 [1] : vector<8x8xf32> to vector<8xf32>
    %232 = vector.shape_cast %231 : vector<8xf32> to vector<8x1xf32>
    %233 = vector.broadcast %232 : vector<8x1xf32> to vector<8x8xf32>
    %234 = arith.subf %230, %233 : vector<8x8xf32>
    %235 = math.exp %234 : vector<8x8xf32>
    %cst_190 = arith.constant dense<0.000000e+00> : vector<8xf32>
    %236 = vector.multi_reduction <add>, %235, %cst_190 [1] : vector<8x8xf32> to vector<8xf32>
    %237 = vector.shape_cast %236 : vector<8xf32> to vector<8x1xf32>
    %238 = tpu.reciprocal %237 {approx = true} : vector<8x1xf32> -> vector<8x1xf32>
    %239 = vector.broadcast %238 : vector<8x1xf32> to vector<8x8xf32>
    %240 = arith.mulf %235, %239 : vector<8x8xf32>
    %cst_191 = arith.constant dense<0.000000e+00> : vector<8x8xf32>
    %241 = tpu.matmul %240, %227, %cst_191 {dimension_numbers = #tpu.dot_dimension_numbers<[1], [0], [0], [1], [0, 0, 1, 1], [], []>} : vector<8x8xf32>, vector<8x8xf32>, vector<8x8xf32> -> vector<8x8xf32>
    %242 = tpu.concatenate %224, %241 in 0 : vector<8x8xf32>, vector<8x8xf32> -> vector<16x8xf32>
    %c0_192 = arith.constant 0 : index
    %c0_193 = arith.constant 0 : index
    %c3_194 = arith.constant 3 : index
    %c0_195 = arith.constant 0 : index
    %c0_196 = arith.constant 0 : index
    %243 = vector.load %arg10[%c0_192, %c0_193, %c3_194, %c0_195, %c0_196] : memref<1x1x4x8x32xf32, #tpu.memory_space<vmem>>, vector<1x1x1x8x32xf32>
    %244 = vector.shape_cast %243 : vector<1x1x1x8x32xf32> to vector<8x32xf32>
    %cst_197 = arith.constant dense<0.000000e+00> : vector<16x32xf32>
    %245 = tpu.matmul %242, %244, %cst_197 {dimension_numbers = #tpu.dot_dimension_numbers<[1], [0], [0], [1], [0, 0, 1, 1], [], []>} : vector<16x8xf32>, vector<8x32xf32>, vector<16x32xf32> -> vector<16x32xf32>
    %246 = arith.addf %186, %245 : vector<16x32xf32>
    %c0_198 = arith.constant 0 : index
    %c0_199 = arith.constant 0 : index
    %c0_200 = arith.constant 0 : index
    %c0_201 = arith.constant 0 : index
    %247 = vector.load %arg11[%c0_198, %c0_199, %c0_200, %c0_201] : memref<1x1x1x32xf32, #tpu.memory_space<vmem>>, vector<1x1x1x32xf32>
    %248 = vector.shape_cast %247 : vector<1x1x1x32xf32> to vector<1x32xf32>
    %249 = vector.broadcast %248 : vector<1x32xf32> to vector<16x32xf32>
    %250 = arith.addf %246, %249 : vector<16x32xf32>
    %251 = arith.addf %3, %250 : vector<16x32xf32>
    %c0_202 = arith.constant 0 : index
    %c0_203 = arith.constant 0 : index
    %c0_204 = arith.constant 0 : index
    %c0_205 = arith.constant 0 : index
    %252 = vector.load %arg12[%c0_202, %c0_203, %c0_204, %c0_205] : memref<1x1x1x32xf32, #tpu.memory_space<vmem>>, vector<1x1x1x32xf32>
    %253 = vector.shape_cast %252 : vector<1x1x1x32xf32> to vector<1x32xf32>
    %c0_206 = arith.constant 0 : index
    %c0_207 = arith.constant 0 : index
    %c0_208 = arith.constant 0 : index
    %c0_209 = arith.constant 0 : index
    %254 = vector.load %arg13[%c0_206, %c0_207, %c0_208, %c0_209] : memref<1x1x1x32xf32, #tpu.memory_space<vmem>>, vector<1x1x1x32xf32>
    %255 = vector.shape_cast %254 : vector<1x1x1x32xf32> to vector<1x32xf32>
    %cst_210 = arith.constant dense<0.000000e+00> : vector<16xf32>
    %256 = vector.multi_reduction <add>, %251, %cst_210 [1] : vector<16x32xf32> to vector<16xf32>
    %257 = vector.shape_cast %256 : vector<16xf32> to vector<16x1xf32>
    %cst_211 = arith.constant 3.200000e+01 : f32
    %258 = vector.broadcast %cst_211 : f32 to vector<16x1xf32>
    %259 = arith.divf %257, %258 : vector<16x1xf32>
    %260 = vector.broadcast %259 : vector<16x1xf32> to vector<16x32xf32>
    %261 = arith.subf %251, %260 : vector<16x32xf32>
    %262 = arith.mulf %261, %261 : vector<16x32xf32>
    %cst_212 = arith.constant dense<0.000000e+00> : vector<16xf32>
    %263 = vector.multi_reduction <add>, %262, %cst_212 [1] : vector<16x32xf32> to vector<16xf32>
    %264 = vector.shape_cast %263 : vector<16xf32> to vector<16x1xf32>
    %cst_213 = arith.constant 3.200000e+01 : f32
    %265 = vector.broadcast %cst_213 : f32 to vector<16x1xf32>
    %266 = arith.divf %264, %265 : vector<16x1xf32>
    %267 = vector.broadcast %259 : vector<16x1xf32> to vector<16x32xf32>
    %268 = arith.subf %251, %267 : vector<16x32xf32>
    %cst_214 = arith.constant 9.99999974E-6 : f32
    %269 = vector.broadcast %cst_214 : f32 to vector<16x1xf32>
    %270 = arith.addf %266, %269 : vector<16x1xf32>
    %271 = math.rsqrt %270 : vector<16x1xf32>
    %272 = vector.broadcast %271 : vector<16x1xf32> to vector<16x32xf32>
    %273 = arith.mulf %268, %272 : vector<16x32xf32>
    %274 = vector.broadcast %253 : vector<1x32xf32> to vector<16x32xf32>
    %275 = arith.mulf %273, %274 : vector<16x32xf32>
    %276 = vector.broadcast %255 : vector<1x32xf32> to vector<16x32xf32>
    %277 = arith.addf %275, %276 : vector<16x32xf32>
    %cst_215 = arith.constant 0.000000e+00 : f32
    %278 = vector.broadcast %cst_215 : f32 to vector<16x32xf32>
    %c0_216 = arith.constant 0 : index
    %c0_217 = arith.constant 0 : index
    %c0_218 = arith.constant 0 : index
    %c0_219 = arith.constant 0 : index
    %c0_220 = arith.constant 0 : index
    %279 = vector.load %arg14[%c0_216, %c0_217, %c0_218, %c0_219, %c0_220] : memref<1x1x4x32x8xf32, #tpu.memory_space<vmem>>, vector<1x1x1x32x8xf32>
    %280 = vector.shape_cast %279 : vector<1x1x1x32x8xf32> to vector<32x8xf32>
    %cst_221 = arith.constant dense<0.000000e+00> : vector<16x8xf32>
    %281 = tpu.matmul %277, %280, %cst_221 {dimension_numbers = #tpu.dot_dimension_numbers<[1], [0], [0], [1], [0, 0, 1, 1], [], []>} : vector<16x32xf32>, vector<32x8xf32>, vector<16x8xf32> -> vector<16x8xf32>
    %c0_222 = arith.constant 0 : index
    %c0_223 = arith.constant 0 : index
    %c0_224 = arith.constant 0 : index
    %c0_225 = arith.constant 0 : index
    %c0_226 = arith.constant 0 : index
    %282 = vector.load %arg15[%c0_222, %c0_223, %c0_224, %c0_225, %c0_226] : memref<1x1x4x1x8xf32, #tpu.memory_space<vmem>>, vector<1x1x1x1x8xf32>
    %283 = vector.shape_cast %282 : vector<1x1x1x1x8xf32> to vector<1x8xf32>
    %284 = vector.broadcast %283 : vector<1x8xf32> to vector<16x8xf32>
    %285 = arith.addf %281, %284 : vector<16x8xf32>
    %c0_227 = arith.constant 0 : index
    %c0_228 = arith.constant 0 : index
    %c0_229 = arith.constant 0 : index
    %c0_230 = arith.constant 0 : index
    %c0_231 = arith.constant 0 : index
    %286 = vector.load %arg16[%c0_227, %c0_228, %c0_229, %c0_230, %c0_231] : memref<1x1x4x32x8xf32, #tpu.memory_space<vmem>>, vector<1x1x1x32x8xf32>
    %287 = vector.shape_cast %286 : vector<1x1x1x32x8xf32> to vector<32x8xf32>
    %cst_232 = arith.constant dense<0.000000e+00> : vector<16x8xf32>
    %288 = tpu.matmul %5, %287, %cst_232 {dimension_numbers = #tpu.dot_dimension_numbers<[1], [0], [0], [1], [0, 0, 1, 1], [], []>} : vector<16x32xf32>, vector<32x8xf32>, vector<16x8xf32> -> vector<16x8xf32>
    %c0_233 = arith.constant 0 : index
    %c0_234 = arith.constant 0 : index
    %c0_235 = arith.constant 0 : index
    %c0_236 = arith.constant 0 : index
    %c0_237 = arith.constant 0 : index
    %289 = vector.load %arg17[%c0_233, %c0_234, %c0_235, %c0_236, %c0_237] : memref<1x1x4x1x8xf32, #tpu.memory_space<vmem>>, vector<1x1x1x1x8xf32>
    %290 = vector.shape_cast %289 : vector<1x1x1x1x8xf32> to vector<1x8xf32>
    %291 = vector.broadcast %290 : vector<1x8xf32> to vector<16x8xf32>
    %292 = arith.addf %288, %291 : vector<16x8xf32>
    %c0_238 = arith.constant 0 : index
    %c0_239 = arith.constant 0 : index
    %c0_240 = arith.constant 0 : index
    %c0_241 = arith.constant 0 : index
    %c0_242 = arith.constant 0 : index
    %293 = vector.load %arg18[%c0_238, %c0_239, %c0_240, %c0_241, %c0_242] : memref<1x1x4x32x8xf32, #tpu.memory_space<vmem>>, vector<1x1x1x32x8xf32>
    %294 = vector.shape_cast %293 : vector<1x1x1x32x8xf32> to vector<32x8xf32>
    %cst_243 = arith.constant dense<0.000000e+00> : vector<16x8xf32>
    %295 = tpu.matmul %5, %294, %cst_243 {dimension_numbers = #tpu.dot_dimension_numbers<[1], [0], [0], [1], [0, 0, 1, 1], [], []>} : vector<16x32xf32>, vector<32x8xf32>, vector<16x8xf32> -> vector<16x8xf32>
    %c0_244 = arith.constant 0 : index
    %c0_245 = arith.constant 0 : index
    %c0_246 = arith.constant 0 : index
    %c0_247 = arith.constant 0 : index
    %c0_248 = arith.constant 0 : index
    %296 = vector.load %arg19[%c0_244, %c0_245, %c0_246, %c0_247, %c0_248] : memref<1x1x4x1x8xf32, #tpu.memory_space<vmem>>, vector<1x1x1x1x8xf32>
    %297 = vector.shape_cast %296 : vector<1x1x1x1x8xf32> to vector<1x8xf32>
    %298 = vector.broadcast %297 : vector<1x8xf32> to vector<16x8xf32>
    %299 = arith.addf %295, %298 : vector<16x8xf32>
    %300 = vector.extract_strided_slice %285 {offsets = [0, 0], sizes = [8, 8], strides = [1, 1]} : vector<16x8xf32> to vector<8x8xf32>
    %301 = vector.extract_strided_slice %292 {offsets = [0, 0], sizes = [8, 8], strides = [1, 1]} : vector<16x8xf32> to vector<8x8xf32>
    %302 = vector.extract_strided_slice %299 {offsets = [0, 0], sizes = [8, 8], strides = [1, 1]} : vector<16x8xf32> to vector<8x8xf32>
    %cst_249 = arith.constant dense<0.000000e+00> : vector<8x8xf32>
    %303 = tpu.matmul %300, %301, %cst_249 {dimension_numbers = #tpu.dot_dimension_numbers<[1], [1], [0], [0], [0, 0, 1, 0], [], []>} : vector<8x8xf32>, vector<8x8xf32>, vector<8x8xf32> -> vector<8x8xf32>
    %cst_250 = arith.constant 0.353553385 : f32
    %304 = vector.broadcast %cst_250 : f32 to vector<8x8xf32>
    %305 = arith.mulf %303, %304 : vector<8x8xf32>
    %cst_251 = arith.constant dense<0xFF800000> : vector<8xf32>
    %306 = vector.multi_reduction <maximumf>, %305, %cst_251 [1] : vector<8x8xf32> to vector<8xf32>
    %307 = vector.shape_cast %306 : vector<8xf32> to vector<8x1xf32>
    %308 = vector.broadcast %307 : vector<8x1xf32> to vector<8x8xf32>
    %309 = arith.subf %305, %308 : vector<8x8xf32>
    %310 = math.exp %309 : vector<8x8xf32>
    %cst_252 = arith.constant dense<0.000000e+00> : vector<8xf32>
    %311 = vector.multi_reduction <add>, %310, %cst_252 [1] : vector<8x8xf32> to vector<8xf32>
    %312 = vector.shape_cast %311 : vector<8xf32> to vector<8x1xf32>
    %313 = tpu.reciprocal %312 {approx = true} : vector<8x1xf32> -> vector<8x1xf32>
    %314 = vector.broadcast %313 : vector<8x1xf32> to vector<8x8xf32>
    %315 = arith.mulf %310, %314 : vector<8x8xf32>
    %cst_253 = arith.constant dense<0.000000e+00> : vector<8x8xf32>
    %316 = tpu.matmul %315, %302, %cst_253 {dimension_numbers = #tpu.dot_dimension_numbers<[1], [0], [0], [1], [0, 0, 1, 1], [], []>} : vector<8x8xf32>, vector<8x8xf32>, vector<8x8xf32> -> vector<8x8xf32>
    %317 = vector.extract_strided_slice %285 {offsets = [8, 0], sizes = [8, 8], strides = [1, 1]} : vector<16x8xf32> to vector<8x8xf32>
    %318 = vector.extract_strided_slice %292 {offsets = [8, 0], sizes = [8, 8], strides = [1, 1]} : vector<16x8xf32> to vector<8x8xf32>
    %319 = vector.extract_strided_slice %299 {offsets = [8, 0], sizes = [8, 8], strides = [1, 1]} : vector<16x8xf32> to vector<8x8xf32>
    %cst_254 = arith.constant dense<0.000000e+00> : vector<8x8xf32>
    %320 = tpu.matmul %317, %318, %cst_254 {dimension_numbers = #tpu.dot_dimension_numbers<[1], [1], [0], [0], [0, 0, 1, 0], [], []>} : vector<8x8xf32>, vector<8x8xf32>, vector<8x8xf32> -> vector<8x8xf32>
    %cst_255 = arith.constant 0.353553385 : f32
    %321 = vector.broadcast %cst_255 : f32 to vector<8x8xf32>
    %322 = arith.mulf %320, %321 : vector<8x8xf32>
    %cst_256 = arith.constant dense<0xFF800000> : vector<8xf32>
    %323 = vector.multi_reduction <maximumf>, %322, %cst_256 [1] : vector<8x8xf32> to vector<8xf32>
    %324 = vector.shape_cast %323 : vector<8xf32> to vector<8x1xf32>
    %325 = vector.broadcast %324 : vector<8x1xf32> to vector<8x8xf32>
    %326 = arith.subf %322, %325 : vector<8x8xf32>
    %327 = math.exp %326 : vector<8x8xf32>
    %cst_257 = arith.constant dense<0.000000e+00> : vector<8xf32>
    %328 = vector.multi_reduction <add>, %327, %cst_257 [1] : vector<8x8xf32> to vector<8xf32>
    %329 = vector.shape_cast %328 : vector<8xf32> to vector<8x1xf32>
    %330 = tpu.reciprocal %329 {approx = true} : vector<8x1xf32> -> vector<8x1xf32>
    %331 = vector.broadcast %330 : vector<8x1xf32> to vector<8x8xf32>
    %332 = arith.mulf %327, %331 : vector<8x8xf32>
    %cst_258 = arith.constant dense<0.000000e+00> : vector<8x8xf32>
    %333 = tpu.matmul %332, %319, %cst_258 {dimension_numbers = #tpu.dot_dimension_numbers<[1], [0], [0], [1], [0, 0, 1, 1], [], []>} : vector<8x8xf32>, vector<8x8xf32>, vector<8x8xf32> -> vector<8x8xf32>
    %334 = tpu.concatenate %316, %333 in 0 : vector<8x8xf32>, vector<8x8xf32> -> vector<16x8xf32>
    %c0_259 = arith.constant 0 : index
    %c0_260 = arith.constant 0 : index
    %c0_261 = arith.constant 0 : index
    %c0_262 = arith.constant 0 : index
    %c0_263 = arith.constant 0 : index
    %335 = vector.load %arg20[%c0_259, %c0_260, %c0_261, %c0_262, %c0_263] : memref<1x1x4x8x32xf32, #tpu.memory_space<vmem>>, vector<1x1x1x8x32xf32>
    %336 = vector.shape_cast %335 : vector<1x1x1x8x32xf32> to vector<8x32xf32>
    %cst_264 = arith.constant dense<0.000000e+00> : vector<16x32xf32>
    %337 = tpu.matmul %334, %336, %cst_264 {dimension_numbers = #tpu.dot_dimension_numbers<[1], [0], [0], [1], [0, 0, 1, 1], [], []>} : vector<16x8xf32>, vector<8x32xf32>, vector<16x32xf32> -> vector<16x32xf32>
    %338 = arith.addf %278, %337 : vector<16x32xf32>
    %c0_265 = arith.constant 0 : index
    %c0_266 = arith.constant 0 : index
    %c1_267 = arith.constant 1 : index
    %c0_268 = arith.constant 0 : index
    %c0_269 = arith.constant 0 : index
    %339 = vector.load %arg14[%c0_265, %c0_266, %c1_267, %c0_268, %c0_269] : memref<1x1x4x32x8xf32, #tpu.memory_space<vmem>>, vector<1x1x1x32x8xf32>
    %340 = vector.shape_cast %339 : vector<1x1x1x32x8xf32> to vector<32x8xf32>
    %cst_270 = arith.constant dense<0.000000e+00> : vector<16x8xf32>
    %341 = tpu.matmul %277, %340, %cst_270 {dimension_numbers = #tpu.dot_dimension_numbers<[1], [0], [0], [1], [0, 0, 1, 1], [], []>} : vector<16x32xf32>, vector<32x8xf32>, vector<16x8xf32> -> vector<16x8xf32>
    %c0_271 = arith.constant 0 : index
    %c0_272 = arith.constant 0 : index
    %c1_273 = arith.constant 1 : index
    %c0_274 = arith.constant 0 : index
    %c0_275 = arith.constant 0 : index
    %342 = vector.load %arg15[%c0_271, %c0_272, %c1_273, %c0_274, %c0_275] : memref<1x1x4x1x8xf32, #tpu.memory_space<vmem>>, vector<1x1x1x1x8xf32>
    %343 = vector.shape_cast %342 : vector<1x1x1x1x8xf32> to vector<1x8xf32>
    %344 = vector.broadcast %343 : vector<1x8xf32> to vector<16x8xf32>
    %345 = arith.addf %341, %344 : vector<16x8xf32>
    %c0_276 = arith.constant 0 : index
    %c0_277 = arith.constant 0 : index
    %c1_278 = arith.constant 1 : index
    %c0_279 = arith.constant 0 : index
    %c0_280 = arith.constant 0 : index
    %346 = vector.load %arg16[%c0_276, %c0_277, %c1_278, %c0_279, %c0_280] : memref<1x1x4x32x8xf32, #tpu.memory_space<vmem>>, vector<1x1x1x32x8xf32>
    %347 = vector.shape_cast %346 : vector<1x1x1x32x8xf32> to vector<32x8xf32>
    %cst_281 = arith.constant dense<0.000000e+00> : vector<16x8xf32>
    %348 = tpu.matmul %5, %347, %cst_281 {dimension_numbers = #tpu.dot_dimension_numbers<[1], [0], [0], [1], [0, 0, 1, 1], [], []>} : vector<16x32xf32>, vector<32x8xf32>, vector<16x8xf32> -> vector<16x8xf32>
    %c0_282 = arith.constant 0 : index
    %c0_283 = arith.constant 0 : index
    %c1_284 = arith.constant 1 : index
    %c0_285 = arith.constant 0 : index
    %c0_286 = arith.constant 0 : index
    %349 = vector.load %arg17[%c0_282, %c0_283, %c1_284, %c0_285, %c0_286] : memref<1x1x4x1x8xf32, #tpu.memory_space<vmem>>, vector<1x1x1x1x8xf32>
    %350 = vector.shape_cast %349 : vector<1x1x1x1x8xf32> to vector<1x8xf32>
    %351 = vector.broadcast %350 : vector<1x8xf32> to vector<16x8xf32>
    %352 = arith.addf %348, %351 : vector<16x8xf32>
    %c0_287 = arith.constant 0 : index
    %c0_288 = arith.constant 0 : index
    %c1_289 = arith.constant 1 : index
    %c0_290 = arith.constant 0 : index
    %c0_291 = arith.constant 0 : index
    %353 = vector.load %arg18[%c0_287, %c0_288, %c1_289, %c0_290, %c0_291] : memref<1x1x4x32x8xf32, #tpu.memory_space<vmem>>, vector<1x1x1x32x8xf32>
    %354 = vector.shape_cast %353 : vector<1x1x1x32x8xf32> to vector<32x8xf32>
    %cst_292 = arith.constant dense<0.000000e+00> : vector<16x8xf32>
    %355 = tpu.matmul %5, %354, %cst_292 {dimension_numbers = #tpu.dot_dimension_numbers<[1], [0], [0], [1], [0, 0, 1, 1], [], []>} : vector<16x32xf32>, vector<32x8xf32>, vector<16x8xf32> -> vector<16x8xf32>
    %c0_293 = arith.constant 0 : index
    %c0_294 = arith.constant 0 : index
    %c1_295 = arith.constant 1 : index
    %c0_296 = arith.constant 0 : index
    %c0_297 = arith.constant 0 : index
    %356 = vector.load %arg19[%c0_293, %c0_294, %c1_295, %c0_296, %c0_297] : memref<1x1x4x1x8xf32, #tpu.memory_space<vmem>>, vector<1x1x1x1x8xf32>
    %357 = vector.shape_cast %356 : vector<1x1x1x1x8xf32> to vector<1x8xf32>
    %358 = vector.broadcast %357 : vector<1x8xf32> to vector<16x8xf32>
    %359 = arith.addf %355, %358 : vector<16x8xf32>
    %360 = vector.extract_strided_slice %345 {offsets = [0, 0], sizes = [8, 8], strides = [1, 1]} : vector<16x8xf32> to vector<8x8xf32>
    %361 = vector.extract_strided_slice %352 {offsets = [0, 0], sizes = [8, 8], strides = [1, 1]} : vector<16x8xf32> to vector<8x8xf32>
    %362 = vector.extract_strided_slice %359 {offsets = [0, 0], sizes = [8, 8], strides = [1, 1]} : vector<16x8xf32> to vector<8x8xf32>
    %cst_298 = arith.constant dense<0.000000e+00> : vector<8x8xf32>
    %363 = tpu.matmul %360, %361, %cst_298 {dimension_numbers = #tpu.dot_dimension_numbers<[1], [1], [0], [0], [0, 0, 1, 0], [], []>} : vector<8x8xf32>, vector<8x8xf32>, vector<8x8xf32> -> vector<8x8xf32>
    %cst_299 = arith.constant 0.353553385 : f32
    %364 = vector.broadcast %cst_299 : f32 to vector<8x8xf32>
    %365 = arith.mulf %363, %364 : vector<8x8xf32>
    %cst_300 = arith.constant dense<0xFF800000> : vector<8xf32>
    %366 = vector.multi_reduction <maximumf>, %365, %cst_300 [1] : vector<8x8xf32> to vector<8xf32>
    %367 = vector.shape_cast %366 : vector<8xf32> to vector<8x1xf32>
    %368 = vector.broadcast %367 : vector<8x1xf32> to vector<8x8xf32>
    %369 = arith.subf %365, %368 : vector<8x8xf32>
    %370 = math.exp %369 : vector<8x8xf32>
    %cst_301 = arith.constant dense<0.000000e+00> : vector<8xf32>
    %371 = vector.multi_reduction <add>, %370, %cst_301 [1] : vector<8x8xf32> to vector<8xf32>
    %372 = vector.shape_cast %371 : vector<8xf32> to vector<8x1xf32>
    %373 = tpu.reciprocal %372 {approx = true} : vector<8x1xf32> -> vector<8x1xf32>
    %374 = vector.broadcast %373 : vector<8x1xf32> to vector<8x8xf32>
    %375 = arith.mulf %370, %374 : vector<8x8xf32>
    %cst_302 = arith.constant dense<0.000000e+00> : vector<8x8xf32>
    %376 = tpu.matmul %375, %362, %cst_302 {dimension_numbers = #tpu.dot_dimension_numbers<[1], [0], [0], [1], [0, 0, 1, 1], [], []>} : vector<8x8xf32>, vector<8x8xf32>, vector<8x8xf32> -> vector<8x8xf32>
    %377 = vector.extract_strided_slice %345 {offsets = [8, 0], sizes = [8, 8], strides = [1, 1]} : vector<16x8xf32> to vector<8x8xf32>
    %378 = vector.extract_strided_slice %352 {offsets = [8, 0], sizes = [8, 8], strides = [1, 1]} : vector<16x8xf32> to vector<8x8xf32>
    %379 = vector.extract_strided_slice %359 {offsets = [8, 0], sizes = [8, 8], strides = [1, 1]} : vector<16x8xf32> to vector<8x8xf32>
    %cst_303 = arith.constant dense<0.000000e+00> : vector<8x8xf32>
    %380 = tpu.matmul %377, %378, %cst_303 {dimension_numbers = #tpu.dot_dimension_numbers<[1], [1], [0], [0], [0, 0, 1, 0], [], []>} : vector<8x8xf32>, vector<8x8xf32>, vector<8x8xf32> -> vector<8x8xf32>
    %cst_304 = arith.constant 0.353553385 : f32
    %381 = vector.broadcast %cst_304 : f32 to vector<8x8xf32>
    %382 = arith.mulf %380, %381 : vector<8x8xf32>
    %cst_305 = arith.constant dense<0xFF800000> : vector<8xf32>
    %383 = vector.multi_reduction <maximumf>, %382, %cst_305 [1] : vector<8x8xf32> to vector<8xf32>
    %384 = vector.shape_cast %383 : vector<8xf32> to vector<8x1xf32>
    %385 = vector.broadcast %384 : vector<8x1xf32> to vector<8x8xf32>
    %386 = arith.subf %382, %385 : vector<8x8xf32>
    %387 = math.exp %386 : vector<8x8xf32>
    %cst_306 = arith.constant dense<0.000000e+00> : vector<8xf32>
    %388 = vector.multi_reduction <add>, %387, %cst_306 [1] : vector<8x8xf32> to vector<8xf32>
    %389 = vector.shape_cast %388 : vector<8xf32> to vector<8x1xf32>
    %390 = tpu.reciprocal %389 {approx = true} : vector<8x1xf32> -> vector<8x1xf32>
    %391 = vector.broadcast %390 : vector<8x1xf32> to vector<8x8xf32>
    %392 = arith.mulf %387, %391 : vector<8x8xf32>
    %cst_307 = arith.constant dense<0.000000e+00> : vector<8x8xf32>
    %393 = tpu.matmul %392, %379, %cst_307 {dimension_numbers = #tpu.dot_dimension_numbers<[1], [0], [0], [1], [0, 0, 1, 1], [], []>} : vector<8x8xf32>, vector<8x8xf32>, vector<8x8xf32> -> vector<8x8xf32>
    %394 = tpu.concatenate %376, %393 in 0 : vector<8x8xf32>, vector<8x8xf32> -> vector<16x8xf32>
    %c0_308 = arith.constant 0 : index
    %c0_309 = arith.constant 0 : index
    %c1_310 = arith.constant 1 : index
    %c0_311 = arith.constant 0 : index
    %c0_312 = arith.constant 0 : index
    %395 = vector.load %arg20[%c0_308, %c0_309, %c1_310, %c0_311, %c0_312] : memref<1x1x4x8x32xf32, #tpu.memory_space<vmem>>, vector<1x1x1x8x32xf32>
    %396 = vector.shape_cast %395 : vector<1x1x1x8x32xf32> to vector<8x32xf32>
    %cst_313 = arith.constant dense<0.000000e+00> : vector<16x32xf32>
    %397 = tpu.matmul %394, %396, %cst_313 {dimension_numbers = #tpu.dot_dimension_numbers<[1], [0], [0], [1], [0, 0, 1, 1], [], []>} : vector<16x8xf32>, vector<8x32xf32>, vector<16x32xf32> -> vector<16x32xf32>
    %398 = arith.addf %338, %397 : vector<16x32xf32>
    %c0_314 = arith.constant 0 : index
    %c0_315 = arith.constant 0 : index
    %c2_316 = arith.constant 2 : index
    %c0_317 = arith.constant 0 : index
    %c0_318 = arith.constant 0 : index
    %399 = vector.load %arg14[%c0_314, %c0_315, %c2_316, %c0_317, %c0_318] : memref<1x1x4x32x8xf32, #tpu.memory_space<vmem>>, vector<1x1x1x32x8xf32>
    %400 = vector.shape_cast %399 : vector<1x1x1x32x8xf32> to vector<32x8xf32>
    %cst_319 = arith.constant dense<0.000000e+00> : vector<16x8xf32>
    %401 = tpu.matmul %277, %400, %cst_319 {dimension_numbers = #tpu.dot_dimension_numbers<[1], [0], [0], [1], [0, 0, 1, 1], [], []>} : vector<16x32xf32>, vector<32x8xf32>, vector<16x8xf32> -> vector<16x8xf32>
    %c0_320 = arith.constant 0 : index
    %c0_321 = arith.constant 0 : index
    %c2_322 = arith.constant 2 : index
    %c0_323 = arith.constant 0 : index
    %c0_324 = arith.constant 0 : index
    %402 = vector.load %arg15[%c0_320, %c0_321, %c2_322, %c0_323, %c0_324] : memref<1x1x4x1x8xf32, #tpu.memory_space<vmem>>, vector<1x1x1x1x8xf32>
    %403 = vector.shape_cast %402 : vector<1x1x1x1x8xf32> to vector<1x8xf32>
    %404 = vector.broadcast %403 : vector<1x8xf32> to vector<16x8xf32>
    %405 = arith.addf %401, %404 : vector<16x8xf32>
    %c0_325 = arith.constant 0 : index
    %c0_326 = arith.constant 0 : index
    %c2_327 = arith.constant 2 : index
    %c0_328 = arith.constant 0 : index
    %c0_329 = arith.constant 0 : index
    %406 = vector.load %arg16[%c0_325, %c0_326, %c2_327, %c0_328, %c0_329] : memref<1x1x4x32x8xf32, #tpu.memory_space<vmem>>, vector<1x1x1x32x8xf32>
    %407 = vector.shape_cast %406 : vector<1x1x1x32x8xf32> to vector<32x8xf32>
    %cst_330 = arith.constant dense<0.000000e+00> : vector<16x8xf32>
    %408 = tpu.matmul %5, %407, %cst_330 {dimension_numbers = #tpu.dot_dimension_numbers<[1], [0], [0], [1], [0, 0, 1, 1], [], []>} : vector<16x32xf32>, vector<32x8xf32>, vector<16x8xf32> -> vector<16x8xf32>
    %c0_331 = arith.constant 0 : index
    %c0_332 = arith.constant 0 : index
    %c2_333 = arith.constant 2 : index
    %c0_334 = arith.constant 0 : index
    %c0_335 = arith.constant 0 : index
    %409 = vector.load %arg17[%c0_331, %c0_332, %c2_333, %c0_334, %c0_335] : memref<1x1x4x1x8xf32, #tpu.memory_space<vmem>>, vector<1x1x1x1x8xf32>
    %410 = vector.shape_cast %409 : vector<1x1x1x1x8xf32> to vector<1x8xf32>
    %411 = vector.broadcast %410 : vector<1x8xf32> to vector<16x8xf32>
    %412 = arith.addf %408, %411 : vector<16x8xf32>
    %c0_336 = arith.constant 0 : index
    %c0_337 = arith.constant 0 : index
    %c2_338 = arith.constant 2 : index
    %c0_339 = arith.constant 0 : index
    %c0_340 = arith.constant 0 : index
    %413 = vector.load %arg18[%c0_336, %c0_337, %c2_338, %c0_339, %c0_340] : memref<1x1x4x32x8xf32, #tpu.memory_space<vmem>>, vector<1x1x1x32x8xf32>
    %414 = vector.shape_cast %413 : vector<1x1x1x32x8xf32> to vector<32x8xf32>
    %cst_341 = arith.constant dense<0.000000e+00> : vector<16x8xf32>
    %415 = tpu.matmul %5, %414, %cst_341 {dimension_numbers = #tpu.dot_dimension_numbers<[1], [0], [0], [1], [0, 0, 1, 1], [], []>} : vector<16x32xf32>, vector<32x8xf32>, vector<16x8xf32> -> vector<16x8xf32>
    %c0_342 = arith.constant 0 : index
    %c0_343 = arith.constant 0 : index
    %c2_344 = arith.constant 2 : index
    %c0_345 = arith.constant 0 : index
    %c0_346 = arith.constant 0 : index
    %416 = vector.load %arg19[%c0_342, %c0_343, %c2_344, %c0_345, %c0_346] : memref<1x1x4x1x8xf32, #tpu.memory_space<vmem>>, vector<1x1x1x1x8xf32>
    %417 = vector.shape_cast %416 : vector<1x1x1x1x8xf32> to vector<1x8xf32>
    %418 = vector.broadcast %417 : vector<1x8xf32> to vector<16x8xf32>
    %419 = arith.addf %415, %418 : vector<16x8xf32>
    %420 = vector.extract_strided_slice %405 {offsets = [0, 0], sizes = [8, 8], strides = [1, 1]} : vector<16x8xf32> to vector<8x8xf32>
    %421 = vector.extract_strided_slice %412 {offsets = [0, 0], sizes = [8, 8], strides = [1, 1]} : vector<16x8xf32> to vector<8x8xf32>
    %422 = vector.extract_strided_slice %419 {offsets = [0, 0], sizes = [8, 8], strides = [1, 1]} : vector<16x8xf32> to vector<8x8xf32>
    %cst_347 = arith.constant dense<0.000000e+00> : vector<8x8xf32>
    %423 = tpu.matmul %420, %421, %cst_347 {dimension_numbers = #tpu.dot_dimension_numbers<[1], [1], [0], [0], [0, 0, 1, 0], [], []>} : vector<8x8xf32>, vector<8x8xf32>, vector<8x8xf32> -> vector<8x8xf32>
    %cst_348 = arith.constant 0.353553385 : f32
    %424 = vector.broadcast %cst_348 : f32 to vector<8x8xf32>
    %425 = arith.mulf %423, %424 : vector<8x8xf32>
    %cst_349 = arith.constant dense<0xFF800000> : vector<8xf32>
    %426 = vector.multi_reduction <maximumf>, %425, %cst_349 [1] : vector<8x8xf32> to vector<8xf32>
    %427 = vector.shape_cast %426 : vector<8xf32> to vector<8x1xf32>
    %428 = vector.broadcast %427 : vector<8x1xf32> to vector<8x8xf32>
    %429 = arith.subf %425, %428 : vector<8x8xf32>
    %430 = math.exp %429 : vector<8x8xf32>
    %cst_350 = arith.constant dense<0.000000e+00> : vector<8xf32>
    %431 = vector.multi_reduction <add>, %430, %cst_350 [1] : vector<8x8xf32> to vector<8xf32>
    %432 = vector.shape_cast %431 : vector<8xf32> to vector<8x1xf32>
    %433 = tpu.reciprocal %432 {approx = true} : vector<8x1xf32> -> vector<8x1xf32>
    %434 = vector.broadcast %433 : vector<8x1xf32> to vector<8x8xf32>
    %435 = arith.mulf %430, %434 : vector<8x8xf32>
    %cst_351 = arith.constant dense<0.000000e+00> : vector<8x8xf32>
    %436 = tpu.matmul %435, %422, %cst_351 {dimension_numbers = #tpu.dot_dimension_numbers<[1], [0], [0], [1], [0, 0, 1, 1], [], []>} : vector<8x8xf32>, vector<8x8xf32>, vector<8x8xf32> -> vector<8x8xf32>
    %437 = vector.extract_strided_slice %405 {offsets = [8, 0], sizes = [8, 8], strides = [1, 1]} : vector<16x8xf32> to vector<8x8xf32>
    %438 = vector.extract_strided_slice %412 {offsets = [8, 0], sizes = [8, 8], strides = [1, 1]} : vector<16x8xf32> to vector<8x8xf32>
    %439 = vector.extract_strided_slice %419 {offsets = [8, 0], sizes = [8, 8], strides = [1, 1]} : vector<16x8xf32> to vector<8x8xf32>
    %cst_352 = arith.constant dense<0.000000e+00> : vector<8x8xf32>
    %440 = tpu.matmul %437, %438, %cst_352 {dimension_numbers = #tpu.dot_dimension_numbers<[1], [1], [0], [0], [0, 0, 1, 0], [], []>} : vector<8x8xf32>, vector<8x8xf32>, vector<8x8xf32> -> vector<8x8xf32>
    %cst_353 = arith.constant 0.353553385 : f32
    %441 = vector.broadcast %cst_353 : f32 to vector<8x8xf32>
    %442 = arith.mulf %440, %441 : vector<8x8xf32>
    %cst_354 = arith.constant dense<0xFF800000> : vector<8xf32>
    %443 = vector.multi_reduction <maximumf>, %442, %cst_354 [1] : vector<8x8xf32> to vector<8xf32>
    %444 = vector.shape_cast %443 : vector<8xf32> to vector<8x1xf32>
    %445 = vector.broadcast %444 : vector<8x1xf32> to vector<8x8xf32>
    %446 = arith.subf %442, %445 : vector<8x8xf32>
    %447 = math.exp %446 : vector<8x8xf32>
    %cst_355 = arith.constant dense<0.000000e+00> : vector<8xf32>
    %448 = vector.multi_reduction <add>, %447, %cst_355 [1] : vector<8x8xf32> to vector<8xf32>
    %449 = vector.shape_cast %448 : vector<8xf32> to vector<8x1xf32>
    %450 = tpu.reciprocal %449 {approx = true} : vector<8x1xf32> -> vector<8x1xf32>
    %451 = vector.broadcast %450 : vector<8x1xf32> to vector<8x8xf32>
    %452 = arith.mulf %447, %451 : vector<8x8xf32>
    %cst_356 = arith.constant dense<0.000000e+00> : vector<8x8xf32>
    %453 = tpu.matmul %452, %439, %cst_356 {dimension_numbers = #tpu.dot_dimension_numbers<[1], [0], [0], [1], [0, 0, 1, 1], [], []>} : vector<8x8xf32>, vector<8x8xf32>, vector<8x8xf32> -> vector<8x8xf32>
    %454 = tpu.concatenate %436, %453 in 0 : vector<8x8xf32>, vector<8x8xf32> -> vector<16x8xf32>
    %c0_357 = arith.constant 0 : index
    %c0_358 = arith.constant 0 : index
    %c2_359 = arith.constant 2 : index
    %c0_360 = arith.constant 0 : index
    %c0_361 = arith.constant 0 : index
    %455 = vector.load %arg20[%c0_357, %c0_358, %c2_359, %c0_360, %c0_361] : memref<1x1x4x8x32xf32, #tpu.memory_space<vmem>>, vector<1x1x1x8x32xf32>
    %456 = vector.shape_cast %455 : vector<1x1x1x8x32xf32> to vector<8x32xf32>
    %cst_362 = arith.constant dense<0.000000e+00> : vector<16x32xf32>
    %457 = tpu.matmul %454, %456, %cst_362 {dimension_numbers = #tpu.dot_dimension_numbers<[1], [0], [0], [1], [0, 0, 1, 1], [], []>} : vector<16x8xf32>, vector<8x32xf32>, vector<16x32xf32> -> vector<16x32xf32>
    %458 = arith.addf %398, %457 : vector<16x32xf32>
    %c0_363 = arith.constant 0 : index
    %c0_364 = arith.constant 0 : index
    %c3_365 = arith.constant 3 : index
    %c0_366 = arith.constant 0 : index
    %c0_367 = arith.constant 0 : index
    %459 = vector.load %arg14[%c0_363, %c0_364, %c3_365, %c0_366, %c0_367] : memref<1x1x4x32x8xf32, #tpu.memory_space<vmem>>, vector<1x1x1x32x8xf32>
    %460 = vector.shape_cast %459 : vector<1x1x1x32x8xf32> to vector<32x8xf32>
    %cst_368 = arith.constant dense<0.000000e+00> : vector<16x8xf32>
    %461 = tpu.matmul %277, %460, %cst_368 {dimension_numbers = #tpu.dot_dimension_numbers<[1], [0], [0], [1], [0, 0, 1, 1], [], []>} : vector<16x32xf32>, vector<32x8xf32>, vector<16x8xf32> -> vector<16x8xf32>
    %c0_369 = arith.constant 0 : index
    %c0_370 = arith.constant 0 : index
    %c3_371 = arith.constant 3 : index
    %c0_372 = arith.constant 0 : index
    %c0_373 = arith.constant 0 : index
    %462 = vector.load %arg15[%c0_369, %c0_370, %c3_371, %c0_372, %c0_373] : memref<1x1x4x1x8xf32, #tpu.memory_space<vmem>>, vector<1x1x1x1x8xf32>
    %463 = vector.shape_cast %462 : vector<1x1x1x1x8xf32> to vector<1x8xf32>
    %464 = vector.broadcast %463 : vector<1x8xf32> to vector<16x8xf32>
    %465 = arith.addf %461, %464 : vector<16x8xf32>
    %c0_374 = arith.constant 0 : index
    %c0_375 = arith.constant 0 : index
    %c3_376 = arith.constant 3 : index
    %c0_377 = arith.constant 0 : index
    %c0_378 = arith.constant 0 : index
    %466 = vector.load %arg16[%c0_374, %c0_375, %c3_376, %c0_377, %c0_378] : memref<1x1x4x32x8xf32, #tpu.memory_space<vmem>>, vector<1x1x1x32x8xf32>
    %467 = vector.shape_cast %466 : vector<1x1x1x32x8xf32> to vector<32x8xf32>
    %cst_379 = arith.constant dense<0.000000e+00> : vector<16x8xf32>
    %468 = tpu.matmul %5, %467, %cst_379 {dimension_numbers = #tpu.dot_dimension_numbers<[1], [0], [0], [1], [0, 0, 1, 1], [], []>} : vector<16x32xf32>, vector<32x8xf32>, vector<16x8xf32> -> vector<16x8xf32>
    %c0_380 = arith.constant 0 : index
    %c0_381 = arith.constant 0 : index
    %c3_382 = arith.constant 3 : index
    %c0_383 = arith.constant 0 : index
    %c0_384 = arith.constant 0 : index
    %469 = vector.load %arg17[%c0_380, %c0_381, %c3_382, %c0_383, %c0_384] : memref<1x1x4x1x8xf32, #tpu.memory_space<vmem>>, vector<1x1x1x1x8xf32>
    %470 = vector.shape_cast %469 : vector<1x1x1x1x8xf32> to vector<1x8xf32>
    %471 = vector.broadcast %470 : vector<1x8xf32> to vector<16x8xf32>
    %472 = arith.addf %468, %471 : vector<16x8xf32>
    %c0_385 = arith.constant 0 : index
    %c0_386 = arith.constant 0 : index
    %c3_387 = arith.constant 3 : index
    %c0_388 = arith.constant 0 : index
    %c0_389 = arith.constant 0 : index
    %473 = vector.load %arg18[%c0_385, %c0_386, %c3_387, %c0_388, %c0_389] : memref<1x1x4x32x8xf32, #tpu.memory_space<vmem>>, vector<1x1x1x32x8xf32>
    %474 = vector.shape_cast %473 : vector<1x1x1x32x8xf32> to vector<32x8xf32>
    %cst_390 = arith.constant dense<0.000000e+00> : vector<16x8xf32>
    %475 = tpu.matmul %5, %474, %cst_390 {dimension_numbers = #tpu.dot_dimension_numbers<[1], [0], [0], [1], [0, 0, 1, 1], [], []>} : vector<16x32xf32>, vector<32x8xf32>, vector<16x8xf32> -> vector<16x8xf32>
    %c0_391 = arith.constant 0 : index
    %c0_392 = arith.constant 0 : index
    %c3_393 = arith.constant 3 : index
    %c0_394 = arith.constant 0 : index
    %c0_395 = arith.constant 0 : index
    %476 = vector.load %arg19[%c0_391, %c0_392, %c3_393, %c0_394, %c0_395] : memref<1x1x4x1x8xf32, #tpu.memory_space<vmem>>, vector<1x1x1x1x8xf32>
    %477 = vector.shape_cast %476 : vector<1x1x1x1x8xf32> to vector<1x8xf32>
    %478 = vector.broadcast %477 : vector<1x8xf32> to vector<16x8xf32>
    %479 = arith.addf %475, %478 : vector<16x8xf32>
    %480 = vector.extract_strided_slice %465 {offsets = [0, 0], sizes = [8, 8], strides = [1, 1]} : vector<16x8xf32> to vector<8x8xf32>
    %481 = vector.extract_strided_slice %472 {offsets = [0, 0], sizes = [8, 8], strides = [1, 1]} : vector<16x8xf32> to vector<8x8xf32>
    %482 = vector.extract_strided_slice %479 {offsets = [0, 0], sizes = [8, 8], strides = [1, 1]} : vector<16x8xf32> to vector<8x8xf32>
    %cst_396 = arith.constant dense<0.000000e+00> : vector<8x8xf32>
    %483 = tpu.matmul %480, %481, %cst_396 {dimension_numbers = #tpu.dot_dimension_numbers<[1], [1], [0], [0], [0, 0, 1, 0], [], []>} : vector<8x8xf32>, vector<8x8xf32>, vector<8x8xf32> -> vector<8x8xf32>
    %cst_397 = arith.constant 0.353553385 : f32
    %484 = vector.broadcast %cst_397 : f32 to vector<8x8xf32>
    %485 = arith.mulf %483, %484 : vector<8x8xf32>
    %cst_398 = arith.constant dense<0xFF800000> : vector<8xf32>
    %486 = vector.multi_reduction <maximumf>, %485, %cst_398 [1] : vector<8x8xf32> to vector<8xf32>
    %487 = vector.shape_cast %486 : vector<8xf32> to vector<8x1xf32>
    %488 = vector.broadcast %487 : vector<8x1xf32> to vector<8x8xf32>
    %489 = arith.subf %485, %488 : vector<8x8xf32>
    %490 = math.exp %489 : vector<8x8xf32>
    %cst_399 = arith.constant dense<0.000000e+00> : vector<8xf32>
    %491 = vector.multi_reduction <add>, %490, %cst_399 [1] : vector<8x8xf32> to vector<8xf32>
    %492 = vector.shape_cast %491 : vector<8xf32> to vector<8x1xf32>
    %493 = tpu.reciprocal %492 {approx = true} : vector<8x1xf32> -> vector<8x1xf32>
    %494 = vector.broadcast %493 : vector<8x1xf32> to vector<8x8xf32>
    %495 = arith.mulf %490, %494 : vector<8x8xf32>
    %cst_400 = arith.constant dense<0.000000e+00> : vector<8x8xf32>
    %496 = tpu.matmul %495, %482, %cst_400 {dimension_numbers = #tpu.dot_dimension_numbers<[1], [0], [0], [1], [0, 0, 1, 1], [], []>} : vector<8x8xf32>, vector<8x8xf32>, vector<8x8xf32> -> vector<8x8xf32>
    %497 = vector.extract_strided_slice %465 {offsets = [8, 0], sizes = [8, 8], strides = [1, 1]} : vector<16x8xf32> to vector<8x8xf32>
    %498 = vector.extract_strided_slice %472 {offsets = [8, 0], sizes = [8, 8], strides = [1, 1]} : vector<16x8xf32> to vector<8x8xf32>
    %499 = vector.extract_strided_slice %479 {offsets = [8, 0], sizes = [8, 8], strides = [1, 1]} : vector<16x8xf32> to vector<8x8xf32>
    %cst_401 = arith.constant dense<0.000000e+00> : vector<8x8xf32>
    %500 = tpu.matmul %497, %498, %cst_401 {dimension_numbers = #tpu.dot_dimension_numbers<[1], [1], [0], [0], [0, 0, 1, 0], [], []>} : vector<8x8xf32>, vector<8x8xf32>, vector<8x8xf32> -> vector<8x8xf32>
    %cst_402 = arith.constant 0.353553385 : f32
    %501 = vector.broadcast %cst_402 : f32 to vector<8x8xf32>
    %502 = arith.mulf %500, %501 : vector<8x8xf32>
    %cst_403 = arith.constant dense<0xFF800000> : vector<8xf32>
    %503 = vector.multi_reduction <maximumf>, %502, %cst_403 [1] : vector<8x8xf32> to vector<8xf32>
    %504 = vector.shape_cast %503 : vector<8xf32> to vector<8x1xf32>
    %505 = vector.broadcast %504 : vector<8x1xf32> to vector<8x8xf32>
    %506 = arith.subf %502, %505 : vector<8x8xf32>
    %507 = math.exp %506 : vector<8x8xf32>
    %cst_404 = arith.constant dense<0.000000e+00> : vector<8xf32>
    %508 = vector.multi_reduction <add>, %507, %cst_404 [1] : vector<8x8xf32> to vector<8xf32>
    %509 = vector.shape_cast %508 : vector<8xf32> to vector<8x1xf32>
    %510 = tpu.reciprocal %509 {approx = true} : vector<8x1xf32> -> vector<8x1xf32>
    %511 = vector.broadcast %510 : vector<8x1xf32> to vector<8x8xf32>
    %512 = arith.mulf %507, %511 : vector<8x8xf32>
    %cst_405 = arith.constant dense<0.000000e+00> : vector<8x8xf32>
    %513 = tpu.matmul %512, %499, %cst_405 {dimension_numbers = #tpu.dot_dimension_numbers<[1], [0], [0], [1], [0, 0, 1, 1], [], []>} : vector<8x8xf32>, vector<8x8xf32>, vector<8x8xf32> -> vector<8x8xf32>
    %514 = tpu.concatenate %496, %513 in 0 : vector<8x8xf32>, vector<8x8xf32> -> vector<16x8xf32>
    %c0_406 = arith.constant 0 : index
    %c0_407 = arith.constant 0 : index
    %c3_408 = arith.constant 3 : index
    %c0_409 = arith.constant 0 : index
    %c0_410 = arith.constant 0 : index
    %515 = vector.load %arg20[%c0_406, %c0_407, %c3_408, %c0_409, %c0_410] : memref<1x1x4x8x32xf32, #tpu.memory_space<vmem>>, vector<1x1x1x8x32xf32>
    %516 = vector.shape_cast %515 : vector<1x1x1x8x32xf32> to vector<8x32xf32>
    %cst_411 = arith.constant dense<0.000000e+00> : vector<16x32xf32>
    %517 = tpu.matmul %514, %516, %cst_411 {dimension_numbers = #tpu.dot_dimension_numbers<[1], [0], [0], [1], [0, 0, 1, 1], [], []>} : vector<16x8xf32>, vector<8x32xf32>, vector<16x32xf32> -> vector<16x32xf32>
    %518 = arith.addf %458, %517 : vector<16x32xf32>
    %c0_412 = arith.constant 0 : index
    %c0_413 = arith.constant 0 : index
    %c0_414 = arith.constant 0 : index
    %c0_415 = arith.constant 0 : index
    %519 = vector.load %arg21[%c0_412, %c0_413, %c0_414, %c0_415] : memref<1x1x1x32xf32, #tpu.memory_space<vmem>>, vector<1x1x1x32xf32>
    %520 = vector.shape_cast %519 : vector<1x1x1x32xf32> to vector<1x32xf32>
    %521 = vector.broadcast %520 : vector<1x32xf32> to vector<16x32xf32>
    %522 = arith.addf %518, %521 : vector<16x32xf32>
    %523 = arith.addf %277, %522 : vector<16x32xf32>
    %c0_416 = arith.constant 0 : index
    %c0_417 = arith.constant 0 : index
    %c0_418 = arith.constant 0 : index
    %c0_419 = arith.constant 0 : index
    %524 = vector.load %arg22[%c0_416, %c0_417, %c0_418, %c0_419] : memref<1x1x1x32xf32, #tpu.memory_space<vmem>>, vector<1x1x1x32xf32>
    %525 = vector.shape_cast %524 : vector<1x1x1x32xf32> to vector<1x32xf32>
    %c0_420 = arith.constant 0 : index
    %c0_421 = arith.constant 0 : index
    %c0_422 = arith.constant 0 : index
    %c0_423 = arith.constant 0 : index
    %526 = vector.load %arg23[%c0_420, %c0_421, %c0_422, %c0_423] : memref<1x1x1x32xf32, #tpu.memory_space<vmem>>, vector<1x1x1x32xf32>
    %527 = vector.shape_cast %526 : vector<1x1x1x32xf32> to vector<1x32xf32>
    %cst_424 = arith.constant dense<0.000000e+00> : vector<16xf32>
    %528 = vector.multi_reduction <add>, %523, %cst_424 [1] : vector<16x32xf32> to vector<16xf32>
    %529 = vector.shape_cast %528 : vector<16xf32> to vector<16x1xf32>
    %cst_425 = arith.constant 3.200000e+01 : f32
    %530 = vector.broadcast %cst_425 : f32 to vector<16x1xf32>
    %531 = arith.divf %529, %530 : vector<16x1xf32>
    %532 = vector.broadcast %531 : vector<16x1xf32> to vector<16x32xf32>
    %533 = arith.subf %523, %532 : vector<16x32xf32>
    %534 = arith.mulf %533, %533 : vector<16x32xf32>
    %cst_426 = arith.constant dense<0.000000e+00> : vector<16xf32>
    %535 = vector.multi_reduction <add>, %534, %cst_426 [1] : vector<16x32xf32> to vector<16xf32>
    %536 = vector.shape_cast %535 : vector<16xf32> to vector<16x1xf32>
    %cst_427 = arith.constant 3.200000e+01 : f32
    %537 = vector.broadcast %cst_427 : f32 to vector<16x1xf32>
    %538 = arith.divf %536, %537 : vector<16x1xf32>
    %539 = vector.broadcast %531 : vector<16x1xf32> to vector<16x32xf32>
    %540 = arith.subf %523, %539 : vector<16x32xf32>
    %cst_428 = arith.constant 9.99999974E-6 : f32
    %541 = vector.broadcast %cst_428 : f32 to vector<16x1xf32>
    %542 = arith.addf %538, %541 : vector<16x1xf32>
    %543 = math.rsqrt %542 : vector<16x1xf32>
    %544 = vector.broadcast %543 : vector<16x1xf32> to vector<16x32xf32>
    %545 = arith.mulf %540, %544 : vector<16x32xf32>
    %546 = vector.broadcast %525 : vector<1x32xf32> to vector<16x32xf32>
    %547 = arith.mulf %545, %546 : vector<16x32xf32>
    %548 = vector.broadcast %527 : vector<1x32xf32> to vector<16x32xf32>
    %549 = arith.addf %547, %548 : vector<16x32xf32>
    %c0_429 = arith.constant 0 : index
    %c0_430 = arith.constant 0 : index
    %c0_431 = arith.constant 0 : index
    %c0_432 = arith.constant 0 : index
    %550 = vector.load %arg24[%c0_429, %c0_430, %c0_431, %c0_432] : memref<1x1x32x2048xf32, #tpu.memory_space<vmem>>, vector<1x1x32x2048xf32>
    %551 = vector.shape_cast %550 : vector<1x1x32x2048xf32> to vector<32x2048xf32>
    %cst_433 = arith.constant dense<0.000000e+00> : vector<16x2048xf32>
    %552 = tpu.matmul %549, %551, %cst_433 {dimension_numbers = #tpu.dot_dimension_numbers<[1], [0], [0], [1], [0, 0, 1, 1], [], []>} : vector<16x32xf32>, vector<32x2048xf32>, vector<16x2048xf32> -> vector<16x2048xf32>
    %c0_434 = arith.constant 0 : index
    %c0_435 = arith.constant 0 : index
    %c0_436 = arith.constant 0 : index
    %c0_437 = arith.constant 0 : index
    %553 = vector.load %arg25[%c0_434, %c0_435, %c0_436, %c0_437] : memref<1x1x1x2048xf32, #tpu.memory_space<vmem>>, vector<1x1x1x2048xf32>
    %554 = vector.shape_cast %553 : vector<1x1x1x2048xf32> to vector<1x2048xf32>
    %555 = vector.broadcast %554 : vector<1x2048xf32> to vector<16x2048xf32>
    %556 = arith.addf %552, %555 : vector<16x2048xf32>
    %cst_438 = arith.constant 0.000000e+00 : f32
    %557 = vector.broadcast %cst_438 : f32 to vector<16x2048xf32>
    %558 = arith.maximumf %556, %557 : vector<16x2048xf32>
    %c0_439 = arith.constant 0 : index
    %c0_440 = arith.constant 0 : index
    %c0_441 = arith.constant 0 : index
    %c0_442 = arith.constant 0 : index
    %559 = vector.load %arg26[%c0_439, %c0_440, %c0_441, %c0_442] : memref<1x1x2048x32xf32, #tpu.memory_space<vmem>>, vector<1x1x2048x32xf32>
    %560 = vector.shape_cast %559 : vector<1x1x2048x32xf32> to vector<2048x32xf32>
    %cst_443 = arith.constant dense<0.000000e+00> : vector<16x32xf32>
    %561 = tpu.matmul %558, %560, %cst_443 {dimension_numbers = #tpu.dot_dimension_numbers<[1], [0], [0], [1], [0, 0, 1, 1], [], []>} : vector<16x2048xf32>, vector<2048x32xf32>, vector<16x32xf32> -> vector<16x32xf32>
    %c0_444 = arith.constant 0 : index
    %c0_445 = arith.constant 0 : index
    %c0_446 = arith.constant 0 : index
    %c0_447 = arith.constant 0 : index
    %562 = vector.load %arg27[%c0_444, %c0_445, %c0_446, %c0_447] : memref<1x1x1x32xf32, #tpu.memory_space<vmem>>, vector<1x1x1x32xf32>
    %563 = vector.shape_cast %562 : vector<1x1x1x32xf32> to vector<1x32xf32>
    %564 = vector.broadcast %563 : vector<1x32xf32> to vector<16x32xf32>
    %565 = arith.addf %561, %564 : vector<16x32xf32>
    %566 = arith.addf %549, %565 : vector<16x32xf32>
    %c0_448 = arith.constant 0 : index
    %c0_449 = arith.constant 0 : index
    %c0_450 = arith.constant 0 : index
    %c0_451 = arith.constant 0 : index
    %567 = vector.load %arg28[%c0_448, %c0_449, %c0_450, %c0_451] : memref<1x1x1x32xf32, #tpu.memory_space<vmem>>, vector<1x1x1x32xf32>
    %568 = vector.shape_cast %567 : vector<1x1x1x32xf32> to vector<1x32xf32>
    %c0_452 = arith.constant 0 : index
    %c0_453 = arith.constant 0 : index
    %c0_454 = arith.constant 0 : index
    %c0_455 = arith.constant 0 : index
    %569 = vector.load %arg29[%c0_452, %c0_453, %c0_454, %c0_455] : memref<1x1x1x32xf32, #tpu.memory_space<vmem>>, vector<1x1x1x32xf32>
    %570 = vector.shape_cast %569 : vector<1x1x1x32xf32> to vector<1x32xf32>
    %cst_456 = arith.constant dense<0.000000e+00> : vector<16xf32>
    %571 = vector.multi_reduction <add>, %566, %cst_456 [1] : vector<16x32xf32> to vector<16xf32>
    %572 = vector.shape_cast %571 : vector<16xf32> to vector<16x1xf32>
    %cst_457 = arith.constant 3.200000e+01 : f32
    %573 = vector.broadcast %cst_457 : f32 to vector<16x1xf32>
    %574 = arith.divf %572, %573 : vector<16x1xf32>
    %575 = vector.broadcast %574 : vector<16x1xf32> to vector<16x32xf32>
    %576 = arith.subf %566, %575 : vector<16x32xf32>
    %577 = arith.mulf %576, %576 : vector<16x32xf32>
    %cst_458 = arith.constant dense<0.000000e+00> : vector<16xf32>
    %578 = vector.multi_reduction <add>, %577, %cst_458 [1] : vector<16x32xf32> to vector<16xf32>
    %579 = vector.shape_cast %578 : vector<16xf32> to vector<16x1xf32>
    %cst_459 = arith.constant 3.200000e+01 : f32
    %580 = vector.broadcast %cst_459 : f32 to vector<16x1xf32>
    %581 = arith.divf %579, %580 : vector<16x1xf32>
    %582 = vector.broadcast %574 : vector<16x1xf32> to vector<16x32xf32>
    %583 = arith.subf %566, %582 : vector<16x32xf32>
    %cst_460 = arith.constant 9.99999974E-6 : f32
    %584 = vector.broadcast %cst_460 : f32 to vector<16x1xf32>
    %585 = arith.addf %581, %584 : vector<16x1xf32>
    %586 = math.rsqrt %585 : vector<16x1xf32>
    %587 = vector.broadcast %586 : vector<16x1xf32> to vector<16x32xf32>
    %588 = arith.mulf %583, %587 : vector<16x32xf32>
    %589 = vector.broadcast %568 : vector<1x32xf32> to vector<16x32xf32>
    %590 = arith.mulf %588, %589 : vector<16x32xf32>
    %591 = vector.broadcast %570 : vector<1x32xf32> to vector<16x32xf32>
    %592 = arith.addf %590, %591 : vector<16x32xf32>
    %c0_461 = arith.constant 0 : index
    %c0_462 = arith.constant 0 : index
    %593 = vector.load %arg35[%c0_461, %c0_462] : memref<16x32xf32, #tpu.memory_space<vmem>>, vector<16x32xf32>
    tpu.vector_store %arg35[%c0_461, %c0_462], %592 {strides = array<i32>} : memref<16x32xf32, #tpu.memory_space<vmem>>, vector<16x32xf32>,
    %c5_i32 = arith.constant 5 : i32
    %594 = arith.cmpi eq, %arg1, %c5_i32 : i32
    %595 = arith.extui %594 : i1 to i32
    %c0_i32_463 = arith.constant 0 : i32
    %596 = arith.cmpi ne, %595, %c0_i32_463 : i32
    scf.if %596 {
      %c0_464 = arith.constant 0 : index
      %c0_465 = arith.constant 0 : index
      %c0_466 = arith.constant 0 : index
      %597 = vector.load %arg30[%c0_464, %c0_465, %c0_466] : memref<1x1x32xf32, #tpu.memory_space<vmem>>, vector<1x1x32xf32>
      %598 = vector.shape_cast %597 : vector<1x1x32xf32> to vector<1x32xf32>
      %c0_467 = arith.constant 0 : index
      %c0_468 = arith.constant 0 : index
      %c0_469 = arith.constant 0 : index
      %599 = vector.load %arg31[%c0_467, %c0_468, %c0_469] : memref<1x1x32xf32, #tpu.memory_space<vmem>>, vector<1x1x32xf32>
      %600 = vector.shape_cast %599 : vector<1x1x32xf32> to vector<1x32xf32>
      %cst_470 = arith.constant dense<0.000000e+00> : vector<16xf32>
      %601 = vector.multi_reduction <add>, %592, %cst_470 [1] : vector<16x32xf32> to vector<16xf32>
      %602 = vector.shape_cast %601 : vector<16xf32> to vector<16x1xf32>
      %cst_471 = arith.constant 3.200000e+01 : f32
      %603 = vector.broadcast %cst_471 : f32 to vector<16x1xf32>
      %604 = arith.divf %602, %603 : vector<16x1xf32>
      %605 = vector.broadcast %604 : vector<16x1xf32> to vector<16x32xf32>
      %606 = arith.subf %592, %605 : vector<16x32xf32>
      %607 = arith.mulf %606, %606 : vector<16x32xf32>
      %cst_472 = arith.constant dense<0.000000e+00> : vector<16xf32>
      %608 = vector.multi_reduction <add>, %607, %cst_472 [1] : vector<16x32xf32> to vector<16xf32>
      %609 = vector.shape_cast %608 : vector<16xf32> to vector<16x1xf32>
      %cst_473 = arith.constant 3.200000e+01 : f32
      %610 = vector.broadcast %cst_473 : f32 to vector<16x1xf32>
      %611 = arith.divf %609, %610 : vector<16x1xf32>
      %612 = vector.broadcast %604 : vector<16x1xf32> to vector<16x32xf32>
      %613 = arith.subf %592, %612 : vector<16x32xf32>
      %cst_474 = arith.constant 9.99999974E-6 : f32
      %614 = vector.broadcast %cst_474 : f32 to vector<16x1xf32>
      %615 = arith.addf %611, %614 : vector<16x1xf32>
      %616 = math.rsqrt %615 : vector<16x1xf32>
      %617 = vector.broadcast %616 : vector<16x1xf32> to vector<16x32xf32>
      %618 = arith.mulf %613, %617 : vector<16x32xf32>
      %619 = vector.broadcast %598 : vector<1x32xf32> to vector<16x32xf32>
      %620 = arith.mulf %618, %619 : vector<16x32xf32>
      %621 = vector.broadcast %600 : vector<1x32xf32> to vector<16x32xf32>
      %622 = arith.addf %620, %621 : vector<16x32xf32>
      %c0_475 = arith.constant 0 : index
      %c0_476 = arith.constant 0 : index
      %c0_477 = arith.constant 0 : index
      %623 = vector.load %arg32[%c0_475, %c0_476, %c0_477] : memref<1x32x128xf32, #tpu.memory_space<vmem>>, vector<1x32x128xf32>
      %624 = vector.shape_cast %623 : vector<1x32x128xf32> to vector<32x128xf32>
      %cst_478 = arith.constant dense<0.000000e+00> : vector<16x128xf32>
      %625 = tpu.matmul %622, %624, %cst_478 {dimension_numbers = #tpu.dot_dimension_numbers<[1], [0], [0], [1], [0, 0, 1, 1], [], []>} : vector<16x32xf32>, vector<32x128xf32>, vector<16x128xf32> -> vector<16x128xf32>
      %c0_479 = arith.constant 0 : index
      %c0_480 = arith.constant 0 : index
      %c0_481 = arith.constant 0 : index
      %626 = vector.load %arg33[%c0_479, %c0_480, %c0_481] : memref<1x1x128xf32, #tpu.memory_space<vmem>>, vector<1x1x128xf32>
      %627 = vector.shape_cast %626 : vector<1x1x128xf32> to vector<1x128xf32>
      %628 = vector.broadcast %627 : vector<1x128xf32> to vector<16x128xf32>
      %629 = arith.addf %625, %628 : vector<16x128xf32>
      %c0_482 = arith.constant 0 : index
      %c0_483 = arith.constant 0 : index
      %c0_484 = arith.constant 0 : index
      %630 = vector.load %arg34[%c0_482, %c0_483, %c0_484] : memref<1x16x128xf32, #tpu.memory_space<vmem>>, vector<1x16x128xf32>
      %631 = vector.shape_cast %630 : vector<1x16x128xf32> to vector<16x128xf32>
      %632 = vector.shape_cast %629 : vector<16x128xf32> to vector<1x16x128xf32>
      tpu.vector_store %arg34[%c0_482, %c0_483, %c0_484], %632 {strides = array<i32>} : memref<1x16x128xf32, #tpu.memory_space<vmem>>, vector<1x16x128xf32>,
    } else {
    }
    return
  }
  func.func @transform_0(%arg0: i32, %arg1: i32) -> (i32, i32, i32) {
    %c0_i32 = arith.constant 0 : i32
    %c0_i32_0 = arith.constant 0 : i32
    %c0_i32_1 = arith.constant 0 : i32
    return %arg0, %c0_i32, %c0_i32_0 : i32, i32, i32
  }
  func.func @transform_1(%arg0: i32, %arg1: i32) -> (i32, i32, i32) {
    %c0_i32 = arith.constant 0 : i32
    %c0_i32_0 = arith.constant 0 : i32
    %c0_i32_1 = arith.constant 0 : i32
    return %arg0, %c0_i32, %c0_i32_0 : i32, i32, i32
  }
  func.func @transform_2(%arg0: i32, %arg1: i32) -> (i32, i32, i32, i32, i32) {
    %c0_i32 = arith.constant 0 : i32
    %c0_i32_0 = arith.constant 0 : i32
    %c0_i32_1 = arith.constant 0 : i32
    %c0_i32_2 = arith.constant 0 : i32
    return %arg0, %arg1, %c0_i32, %c0_i32_0, %c0_i32_1 : i32, i32, i32, i32, i32
  }
  func.func @transform_3(%arg0: i32, %arg1: i32) -> (i32, i32, i32, i32, i32) {
    %c0_i32 = arith.constant 0 : i32
    %c0_i32_0 = arith.constant 0 : i32
    %c0_i32_1 = arith.constant 0 : i32
    %c0_i32_2 = arith.constant 0 : i32
    return %arg0, %arg1, %c0_i32, %c0_i32_0, %c0_i32_1 : i32, i32, i32, i32, i32
  }
  func.func @transform_4(%arg0: i32, %arg1: i32) -> (i32, i32, i32, i32, i32) {
    %c0_i32 = arith.constant 0 : i32
    %c0_i32_0 = arith.constant 0 : i32
    %c0_i32_1 = arith.constant 0 : i32
    %c0_i32_2 = arith.constant 0 : i32
    return %arg0, %arg1, %c0_i32, %c0_i32_0, %c0_i32_1 : i32, i32, i32, i32, i32
  }
  func.func @transform_5(%arg0: i32, %arg1: i32) -> (i32, i32, i32, i32, i32) {
    %c0_i32 = arith.constant 0 : i32
    %c0_i32_0 = arith.constant 0 : i32
    %c0_i32_1 = arith.constant 0 : i32
    %c0_i32_2 = arith.constant 0 : i32
    return %arg0, %arg1, %c0_i32, %c0_i32_0, %c0_i32_1 : i32, i32, i32, i32, i32
  }
  func.func @transform_6(%arg0: i32, %arg1: i32) -> (i32, i32, i32, i32, i32) {
    %c0_i32 = arith.constant 0 : i32
    %c0_i32_0 = arith.constant 0 : i32
    %c0_i32_1 = arith.constant 0 : i32
    %c0_i32_2 = arith.constant 0 : i32
    return %arg0, %arg1, %c0_i32, %c0_i32_0, %c0_i32_1 : i32, i32, i32, i32, i32
  }
  func.func @transform_7(%arg0: i32, %arg1: i32) -> (i32, i32, i32, i32, i32) {
    %c0_i32 = arith.constant 0 : i32
    %c0_i32_0 = arith.constant 0 : i32
    %c0_i32_1 = arith.constant 0 : i32
    %c0_i32_2 = arith.constant 0 : i32
    return %arg0, %arg1, %c0_i32, %c0_i32_0, %c0_i32_1 : i32, i32, i32, i32, i32
  }
  func.func @transform_8(%arg0: i32, %arg1: i32) -> (i32, i32, i32, i32, i32) {
    %c0_i32 = arith.constant 0 : i32
    %c0_i32_0 = arith.constant 0 : i32
    %c0_i32_1 = arith.constant 0 : i32
    %c0_i32_2 = arith.constant 0 : i32
    return %arg0, %arg1, %c0_i32, %c0_i32_0, %c0_i32_1 : i32, i32, i32, i32, i32
  }
  func.func @transform_9(%arg0: i32, %arg1: i32) -> (i32, i32, i32, i32) {
    %c0_i32 = arith.constant 0 : i32
    %c0_i32_0 = arith.constant 0 : i32
    %c0_i32_1 = arith.constant 0 : i32
    return %arg0, %arg1, %c0_i32, %c0_i32_0 : i32, i32, i32, i32
  }
  func.func @transform_10(%arg0: i32, %arg1: i32) -> (i32, i32, i32, i32) {
    %c0_i32 = arith.constant 0 : i32
    %c0_i32_0 = arith.constant 0 : i32
    %c0_i32_1 = arith.constant 0 : i32
    return %arg0, %arg1, %c0_i32, %c0_i32_0 : i32, i32, i32, i32
  }
  func.func @transform_11(%arg0: i32, %arg1: i32) -> (i32, i32, i32, i32) {
    %c0_i32 = arith.constant 0 : i32
    %c0_i32_0 = arith.constant 0 : i32
    %c0_i32_1 = arith.constant 0 : i32
    return %arg0, %arg1, %c0_i32, %c0_i32_0 : i32, i32, i32, i32
  }
  func.func @transform_12(%arg0: i32, %arg1: i32) -> (i32, i32, i32, i32, i32) {
    %c0_i32 = arith.constant 0 : i32
    %c0_i32_0 = arith.constant 0 : i32
    %c0_i32_1 = arith.constant 0 : i32
    %c0_i32_2 = arith.constant 0 : i32
    return %arg0, %arg1, %c0_i32, %c0_i32_0, %c0_i32_1 : i32, i32, i32, i32, i32
  }
  func.func @transform_13(%arg0: i32, %arg1: i32) -> (i32, i32, i32, i32, i32) {
    %c0_i32 = arith.constant 0 : i32
    %c0_i32_0 = arith.constant 0 : i32
    %c0_i32_1 = arith.constant 0 : i32
    %c0_i32_2 = arith.constant 0 : i32
    return %arg0, %arg1, %c0_i32, %c0_i32_0, %c0_i32_1 : i32, i32, i32, i32, i32
  }
  func.func @transform_14(%arg0: i32, %arg1: i32) -> (i32, i32, i32, i32, i32) {
    %c0_i32 = arith.constant 0 : i32
    %c0_i32_0 = arith.constant 0 : i32
    %c0_i32_1 = arith.constant 0 : i32
    %c0_i32_2 = arith.constant 0 : i32
    return %arg0, %arg1, %c0_i32, %c0_i32_0, %c0_i32_1 : i32, i32, i32, i32, i32
  }
  func.func @transform_15(%arg0: i32, %arg1: i32) -> (i32, i32, i32, i32, i32) {
    %c0_i32 = arith.constant 0 : i32
    %c0_i32_0 = arith.constant 0 : i32
    %c0_i32_1 = arith.constant 0 : i32
    %c0_i32_2 = arith.constant 0 : i32
    return %arg0, %arg1, %c0_i32, %c0_i32_0, %c0_i32_1 : i32, i32, i32, i32, i32
  }
  func.func @transform_16(%arg0: i32, %arg1: i32) -> (i32, i32, i32, i32, i32) {
    %c0_i32 = arith.constant 0 : i32
    %c0_i32_0 = arith.constant 0 : i32
    %c0_i32_1 = arith.constant 0 : i32
    %c0_i32_2 = arith.constant 0 : i32
    return %arg0, %arg1, %c0_i32, %c0_i32_0, %c0_i32_1 : i32, i32, i32, i32, i32
  }
  func.func @transform_17(%arg0: i32, %arg1: i32) -> (i32, i32, i32, i32, i32) {
    %c0_i32 = arith.constant 0 : i32
    %c0_i32_0 = arith.constant 0 : i32
    %c0_i32_1 = arith.constant 0 : i32
    %c0_i32_2 = arith.constant 0 : i32
    return %arg0, %arg1, %c0_i32, %c0_i32_0, %c0_i32_1 : i32, i32, i32, i32, i32
  }
  func.func @transform_18(%arg0: i32, %arg1: i32) -> (i32, i32, i32, i32, i32) {
    %c0_i32 = arith.constant 0 : i32
    %c0_i32_0 = arith.constant 0 : i32
    %c0_i32_1 = arith.constant 0 : i32
    %c0_i32_2 = arith.constant 0 : i32
    return %arg0, %arg1, %c0_i32, %c0_i32_0, %c0_i32_1 : i32, i32, i32, i32, i32
  }
  func.func @transform_19(%arg0: i32, %arg1: i32) -> (i32, i32, i32, i32) {
    %c0_i32 = arith.constant 0 : i32
    %c0_i32_0 = arith.constant 0 : i32
    %c0_i32_1 = arith.constant 0 : i32
    return %arg0, %arg1, %c0_i32, %c0_i32_0 : i32, i32, i32, i32
  }
  func.func @transform_20(%arg0: i32, %arg1: i32) -> (i32, i32, i32, i32) {
    %c0_i32 = arith.constant 0 : i32
    %c0_i32_0 = arith.constant 0 : i32
    %c0_i32_1 = arith.constant 0 : i32
    return %arg0, %arg1, %c0_i32, %c0_i32_0 : i32, i32, i32, i32
  }
  func.func @transform_21(%arg0: i32, %arg1: i32) -> (i32, i32, i32, i32) {
    %c0_i32 = arith.constant 0 : i32
    %c0_i32_0 = arith.constant 0 : i32
    %c0_i32_1 = arith.constant 0 : i32
    return %arg0, %arg1, %c0_i32, %c0_i32_0 : i32, i32, i32, i32
  }
  func.func @transform_22(%arg0: i32, %arg1: i32) -> (i32, i32, i32, i32) {
    %c0_i32 = arith.constant 0 : i32
    %c0_i32_0 = arith.constant 0 : i32
    %c0_i32_1 = arith.constant 0 : i32
    return %arg0, %arg1, %c0_i32, %c0_i32_0 : i32, i32, i32, i32
  }
  func.func @transform_23(%arg0: i32, %arg1: i32) -> (i32, i32, i32, i32) {
    %c0_i32 = arith.constant 0 : i32
    %c0_i32_0 = arith.constant 0 : i32
    %c0_i32_1 = arith.constant 0 : i32
    return %arg0, %arg1, %c0_i32, %c0_i32_0 : i32, i32, i32, i32
  }
  func.func @transform_24(%arg0: i32, %arg1: i32) -> (i32, i32, i32, i32) {
    %c0_i32 = arith.constant 0 : i32
    %c0_i32_0 = arith.constant 0 : i32
    %c0_i32_1 = arith.constant 0 : i32
    return %arg0, %arg1, %c0_i32, %c0_i32_0 : i32, i32, i32, i32
  }
  func.func @transform_25(%arg0: i32, %arg1: i32) -> (i32, i32, i32, i32) {
    %c0_i32 = arith.constant 0 : i32
    %c0_i32_0 = arith.constant 0 : i32
    %c0_i32_1 = arith.constant 0 : i32
    return %arg0, %arg1, %c0_i32, %c0_i32_0 : i32, i32, i32, i32
  }
  func.func @transform_26(%arg0: i32, %arg1: i32) -> (i32, i32, i32, i32) {
    %c0_i32 = arith.constant 0 : i32
    %c0_i32_0 = arith.constant 0 : i32
    %c0_i32_1 = arith.constant 0 : i32
    return %arg0, %arg1, %c0_i32, %c0_i32_0 : i32, i32, i32, i32
  }
  func.func @transform_27(%arg0: i32, %arg1: i32) -> (i32, i32, i32, i32) {
    %c0_i32 = arith.constant 0 : i32
    %c0_i32_0 = arith.constant 0 : i32
    %c0_i32_1 = arith.constant 0 : i32
    return %arg0, %arg1, %c0_i32, %c0_i32_0 : i32, i32, i32, i32
  }
  func.func @transform_28(%arg0: i32, %arg1: i32) -> (i32, i32, i32) {
    %c0_i32 = arith.constant 0 : i32
    %c0_i32_0 = arith.constant 0 : i32
    %c0_i32_1 = arith.constant 0 : i32
    return %arg0, %c0_i32, %c0_i32_0 : i32, i32, i32
  }
  func.func @transform_29(%arg0: i32, %arg1: i32) -> (i32, i32, i32) {
    %c0_i32 = arith.constant 0 : i32
    %c0_i32_0 = arith.constant 0 : i32
    %c0_i32_1 = arith.constant 0 : i32
    return %arg0, %c0_i32, %c0_i32_0 : i32, i32, i32
  }
  func.func @transform_30(%arg0: i32, %arg1: i32) -> (i32, i32, i32) {
    %c0_i32 = arith.constant 0 : i32
    %c0_i32_0 = arith.constant 0 : i32
    %c0_i32_1 = arith.constant 0 : i32
    return %arg0, %c0_i32, %c0_i32_0 : i32, i32, i32
  }
  func.func @transform_31(%arg0: i32, %arg1: i32) -> (i32, i32, i32) {
    %c0_i32 = arith.constant 0 : i32
    %c0_i32_0 = arith.constant 0 : i32
    %c0_i32_1 = arith.constant 0 : i32
    return %arg0, %c0_i32, %c0_i32_0 : i32, i32, i32
  }
  func.func @transform_32(%arg0: i32, %arg1: i32) -> (i32, i32, i32) {
    %c0_i32 = arith.constant 0 : i32
    %c0_i32_0 = arith.constant 0 : i32
    %c0_i32_1 = arith.constant 0 : i32
    return %arg0, %c0_i32, %c0_i32_0 : i32, i32, i32
  }
}

</mosaic_0001>

<bundles_post_ra>
// kernel: nar_transformer_fwd.2
= control target key start
LH: loop header
LB: loop body
LE: loop exit
PB: predicated region body
PF: predicated region fallthrough
CT: control target
= control target key end

     0   :  { %s7429_s30 = smov 0   ;;  %s7431_s20 = smov 0   ;;  %s8325_s0 = inlined_call_operand.vmem [shape: f32[2,16,32], index: 0, kind: input, shape index: {}]   ;;  %s8326_s1 = inlined_call_operand.vmem [shape: f32[2,1,4,32,8], index: 1, kind: input, shape index: {}]   ;;  %s8327_s2 = inlined_call_operand.vmem [shape: f32[2,1,4,1,8], index: 2, kind: input, shape index: {}]   ;;  %s8328_s3 = inlined_call_operand.vmem [shape: f32[2,1,4,32,8], index: 3, kind: input, shape index: {}]   ;;  %s8329_s4 = inlined_call_operand.vmem [shape: f32[2,1,4,1,8], index: 4, kind: input, shape index: {}]   ;;  %s8330_s5 = inlined_call_operand.vmem [shape: f32[2,1,4,32,8], index: 5, kind: input, shape index: {}]   ;;  %s8331_s6 = inlined_call_operand.vmem [shape: f32[2,1,4,1,8], index: 6, kind: input, shape index: {}]   ;;  %s8332_s7 = inlined_call_operand.vmem [shape: f32[2,1,4,8,32], index: 7, kind: input, shape index: {}]   ;;  %s8333_s8 = inlined_call_operand.vmem [shape: f32[2,1,1,32], index: 8, kind: input, shape index: {}]   ;;  %s8334_s9 = inlined_call_operand.vmem [shape: f32[2,1,1,32], index: 9, kind: input, shape index: {}]   ;;  %s8335_s10 = inlined_call_operand.vmem [shape: f32[2,1,1,32], index: 10, kind: input, shape index: {}]   ;;  %s8336_s11 = inlined_call_operand.vmem [shape: f32[2,1,32,2048], index: 11, kind: input, shape index: {}]   ;;  %s8337_s12 = inlined_call_operand.vmem [shape: f32[2,1,1,2048], index: 12, kind: input, shape index: {}]   ;;  %s8338_s13 = inlined_call_operand.vmem [shape: f32[2,1,2048,32], index: 13, kind: input, shape index: {}]   ;;  %s8339_s14 = inlined_call_operand.vmem [shape: f32[2,1,1,32], index: 14, kind: input, shape index: {}]   ;;  %s8340_s15 = inlined_call_operand.vmem [shape: f32[2,1,1,32], index: 15, kind: input, shape index: {}]   ;;  %s8341_s16 = inlined_call_operand.vmem [shape: f32[2,1,1,32], index: 16, kind: input, shape index: {}]   ;;  %s8342_s17 = inlined_call_operand.vmem [shape: f32[2,1,32], index: 17, kind: input, shape index: {}]   ;;  %s8343_s18 = inlined_call_operand.vmem [shape: f32[2,1,32], index: 18, kind: input, shape index: {}]   ;;  %s8344_s19 = inlined_call_operand.vmem [shape: f32[2,16,32], index: 19, kind: output, shape index: {}]  }
   0x1   :  { %8345 = sst [smem:[#allocation4_spill]] %s8325_s0  ;;  %s7427_s0 = smov 0  }
   0x2   :  { %8346 = sst [smem:[#allocation5_spill]] %s8326_s1 }
   0x3   :  { %8347 = sst [smem:[#allocation6_spill]] %s8327_s2 }
   0x4   :  { %8348 = sst [smem:[#allocation7_spill]] %s8328_s3 }
   0x5 LB: > { %s41_s21 = sadd.s32 1, %s7319_s30  ;;  %p5986_p0 = scmp.ge.s32.totalorder %s7323_s20, 1  ;;  %s7323_s20 = sphi %s7431_s20, %s29_s20   ;;  %s7319_s30 = sphi %s7429_s30, %s8356_s30   ;;  %s7315_s0 = sphi %s7427_s0, %s8355_s0  }
   0x6   : > { %p43_p1 = scmp.ge.s32.totalorder %s41_s21, 2  ;;  %p799_p2 = scmp.lt.s32.totalorder %s7323_s20, 3 }
   0x8   : > { %s8358_s21 = smov (%p43_p1, %s41_s21), 0  ;;  %p800_p3 = pnand %p5986_p0, %p799_p2 }
   0x9   : > { %8349 = sst [smem:[#allocation3_spill]] %s8358_s21  ;;  %p983_p4 = scmp.lt.s32.totalorder (!%p800_p3), %s7315_s0, 1  ;;  %vm1127_vm0 = vcmask (!%p800_p3), 261120   ;;  %v7325_v16 = vmov (!%p800_p3), 0.0   ;;  %vm7326_vm1 = vmmov (!%p800_p3), 0   ;;  %vm1397_vm2 = vcmask (!%p800_p3), 64512  }
   0xa   : > { %803 = sbr.rel (%p800_p3) target bundleno = 5926 (0x1726), region = 96  ;;  %s8350_s24 = sld [smem:[#allocation7_spill]] (!%p800_p3) }
   0xb   : > { %s8351_s27 = sld [smem:[#allocation5_spill]] (!%p800_p3)  ;;  %s8352_s23 = sld [smem:[#allocation4_spill]] (!%p800_p3) }
  0x11   : > { %s8360_s0 = smov (!%p983_p4, %s7315_s0), 1 }
  0x12   : > { %s7448_s1 = sshll.u32 %s8360_s0, 7  ;;  %s7451_s22 = sshll.u32 %s8360_s0, 4 }
  0x13   : > { %s7457_s25 = scalar_lea.vmem %s8350_s24, %s7448_s1  ;;  %s7463_s28 = scalar_lea.vmem %s8351_s27, %s7448_s1 }
  0x14   : > { %v1225_v0 = vld [vmem:[%s7457_s25] sm:$0xff]  ;;  %v1226_v1 = vld [vmem:[%s7457_s25 + $0x8] sm:$0xff]  ;;  %s987_s24 = scalar_lea.vmem %s8352_s23, %s7451_s22  ;;  %v1227_v5 = vld [vmem:[%s7457_s25 + $0x10] sm:$0xff]  ;;  %s7497_s3 = sshll.u32 %s8360_s0, 2 }
  0x15   : > { %v1132_v2 = vld [vmem:[%s7463_s28] sm:$0xff]  ;;  %v6817_v3 = vpack.c.bf16 %v1226_v1, %v1225_v0  ;;  %v1133_v4 = vld [vmem:[%s7463_s28 + $0x8] sm:$0xff]  ;;  %v1228_v6 = vld [vmem:[%s7457_s25 + $0x18] sm:$0xff]  ;;  %s7503_s29 = scalar_lea.vmem %s8329_s4, %s7497_s3  ;;  %s7522_s2 = scalar_lea.vmem %s8330_s5, %s7448_s1 }
  0x16   : > { %v6809_v7 = vpack.c.bf16 %v1133_v4, %v1132_v2  ;;  %v6821_v8 = vpack.c.bf16 %v1228_v6, %v1227_v5  ;;  %v1134_v9 = vld [vmem:[%s7463_s28 + $0x10] sm:$0xff]  ;;  %v1135_v10 = vld [vmem:[%s7463_s28 + $0x18] sm:$0xff]  ;;  %v1125_v11 = vld [vmem:[%s987_s24] sm:$0xff]  ;;  %s1059_s27 = scalar_lea.vmem %s8334_s9, %s8360_s0  ;;  %s7952_s26 = scalar_lea.vmem %s8337_s12, %s7451_s22 }
  0x17   : > { %6818 = vmatprep.subr.bf16.mxu1 %v6817_v3  ;;  %v6813_v12 = vpack.c.bf16 %v1135_v10, %v1134_v9  ;;  %1128 = vst.msk [vmem:[#allocation2] sm:$0xff] %vm1127_vm0, %v1125_v11  ;;  %v1126_v13 = vld [vmem:[%s987_s24 + $0x8] sm:$0xff]  ;;  %s8353_s24 = sld [smem:[#allocation6_spill]]  ;;  %v6010_v17 = vld [vmem:[%s7503_s29] ss:$0 sm:$0xff]  ;;  %v1313_v29 = vld [vmem:[%s7522_s2 + $0x10] sm:$0xff] }
  0x18   : > { %6820 = vmatpush3.bf16.msra.mxu1 %v6817_v3  ;;  %6810 = vmatprep.subr.bf16.mxu0 %v6809_v7  ;;  %1129 = vst.msk [vmem:[#allocation2 + $0x8] sm:$0xff] %vm1127_vm0, %v1126_v13  ;;  %v1311_v27 = vld [vmem:[%s7522_s2] sm:$0xff]  ;;  %v1312_v28 = vld [vmem:[%s7522_s2 + $0x8] sm:$0xff]  ;;  %v1314_v31 = vld [vmem:[%s7522_s2 + $0x18] sm:$0xff] }
  0x19   : > { %6812 = vmatpush3.bf16.msra.mxu0 %v6809_v7  ;;  %6822 = vmatprep.subr.bf16.mxu1 %v6821_v8  ;;  %v6825_v30 = vpack.c.bf16 %v1312_v28, %v1311_v27  ;;  %v6829_v32 = vpack.c.bf16 %v1314_v31, %v1313_v29  ;;  %v6030_v61 = vld [vmem:[%s7457_s25 + $0x20] sm:$0xff]  ;;  %v6031_v62 = vld [vmem:[%s7457_s25 + $0x28] sm:$0xff]  ;;  %v6024_v3 = vld [vmem:[%s7463_s28 + $0x30] sm:$0xff] }
  0x1a   : > { %6814 = vmatprep.subr.bf16.mxu0 %v6813_v12  ;;  %v6841_v63 = vpack.c.bf16 %v6031_v62, %v6030_v61  ;;  %v6022_v0 = vld [vmem:[%s7463_s28 + $0x20] sm:$0xff]  ;;  %v6023_v1 = vld [vmem:[%s7463_s28 + $0x28] sm:$0xff]  ;;  %v6025_v4 = vld [vmem:[%s7463_s28 + $0x38] sm:$0xff] }
  0x1b   : > { %v6833_v2 = vpack.c.bf16 %v6023_v1, %v6022_v0  ;;  %v6837_v5 = vpack.c.bf16 %v6025_v4, %v6024_v3  ;;  %v6038_v6 = vld [vmem:[%s7522_s2 + $0x20] sm:$0xff]  ;;  %v6039_v7 = vld [vmem:[%s7522_s2 + $0x28] sm:$0xff]  ;;  %v6032_v10 = vld [vmem:[%s7457_s25 + $0x30] sm:$0xff] }
  0x1c   : > { %6824 = vmatpush3.bf16.msra.mxu1 %v6821_v8  ;;  %v6849_v8 = vpack.c.bf16 %v6039_v7, %v6038_v6  ;;  %v6033_v11 = vld [vmem:[%s7457_s25 + $0x38] sm:$0xff]  ;;  %v6057_v1 = vld [vmem:[%s7463_s28 + $0x40] sm:$0xff]  ;;  %v6059_v4 = vld [vmem:[%s7463_s28 + $0x50] sm:$0xff] }
  0x1d   : > { %6816 = vmatpush3.bf16.msra.mxu0 %v6813_v12  ;;  %6610 = vmatprep.subr.mxu1 %v7325_v16  ;;  %s7509_s21 = scalar_lea.vmem %s8353_s24, %s7497_s3  ;;  %s7538_s24 = scalar_lea.vmem %s8331_s6, %s7497_s3 }
  0x1e   : > { %v7479_v14 = vld [vmem:[#allocation2] sm:$0xff]  ;;  %6826 = vmatprep.subr.bf16.mxu0 %v6825_v30  ;;  %s6153_s3 = sshll.u32 %s8360_s0, 5 }
  0x1f   : > { %6596 = vmatprep.mubr.msk.f32.mxu1 %vm1127_vm0, %v7479_v14  ;;  %v7483_v15 = vld [vmem:[#allocation2 + $0x8] sm:$0xff]  ;;  %6585 = vmatprep.mubr.msk.f32.mxu0 %vm1127_vm0, %v7479_v14  ;;  %v6007_v18 = vld [vmem:[%s7509_s21] ss:$0 sm:$0xff]  ;;  %s7610_s1 = scalar_lea.vmem %s8332_s7, %s6153_s3 }
  0x20   : > { %6597 = vmatmul.mubr.msk.f32.vlgmr.msra.gmra.mrb[0].mxu1 %vm1127_vm0, %v7483_v15  ;;  %6586 = vmatmul.mubr.msk.f32.vlgmr.msra.gmra.mrb[0].mxu0 %vm1127_vm0, %v7483_v15  ;;  %v6013_v43 = vld [vmem:[%s7538_s24] ss:$0 sm:$0xff] }
  0x21   : > { %6607 = vmatprep.mubr.msk.f32.mxu0 %vm1127_vm0, %v7479_v14  ;;  %6612 = vmatprep.mubr.msk.f32.mxu1 %vm7326_vm1, %v7325_v16  ;;  %v1720_v0 = vld [vmem:[%s7610_s1] sm:$0xff] }
  0x22   : > { %6828 = vmatpush3.bf16.msra.mxu0 %v6825_v30 }
  0x23   : > { %6830 = vmatprep.subr.bf16.mxu0 %v6829_v32 }
  0x26   : > { %6832 = vmatpush3.bf16.msra.mxu0 %v6829_v32 }
  0x27   : > { %6834 = vmatprep.subr.bf16.mxu0 %v6833_v2 }
  0x29   : > { %6608 = vmatmul.mubr.msk.f32.vlgmr.msra.gmra.mrb[2].mxu0 %vm1127_vm0, %v7483_v15 }
  0x2a   : > { %6638 = vmatprep.mubr.msk.f32.mxu0 %vm1127_vm0, %v7479_v14  ;;  %6836 = vmatpush3.bf16.msra.mxu0 %v6833_v2  ;;  %v6058_v2 = vld [vmem:[%s7463_s28 + $0x48] sm:$0xff] }
  0x2b   : > { %6838 = vmatprep.subr.bf16.mxu0 %v6837_v5  ;;  %v6857_v3 = vpack.c.bf16 %v6058_v2, %v6057_v1  ;;  %v6087_v1 = vld [vmem:[%s7610_s1 + $0x10] sm:$0xff]  ;;  %v6098_v2 = vld [vmem:[%s7457_s25 + $0x60] sm:$0xff] }
  0x2e   : > { %6840 = vmatpush3.bf16.msra.mxu0 %v6837_v5  ;;  %v6060_v5 = vld [vmem:[%s7463_s28 + $0x58] sm:$0xff] }
  0x2f   : > { %6850 = vmatprep.subr.bf16.mxu0 %v6849_v8  ;;  %v6861_v6 = vpack.c.bf16 %v6060_v5, %v6059_v4  ;;  %v6090_v5 = vld [vmem:[%s7463_s28 + $0x60] sm:$0xff] }
  0x31   : > { %6639 = vmatmul.mubr.msk.f32.vlgmr.msra.gmra.mrb[4].mxu0 %vm1127_vm0, %v7483_v15 }
  0x32   : > { %6660 = vmatprep.mubr.msk.f32.mxu0 %vm1127_vm0, %v7479_v14  ;;  %6852 = vmatpush3.bf16.msra.mxu0 %v6849_v8  ;;  %v6065_v8 = vld [vmem:[%s7457_s25 + $0x40] sm:$0xff] }
  0xf3   : > { %v6598_v19 = vpop.f32.mrb[0].mxu1  ;;  %v6587_v20 = vpop.f32.mrb[0].mxu0 }
  0xf4   : > { %v1308_v21 = vadd.f32 %v6598_v19, %v6010_v17  ;;  %v1302_v22 = vpop.f32.mrb[1].mxu1  ;;  %v1222_v23 = vadd.f32 %v6587_v20, %v6007_v18  ;;  %v1216_v24 = vpop.f32.mrb[1].mxu0  ;;  %v6041_v19 = vld [vmem:[%s7522_s2 + $0x38] sm:$0xff] }
  0xf5   : > { %v1303_v25 = vadd.f32 %v6010_v17, %v1302_v22  ;;  %v1217_v26 = vadd.f32 %v6007_v18, %v1216_v24  ;;  %v6845_v17 = vpack.c.bf16 %v6033_v11, %v6032_v10  ;;  %v6040_v18 = vld [vmem:[%s7522_s2 + $0x30] sm:$0xff] }
  0xf6   : > { %v6853_v20 = vpack.c.bf16 %v6041_v19, %v6040_v18  ;;  %v6068_v18 = vld [vmem:[%s7457_s25 + $0x58] sm:$0xff] }
  0xf7   : > { %6611 = vmatpush3.xpose.msk.msra.mxu1 %vm1397_vm2, %v1303_v25  ;;  %v6035_v25 = vld [vmem:[%s7503_s29 + $0x1] ss:$0 sm:$0xff] }
  0xf8   : > { %6615 = vmatprep.subr.mxu1 %v7325_v16  ;;  %6854 = vmatprep.subr.bf16.mxu0 %v6853_v20 }
  0xf9   : > { %6856 = vmatpush3.bf16.msra.mxu0 %v6853_v20 }
  0xfa   : > { %6613 = vmatmul.mubr.msk.f32.vlgmr.msra.gmra.mrb[2].mxu1 %vm1397_vm2, %v1217_v26  ;;  %6673 = vmatprep.subr.mxu0 %v7325_v16  ;;  %v6027_v26 = vld [vmem:[%s7509_s21 + $0x1] ss:$0 sm:$0xff] }
  0xfb   : > { %6617 = vmatprep.mubr.msk.f32.mxu1 %vm7326_vm1, %v7325_v16 }
  0xfc   : > { %v6609_v42 = vpop.f32.mrb[2].mxu0  ;;  %6661 = vmatmul.mubr.msk.f32.vlgmr.msra.gmra.mrb[6].mxu0 %vm1127_vm0, %v7483_v15 }
  0xfd   : > { %v1388_v44 = vpop.f32.mrb[3].mxu0  ;;  %v1394_v45 = vadd.f32 %v6609_v42, %v6013_v43  ;;  %6675 = vmatprep.mubr.msk.f32.mxu0 %vm7326_vm1, %v7325_v16 }
  0xfe   : > { %v1389_v46 = vadd.f32 %v6013_v43, %v1388_v44 }
 0x100   : > { %6616 = vmatpush3.msra.mxu1 %v1389_v46 }
 0x101   : > { %6620 = vmatprep.subr.mxu1 %v7325_v16 }
 0x1cd   : > { %v1470_v33 = vpop.f32.mrb[2].mxu1 }
 0x1ce   : > { %v1474_v34 = vmul.f32 0.35355338, %v1470_v33  ;;  %v6614_v35 = vpop.f32.mrb[3].mxu1  ;;  %v6043_v33 = vld [vmem:[%s7538_s24 + $0x1] ss:$0 sm:$0xff] }
 0x1d0   : > { %v1475_v36 = vsel %vm1397_vm2, %v1474_v34, -inf }
 0x1d1   : > { %1476 = vmax.xlane.f32.xlu0 %v1475_v36 }
 0x25e   : > { %v1477_v37 = vpop.xlane.xlu0 %1476 }
 0x25f   : > { %v1478_v38 = vsub.f32 %v1474_v34, %v1477_v37 }
 0x261   : > { %v1479_v39 = vmul.f32 1.442695, %v1478_v38 }
 0x263   : > { %7257 = vpow2.f32 %v1479_v39 }
 0x26d   : > { %v7258_v40 = vpop.eup %7257 }
 0x26e   : > { %v1481_v41 = vsel %vm1397_vm2, %v7258_v40, 0.0 }
 0x26f   : > { %1482 = vadd.xlane.f32.xlu0 %v1481_v41 }
 0x2fc   : > { %v1483_v47 = vpop.xlane.xlu0 %1482 }
 0x2fd   : > { %7259 = vrcp.f32 %v1483_v47 }
 0x307   : > { %v7260_v48 = vpop.eup %7259 }
 0x308   : > { %v1485_v49 = vmul.f32 %v7260_v48, %v7258_v40 }
 0x30a   : > { %6618 = vmatmul.mubr.msk.f32.vlgmr.msra.gmra.mrb[4].mxu1 %vm1397_vm2, %v1485_v49 }
 0x30b   : > { %6621 = vmatpush3.xpose.msk.msra.mxu1 %vm1397_vm2, %v1308_v21  ;;  %6622 = vmatprep.mubr.msk.f32.mxu1 %vm7326_vm1, %v7325_v16  ;;  %v6640_v21 = vpop.f32.mrb[4].mxu0 }
 0x30c   : > { %6625 = vmatprep.subr.mxu1 %v7325_v16  ;;  %v1800_v22 = vpop.f32.mrb[5].mxu0  ;;  %v1806_v31 = vadd.f32 %v6640_v21, %v6027_v26  ;;  %v6070_v21 = vld [vmem:[%s7503_s29 + $0x2] ss:$0 sm:$0xff] }
 0x30d   : > { %v1801_v32 = vadd.f32 %v6027_v26, %v1800_v22  ;;  %v6662_v34 = vpop.f32.mrb[6].mxu0 }
 0x30e   : > { %6623 = vmatmul.mubr.msk.f32.vlgmr.msra.gmra.mrb[6].mxu1 %vm1397_vm2, %v1222_v23  ;;  %v1982_v35 = vadd.f32 %v6662_v34, %v6043_v33  ;;  %v1976_v36 = vpop.f32.mrb[7].mxu0 }
 0x30f   : > { %6626 = vmatpush3.msra.mxu1 %v1394_v45  ;;  %6627 = vmatprep.mubr.msk.f32.mxu1 %vm7326_vm1, %v7325_v16  ;;  %v1977_v37 = vadd.f32 %v6043_v33, %v1976_v36  ;;  %v6076_v33 = vld [vmem:[%s7522_s2 + $0x58] sm:$0xff] }
 0x310   : > { %6842 = vmatprep.subr.bf16.mxu1 %v6841_v63 }
 0x3dd   : > { %v7550_v50 = vpop.f32.mrb[4].mxu1 }
 0x3de   : > { %v6619_v51 = vpop.f32.mrb[5].mxu1 }
 0x3e1   : > { %v1631_v52 = vpop.f32.mrb[6].mxu1 }
 0x3e2   : > { %v1635_v53 = vmul.f32 0.35355338, %v1631_v52  ;;  %v6624_v54 = vpop.f32.mrb[7].mxu1 }
 0x3e4   : > { %v1636_v55 = vsel %vm1397_vm2, %v1635_v53, -inf }
 0x3e5   : > { %1637 = vmax.xlane.f32.xlu1 %v1636_v55 }
 0x472   : > { %v1638_v56 = vpop.xlane.xlu1 %1637 }
 0x473   : > { %v1639_v57 = vsub.f32 %v1635_v53, %v1638_v56 }
 0x475   : > { %v1640_v58 = vmul.f32 1.442695, %v1639_v57 }
 0x477   : > { %7261 = vpow2.f32 %v1640_v58 }
 0x481   : > { %v7262_v59 = vpop.eup %7261 }
 0x482   : > { %v1642_v60 = vsel %vm1397_vm2, %v7262_v59, 0.0 }
 0x483   : > { %1643 = vadd.xlane.f32.xlu1 %v1642_v60 }
 0x510   : > { %v1644_v9 = vpop.xlane.xlu1 %1643 }
 0x511   : > { %7263 = vrcp.f32 %v1644_v9  ;;  %v6066_v9 = vld [vmem:[%s7457_s25 + $0x48] sm:$0xff] }
 0x512   : > { %v6865_v11 = vpack.c.bf16 %v6066_v9, %v6065_v8  ;;  %v6092_v8 = vld [vmem:[%s7463_s28 + $0x70] sm:$0xff]  ;;  %v6093_v9 = vld [vmem:[%s7463_s28 + $0x78] sm:$0xff] }
 0x51b   : > { %v7264_v12 = vpop.eup %7263 }
 0x51c   : > { %v1646_v13 = vmul.f32 %v7264_v12, %v7262_v59 }
 0x51e   : > { %6628 = vmatmul.mubr.msk.f32.vlgmr.msra.gmra.mrb[8].mxu1 %vm1397_vm2, %v1646_v13 }
 0x51f   : > { %6844 = vmatpush3.bf16.msra.mxu1 %v6841_v63  ;;  %6649 = vmatprep.mubr.msk.f32.mxu1 %vm1127_vm0, %v7479_v14  ;;  %v6052_v63 = vld [vmem:[%s7610_s1 + $0x8] sm:$0xff] }
 0x520   : > { %6846 = vmatprep.subr.bf16.mxu1 %v6845_v17 }
 0x523   : > { %6848 = vmatpush3.bf16.msra.mxu1 %v6845_v17  ;;  %v6067_v17 = vld [vmem:[%s7457_s25 + $0x50] sm:$0xff] }
 0x524   : > { %6663 = vmatprep.subr.mxu1 %v7325_v16  ;;  %v6869_v19 = vpack.c.bf16 %v6068_v18, %v6067_v17  ;;  %v6109_v18 = vld [vmem:[%s7522_s2 + $0x78] sm:$0xff] }
 0x526   : > { %6650 = vmatmul.mubr.msk.f32.vlgmr.msra.gmra.mrb[10].mxu1 %vm1127_vm0, %v7483_v15 }
 0x527   : > { %6665 = vmatprep.mubr.msk.f32.mxu1 %vm7326_vm1, %v7325_v16 }
 0x5f1   : > { %v7583_v23 = vpop.f32.mrb[8].mxu1 }
 0x5f2   : > { %v6629_v24 = vpop.f32.mrb[9].mxu1 }
 0x5f9   : > { %v6651_v27 = vpop.f32.mrb[10].mxu1 }
 0x5fa   : > { %v1894_v28 = vadd.f32 %v6651_v27, %v6035_v25  ;;  %v1888_v29 = vpop.f32.mrb[11].mxu1 }
 0x5fb   : > { %v1889_v30 = vadd.f32 %v6035_v25, %v1888_v29  ;;  %v6073_v29 = vld [vmem:[%s7522_s2 + $0x40] sm:$0xff] }
 0x5fc   : > { %6674 = vmatpush3.xpose.msk.msra.mxu0 %vm1397_vm2, %v1894_v28 }
 0x5fd   : > { %6664 = vmatpush3.xpose.msk.msra.mxu1 %vm1397_vm2, %v1889_v30  ;;  %6683 = vmatprep.subr.mxu0 %v6052_v63  ;;  %v6074_v30 = vld [vmem:[%s7522_s2 + $0x48] sm:$0xff] }
 0x5fe   : > { %6668 = vmatprep.subr.mxu1 %v7325_v16 }
 0x5ff   : > { %6676 = vmatmul.mubr.msk.f32.vlgmr.msra.gmra.mrb[8].mxu0 %vm1397_vm2, %v1806_v31  ;;  %v6075_v31 = vld [vmem:[%s7522_s2 + $0x50] sm:$0xff] }
 0x600   : > { %6666 = vmatmul.mubr.msk.f32.vlgmr.msra.gmra.mrb[12].mxu1 %vm1397_vm2, %v1801_v32  ;;  %6684 = vmatpush3.msra.mxu0 %v6052_v63  ;;  %v6873_v32 = vpack.c.bf16 %v6074_v30, %v6073_v29  ;;  %v6877_v34 = vpack.c.bf16 %v6076_v33, %v6075_v31  ;;  %v6095_v33 = vld [vmem:[%s7509_s21 + $0x3] ss:$0 sm:$0xff] }
 0x601   : > { %6670 = vmatprep.mubr.msk.f32.mxu1 %vm7326_vm1, %v7325_v16  ;;  %6669 = vmatpush3.msra.mxu1 %v1977_v37 }
 0x602   : > { %6678 = vmatprep.subr.mxu1 %v7325_v16  ;;  %6688 = vmatprep.subr.mxu0 %v1720_v0 }
 0x6d2   : > { %v2218_v38 = vpop.f32.mrb[8].mxu0 }
 0x6d3   : > { %v2222_v39 = vmul.f32 0.35355338, %v2218_v38  ;;  %v2057_v40 = vpop.f32.mrb[12].mxu1  ;;  %v6677_v41 = vpop.f32.mrb[9].mxu0 }
 0x6d4   : > { %v2061_v42 = vmul.f32 0.35355338, %v2057_v40  ;;  %v6667_v43 = vpop.f32.mrb[13].mxu1 }
 0x6d5   : > { %v2223_v44 = vsel %vm1397_vm2, %v2222_v39, -inf }
 0x6d6   : > { %2224 = vmax.xlane.f32.xlu1 %v2223_v44  ;;  %v2062_v45 = vsel %vm1397_vm2, %v2061_v42, -inf }
 0x6d7   : > { %2063 = vmax.xlane.f32.xlu0 %v2062_v45 }
 0x763   : > { %v2225_v46 = vpop.xlane.xlu1 %2224 }
 0x764   : > { %v2226_v47 = vsub.f32 %v2222_v39, %v2225_v46  ;;  %v2064_v48 = vpop.xlane.xlu0 %2063 }
 0x765   : > { %v2065_v49 = vsub.f32 %v2061_v42, %v2064_v48 }
 0x766   : > { %v2227_v51 = vmul.f32 1.442695, %v2226_v47 }
 0x767   : > { %v2066_v52 = vmul.f32 1.442695, %v2065_v49 }
 0x768   : > { %7265 = vpow2.f32 %v2227_v51 }
 0x769   : > { %7267 = vpow2.f32 %v2066_v52 }
 0x772   : > { %v7266_v53 = vpop.eup %7265 }
 0x773   : > { %v7268_v54 = vpop.eup %7267  ;;  %v2229_v55 = vsel %vm1397_vm2, %v7266_v53, 0.0 }
 0x774   : > { %2230 = vadd.xlane.f32.xlu1 %v2229_v55  ;;  %v2068_v56 = vsel %vm1397_vm2, %v7268_v54, 0.0  ;;  %v6078_v55 = vld [vmem:[%s7538_s24 + $0x2] ss:$0 sm:$0xff] }
 0x775   : > { %2069 = vadd.xlane.f32.xlu0 %v2068_v56 }
 0x801   : > { %v2231_v57 = vpop.xlane.xlu1 %2230 }
 0x802   : > { %v2070_v58 = vpop.xlane.xlu0 %2069 }
 0x803   : > { %7269 = vrcp.f32 %v2070_v58 }
 0x804   : > { %7271 = vrcp.f32 %v2231_v57 }
 0x80d   : > { %v7270_v59 = vpop.eup %7269 }
 0x80e   : > { %v2072_v60 = vmul.f32 %v7270_v59, %v7268_v54  ;;  %v7272_v61 = vpop.eup %7271 }
 0x80f   : > { %v2233_v62 = vmul.f32 %v7272_v61, %v7266_v53 }
 0x810   : > { %6671 = vmatmul.mubr.msk.f32.vlgmr.msra.gmra.mrb[14].mxu1 %vm1397_vm2, %v2072_v60 }
 0x811   : > { %6679 = vmatpush3.msra.mxu1 %v1982_v35  ;;  %6680 = vmatprep.mubr.msk.f32.mxu1 %vm7326_vm1, %v7325_v16 }
 0x812   : > { %6858 = vmatprep.subr.bf16.mxu1 %v6857_v3 }
 0x814   : > { %6681 = vmatmul.mubr.msk.f32.vlgmr.msra.gmra.mrb[16].mxu1 %vm1397_vm2, %v2233_v62 }
 0x815   : > { %6701 = vmatprep.mubr.msk.f32.mxu1 %vm1127_vm0, %v7479_v14  ;;  %6860 = vmatpush3.bf16.msra.mxu1 %v6857_v3  ;;  %v6099_v3 = vld [vmem:[%s7457_s25 + $0x68] sm:$0xff] }
 0x816   : > { %6862 = vmatprep.subr.bf16.mxu1 %v6861_v6  ;;  %v6889_v4 = vpack.c.bf16 %v6099_v3, %v6098_v2  ;;  %v6120_v2 = vld [vmem:[%s7610_s1 + $0x18] sm:$0xff] }
 0x819   : > { %6864 = vmatpush3.bf16.msra.mxu1 %v6861_v6  ;;  %v6091_v6 = vld [vmem:[%s7463_s28 + $0x68] sm:$0xff]  ;;  %s1053_s28 = scalar_lea.vmem %s8333_s8, %s8360_s0 }
 0x81a   : > { %6874 = vmatprep.subr.bf16.mxu1 %v6873_v32 }
 0x81c   : > { %6702 = vmatmul.mubr.msk.f32.vlgmr.msra.gmra.mrb[18].mxu1 %vm1127_vm0, %v7483_v15 }
 0x81d   : > { %6723 = vmatprep.mubr.msk.f32.mxu1 %vm1127_vm0, %v7479_v14  ;;  %6876 = vmatpush3.bf16.msra.mxu1 %v6873_v32  ;;  %v6103_v32 = vld [vmem:[%s7503_s29 + $0x3] ss:$0 sm:$0xff]  ;;  %s6154_s29 = sshll.u32 %s8360_s0, 9 }
 0x81e   : > { %6878 = vmatprep.subr.bf16.mxu1 %v6877_v34 }
 0x821   : > { %6880 = vmatpush3.bf16.msra.mxu1 %v6877_v34 }
 0x822   : > { %6731 = vmatprep.subr.mxu1 %v7325_v16 }
 0x824   : > { %6724 = vmatmul.mubr.msk.f32.vlgmr.msra.gmra.mrb[20].mxu1 %vm1127_vm0, %v7483_v15 }
 0x825   : > { %6733 = vmatprep.mubr.msk.f32.mxu1 %vm7326_vm1, %v7325_v16 }
 0x8e3   : > { %v2142_v7 = vpop.f32.mrb[14].mxu1 }
 0x8e4   : > { %v6672_v10 = vpop.f32.mrb[15].mxu1  ;;  %6685 = vmatprep.mubr.msk.f32.mxu0 %vm1397_vm2, %v2142_v7  ;;  %v6881_v7 = vpack.c.bf16 %v6091_v6, %v6090_v5 }
 0x8e5   : > { %v6885_v10 = vpack.c.bf16 %v6093_v9, %v6092_v8 }
 0x8e7   : > { %v2303_v12 = vpop.f32.mrb[16].mxu1 }
 0x8e8   : > { %v6682_v13 = vpop.f32.mrb[17].mxu1  ;;  %6686 = vmatmul.mubr.msk.f32.vlgmr.msra.gmra.mrb[10].mxu0 %vm1397_vm2, %v2303_v12  ;;  %v6107_v12 = vld [vmem:[%s7522_s2 + $0x68] sm:$0xff] }
 0x8e9   : > { %6689 = vmatpush3.msra.mxu0 %v1720_v0  ;;  %6690 = vmatprep.mubr.msk.f32.mxu0 %vm1397_vm2, %v7550_v50  ;;  %v6108_v13 = vld [vmem:[%s7522_s2 + $0x70] sm:$0xff] }
 0x8ea   : > { %6866 = vmatprep.subr.bf16.mxu0 %v6865_v11 }
 0x8ef   : > { %v6703_v50 = vpop.f32.mrb[18].mxu1 }
 0x8f0   : > { %6691 = vmatmul.mubr.msk.f32.vlgmr.msra.gmra.mrb[10].mxu0 %vm1397_vm2, %v7583_v23  ;;  %v2550_v20 = vpop.f32.mrb[19].mxu1  ;;  %v6062_v23 = vld [vmem:[%s7509_s21 + $0x2] ss:$0 sm:$0xff]  ;;  %s1097_s21 = scalar_lea.vmem %s8339_s14, %s8360_s0 }
 0x8f1   : > { %6868 = vmatpush3.bf16.msra.mxu0 %v6865_v11  ;;  %6712 = vmatprep.mubr.msk.f32.mxu0 %vm1127_vm0, %v7479_v14  ;;  %v2551_v26 = vadd.f32 %v6062_v23, %v2550_v20  ;;  %v2556_v28 = vadd.f32 %v6703_v50, %v6062_v23  ;;  %v6106_v11 = vld [vmem:[%s7522_s2 + $0x60] sm:$0xff]  ;;  %v6100_v20 = vld [vmem:[%s7457_s25 + $0x70] sm:$0xff]  ;;  %s1120_s2 = scalar_lea.vmem %s8344_s19, %s7451_s22 }
 0x8f2   : > { %6870 = vmatprep.subr.bf16.mxu0 %v6869_v19  ;;  %v6897_v17 = vpack.c.bf16 %v6107_v12, %v6106_v11 }
 0x8f5   : > { %6872 = vmatpush3.bf16.msra.mxu0 %v6869_v19  ;;  %v6901_v19 = vpack.c.bf16 %v6109_v18, %v6108_v13 }
 0x8f6   : > { %6726 = vmatprep.subr.mxu0 %v7325_v16 }
 0x8f7   : > { %v6725_v54 = vpop.f32.mrb[20].mxu1 }
 0x8f8   : > { %6713 = vmatmul.mubr.msk.f32.vlgmr.msra.gmra.mrb[12].mxu0 %vm1127_vm0, %v7483_v15  ;;  %v2726_v56 = vpop.f32.mrb[21].mxu1  ;;  %v2732_v57 = vadd.f32 %v6725_v54, %v6078_v55 }
 0x8f9   : > { %6728 = vmatprep.mubr.msk.f32.mxu0 %vm7326_vm1, %v7325_v16  ;;  %v2727_v58 = vadd.f32 %v6078_v55, %v2726_v56 }
 0x8fb   : > { %6732 = vmatpush3.msra.mxu1 %v2727_v58 }
 0x8fc   : > { %6741 = vmatprep.subr.mxu1 %v7325_v16 }
 0x9cb   : > { %v6714_v22 = vpop.f32.mrb[12].mxu0 }
 0x9cc   : > { %v2638_v24 = vpop.f32.mrb[13].mxu0  ;;  %v2644_v27 = vadd.f32 %v6714_v22, %v6070_v21 }
 0x9cd   : > { %v2639_v25 = vadd.f32 %v6070_v21, %v2638_v24  ;;  %v6101_v21 = vld [vmem:[%s7457_s25 + $0x78] sm:$0xff]  ;;  %s1065_s25 = scalar_lea.vmem %s8335_s10, %s8360_s0 }
 0x9ce   : > { %v6893_v23 = vpack.c.bf16 %v6101_v21, %v6100_v20 }
 0x9cf   : > { %6727 = vmatpush3.xpose.msk.msra.mxu0 %vm1397_vm2, %v2639_v25 }
 0x9d0   : > { %6736 = vmatprep.subr.mxu0 %v7325_v16 }
 0x9d2   : > { %6729 = vmatmul.mubr.msk.f32.vlgmr.msra.gmra.mrb[14].mxu0 %vm1397_vm2, %v2551_v26 }
 0x9d3   : > { %6737 = vmatpush3.xpose.msk.msra.mxu0 %vm1397_vm2, %v2644_v27  ;;  %6738 = vmatprep.mubr.msk.f32.mxu0 %vm7326_vm1, %v7325_v16 }
 0x9d4   : > { %6746 = vmatprep.subr.mxu0 %v6087_v1 }
 0x9d6   : > { %6739 = vmatmul.mubr.msk.f32.vlgmr.msra.gmra.mrb[16].mxu0 %vm1397_vm2, %v2556_v28  ;;  %v6111_v28 = vld [vmem:[%s7538_s24 + $0x3] ss:$0 sm:$0xff]  ;;  %s7746_s24 = scalar_lea.vmem %s8336_s11, %s6154_s29  ;;  %s1103_s29 = scalar_lea.vmem %s8340_s15, %s8360_s0 }
 0x9d7   : > { %6747 = vmatpush3.msra.mxu0 %v6087_v1 }
 0x9d8   : > { %6890 = vmatprep.subr.bf16.mxu0 %v6889_v4 }
 0xaa5   : > { %v2807_v35 = vpop.f32.mrb[14].mxu0 }
 0xaa6   : > { %v2811_v36 = vmul.f32 0.35355338, %v2807_v35  ;;  %v6730_v37 = vpop.f32.mrb[15].mxu0 }
 0xaa8   : > { %v2812_v38 = vsel %vm1397_vm2, %v2811_v36, -inf }
 0xaa9   : > { %2813 = vmax.xlane.f32.xlu0 %v2812_v38  ;;  %v2968_v39 = vpop.f32.mrb[16].mxu0 }
 0xaaa   : > { %v2972_v40 = vmul.f32 0.35355338, %v2968_v39  ;;  %v6740_v41 = vpop.f32.mrb[17].mxu0 }
 0xaac   : > { %v2973_v42 = vsel %vm1397_vm2, %v2972_v40, -inf }
 0xaad   : > { %2974 = vmax.xlane.f32.xlu1 %v2973_v42 }
 0xb36   : > { %v2814_v43 = vpop.xlane.xlu0 %2813 }
 0xb37   : > { %v2815_v44 = vsub.f32 %v2811_v36, %v2814_v43 }
 0xb39   : > { %v2816_v45 = vmul.f32 1.442695, %v2815_v44 }
 0xb3a   : > { %v2975_v46 = vpop.xlane.xlu1 %2974 }
 0xb3b   : > { %7273 = vpow2.f32 %v2816_v45  ;;  %v2976_v47 = vsub.f32 %v2972_v40, %v2975_v46 }
 0xb3d   : > { %v2977_v48 = vmul.f32 1.442695, %v2976_v47 }
 0xb3f   : > { %7275 = vpow2.f32 %v2977_v48 }
 0xb45   : > { %v7274_v49 = vpop.eup %7273 }
 0xb46   : > { %v2818_v51 = vsel %vm1397_vm2, %v7274_v49, 0.0 }
 0xb47   : > { %2819 = vadd.xlane.f32.xlu0 %v2818_v51 }
 0xb49   : > { %v7276_v52 = vpop.eup %7275 }
 0xb4a   : > { %v2979_v53 = vsel %vm1397_vm2, %v7276_v52, 0.0 }
 0xb4b   : > { %2980 = vadd.xlane.f32.xlu1 %v2979_v53 }
 0xbd4   : > { %v2820_v59 = vpop.xlane.xlu0 %2819 }
 0xbd5   : > { %7277 = vrcp.f32 %v2820_v59 }
 0xbd8   : > { %v2981_v60 = vpop.xlane.xlu1 %2980 }
 0xbd9   : > { %7279 = vrcp.f32 %v2981_v60 }
 0xbdf   : > { %v7278_v61 = vpop.eup %7277 }
 0xbe0   : > { %v2822_v62 = vmul.f32 %v7278_v61, %v7274_v49 }
 0xbe2   : > { %6734 = vmatmul.mubr.msk.f32.vlgmr.msra.gmra.mrb[22].mxu1 %vm1397_vm2, %v2822_v62 }
 0xbe3   : > { %v7280_v63 = vpop.eup %7279  ;;  %6742 = vmatpush3.msra.mxu1 %v2732_v57  ;;  %6743 = vmatprep.mubr.msk.f32.mxu1 %vm7326_vm1, %v7325_v16 }
 0xbe4   : > { %v2983_v0 = vmul.f32 %v7280_v63, %v7276_v52  ;;  %6882 = vmatprep.subr.bf16.mxu1 %v6881_v7 }
 0xbe6   : > { %6744 = vmatmul.mubr.msk.f32.vlgmr.msra.gmra.mrb[24].mxu1 %vm1397_vm2, %v2983_v0 }
 0xbe7   : > { %6759 = vmatprep.mubr.msk.f32.mxu1 %vm1127_vm0, %v7479_v14  ;;  %6884 = vmatpush3.bf16.msra.mxu1 %v6881_v7  ;;  %v6123_v7 = vld [vmem:[%s1053_s28] ss:$0 sm:$0xff]  ;;  %s6155_s28 = sshll.u32 %s8360_s0, 11 }
 0xbe8   : > { %6886 = vmatprep.subr.bf16.mxu1 %v6885_v10  ;;  %s7848_s23 = scalar_lea.vmem %s8338_s13, %s6155_s28 }
 0xbeb   : > { %6888 = vmatpush3.bf16.msra.mxu1 %v6885_v10 }
 0xbec   : > { %6898 = vmatprep.subr.bf16.mxu1 %v6897_v17 }
 0xbee   : > { %6760 = vmatmul.mubr.msk.f32.vlgmr.msra.gmra.mrb[26].mxu1 %vm1127_vm0, %v7483_v15 }
 0xbef   : > { %6781 = vmatprep.mubr.msk.f32.mxu1 %vm1127_vm0, %v7479_v14  ;;  %6900 = vmatpush3.bf16.msra.mxu1 %v6897_v17 }
 0xbf0   : > { %6902 = vmatprep.subr.bf16.mxu1 %v6901_v19 }
 0xbf3   : > { %6904 = vmatpush3.bf16.msra.mxu1 %v6901_v19 }
 0xbf4   : > { %6794 = vmatprep.subr.mxu1 %v7325_v16 }
 0xbf6   : > { %6782 = vmatmul.mubr.msk.f32.vlgmr.msra.gmra.mrb[28].mxu1 %vm1127_vm0, %v7483_v15 }
 0xbf7   : > { %6796 = vmatprep.mubr.msk.f32.mxu1 %vm7326_vm1, %v7325_v16 }
 0xcb5   : > { %v2892_v50 = vpop.f32.mrb[22].mxu1 }
 0xcb6   : > { %v6735_v22 = vpop.f32.mrb[23].mxu1  ;;  %6748 = vmatprep.mubr.msk.f32.mxu0 %vm1397_vm2, %v2892_v50 }
 0xcb9   : > { %v3053_v24 = vpop.f32.mrb[24].mxu1 }
 0xcba   : > { %v6745_v25 = vpop.f32.mrb[25].mxu1  ;;  %6749 = vmatmul.mubr.msk.f32.vlgmr.msra.gmra.mrb[10].mxu0 %vm1397_vm2, %v3053_v24 }
 0xcbb   : > { %6892 = vmatpush3.bf16.msra.mxu0 %v6889_v4  ;;  %6770 = vmatprep.mubr.msk.f32.mxu0 %vm1127_vm0, %v7479_v14 }
 0xcbc   : > { %6894 = vmatprep.subr.bf16.mxu0 %v6893_v23 }
 0xcbf   : > { %6896 = vmatpush3.bf16.msra.mxu0 %v6893_v23 }
 0xcc0   : > { %6784 = vmatprep.subr.mxu0 %v7325_v16 }
 0xcc1   : > { %v6761_v26 = vpop.f32.mrb[26].mxu1 }
 0xcc2   : > { %6771 = vmatmul.mubr.msk.f32.vlgmr.msra.gmra.mrb[18].mxu0 %vm1127_vm0, %v7483_v15  ;;  %v3221_v27 = vpop.f32.mrb[27].mxu1  ;;  %v3227_v38 = vadd.f32 %v6761_v26, %v6095_v33  ;;  %v3870_v26 = vld [vmem:[%s7746_s24 + $0x8] sm:$0xff] }
 0xcc3   : > { %6786 = vmatprep.mubr.msk.f32.mxu0 %vm7326_vm1, %v7325_v16  ;;  %v3222_v39 = vadd.f32 %v6095_v33, %v3221_v27  ;;  %v3886_v27 = vld [vmem:[%s7746_s24 + $0x88] sm:$0xff] }
 0xcc9   : > { %v6783_v29 = vpop.f32.mrb[28].mxu1 }
 0xcca   : > { %v3403_v30 = vadd.f32 %v6783_v29, %v6111_v28  ;;  %v3397_v31 = vpop.f32.mrb[29].mxu1  ;;  %v6905_v29 = vpack.c.bf16 %v3886_v27, %v3870_v26  ;;  %v3880_v26 = vld [vmem:[%s7746_s24 + $0x58] sm:$0xff] }
 0xccb   : > { %v3398_v40 = vadd.f32 %v6111_v28, %v3397_v31  ;;  %v3872_v28 = vld [vmem:[%s7746_s24 + $0x18] sm:$0xff]  ;;  %v3869_v31 = vld [vmem:[%s7746_s24] sm:$0xff] }
 0xccc   : > { %v3896_v27 = vld [vmem:[%s7746_s24 + $0xd8] sm:$0xff] }
 0xd95   : > { %v6772_v34 = vpop.f32.mrb[18].mxu0 }
 0xd96   : > { %v3315_v35 = vadd.f32 %v6772_v34, %v6103_v32  ;;  %v3309_v36 = vpop.f32.mrb[19].mxu0 }
 0xd97   : > { %v3310_v37 = vadd.f32 %v6103_v32, %v3309_v36  ;;  %v3885_v32 = vld [vmem:[%s7746_s24 + $0x80] sm:$0xff]  ;;  %v3887_v36 = vld [vmem:[%s7746_s24 + $0x90] sm:$0xff] }
 0xd98   : > { %6795 = vmatpush3.xpose.msk.msra.mxu1 %vm1397_vm2, %v3315_v35  ;;  %v6907_v34 = vpack.c.bf16 %v3885_v32, %v3869_v31  ;;  %v3871_v35 = vld [vmem:[%s7746_s24 + $0x10] sm:$0xff]  ;;  %v3893_v32 = vld [vmem:[%s7746_s24 + $0xc0] sm:$0xff] }
 0xd99   : > { %6785 = vmatpush3.xpose.msk.msra.mxu0 %vm1397_vm2, %v3310_v37  ;;  %6906 = vmatprep.subr.bf16.mxu1 %v6905_v29  ;;  %v6915_v37 = vpack.c.bf16 %v3887_v36, %v3871_v35  ;;  %v6945_v36 = vpack.c.bf16 %v3896_v27, %v3880_v26  ;;  %v4722_v26 = vld [vmem:[%s7848_s23 + $0x198] sm:$0xff] }
 0xd9a   : > { %6789 = vmatprep.subr.mxu0 %v7325_v16 }
 0xd9b   : > { %6797 = vmatmul.mubr.msk.f32.vlgmr.msra.gmra.mrb[30].mxu1 %vm1397_vm2, %v3227_v38  ;;  %v3902_v38 = vld [vmem:[%s7746_s24 + $0x108] sm:$0xff] }
 0xd9c   : > { %6787 = vmatmul.mubr.msk.f32.vlgmr.msra.gmra.mrb[20].mxu0 %vm1397_vm2, %v3222_v39  ;;  %4087 = vmatprep.mubr.f32.mxu1 %v7325_v16  ;;  %v3918_v39 = vld [vmem:[%s7746_s24 + $0x188] sm:$0xff] }
 0xd9d   : > { %6790 = vmatpush3.msra.mxu0 %v3398_v40  ;;  %6791 = vmatprep.mubr.msk.f32.mxu0 %vm7326_vm1, %v7325_v16  ;;  %v3904_v40 = vld [vmem:[%s7746_s24 + $0x118] sm:$0xff] }
 0xd9e   : > { %6799 = vmatprep.subr.mxu0 %v7325_v16  ;;  %6908 = vmatpush1.bf16.msra.mxu1 %v6907_v34  ;;  %v3895_v34 = vld [vmem:[%s7746_s24 + $0xd0] sm:$0xff] }
 0xe6e   : > { %v3639_v41 = vpop.f32.mrb[30].mxu1 }
 0xe6f   : > { %v3643_v42 = vmul.f32 0.35355338, %v3639_v41  ;;  %v3478_v43 = vpop.f32.mrb[20].mxu0  ;;  %v6798_v44 = vpop.f32.mrb[31].mxu1  ;;  %v6909_v41 = vpack.c.bf16 %v3918_v39, %v3902_v38  ;;  %v3926_v38 = vld [vmem:[%s7746_s24 + $0x1c8] sm:$0xff]  ;;  %v3912_v39 = vld [vmem:[%s7746_s24 + $0x158] sm:$0xff] }
 0xe70   : > { %v3482_v45 = vmul.f32 0.35355338, %v3478_v43  ;;  %v6788_v46 = vpop.f32.mrb[21].mxu0  ;;  %v3901_v43 = vld [vmem:[%s7746_s24 + $0x100] sm:$0xff] }
 0xe71   : > { %v3644_v47 = vsel %vm1397_vm2, %v3643_v42, -inf  ;;  %v3917_v44 = vld [vmem:[%s7746_s24 + $0x180] sm:$0xff]  ;;  %6910 = vmatprep.subr.bf16.mxu1 %v6909_v41 }
 0xe72   : > { %3645 = vmax.xlane.f32.xlu1 %v3644_v47  ;;  %v3483_v48 = vsel %vm1397_vm2, %v3482_v45, -inf  ;;  %v6911_v46 = vpack.c.bf16 %v3917_v44, %v3901_v43  ;;  %v3903_v47 = vld [vmem:[%s7746_s24 + $0x110] sm:$0xff]  ;;  %v3909_v43 = vld [vmem:[%s7746_s24 + $0x140] sm:$0xff] }
 0xe73   : > { %3484 = vmax.xlane.f32.xlu0 %v3483_v48  ;;  %v3919_v48 = vld [vmem:[%s7746_s24 + $0x190] sm:$0xff]  ;;  %v3925_v44 = vld [vmem:[%s7746_s24 + $0x1c0] sm:$0xff] }
 0xe74   : > { %6912 = vmatpush1.bf16.msra.mxu1 %v6911_v46  ;;  %v3927_v46 = vld [vmem:[%s7746_s24 + $0x1d0] sm:$0xff] }
 0xeff   : > { %v3646_v49 = vpop.xlane.xlu1 %3645 }
 0xf00   : > { %v3647_v51 = vsub.f32 %v3643_v42, %v3646_v49  ;;  %v3485_v52 = vpop.xlane.xlu0 %3484  ;;  %v3920_v42 = vld [vmem:[%s7746_s24 + $0x198] sm:$0xff]  ;;  %v6919_v49 = vpack.c.bf16 %v3919_v48, %v3903_v47 }
 0xf01   : > { %v3486_v53 = vsub.f32 %v3482_v45, %v3485_v52  ;;  %v6917_v45 = vpack.c.bf16 %v3920_v42, %v3904_v40  ;;  %v3890_v52 = vld [vmem:[%s7746_s24 + $0xa8] sm:$0xff]  ;;  %v3928_v40 = vld [vmem:[%s7746_s24 + $0x1d8] sm:$0xff] }
 0xf02   : > { %v3648_v54 = vmul.f32 1.442695, %v3647_v51  ;;  %v3874_v51 = vld [vmem:[%s7746_s24 + $0x28] sm:$0xff]  ;;  %v6949_v48 = vpack.c.bf16 %v3928_v40, %v3912_v39 }
 0xf03   : > { %v3487_v55 = vmul.f32 1.442695, %v3486_v53  ;;  %v3876_v53 = vld [vmem:[%s7746_s24 + $0x38] sm:$0xff]  ;;  %v4724_v39 = vld [vmem:[%s7848_s23 + $0x1a8] sm:$0xff] }
 0xf04   : > { %7281 = vpow2.f32 %v3648_v54  ;;  %v6921_v54 = vpack.c.bf16 %v3890_v52, %v3874_v51  ;;  %v3898_v51 = vld [vmem:[%s7746_s24 + $0xe8] sm:$0xff]  ;;  %v3884_v52 = vld [vmem:[%s7746_s24 + $0x78] sm:$0xff] }
 0xf05   : > { %7283 = vpow2.f32 %v3487_v55  ;;  %v3892_v55 = vld [vmem:[%s7746_s24 + $0xb8] sm:$0xff] }
 0xf06   : > { %6922 = vmatprep.subr.bf16.mxu1 %v6921_v54  ;;  %v6943_v54 = vpack.c.bf16 %v3925_v44, %v3909_v43  ;;  %v4676_v43 = vld [vmem:[%s7848_s23 + $0x28] sm:$0xff] }
 0xf0e   : > { %v7282_v56 = vpop.eup %7281 }
 0xf0f   : > { %v7284_v57 = vpop.eup %7283  ;;  %v3650_v58 = vsel %vm1397_vm2, %v7282_v56, 0.0 }
 0xf10   : > { %3651 = vadd.xlane.f32.xlu1 %v3650_v58  ;;  %v3489_v59 = vsel %vm1397_vm2, %v7284_v57, 0.0 }
 0xf11   : > { %3490 = vadd.xlane.f32.xlu0 %v3489_v59 }
 0xf9d   : > { %v3652_v60 = vpop.xlane.xlu1 %3651 }
 0xf9e   : > { %v3491_v61 = vpop.xlane.xlu0 %3490 }
 0xf9f   : > { %7285 = vrcp.f32 %v3491_v61 }
 0xfa0   : > { %7287 = vrcp.f32 %v3652_v60 }
 0xfa9   : > { %v7286_v62 = vpop.eup %7285 }
 0xfaa   : > { %v3493_v63 = vmul.f32 %v7286_v62, %v7284_v57  ;;  %v7288_v0 = vpop.eup %7287 }
 0xfab   : > { %v3654_v1 = vmul.f32 %v7288_v0, %v7282_v56  ;;  %v6929_v56 = vpack.c.bf16 %v3892_v55, %v3876_v53  ;;  %v3900_v53 = vld [vmem:[%s7746_s24 + $0xf8] sm:$0xff] }
 0xfac   : > { %6792 = vmatmul.mubr.msk.f32.vlgmr.msra.gmra.mrb[22].mxu0 %vm1397_vm2, %v3493_v63 }
 0xfad   : > { %6800 = vmatpush3.msra.mxu0 %v3403_v30  ;;  %6801 = vmatprep.mubr.msk.f32.mxu0 %vm7326_vm1, %v7325_v16  ;;  %v3888_v30 = vld [vmem:[%s7746_s24 + $0x98] sm:$0xff] }
 0xfae   : > { %6804 = vmatprep.subr.mxu0 %v6120_v2  ;;  %v6913_v33 = vpack.c.bf16 %v3888_v30, %v3872_v28  ;;  %v3877_v30 = vld [vmem:[%s7746_s24 + $0x40] sm:$0xff] }
 0xfaf   : > { %v6939_v41 = vpack.c.bf16 %v3893_v32, %v3877_v30  ;;  %v4674_v30 = vld [vmem:[%s7848_s23 + $0x18] sm:$0xff] }
 0xfb0   : > { %6802 = vmatmul.mubr.msk.f32.vlgmr.msra.gmra.mrb[24].mxu0 %vm1397_vm2, %v3654_v1  ;;  %v6124_v1 = vld [vmem:[%s1059_s27] ss:$0 sm:$0xff]  ;;  %s1112_s27 = scalar_lea.vmem %s8342_s17, %s8360_s0 }
 0xfb1   : > { %6805 = vmatpush3.msra.mxu0 %v6120_v2  ;;  %v3873_v2 = vld [vmem:[%s7746_s24 + $0x20] sm:$0xff] }
 0xfb2   : > { %6914 = vmatprep.subr.bf16.mxu0 %v6913_v33  ;;  %v3879_v33 = vld [vmem:[%s7746_s24 + $0x50] sm:$0xff] }
 0xfb3   : > { %v6947_v42 = vpack.c.bf16 %v3895_v34, %v3879_v33  ;;  %v4705_v34 = vld [vmem:[%s7848_s23 + $0x110] sm:$0xff] }
0x107f   : > { %v3563_v3 = vpop.f32.mrb[22].mxu0 }
0x1080   : > { %v6793_v4 = vpop.f32.mrb[23].mxu0  ;;  %6806 = vmatprep.mubr.msk.f32.mxu0 %vm1397_vm2, %v3563_v3 }
0x1083   : > { %v3724_v5 = vpop.f32.mrb[24].mxu0 }
0x1084   : > { %v6803_v6 = vpop.f32.mrb[25].mxu0  ;;  %6807 = vmatmul.mubr.msk.f32.vlgmr.msra.gmra.mrb[10].mxu0 %vm1397_vm2, %v3724_v5  ;;  %v3889_v5 = vld [vmem:[%s7746_s24 + $0xa0] sm:$0xff] }
0x1085   : > { %4164 = vmatprep.mubr.f32.mxu0 %v7325_v16  ;;  %6916 = vmatpush1.bf16.msra.mxu0 %v6915_v37  ;;  %v3875_v6 = vld [vmem:[%s7746_s24 + $0x30] sm:$0xff]  ;;  %v3910_v37 = vld [vmem:[%s7746_s24 + $0x148] sm:$0xff] }
0x1086   : > { %6918 = vmatprep.subr.bf16.mxu0 %v6917_v45  ;;  %v3911_v45 = vld [vmem:[%s7746_s24 + $0x150] sm:$0xff]  ;;  %v6941_v47 = vpack.c.bf16 %v3926_v38, %v3910_v37  ;;  %v4692_v37 = vld [vmem:[%s7848_s23 + $0xa8] sm:$0xff]  ;;  %v4723_v38 = vld [vmem:[%s7848_s23 + $0x1a0] sm:$0xff] }
0x1087   : > { %v6951_v55 = vpack.c.bf16 %v3927_v46, %v3911_v45  ;;  %v7009_v45 = vpack.c.bf16 %v4724_v39, %v4723_v38  ;;  %v4707_v46 = vld [vmem:[%s7848_s23 + $0x120] sm:$0xff]  ;;  %v4733_v38 = vld [vmem:[%s7848_s23 + $0x1f0] sm:$0xff] }
0x1089   : > { %6920 = vmatpush1.bf16.msra.mxu0 %v6919_v49  ;;  %v3882_v49 = vld [vmem:[%s7746_s24 + $0x68] sm:$0xff] }
0x108a   : > { %6930 = vmatprep.subr.bf16.mxu0 %v6929_v56  ;;  %v3881_v56 = vld [vmem:[%s7746_s24 + $0x60] sm:$0xff] }
0x1157   : > { %v6808_v8 = vpop.f32.mrb[10].mxu0 }
0x1158   : > { %v3821_v9 = vadd.f32 %v6808_v8, %v6123_v7  ;;  %v3802_v10 = vpop.f32.mrb[11].mxu0  ;;  %v6125_v8 = vld [vmem:[%s1065_s25] ss:$0 sm:$0xff]  ;;  %s1115_s25 = scalar_lea.vmem %s8343_s18, %s8360_s0 }
0x1159   : > { %v3820_v11 = vadd.f32 %v6123_v7, %v3802_v10  ;;  %v3891_v7 = vld [vmem:[%s7746_s24 + $0xb0] sm:$0xff] }
0x115a   : > { %v3823_v12 = vadd.f32 %v3821_v9, %v7483_v15  ;;  %v3906_v9 = vld [vmem:[%s7746_s24 + $0x128] sm:$0xff] }
0x115b   : > { %v3822_v13 = vadd.f32 %v3820_v11, %v7479_v14  ;;  %v3922_v11 = vld [vmem:[%s7746_s24 + $0x1a8] sm:$0xff] }
0x115c   : > { %v3829_v17 = vsel %vm1127_vm0, %v3823_v12, 0.0 }
0x115d   : > { %3830 = vadd.xlane.f32.xlu1 %v3829_v17  ;;  %v3826_v18 = vsel %vm1127_vm0, %v3822_v13, 0.0  ;;  %v6923_v17 = vpack.c.bf16 %v3889_v5, %v3873_v2  ;;  %v3929_v5 = vld [vmem:[%s7746_s24 + $0x1e0] sm:$0xff] }
0x115e   : > { %3827 = vadd.xlane.f32.xlu0 %v3826_v18  ;;  %v6931_v18 = vpack.c.bf16 %v3891_v7, %v3875_v6  ;;  %v3915_v6 = vld [vmem:[%s7746_s24 + $0x170] sm:$0xff] }
0x115f   : > { %v3931_v7 = vld [vmem:[%s7746_s24 + $0x1f0] sm:$0xff] }
0x11ea   : > { %v3831_v19 = vpop.xlane.xlu1 %3830 }
0x11eb   : > { %v3834_v50 = vmul.f32 0.03125, %v3831_v19  ;;  %v3828_v20 = vpop.xlane.xlu0 %3827  ;;  %v3905_v19 = vld [vmem:[%s7746_s24 + $0x120] sm:$0xff] }
0x11ec   : > { %v3833_v21 = vmul.f32 0.03125, %v3828_v20 }
0x11ed   : > { %v7732_v22 = vsub.f32 %v3823_v12, %v3834_v50  ;;  %v3908_v12 = vld [vmem:[%s7746_s24 + $0x138] sm:$0xff] }
0x11ee   : > { %v7734_v23 = vsub.f32 %v3822_v13, %v3833_v21  ;;  %v3924_v13 = vld [vmem:[%s7746_s24 + $0x1b8] sm:$0xff]  ;;  %v3921_v21 = vld [vmem:[%s7746_s24 + $0x1a0] sm:$0xff] }
0x11ef   : > { %v3838_v15 = vmul.f32 %v7732_v22, %v7732_v22  ;;  %v6927_v28 = vpack.c.bf16 %v3921_v21, %v3905_v19  ;;  %v4671_v19 = vld [vmem:[%s7848_s23] sm:$0xff] }
0x11f0   : > { %v3837_v14 = vmul.f32 %v7734_v23, %v7734_v23 }
0x11f1   : > { %v3842_v24 = vsel %vm1127_vm0, %v3838_v15, 0.0  ;;  %v6925_v15 = vpack.c.bf16 %v3922_v11, %v3906_v9  ;;  %v4688_v11 = vld [vmem:[%s7848_s23 + $0x88] sm:$0xff] }
0x11f2   : > { %3843 = vadd.xlane.f32.xlu1 %v3842_v24  ;;  %v3839_v25 = vsel %vm1127_vm0, %v3837_v14, 0.0  ;;  %v6933_v14 = vpack.c.bf16 %v3924_v13, %v3908_v12  ;;  %v3878_v24 = vld [vmem:[%s7746_s24 + $0x48] sm:$0xff]  ;;  %v4719_v12 = vld [vmem:[%s7848_s23 + $0x180] sm:$0xff] }
0x11f3   : > { %3840 = vadd.xlane.f32.xlu0 %v3839_v25  ;;  %v3894_v25 = vld [vmem:[%s7746_s24 + $0xc8] sm:$0xff] }
0x11f4   : > { %v6937_v35 = vpack.c.bf16 %v3894_v25, %v3878_v24  ;;  %v4720_v13 = vld [vmem:[%s7848_s23 + $0x188] sm:$0xff]  ;;  %v4690_v24 = vld [vmem:[%s7848_s23 + $0x98] sm:$0xff]  ;;  %v4721_v25 = vld [vmem:[%s7848_s23 + $0x190] sm:$0xff] }
0x11f5   : > { %v7005_v33 = vpack.c.bf16 %v4722_v26, %v4721_v25 }
0x127f   : > { %v3844_v57 = vpop.xlane.xlu1 %3843 }
0x1280   : > { %v3846_v58 = vmul.f32 0.03125, %v3844_v57  ;;  %v3841_v59 = vpop.xlane.xlu0 %3840  ;;  %v3897_v57 = vld [vmem:[%s7746_s24 + $0xe0] sm:$0xff] }
0x1281   : > { %v3845_v60 = vmul.f32 0.03125, %v3841_v59  ;;  %v3899_v59 = vld [vmem:[%s7746_s24 + $0xf0] sm:$0xff]  ;;  %v6955_v2 = vpack.c.bf16 %v3897_v57, %v3881_v56 }
0x1282   : > { %v3848_v61 = vadd.f32 1e-05, %v3846_v58  ;;  %v3883_v58 = vld [vmem:[%s7746_s24 + $0x70] sm:$0xff] }
0x1283   : > { %v3847_v62 = vadd.f32 1e-05, %v3845_v60  ;;  %v6953_v60 = vpack.c.bf16 %v3898_v51, %v3882_v49  ;;  %v4725_v49 = vld [vmem:[%s7848_s23 + $0x1b0] sm:$0xff]  ;;  %v4726_v51 = vld [vmem:[%s7848_s23 + $0x1b8] sm:$0xff] }
0x1284   : > { %7289 = vrsqrt.f32 %v3848_v61  ;;  %v6961_v61 = vpack.c.bf16 %v3900_v53, %v3884_v52  ;;  %v7013_v57 = vpack.c.bf16 %v4726_v51, %v4725_v49  ;;  %v4783_v49 = vld [vmem:[%s7848_s23 + $0x380] sm:$0xff] }
0x1285   : > { %7291 = vrsqrt.f32 %v3847_v62  ;;  %v3914_v62 = vld [vmem:[%s7746_s24 + $0x168] sm:$0xff] }
0x128e   : > { %v7290_v63 = vpop.eup %7289 }
0x128f   : > { %v7292_v0 = vpop.eup %7291  ;;  %v3852_v3 = vmul.f32 %v7290_v63, %v7732_v22  ;;  %v3907_v22 = vld [vmem:[%s7746_s24 + $0x130] sm:$0xff]  ;;  %v3930_v63 = vld [vmem:[%s7746_s24 + $0x1e8] sm:$0xff] }
0x1290   : > { %v3851_v4 = vmul.f32 %v7292_v0, %v7734_v23  ;;  %v3923_v23 = vld [vmem:[%s7746_s24 + $0x1b0] sm:$0xff]  ;;  %v3916_v0 = vld [vmem:[%s7746_s24 + $0x178] sm:$0xff] }
0x1291   : > { %v3860_v50 = vmul.f32 %v6124_v1, %v3852_v3  ;;  %v6935_v29 = vpack.c.bf16 %v3923_v23, %v3907_v22  ;;  %v6963_v3 = vpack.c.bf16 %v3899_v59, %v3883_v58  ;;  %v7001_v22 = vpack.c.bf16 %v4720_v13, %v4719_v12  ;;  %v4703_v23 = vld [vmem:[%s7848_s23 + $0x100] sm:$0xff]  ;;  %v4709_v58 = vld [vmem:[%s7848_s23 + $0x130] sm:$0xff]  ;;  %v4710_v59 = vld [vmem:[%s7848_s23 + $0x138] sm:$0xff] }
0x1292   : > { %v3859_v10 = vmul.f32 %v6124_v1, %v3851_v4  ;;  %v3932_v1 = vld [vmem:[%s7746_s24 + $0x1f8] sm:$0xff]  ;;  %v3913_v4 = vld [vmem:[%s7746_s24 + $0x160] sm:$0xff]  ;;  %s1109_s24 = scalar_lea.vmem %s8341_s16, %s8360_s0 }
0x1293   : > { %v7801_v31 = vadd.f32 %v6125_v8, %v3860_v50  ;;  %v6965_v9 = vpack.c.bf16 %v3932_v1, %v3916_v0  ;;  %v4672_v50 = vld [vmem:[%s7848_s23 + $0x8] sm:$0xff]  ;;  %v7015_v1 = vpack.c.bf16 %v4710_v59, %v4709_v58  ;;  %v7957_v58 = vld [vmem:[%s7952_s26] sm:$0xff] }
0x1294   : > { %v7787_v20 = vadd.f32 %v6125_v8, %v3859_v10  ;;  %v6957_v8 = vpack.c.bf16 %v3930_v63, %v3914_v62  ;;  %v4687_v10 = vld [vmem:[%s7848_s23 + $0x80] sm:$0xff]  ;;  %v6971_v27 = vpack.c.bf16 %v4672_v50, %v4671_v19  ;;  %v4728_v63 = vld [vmem:[%s7848_s23 + $0x1c8] sm:$0xff] }
0x1295   : > { %v6969_v21 = vpack.c.bf16 %v4688_v11, %v4687_v10  ;;  %v4727_v62 = vld [vmem:[%s7848_s23 + $0x1c0] sm:$0xff]  ;;  %v4729_v10 = vld [vmem:[%s7848_s23 + $0x1d0] sm:$0xff]  ;;  %v4730_v11 = vld [vmem:[%s7848_s23 + $0x1d8] sm:$0xff] }
0x1296   : > { %6126 = vmatmul.mubr.msk.f32.vlgmr.msra.gmra.mrb[32].mxu1 %vm1127_vm0, %v7787_v20  ;;  %6128 = vmatmul.mubr.msk.f32.vlgmr.msra.gmra.mrb[26].mxu0 %vm1127_vm0, %v7787_v20  ;;  %v7021_v50 = vpack.c.bf16 %v4730_v11, %v4729_v10 }
0x1297   : > { %6924 = vmatpush1.bf16.msra.mxu1 %v6923_v17  ;;  %6932 = vmatpush1.bf16.msra.mxu0 %v6931_v18  ;;  %v6959_v17 = vpack.c.bf16 %v3929_v5, %v3913_v4  ;;  %v6967_v18 = vpack.c.bf16 %v3931_v7, %v3915_v6  ;;  %v7017_v5 = vpack.c.bf16 %v4728_v63, %v4727_v62  ;;  %v4711_v6 = vld [vmem:[%s7848_s23 + $0x140] sm:$0xff]  ;;  %v4712_v7 = vld [vmem:[%s7848_s23 + $0x148] sm:$0xff] }
0x1298   : > { %4093 = vmatprep.mubr.f32.mxu1 %v7325_v16  ;;  %4170 = vmatprep.mubr.f32.mxu0 %v7325_v16  ;;  %v7019_v13 = vpack.c.bf16 %v4712_v7, %v4711_v6  ;;  %v4767_v6 = vld [vmem:[%s7848_s23 + $0x300] sm:$0xff]  ;;  %v4768_v7 = vld [vmem:[%s7848_s23 + $0x308] sm:$0xff] }
0x1299   : > { %6926 = vmatprep.subr.bf16.mxu1 %v6925_v15  ;;  %6934 = vmatprep.subr.bf16.mxu0 %v6933_v14  ;;  %v4704_v15 = vld [vmem:[%s7848_s23 + $0x108] sm:$0xff]  ;;  %v4689_v14 = vld [vmem:[%s7848_s23 + $0x90] sm:$0xff] }
0x129a   : > { %6127 = vmatmul.mubr.msk.f32.gmra.mrb[34].mxu1 %vm1127_vm0, %v7801_v31  ;;  %6129 = vmatmul.mubr.msk.f32.gmra.mrb[28].mxu0 %vm1127_vm0, %v7801_v31  ;;  %v6973_v32 = vpack.c.bf16 %v4690_v24, %v4689_v14  ;;  %v4731_v14 = vld [vmem:[%s7848_s23 + $0x1e0] sm:$0xff]  ;;  %v4732_v24 = vld [vmem:[%s7848_s23 + $0x1e8] sm:$0xff] }
0x129b   : > { %6928 = vmatpush1.bf16.msra.mxu1 %v6927_v28  ;;  %6936 = vmatpush1.bf16.msra.mxu0 %v6935_v29  ;;  %v7003_v28 = vpack.c.bf16 %v4704_v15, %v4703_v23  ;;  %v4673_v29 = vld [vmem:[%s7848_s23 + $0x10] sm:$0xff]  ;;  %v4699_v23 = vld [vmem:[%s7848_s23 + $0xe0] sm:$0xff]  ;;  %v4700_v15 = vld [vmem:[%s7848_s23 + $0xe8] sm:$0xff] }
0x129c   : > { %4241 = vmatprep.mubr.f32.mxu1 %v7325_v16  ;;  %4318 = vmatprep.mubr.f32.mxu0 %v7325_v16  ;;  %v6975_v40 = vpack.c.bf16 %v4674_v30, %v4673_v29  ;;  %v7025_v29 = vpack.c.bf16 %v4732_v24, %v4731_v14  ;;  %v4684_v30 = vld [vmem:[%s7848_s23 + $0x68] sm:$0xff]  ;;  %v4737_v14 = vld [vmem:[%s7848_s23 + $0x210] sm:$0xff] }
0x129d   : > { %6938 = vmatprep.subr.bf16.mxu1 %v6937_v35  ;;  %6946 = vmatprep.subr.bf16.mxu0 %v6945_v36  ;;  %v4706_v35 = vld [vmem:[%s7848_s23 + $0x118] sm:$0xff]  ;;  %v4691_v36 = vld [vmem:[%s7848_s23 + $0xa0] sm:$0xff] }
0x129e   : > { %6130 = vmatmul.mubr.msk.f32.vlgmr.msra.gmra.mrb[36].mxu1 %vm1127_vm0, %v7787_v20  ;;  %6132 = vmatmul.mubr.msk.f32.vlgmr.msra.gmra.mrb[30].mxu0 %vm1127_vm0, %v7787_v20  ;;  %v6977_v44 = vpack.c.bf16 %v4692_v37, %v4691_v36  ;;  %v4701_v36 = vld [vmem:[%s7848_s23 + $0xf0] sm:$0xff]  ;;  %v4702_v37 = vld [vmem:[%s7848_s23 + $0xf8] sm:$0xff] }
0x129f   : > { %6940 = vmatpush1.bf16.msra.mxu1 %v6939_v41  ;;  %6948 = vmatpush1.bf16.msra.mxu0 %v6947_v42  ;;  %v7007_v41 = vpack.c.bf16 %v4706_v35, %v4705_v34  ;;  %v4675_v42 = vld [vmem:[%s7848_s23 + $0x20] sm:$0xff]  ;;  %v6997_v39 = vpack.c.bf16 %v4702_v37, %v4701_v36 }
0x12a0   : > { %4247 = vmatprep.mubr.f32.mxu1 %v7325_v16  ;;  %4324 = vmatprep.mubr.f32.mxu0 %v7325_v16  ;;  %v6979_v52 = vpack.c.bf16 %v4676_v43, %v4675_v42  ;;  %v4686_v42 = vld [vmem:[%s7848_s23 + $0x78] sm:$0xff] }
0x12a1   : > { %6942 = vmatprep.subr.bf16.mxu1 %v6941_v47  ;;  %6950 = vmatprep.subr.bf16.mxu0 %v6949_v48  ;;  %v4708_v47 = vld [vmem:[%s7848_s23 + $0x128] sm:$0xff]  ;;  %v4693_v48 = vld [vmem:[%s7848_s23 + $0xb0] sm:$0xff] }
0x12a2   : > { %6131 = vmatmul.mubr.msk.f32.gmra.mrb[38].mxu1 %vm1127_vm0, %v7801_v31  ;;  %6133 = vmatmul.mubr.msk.f32.gmra.mrb[32].mxu0 %vm1127_vm0, %v7801_v31  ;;  %v7011_v53 = vpack.c.bf16 %v4708_v47, %v4707_v46  ;;  %v4718_v46 = vld [vmem:[%s7848_s23 + $0x178] sm:$0xff] }
0x12a3   : > { %6944 = vmatpush1.bf16.msra.mxu1 %v6943_v54  ;;  %6952 = vmatpush1.bf16.msra.mxu0 %v6951_v55  ;;  %v4677_v54 = vld [vmem:[%s7848_s23 + $0x30] sm:$0xff]  ;;  %v4678_v55 = vld [vmem:[%s7848_s23 + $0x38] sm:$0xff] }
0x12a4   : > { %4395 = vmatprep.mubr.f32.mxu1 %v7325_v16  ;;  %4472 = vmatprep.mubr.f32.mxu0 %v7325_v16  ;;  %v6983_v0 = vpack.c.bf16 %v4678_v55, %v4677_v54  ;;  %v3937_v54 = vlaneseq }
0x12a5   : > { %6954 = vmatprep.subr.bf16.mxu1 %v6953_v60  ;;  %6962 = vmatprep.subr.bf16.mxu0 %v6961_v61  ;;  %v4695_v60 = vld [vmem:[%s7848_s23 + $0xc0] sm:$0xff]  ;;  %v4696_v61 = vld [vmem:[%s7848_s23 + $0xc8] sm:$0xff] }
0x12a6   : > { %6134 = vmatmul.mubr.msk.f32.vlgmr.msra.gmra.mrb[40].mxu1 %vm1127_vm0, %v7787_v20  ;;  %6136 = vmatmul.mubr.msk.f32.vlgmr.msra.gmra.mrb[34].mxu0 %vm1127_vm0, %v7787_v20  ;;  %v6985_v4 = vpack.c.bf16 %v4696_v61, %v4695_v60  ;;  %v7946_v55 = vshrl.u32 %v3937_v54, 7 }
0x12a7   : > { %6956 = vmatpush1.bf16.msra.mxu1 %v6955_v2  ;;  %6964 = vmatpush1.bf16.msra.mxu0 %v6963_v3  ;;  %v4679_v2 = vld [vmem:[%s7848_s23 + $0x40] sm:$0xff]  ;;  %v4680_v3 = vld [vmem:[%s7848_s23 + $0x48] sm:$0xff] }
0x12a8   : > { %4401 = vmatprep.mubr.f32.mxu1 %v7325_v16  ;;  %4478 = vmatprep.mubr.f32.mxu0 %v7325_v16  ;;  %v6987_v12 = vpack.c.bf16 %v4680_v3, %v4679_v2  ;;  %v3943_v59 = vsub.s32 1, %v7946_v55  ;;  %v3951_v60 = vsub.s32 3, %v7946_v55  ;;  %v4736_v2 = vld [vmem:[%s7848_s23 + $0x208] sm:$0xff]  ;;  %v3959_v3 = vsub.s32 5, %v7946_v55 }
0x12a9   : > { %6958 = vmatprep.subr.bf16.mxu1 %v6957_v8  ;;  %6966 = vmatprep.subr.bf16.mxu0 %v6965_v9  ;;  %v4697_v8 = vld [vmem:[%s7848_s23 + $0xd0] sm:$0xff]  ;;  %v4698_v9 = vld [vmem:[%s7848_s23 + $0xd8] sm:$0xff] }
0x12aa   : > { %6135 = vmatmul.mubr.msk.f32.gmra.mrb[42].mxu1 %vm1127_vm0, %v7801_v31  ;;  %6137 = vmatmul.mubr.msk.f32.gmra.mrb[36].mxu0 %vm1127_vm0, %v7801_v31  ;;  %v6989_v19 = vpack.c.bf16 %v4698_v9, %v4697_v8  ;;  %v3944_v63 = vrot.slane %v7957_v58, %v3943_v59  ;;  %v4753_v8 = vld [vmem:[%s7848_s23 + $0x290] sm:$0xff] }
0x12ab   : > { %6960 = vmatpush1.bf16.msra.mxu1 %v6959_v17  ;;  %6968 = vmatpush1.bf16.msra.mxu0 %v6967_v18  ;;  %v4681_v17 = vld [vmem:[%s7848_s23 + $0x50] sm:$0xff]  ;;  %v4682_v18 = vld [vmem:[%s7848_s23 + $0x58] sm:$0xff] }
0x12ac   : > { %4549 = vmatprep.mubr.f32.mxu1 %v7325_v16  ;;  %4626 = vmatprep.mubr.f32.mxu0 %v7325_v16  ;;  %v6991_v25 = vpack.c.bf16 %v4682_v18, %v4681_v17  ;;  %v4785_v17 = vld [vmem:[%s7848_s23 + $0x390] sm:$0xff]  ;;  %v4786_v18 = vld [vmem:[%s7848_s23 + $0x398] sm:$0xff] }
0x12ad   : > { %6970 = vmatprep.subr.bf16.mxu1 %v6969_v21  ;;  %7002 = vmatprep.subr.bf16.mxu0 %v7001_v22  ;;  %v4713_v21 = vld [vmem:[%s7848_s23 + $0x150] sm:$0xff]  ;;  %v4714_v22 = vld [vmem:[%s7848_s23 + $0x158] sm:$0xff] }
0x12ae   : > { %6138 = vmatmul.mubr.msk.f32.vlgmr.msra.gmra.mrb[44].mxu1 %vm1127_vm0, %v7787_v20  ;;  %6140 = vmatmul.mubr.msk.f32.vlgmr.msra.gmra.mrb[38].mxu0 %vm1127_vm0, %v7787_v20  ;;  %v7023_v26 = vpack.c.bf16 %v4714_v22, %v4713_v21  ;;  %v3967_v21 = vsub.s32 7, %v7946_v55 }
0x12af   : > { %4555 = vmatprep.mubr.f32.mxu1 %v7325_v16  ;;  %4632 = vmatprep.mubr.f32.mxu0 %v7325_v16  ;;  %v4694_v16 = vld [vmem:[%s7848_s23 + $0xb8] sm:$0xff] }
0x12b0   : > { %6972 = vmatpush3.bf16.msra.mxu1 %v6971_v27  ;;  %7004 = vmatpush3.bf16.msra.mxu0 %v7003_v28  ;;  %v6981_v56 = vpack.c.bf16 %v4694_v16, %v4693_v48  ;;  %v4683_v27 = vld [vmem:[%s7848_s23 + $0x60] sm:$0xff]  ;;  %v6993_v28 = vpack.c.bf16 %v4700_v15, %v4699_v23  ;;  %v4752_v16 = vld [vmem:[%s7848_s23 + $0x288] sm:$0xff]  ;;  %v7067_v23 = vpack.c.bf16 %v4768_v7, %v4767_v6  ;;  %v4757_v7 = vld [vmem:[%s7848_s23 + $0x2b0] sm:$0xff] }
0x12b1   : > { %6974 = vmatprep.subr.bf16.mxu1 %v6973_v32  ;;  %7006 = vmatprep.subr.bf16.mxu0 %v7005_v33  ;;  %v4715_v32 = vld [vmem:[%s7848_s23 + $0x160] sm:$0xff]  ;;  %v4716_v33 = vld [vmem:[%s7848_s23 + $0x168] sm:$0xff]  ;;  %v6995_v34 = vpack.c.bf16 %v4684_v30, %v4683_v27  ;;  %v7986_v15 = vrot.slane %v7957_v58, %v3959_v3  ;;  %v4738_v30 = vld [vmem:[%s7848_s23 + $0x218] sm:$0xff] }
0x12b2   : > { %6139 = vmatmul.mubr.msk.f32.gmra.mrb[46].mxu1 %vm1127_vm0, %v7801_v31  ;;  %6141 = vmatmul.mubr.msk.f32.gmra.mrb[40].mxu0 %vm1127_vm0, %v7801_v31  ;;  %v7027_v35 = vpack.c.bf16 %v4716_v33, %v4715_v32  ;;  %v4751_v48 = vld [vmem:[%s7848_s23 + $0x280] sm:$0xff]  ;;  %v4769_v32 = vld [vmem:[%s7848_s23 + $0x310] sm:$0xff]  ;;  %v8010_v6 = vld [vmem:[%s7952_s26 + $0x8] sm:$0xff] }
0x12b3   : > { %v7033_v51 = vpack.c.bf16 %v4752_v16, %v4751_v48  ;;  %v4740_v48 = vld [vmem:[%s7848_s23 + $0x228] sm:$0xff] }
0x12b4   : > { %6976 = vmatpush3.bf16.msra.mxu1 %v6975_v40  ;;  %7008 = vmatpush3.bf16.msra.mxu0 %v7007_v41  ;;  %v4734_v40 = vld [vmem:[%s7848_s23 + $0x1f8] sm:$0xff]  ;;  %v4685_v41 = vld [vmem:[%s7848_s23 + $0x70] sm:$0xff] }
0x12b5   : > { %6978 = vmatprep.subr.bf16.mxu1 %v6977_v44  ;;  %7010 = vmatprep.subr.bf16.mxu0 %v7009_v45  ;;  %v7029_v43 = vpack.c.bf16 %v4734_v40, %v4733_v38  ;;  %v6999_v44 = vpack.c.bf16 %v4686_v42, %v4685_v41  ;;  %v4717_v45 = vld [vmem:[%s7848_s23 + $0x170] sm:$0xff]  ;;  %v4755_v40 = vld [vmem:[%s7848_s23 + $0x2a0] sm:$0xff] }
0x12b6   : > { %v7031_v47 = vpack.c.bf16 %v4718_v46, %v4717_v45  ;;  %v4787_v45 = vld [vmem:[%s7848_s23 + $0x3a0] sm:$0xff]  ;;  %v4788_v46 = vld [vmem:[%s7848_s23 + $0x3a8] sm:$0xff] }
0x12b8   : > { %6980 = vmatpush3.bf16.msra.mxu1 %v6979_v52  ;;  %7012 = vmatpush3.bf16.msra.mxu0 %v7011_v53  ;;  %v4784_v52 = vld [vmem:[%s7848_s23 + $0x388] sm:$0xff] }
0x12b9   : > { %6982 = vmatprep.subr.bf16.mxu1 %v6981_v56  ;;  %7014 = vmatprep.subr.bf16.mxu0 %v7013_v57  ;;  %v7065_v53 = vpack.c.bf16 %v4784_v52, %v4783_v49  ;;  %v3939_v56 = vsub.s32 0, %v7946_v55  ;;  %v3947_v57 = vsub.s32 2, %v7946_v55 }
0x12bb   : > { %v3940_v61 = vrot.slane %v7957_v58, %v3939_v56  ;;  %v3948_v62 = vrot.slane %v7957_v58, %v3947_v57 }
0x12bc   : > { %6984 = vmatpush3.bf16.msra.mxu1 %v6983_v0  ;;  %7016 = vmatpush3.bf16.msra.mxu0 %v7015_v1  ;;  %v3952_v0 = vrot.slane %v7957_v58, %v3951_v60  ;;  %v4735_v1 = vld [vmem:[%s7848_s23 + $0x200] sm:$0xff] }
0x12bd   : > { %6986 = vmatprep.subr.bf16.mxu1 %v6985_v4  ;;  %7018 = vmatprep.subr.bf16.mxu0 %v7017_v5  ;;  %v7035_v22 = vpack.c.bf16 %v4736_v2, %v4735_v1 }
0x12c0   : > { %6988 = vmatpush3.bf16.msra.mxu1 %v6987_v12  ;;  %7020 = vmatpush3.bf16.msra.mxu0 %v7019_v13  ;;  %v4754_v13 = vld [vmem:[%s7848_s23 + $0x298] sm:$0xff] }
0x12c1   : > { %6990 = vmatprep.subr.bf16.mxu1 %v6989_v19  ;;  %7022 = vmatprep.subr.bf16.mxu0 %v7021_v50 }
0x12c4   : > { %6992 = vmatpush3.bf16.msra.mxu1 %v6991_v25  ;;  %7024 = vmatpush3.bf16.msra.mxu0 %v7023_v26 }
0x12c5   : > { %6994 = vmatprep.subr.bf16.mxu1 %v6993_v28  ;;  %7026 = vmatprep.subr.bf16.mxu0 %v7025_v29  ;;  %v7037_v28 = vpack.c.bf16 %v4754_v13, %v4753_v8  ;;  %v7069_v29 = vpack.c.bf16 %v4786_v18, %v4785_v17 }
0x12c8   : > { %6996 = vmatpush3.bf16.msra.mxu1 %v6995_v34  ;;  %7028 = vmatpush3.bf16.msra.mxu0 %v7027_v35 }
0x12c9   : > { %6998 = vmatprep.subr.bf16.mxu1 %v6997_v39  ;;  %7030 = vmatprep.subr.bf16.mxu0 %v7029_v43  ;;  %v4770_v39 = vld [vmem:[%s7848_s23 + $0x318] sm:$0xff]  ;;  %v7996_v43 = vrot.slane %v7957_v58, %v3967_v21 }
0x12ca   : > { %v7071_v54 = vpack.c.bf16 %v4770_v39, %v4769_v32  ;;  %v4759_v32 = vld [vmem:[%s7848_s23 + $0x2c0] sm:$0xff] }
0x12cb   : > { %v4743_v39 = vld [vmem:[%s7848_s23 + $0x240] sm:$0xff] }
0x12cc   : > { %7000 = vmatpush3.bf16.msra.mxu1 %v6999_v44  ;;  %7032 = vmatpush3.bf16.msra.mxu0 %v7031_v47  ;;  %v4756_v44 = vld [vmem:[%s7848_s23 + $0x2a8] sm:$0xff]  ;;  %v4739_v47 = vld [vmem:[%s7848_s23 + $0x220] sm:$0xff] }
0x12cd   : > { %7034 = vmatprep.subr.bf16.mxu1 %v7033_v51  ;;  %7066 = vmatprep.subr.bf16.mxu0 %v7065_v53  ;;  %v7039_v53 = vpack.c.bf16 %v4738_v30, %v4737_v14  ;;  %v4742_v14 = vld [vmem:[%s7848_s23 + $0x238] sm:$0xff] }
0x12ce   : > { %v4774_v30 = vld [vmem:[%s7848_s23 + $0x338] sm:$0xff] }
0x1369   : > { %v4089_v4 = vpop.f32.mrb[32].mxu1  ;;  %v4166_v5 = vpop.f32.mrb[26].mxu0 }
0x136a   : > { %v4090_v9 = vadd.f32 %v4089_v4, %v3940_v61  ;;  %v4167_v10 = vadd.f32 %v4166_v5, %v3948_v62  ;;  %v4091_v11 = vpop.f32.mrb[33].mxu1  ;;  %v4168_v12 = vpop.f32.mrb[27].mxu0  ;;  %v7041_v4 = vpack.c.bf16 %v4756_v44, %v4755_v40  ;;  %v7073_v5 = vpack.c.bf16 %v4788_v46, %v4787_v45  ;;  %v4744_v40 = vld [vmem:[%s7848_s23 + $0x248] sm:$0xff] }
0x136b   : > { %v4092_v19 = vadd.f32 %v4091_v11, %v3944_v63  ;;  %v4169_v50 = vadd.f32 %v4168_v12, %v3952_v0  ;;  %v4789_v11 = vld [vmem:[%s7848_s23 + $0x3b0] sm:$0xff]  ;;  %v4790_v12 = vld [vmem:[%s7848_s23 + $0x3b8] sm:$0xff] }
0x136c   : > { %v4639_v33 = vmax.f32 %v4090_v9, 0.0  ;;  %v4641_v34 = vmax.f32 %v4167_v10, 0.0  ;;  %v4758_v10 = vld [vmem:[%s7848_s23 + $0x2b8] sm:$0xff] }
0x136d   : > { %v4640_v24 = vmax.f32 %v4092_v19, 0.0  ;;  %v4642_v25 = vmax.f32 %v4169_v50, 0.0  ;;  %v4095_v26 = vpop.f32.mrb[34].mxu1  ;;  %v4172_v27 = vpop.f32.mrb[28].mxu0  ;;  %v7043_v50 = vpack.c.bf16 %v4740_v48, %v4739_v47  ;;  %v4775_v47 = vld [vmem:[%s7848_s23 + $0x340] sm:$0xff]  ;;  %v4776_v48 = vld [vmem:[%s7848_s23 + $0x348] sm:$0xff] }
0x136e   : > { %v4096_v35 = vadd.f32 %v4095_v26, %v3940_v61  ;;  %v4173_v36 = vadd.f32 %v4172_v27, %v3948_v62  ;;  %v4097_v37 = vpop.f32.mrb[35].mxu1  ;;  %v4174_v38 = vpop.f32.mrb[29].mxu0  ;;  %v4771_v61 = vld [vmem:[%s7848_s23 + $0x320] sm:$0xff]  ;;  %v4772_v62 = vld [vmem:[%s7848_s23 + $0x328] sm:$0xff]  ;;  %v3980_v26 = vrot.slane %v8010_v6, %v3947_v57  ;;  %v7045_v27 = vpack.c.bf16 %v4758_v10, %v4757_v7  ;;  %v4745_v7 = vld [vmem:[%s7848_s23 + $0x250] sm:$0xff] }
0x136f   : > { %v4098_v41 = vadd.f32 %v4097_v37, %v3944_v63  ;;  %v4175_v42 = vadd.f32 %v4174_v38, %v3952_v0  ;;  %4998 = vmatprep.mubr.f32.mxu1 %v4640_v24  ;;  %5073 = vmatprep.mubr.f32.mxu0 %v4642_v25 }
0x1370   : > { %4999 = vmatmul.mubr.f32.vlgmr.msra.gmra.mrb[48].mxu1 %v4639_v33  ;;  %5074 = vmatmul.mubr.f32.vlgmr.msra.gmra.mrb[42].mxu0 %v4641_v34  ;;  %v4655_v63 = vmax.f32 %v4096_v35, 0.0  ;;  %v4657_v0 = vmax.f32 %v4173_v36, 0.0  ;;  %v4760_v33 = vld [vmem:[%s7848_s23 + $0x2c8] sm:$0xff]  ;;  %v4791_v34 = vld [vmem:[%s7848_s23 + $0x3c0] sm:$0xff] }
0x1371   : > { %v4656_v16 = vmax.f32 %v4098_v41, 0.0  ;;  %v4658_v49 = vmax.f32 %v4175_v42, 0.0  ;;  %7036 = vmatpush3.bf16.msra.mxu1 %v7035_v22  ;;  %7068 = vmatpush3.bf16.msra.mxu0 %v7067_v23  ;;  %v8003_v51 = vpop.f32.mrb[36].mxu1  ;;  %v8005_v52 = vpop.f32.mrb[30].mxu0  ;;  %v7075_v22 = vpack.c.bf16 %v4772_v62, %v4771_v61  ;;  %v4741_v23 = vld [vmem:[%s7848_s23 + $0x230] sm:$0xff]  ;;  %v4792_v35 = vld [vmem:[%s7848_s23 + $0x3c8] sm:$0xff]  ;;  %v7049_v45 = vpack.c.bf16 %v4760_v33, %v4759_v32 }
0x1372   : > { %v4245_v1 = vpop.f32.mrb[37].mxu1  ;;  %v4322_v2 = vpop.f32.mrb[31].mxu0  ;;  %7038 = vmatprep.subr.bf16.mxu1 %v7037_v28  ;;  %7070 = vmatprep.subr.bf16.mxu0 %v7069_v29  ;;  %v7077_v28 = vpack.c.bf16 %v4790_v12, %v4789_v11  ;;  %v4773_v29 = vld [vmem:[%s7848_s23 + $0x330] sm:$0xff]  ;;  %v7047_v37 = vpack.c.bf16 %v4742_v14, %v4741_v23  ;;  %v7081_v46 = vpack.c.bf16 %v4792_v35, %v4791_v34  ;;  %v4794_v62 = vld [vmem:[%s7848_s23 + $0x3d8] sm:$0xff]  ;;  %v4764_v23 = vld [vmem:[%s7848_s23 + $0x2e8] sm:$0xff] }
0x1373   : > { %v4246_v8 = vadd.f32 %v4245_v1, %v7986_v15  ;;  %v4323_v9 = vadd.f32 %v4322_v2, %v7996_v43  ;;  %5003 = vmatprep.mubr.f32.mxu1 %v4656_v16  ;;  %5078 = vmatprep.mubr.f32.mxu0 %v4658_v49  ;;  %v7079_v38 = vpack.c.bf16 %v4774_v30, %v4773_v29  ;;  %v4761_v16 = vld [vmem:[%s7848_s23 + $0x2d0] sm:$0xff]  ;;  %v3955_v49 = vsub.s32 4, %v7946_v55  ;;  %v4747_v35 = vld [vmem:[%s7848_s23 + $0x260] sm:$0xff] }
0x1374   : > { %5004 = vmatmul.mubr.f32.gmra.mrb[50].mxu1 %v4655_v63  ;;  %5079 = vmatmul.mubr.f32.gmra.mrb[44].mxu0 %v4657_v0  ;;  %v4793_v61 = vld [vmem:[%s7848_s23 + $0x3d0] sm:$0xff]  ;;  %v7051_v63 = vpack.c.bf16 %v4744_v40, %v4743_v39  ;;  %v7083_v2 = vpack.c.bf16 %v4776_v48, %v4775_v47  ;;  %v3992_v14 = vrot.slane %v8010_v6, %v3959_v3  ;;  %v4748_v3 = vld [vmem:[%s7848_s23 + $0x268] sm:$0xff]  ;;  %v4766_v47 = vld [vmem:[%s7848_s23 + $0x2f8] sm:$0xff] }
0x1375   : > { %v4644_v13 = vmax.f32 %v4246_v8, 0.0  ;;  %v4646_v17 = vmax.f32 %v4323_v9, 0.0  ;;  %7040 = vmatpush3.bf16.msra.mxu1 %v7039_v53  ;;  %7072 = vmatpush3.bf16.msra.mxu0 %v7071_v54  ;;  %v8018_v18 = vpop.f32.mrb[38].mxu1  ;;  %v8020_v19 = vpop.f32.mrb[32].mxu0  ;;  %v3963_v53 = vsub.s32 6, %v7946_v55  ;;  %v4762_v54 = vld [vmem:[%s7848_s23 + $0x2d8] sm:$0xff] }
0x1376   : > { %v8024_v24 = vpop.f32.mrb[39].mxu1  ;;  %v8026_v25 = vpop.f32.mrb[33].mxu0  ;;  %7042 = vmatprep.subr.bf16.mxu1 %v7041_v4  ;;  %7074 = vmatprep.subr.bf16.mxu0 %v7073_v5  ;;  %v3988_v4 = vrot.slane %v8010_v6, %v3955_v49  ;;  %v4746_v8 = vld [vmem:[%s7848_s23 + $0x258] sm:$0xff]  ;;  %v4777_v9 = vld [vmem:[%s7848_s23 + $0x350] sm:$0xff] }
0x1377   : > { %5148 = vmatprep.mubr.f32.mxu1 %v4644_v13  ;;  %5223 = vmatprep.mubr.f32.mxu0 %v4646_v17  ;;  %v3996_v5 = vrot.slane %v8010_v6, %v3963_v53  ;;  %v7053_v13 = vpack.c.bf16 %v4762_v54, %v4761_v16  ;;  %v7085_v17 = vpack.c.bf16 %v4794_v62, %v4793_v61  ;;  %v4797_v54 = vld [vmem:[%s7848_s23 + $0x3f0] sm:$0xff]  ;;  %v4798_v61 = vld [vmem:[%s7848_s23 + $0x3f8] sm:$0xff] }
0x1378   : > { %v7055_v32 = vpack.c.bf16 %v4746_v8, %v4745_v7  ;;  %v3956_v62 = vrot.slane %v7957_v58, %v3955_v49  ;;  %v7059_v7 = vpack.c.bf16 %v4748_v3, %v4747_v35  ;;  %v4800_v35 = vld [vmem:[%s7848_s23 + $0x408] sm:$0xff] }
0x1379   : > { %7044 = vmatpush3.bf16.msra.mxu1 %v7043_v50  ;;  %7076 = vmatpush3.bf16.msra.mxu0 %v7075_v22  ;;  %v8037_v36 = vpop.f32.mrb[40].mxu1  ;;  %v4474_v57 = vpop.f32.mrb[34].mxu0  ;;  %v4778_v50 = vld [vmem:[%s7848_s23 + $0x358] sm:$0xff]  ;;  %v4763_v22 = vld [vmem:[%s7848_s23 + $0x2e0] sm:$0xff] }
0x137a   : > { %v8041_v41 = vadd.f32 %v4474_v57, %v3980_v26  ;;  %v8043_v42 = vpop.f32.mrb[41].mxu1  ;;  %v8045_v44 = vpop.f32.mrb[35].mxu0  ;;  %7046 = vmatprep.subr.bf16.mxu1 %v7045_v27  ;;  %7078 = vmatprep.subr.bf16.mxu0 %v7077_v28  ;;  %v4795_v27 = vld [vmem:[%s7848_s23 + $0x3e0] sm:$0xff]  ;;  %v4796_v28 = vld [vmem:[%s7848_s23 + $0x3e8] sm:$0xff]  ;;  %v7087_v33 = vpack.c.bf16 %v4778_v50, %v4777_v9  ;;  %v7057_v34 = vpack.c.bf16 %v4764_v23, %v4763_v22  ;;  %v4781_v50 = vld [vmem:[%s7848_s23 + $0x370] sm:$0xff] }
0x137b   : > { %v4779_v57 = vld [vmem:[%s7848_s23 + $0x360] sm:$0xff]  ;;  %v7089_v40 = vpack.c.bf16 %v4796_v28, %v4795_v27  ;;  %v7093_v23 = vpack.c.bf16 %v4798_v61, %v4797_v54  ;;  %v4782_v27 = vld [vmem:[%s7848_s23 + $0x378] sm:$0xff]  ;;  %v4252_v61 = vadd.f32 %v8024_v24, %v7986_v15 }
0x137c   : > { %v4815_v28 = vld [vmem:[%s7848_s23 + $0x480] sm:$0xff]  ;;  %v7095_v3 = vpack.c.bf16 %v4782_v27, %v4781_v50  ;;  %v4850_v54 = vld [vmem:[%s7848_s23 + $0x598] sm:$0xff] }
0x137d   : > { %7048 = vmatpush3.bf16.msra.mxu1 %v7047_v37  ;;  %7080 = vmatpush3.bf16.msra.mxu0 %v7079_v38  ;;  %v8055_v0 = vpop.f32.mrb[42].mxu1  ;;  %v4480_v1 = vpop.f32.mrb[36].mxu0 }
0x137e   : > { %v8062_v10 = vadd.f32 %v4480_v1, %v3980_v26  ;;  %v8064_v11 = vpop.f32.mrb[43].mxu1  ;;  %v8066_v12 = vpop.f32.mrb[37].mxu0  ;;  %7050 = vmatprep.subr.bf16.mxu1 %v7049_v45  ;;  %7082 = vmatprep.subr.bf16.mxu0 %v7081_v46  ;;  %v4000_v26 = vrot.slane %v8010_v6, %v3967_v21  ;;  %v4780_v45 = vld [vmem:[%s7848_s23 + $0x368] sm:$0xff]  ;;  %v4765_v46 = vld [vmem:[%s7848_s23 + $0x2f0] sm:$0xff] }
0x137f   : > { %v7091_v8 = vpack.c.bf16 %v4780_v45, %v4779_v57  ;;  %v7061_v9 = vpack.c.bf16 %v4766_v47, %v4765_v46  ;;  %v4818_v46 = vld [vmem:[%s7848_s23 + $0x498] sm:$0xff]  ;;  %v4849_v47 = vld [vmem:[%s7848_s23 + $0x590] sm:$0xff] }
0x1381   : > { %7052 = vmatpush3.bf16.msra.mxu1 %v7051_v63  ;;  %7084 = vmatpush3.bf16.msra.mxu0 %v7083_v2  ;;  %v4551_v29 = vpop.f32.mrb[44].mxu1  ;;  %v4628_v30 = vpop.f32.mrb[38].mxu0  ;;  %v3964_v63 = vrot.slane %v7957_v58, %v3963_v53 }
0x1382   : > { %v8082_v37 = vadd.f32 %v4551_v29, %v3988_v4  ;;  %v8084_v21 = vadd.f32 %v4628_v30, %v3996_v5  ;;  %v4553_v38 = vpop.f32.mrb[45].mxu1  ;;  %v4630_v39 = vpop.f32.mrb[39].mxu0  ;;  %7054 = vmatprep.subr.bf16.mxu1 %v7053_v13  ;;  %7086 = vmatprep.subr.bf16.mxu0 %v7085_v17  ;;  %v4749_v13 = vld [vmem:[%s7848_s23 + $0x270] sm:$0xff]  ;;  %v4750_v17 = vld [vmem:[%s7848_s23 + $0x278] sm:$0xff]  ;;  %v4816_v29 = vld [vmem:[%s7848_s23 + $0x488] sm:$0xff] }
0x1383   : > { %v8089_v48 = vadd.f32 %v4553_v38, %v3992_v14  ;;  %v8091_v16 = vadd.f32 %v4630_v39, %v4000_v26  ;;  %v7097_v57 = vpack.c.bf16 %v4816_v29, %v4815_v28  ;;  %v4831_v38 = vld [vmem:[%s7848_s23 + $0x500] sm:$0xff]  ;;  %v4832_v39 = vld [vmem:[%s7848_s23 + $0x508] sm:$0xff] }
0x1384   : > { %v7131_v15 = vpack.c.bf16 %v4832_v39, %v4831_v38  ;;  %v4803_v29 = vld [vmem:[%s7848_s23 + $0x420] sm:$0xff]  ;;  %v4821_v38 = vld [vmem:[%s7848_s23 + $0x4b0] sm:$0xff]  ;;  %v4822_v39 = vld [vmem:[%s7848_s23 + $0x4b8] sm:$0xff] }
0x1385   : > { %7056 = vmatpush3.bf16.msra.mxu1 %v7055_v32  ;;  %7088 = vmatpush3.bf16.msra.mxu0 %v7087_v33  ;;  %v4557_v1 = vpop.f32.mrb[46].mxu1  ;;  %v4634_v2 = vpop.f32.mrb[40].mxu0  ;;  %v4847_v33 = vld [vmem:[%s7848_s23 + $0x580] sm:$0xff] }
0x1386   : > { %v8100_v49 = vadd.f32 %v4557_v1, %v3988_v4  ;;  %v8102_v58 = vadd.f32 %v4634_v2, %v3996_v5  ;;  %v4559_v53 = vpop.f32.mrb[47].mxu1  ;;  %v4636_v22 = vpop.f32.mrb[41].mxu0  ;;  %7058 = vmatprep.subr.bf16.mxu1 %v7057_v34  ;;  %7090 = vmatprep.subr.bf16.mxu0 %v7089_v40  ;;  %v4848_v4 = vld [vmem:[%s7848_s23 + $0x588] sm:$0xff]  ;;  %v4799_v5 = vld [vmem:[%s7848_s23 + $0x400] sm:$0xff]  ;;  %v7063_v34 = vpack.c.bf16 %v4750_v17, %v4749_v13  ;;  %v4817_v40 = vld [vmem:[%s7848_s23 + $0x490] sm:$0xff]  ;;  %v4660_v13 = vmax.f32 %v4252_v61, 0.0 }
0x1387   : > { %v8107_v30 = vadd.f32 %v4559_v53, %v3992_v14  ;;  %v8109_v32 = vadd.f32 %v4636_v22, %v4000_v26  ;;  %v4244_v14 = vadd.f32 %v8003_v51, %v3956_v62  ;;  %v4321_v26 = vadd.f32 %v8005_v52, %v3964_v63  ;;  %v4833_v22 = vld [vmem:[%s7848_s23 + $0x510] sm:$0xff] }
0x1388   : > { %v7129_v45 = vpack.c.bf16 %v4848_v4, %v4847_v33  ;;  %v4329_v1 = vadd.f32 %v8026_v25, %v7996_v43  ;;  %v8130_v51 = vrot.slane %v8010_v6, %v3943_v59  ;;  %v8135_v52 = vrot.slane %v8010_v6, %v3951_v60  ;;  %v4801_v60 = vld [vmem:[%s7848_s23 + $0x410] sm:$0xff]  ;;  %v4804_v33 = vld [vmem:[%s7848_s23 + $0x428] sm:$0xff] }
0x1389   : > { %7060 = vmatpush3.bf16.msra.mxu1 %v7059_v7  ;;  %7092 = vmatpush3.bf16.msra.mxu0 %v7091_v8  ;;  %v7099_v2 = vpack.c.bf16 %v4800_v35, %v4799_v5  ;;  %v7101_v24 = vpack.c.bf16 %v4818_v46, %v4817_v40  ;;  %v7133_v43 = vpack.c.bf16 %v4850_v54, %v4849_v47  ;;  %v4643_v25 = vmax.f32 %v4244_v14, 0.0  ;;  %v4853_v40 = vld [vmem:[%s7848_s23 + $0x5b0] sm:$0xff]  ;;  %v4854_v14 = vld [vmem:[%s7848_s23 + $0x5b8] sm:$0xff] }
0x138a   : > { %7062 = vmatprep.subr.bf16.mxu1 %v7061_v9  ;;  %7094 = vmatprep.subr.bf16.mxu0 %v7093_v23  ;;  %v4645_v7 = vmax.f32 %v4321_v26, 0.0  ;;  %v4250_v59 = vadd.f32 %v8018_v18, %v3956_v62  ;;  %v4327_v8 = vadd.f32 %v8020_v19, %v3964_v63  ;;  %v4802_v9 = vld [vmem:[%s7848_s23 + $0x418] sm:$0xff]  ;;  %v4662_v17 = vmax.f32 %v4329_v1, 0.0  ;;  %v4819_v18 = vld [vmem:[%s7848_s23 + $0x4a0] sm:$0xff]  ;;  %v4820_v19 = vld [vmem:[%s7848_s23 + $0x4a8] sm:$0xff] }
0x138b   : > { %v4400_v50 = vadd.f32 %v8043_v42, %v8130_v51  ;;  %v4477_v53 = vadd.f32 %v8045_v44, %v8135_v52  ;;  %v4834_v23 = vld [vmem:[%s7848_s23 + $0x518] sm:$0xff]  ;;  %v4851_v62 = vld [vmem:[%s7848_s23 + $0x5a0] sm:$0xff]  ;;  %v4852_v63 = vld [vmem:[%s7848_s23 + $0x5a8] sm:$0xff]  ;;  %v7103_v44 = vpack.c.bf16 %v4802_v9, %v4801_v60  ;;  %v7105_v35 = vpack.c.bf16 %v4820_v19, %v4819_v18 }
0x138c   : > { %v4659_v27 = vmax.f32 %v4250_v59, 0.0  ;;  %v4661_v42 = vmax.f32 %v4327_v8, 0.0  ;;  %v7135_v28 = vpack.c.bf16 %v4834_v23, %v4833_v22  ;;  %v7107_v26 = vpack.c.bf16 %v4804_v33, %v4803_v29  ;;  %v4805_v46 = vld [vmem:[%s7848_s23 + $0x430] sm:$0xff]  ;;  %v4806_v47 = vld [vmem:[%s7848_s23 + $0x438] sm:$0xff]  ;;  %v4807_v8 = vld [vmem:[%s7848_s23 + $0x440] sm:$0xff] }
0x138d   : > { %7064 = vmatpush3.bf16.msra.mxu1 %v7063_v34  ;;  %7096 = vmatpush3.bf16.msra.mxu0 %v7095_v3  ;;  %v4648_v4 = vmax.f32 %v4400_v50, 0.0  ;;  %v4650_v5 = vmax.f32 %v4477_v53, 0.0  ;;  %v7137_v34 = vpack.c.bf16 %v4852_v63, %v4851_v62  ;;  %v4835_v3 = vld [vmem:[%s7848_s23 + $0x520] sm:$0xff]  ;;  %v7109_v54 = vpack.c.bf16 %v4822_v39, %v4821_v38  ;;  %v4837_v1 = vld [vmem:[%s7848_s23 + $0x530] sm:$0xff]  ;;  %v4808_v60 = vld [vmem:[%s7848_s23 + $0x448] sm:$0xff] }
0x138e   : > { %7098 = vmatprep.subr.bf16.mxu1 %v7097_v57  ;;  %7130 = vmatprep.subr.bf16.mxu0 %v7129_v45  ;;  %v4836_v57 = vld [vmem:[%s7848_s23 + $0x528] sm:$0xff]  ;;  %v7141_v61 = vpack.c.bf16 %v4854_v14, %v4853_v40  ;;  %v4825_v53 = vld [vmem:[%s7848_s23 + $0x4d0] sm:$0xff]  ;;  %v4826_v22 = vld [vmem:[%s7848_s23 + $0x4d8] sm:$0xff]  ;;  %v7115_v19 = vpack.c.bf16 %v4808_v60, %v4807_v8 }
0x138f   : > { %v7139_v45 = vpack.c.bf16 %v4836_v57, %v4835_v3  ;;  %v4840_v50 = vld [vmem:[%s7848_s23 + $0x548] sm:$0xff]  ;;  %v4857_v23 = vld [vmem:[%s7848_s23 + $0x5d0] sm:$0xff]  ;;  %v4858_v18 = vld [vmem:[%s7848_s23 + $0x5d8] sm:$0xff] }
0x1390   : > { %5149 = vmatmul.mubr.f32.vlgmr.msra.gmra.mrb[52].mxu1 %v4643_v25  ;;  %5224 = vmatmul.mubr.f32.vlgmr.msra.gmra.mrb[46].mxu0 %v4645_v7  ;;  %v4856_v25 = vld [vmem:[%s7848_s23 + $0x5c8] sm:$0xff]  ;;  %v7111_v7 = vpack.c.bf16 %v4806_v47, %v4805_v46  ;;  %v4809_v63 = vld [vmem:[%s7848_s23 + $0x450] sm:$0xff]  ;;  %v4842_v29 = vld [vmem:[%s7848_s23 + $0x558] sm:$0xff] }
0x1391   : > { %5153 = vmatprep.mubr.f32.mxu1 %v4660_v13  ;;  %5228 = vmatprep.mubr.f32.mxu0 %v4662_v17  ;;  %v4839_v17 = vld [vmem:[%s7848_s23 + $0x540] sm:$0xff]  ;;  %v4812_v38 = vld [vmem:[%s7848_s23 + $0x468] sm:$0xff]  ;;  %v4830_v46 = vld [vmem:[%s7848_s23 + $0x4f8] sm:$0xff] }
0x1392   : > { %7100 = vmatpush3.bf16.msra.mxu1 %v7099_v2  ;;  %7132 = vmatpush3.bf16.msra.mxu0 %v7131_v15  ;;  %v4838_v2 = vld [vmem:[%s7848_s23 + $0x538] sm:$0xff]  ;;  %v4823_v15 = vld [vmem:[%s7848_s23 + $0x4c0] sm:$0xff]  ;;  %v7147_v62 = vpack.c.bf16 %v4840_v50, %v4839_v17  ;;  %v4861_v47 = vld [vmem:[%s7848_s23 + $0x5f0] sm:$0xff] }
0x1393   : > { %7102 = vmatprep.subr.bf16.mxu1 %v7101_v24  ;;  %7134 = vmatprep.subr.bf16.mxu0 %v7133_v43  ;;  %v4824_v24 = vld [vmem:[%s7848_s23 + $0x4c8] sm:$0xff]  ;;  %v4855_v43 = vld [vmem:[%s7848_s23 + $0x5c0] sm:$0xff]  ;;  %v7143_v59 = vpack.c.bf16 %v4838_v2, %v4837_v1  ;;  %v4813_v2 = vld [vmem:[%s7848_s23 + $0x470] sm:$0xff] }
0x1394   : > { %5154 = vmatmul.mubr.f32.gmra.mrb[54].mxu1 %v4659_v27  ;;  %5229 = vmatmul.mubr.f32.gmra.mrb[48].mxu0 %v4661_v42  ;;  %v7113_v9 = vpack.c.bf16 %v4824_v24, %v4823_v15  ;;  %v7145_v13 = vpack.c.bf16 %v4856_v25, %v4855_v43  ;;  %v4810_v27 = vld [vmem:[%s7848_s23 + $0x458] sm:$0xff]  ;;  %v7117_v42 = vpack.c.bf16 %v4826_v22, %v4825_v53  ;;  %v4827_v33 = vld [vmem:[%s7848_s23 + $0x4e0] sm:$0xff]  ;;  %v4880_v60 = vld [vmem:[%s7848_s23 + $0x688] sm:$0xff] }
0x1395   : > { %5298 = vmatprep.mubr.f32.mxu1 %v4648_v4  ;;  %5373 = vmatprep.mubr.f32.mxu0 %v4650_v5  ;;  %v4828_v4 = vld [vmem:[%s7848_s23 + $0x4e8] sm:$0xff]  ;;  %v4859_v5 = vld [vmem:[%s7848_s23 + $0x5e0] sm:$0xff]  ;;  %v4814_v15 = vld [vmem:[%s7848_s23 + $0x478] sm:$0xff]  ;;  %v3972_v24 = vrot.slane %v8010_v6, %v3939_v56 }
0x1396   : > { %7104 = vmatpush3.bf16.msra.mxu1 %v7103_v44  ;;  %7136 = vmatpush3.bf16.msra.mxu0 %v7135_v28  ;;  %v7149_v44 = vpack.c.bf16 %v4858_v18, %v4857_v23  ;;  %v4841_v28 = vld [vmem:[%s7848_s23 + $0x550] sm:$0xff]  ;;  %v4811_v57 = vld [vmem:[%s7848_s23 + $0x460] sm:$0xff]  ;;  %v7121_v39 = vpack.c.bf16 %v4828_v4, %v4827_v33  ;;  %v7127_v55 = vpack.c.bf16 %v4814_v15, %v4813_v2  ;;  %v4864_v22 = vld [vmem:[%s7848_s23 + $0x608] sm:$0xff] }
0x1397   : > { %7106 = vmatprep.subr.bf16.mxu1 %v7105_v35  ;;  %7138 = vmatprep.subr.bf16.mxu0 %v7137_v34  ;;  %v4860_v35 = vld [vmem:[%s7848_s23 + $0x5e8] sm:$0xff]  ;;  %v7119_v34 = vpack.c.bf16 %v4810_v27, %v4809_v63  ;;  %v7151_v3 = vpack.c.bf16 %v4842_v29, %v4841_v28  ;;  %v4843_v14 = vld [vmem:[%s7848_s23 + $0x560] sm:$0xff]  ;;  %v4398_v6 = vadd.f32 %v8037_v36, %v3972_v24  ;;  %v4881_v63 = vld [vmem:[%s7848_s23 + $0x690] sm:$0xff] }
0x1398   : > { %v7153_v40 = vpack.c.bf16 %v4860_v35, %v4859_v5  ;;  %v4879_v8 = vld [vmem:[%s7848_s23 + $0x680] sm:$0xff]  ;;  %v4406_v23 = vadd.f32 %v8064_v11, %v8130_v51  ;;  %v4483_v18 = vadd.f32 %v8066_v12, %v8135_v52  ;;  %v4882_v27 = vld [vmem:[%s7848_s23 + $0x698] sm:$0xff]  ;;  %v4649_v11 = vmax.f32 %v8041_v41, 0.0  ;;  %v4865_v52 = vld [vmem:[%s7848_s23 + $0x610] sm:$0xff] }
0x1399   : > { %v7161_v17 = vpack.c.bf16 %v4880_v60, %v4879_v8  ;;  %v4863_v53 = vld [vmem:[%s7848_s23 + $0x600] sm:$0xff]  ;;  %v4914_v36 = vld [vmem:[%s7848_s23 + $0x798] sm:$0xff]  ;;  %v4647_v28 = vmax.f32 %v4398_v6, 0.0  ;;  %v4404_v12 = vadd.f32 %v8055_v0, %v3972_v24  ;;  %v7165_v5 = vpack.c.bf16 %v4882_v27, %v4881_v63  ;;  %v4884_v41 = vld [vmem:[%s7848_s23 + $0x6a8] sm:$0xff] }
0x139a   : > { %7108 = vmatpush3.bf16.msra.mxu1 %v7107_v26  ;;  %7140 = vmatpush3.bf16.msra.mxu0 %v7139_v45  ;;  %v4844_v26 = vld [vmem:[%s7848_s23 + $0x568] sm:$0xff]  ;;  %v4829_v45 = vld [vmem:[%s7848_s23 + $0x4f0] sm:$0xff]  ;;  %v4866_v29 = vld [vmem:[%s7848_s23 + $0x618] sm:$0xff]  ;;  %v4664_v33 = vmax.f32 %v4406_v23, 0.0  ;;  %v4666_v4 = vmax.f32 %v4483_v18, 0.0 }
0x139b   : > { %7110 = vmatprep.subr.bf16.mxu1 %v7109_v54  ;;  %7142 = vmatprep.subr.bf16.mxu0 %v7141_v61  ;;  %v4862_v54 = vld [vmem:[%s7848_s23 + $0x5f8] sm:$0xff]  ;;  %v7123_v61 = vpack.c.bf16 %v4812_v38, %v4811_v57  ;;  %v7155_v1 = vpack.c.bf16 %v4844_v26, %v4843_v14  ;;  %v7125_v43 = vpack.c.bf16 %v4830_v46, %v4829_v45  ;;  %v4883_v57 = vld [vmem:[%s7848_s23 + $0x6a0] sm:$0xff]  ;;  %v4916_v38 = vld [vmem:[%s7848_s23 + $0x7a8] sm:$0xff] }
0x139c   : > { %v7157_v25 = vpack.c.bf16 %v4862_v54, %v4861_v47  ;;  %v4915_v0 = vld [vmem:[%s7848_s23 + $0x7a0] sm:$0xff]  ;;  %v7167_v14 = vpack.c.bf16 %v4866_v29, %v4865_v52  ;;  %v4868_v46 = vld [vmem:[%s7848_s23 + $0x628] sm:$0xff]  ;;  %v4652_v47 = vmax.f32 %v8089_v48, 0.0  ;;  %v4654_v54 = vmax.f32 %v8091_v16, 0.0  ;;  %v4885_v15 = vld [vmem:[%s7848_s23 + $0x6b0] sm:$0xff] }
0x139d   : > { %v4867_v45 = vld [vmem:[%s7848_s23 + $0x620] sm:$0xff]  ;;  %v4900_v2 = vld [vmem:[%s7848_s23 + $0x728] sm:$0xff]  ;;  %v4886_v24 = vld [vmem:[%s7848_s23 + $0x6b8] sm:$0xff] }
0x139e   : > { %7112 = vmatpush3.bf16.msra.mxu1 %v7111_v7  ;;  %7144 = vmatpush3.bf16.msra.mxu0 %v7143_v59  ;;  %v4845_v7 = vld [vmem:[%s7848_s23 + $0x570] sm:$0xff]  ;;  %v4846_v59 = vld [vmem:[%s7848_s23 + $0x578] sm:$0xff]  ;;  %v7171_v48 = vpack.c.bf16 %v4868_v46, %v4867_v45  ;;  %v7173_v8 = vpack.c.bf16 %v4886_v24, %v4885_v15  ;;  %v4919_v6 = vld [vmem:[%s7848_s23 + $0x7c0] sm:$0xff] }
0x139f   : > { %7114 = vmatprep.subr.bf16.mxu1 %v7113_v9  ;;  %7146 = vmatprep.subr.bf16.mxu0 %v7145_v13  ;;  %v4911_v9 = vld [vmem:[%s7848_s23 + $0x780] sm:$0xff]  ;;  %v4912_v13 = vld [vmem:[%s7848_s23 + $0x788] sm:$0xff]  ;;  %v7159_v56 = vpack.c.bf16 %v4846_v59, %v4845_v7  ;;  %v4869_v7 = vld [vmem:[%s7848_s23 + $0x630] sm:$0xff] }
0x13a0   : > { %v7193_v50 = vpack.c.bf16 %v4912_v13, %v4911_v9  ;;  %v4870_v59 = vld [vmem:[%s7848_s23 + $0x638] sm:$0xff]  ;;  %v4901_v9 = vld [vmem:[%s7848_s23 + $0x730] sm:$0xff]  ;;  %v4872_v23 = vld [vmem:[%s7848_s23 + $0x648] sm:$0xff] }
0x13a1   : > { %v4902_v13 = vld [vmem:[%s7848_s23 + $0x738] sm:$0xff]  ;;  %v4904_v63 = vld [vmem:[%s7848_s23 + $0x748] sm:$0xff]  ;;  %v4889_v27 = vld [vmem:[%s7848_s23 + $0x6d0] sm:$0xff] }
0x13a2   : > { %7116 = vmatpush3.bf16.msra.mxu1 %v7115_v19  ;;  %7148 = vmatpush3.bf16.msra.mxu0 %v7147_v62  ;;  %v4895_v19 = vld [vmem:[%s7848_s23 + $0x700] sm:$0xff]  ;;  %v4896_v62 = vld [vmem:[%s7848_s23 + $0x708] sm:$0xff]  ;;  %v4893_v45 = vld [vmem:[%s7848_s23 + $0x6f0] sm:$0xff] }
0x13a3   : > { %7118 = vmatprep.subr.bf16.mxu1 %v7117_v42  ;;  %7150 = vmatprep.subr.bf16.mxu0 %v7149_v44  ;;  %v4913_v42 = vld [vmem:[%s7848_s23 + $0x790] sm:$0xff]  ;;  %v7163_v44 = vpack.c.bf16 %v4864_v22, %v4863_v53  ;;  %v7195_v51 = vpack.c.bf16 %v4896_v62, %v4895_v19  ;;  %v7207_v53 = vpack.c.bf16 %v4902_v13, %v4901_v9  ;;  %v4871_v22 = vld [vmem:[%s7848_s23 + $0x640] sm:$0xff]  ;;  %v4894_v46 = vld [vmem:[%s7848_s23 + $0x6f8] sm:$0xff]  ;;  %v4667_v9 = vmax.f32 %v8100_v49, 0.0 }
0x13a4   : > { %v7197_v35 = vpack.c.bf16 %v4914_v36, %v4913_v42  ;;  %v4903_v62 = vld [vmem:[%s7848_s23 + $0x740] sm:$0xff]  ;;  %v4890_v42 = vld [vmem:[%s7848_s23 + $0x6d8] sm:$0xff]  ;;  %v4921_v36 = vld [vmem:[%s7848_s23 + $0x7d0] sm:$0xff]  ;;  %v4669_v13 = vmax.f32 %v8102_v58, 0.0 }
0x13a5   : > { %v7181_v52 = vpack.c.bf16 %v4890_v42, %v4889_v27  ;;  %v4878_v24 = vld [vmem:[%s7848_s23 + $0x678] sm:$0xff] }
0x13a6   : > { %7120 = vmatpush3.bf16.msra.mxu1 %v7119_v34  ;;  %7152 = vmatpush3.bf16.msra.mxu0 %v7151_v3  ;;  %v4897_v34 = vld [vmem:[%s7848_s23 + $0x710] sm:$0xff]  ;;  %v4898_v3 = vld [vmem:[%s7848_s23 + $0x718] sm:$0xff] }
0x13a7   : > { %7122 = vmatprep.subr.bf16.mxu1 %v7121_v39  ;;  %7154 = vmatprep.subr.bf16.mxu0 %v7153_v40  ;;  %v4663_v39 = vmax.f32 %v4404_v12, 0.0  ;;  %v4665_v40 = vmax.f32 %v8062_v10, 0.0  ;;  %v7199_v26 = vpack.c.bf16 %v4898_v3, %v4897_v34  ;;  %v4899_v10 = vld [vmem:[%s7848_s23 + $0x720] sm:$0xff]  ;;  %v4873_v12 = vld [vmem:[%s7848_s23 + $0x650] sm:$0xff]  ;;  %v4924_v3 = vld [vmem:[%s7848_s23 + $0x7e8] sm:$0xff] }
0x13a8   : > { %v7203_v16 = vpack.c.bf16 %v4900_v2, %v4899_v10  ;;  %v4923_v34 = vld [vmem:[%s7848_s23 + $0x7e0] sm:$0xff]  ;;  %v4877_v10 = vld [vmem:[%s7848_s23 + $0x670] sm:$0xff]  ;;  %v7189_v2 = vpack.c.bf16 %v4894_v46, %v4893_v45 }
0x13aa   : > { %7124 = vmatpush3.bf16.msra.mxu1 %v7123_v61  ;;  %7156 = vmatpush3.bf16.msra.mxu0 %v7155_v1  ;;  %v7169_v61 = vpack.c.bf16 %v4884_v41, %v4883_v57  ;;  %v7201_v1 = vpack.c.bf16 %v4916_v38, %v4915_v0  ;;  %v4875_v0 = vld [vmem:[%s7848_s23 + $0x660] sm:$0xff]  ;;  %v4876_v38 = vld [vmem:[%s7848_s23 + $0x668] sm:$0xff] }
0x13ab   : > { %7126 = vmatprep.subr.bf16.mxu1 %v7125_v43  ;;  %7158 = vmatprep.subr.bf16.mxu0 %v7157_v25  ;;  %v4917_v43 = vld [vmem:[%s7848_s23 + $0x7b0] sm:$0xff]  ;;  %v4918_v25 = vld [vmem:[%s7848_s23 + $0x7b8] sm:$0xff] }
0x13ac   : > { %v7205_v60 = vpack.c.bf16 %v4918_v25, %v4917_v43  ;;  %v4909_v43 = vld [vmem:[%s7848_s23 + $0x770] sm:$0xff]  ;;  %v4910_v25 = vld [vmem:[%s7848_s23 + $0x778] sm:$0xff] }
0x13ae   : > { %7128 = vmatpush3.bf16.msra.mxu1 %v7127_v55  ;;  %7160 = vmatpush3.bf16.msra.mxu0 %v7159_v56  ;;  %v4887_v55 = vld [vmem:[%s7848_s23 + $0x6c0] sm:$0xff]  ;;  %v4888_v56 = vld [vmem:[%s7848_s23 + $0x6c8] sm:$0xff] }
0x13af   : > { %7162 = vmatprep.subr.bf16.mxu1 %v7161_v17  ;;  %7194 = vmatprep.subr.bf16.mxu0 %v7193_v50  ;;  %v4920_v17 = vld [vmem:[%s7848_s23 + $0x7c8] sm:$0xff]  ;;  %v7175_v50 = vpack.c.bf16 %v4870_v59, %v4869_v7  ;;  %v7177_v18 = vpack.c.bf16 %v4888_v56, %v4887_v55  ;;  %v4651_v7 = vmax.f32 %v8082_v37, 0.0  ;;  %v4653_v59 = vmax.f32 %v8084_v21, 0.0  ;;  %v6142_v55 = vld [vmem:[%s1097_s21] ss:$0 sm:$0xff] }
0x13b0   : > { %v7209_v19 = vpack.c.bf16 %v4920_v17, %v4919_v6 }
0x13b1   : > { %5299 = vmatmul.mubr.f32.vlgmr.msra.gmra.mrb[56].mxu1 %v4647_v28  ;;  %5374 = vmatmul.mubr.f32.vlgmr.msra.gmra.mrb[50].mxu0 %v4649_v11  ;;  %v7179_v28 = vpack.c.bf16 %v4872_v23, %v4871_v22  ;;  %v7211_v11 = vpack.c.bf16 %v4904_v63, %v4903_v62 }
0x13b2   : > { %5303 = vmatprep.mubr.f32.mxu1 %v4664_v33  ;;  %5378 = vmatprep.mubr.f32.mxu0 %v4666_v4  ;;  %v4905_v33 = vld [vmem:[%s7848_s23 + $0x750] sm:$0xff]  ;;  %v4906_v4 = vld [vmem:[%s7848_s23 + $0x758] sm:$0xff] }
0x13b3   : > { %7164 = vmatpush3.bf16.msra.mxu1 %v7163_v44  ;;  %7196 = vmatpush3.bf16.msra.mxu0 %v7195_v51  ;;  %v4922_v44 = vld [vmem:[%s7848_s23 + $0x7d8] sm:$0xff]  ;;  %v7215_v41 = vpack.c.bf16 %v4906_v4, %v4905_v33 }
0x13b4   : > { %7166 = vmatprep.subr.bf16.mxu1 %v7165_v5  ;;  %7198 = vmatprep.subr.bf16.mxu0 %v7197_v35  ;;  %v4874_v51 = vld [vmem:[%s7848_s23 + $0x658] sm:$0xff]  ;;  %v7213_v29 = vpack.c.bf16 %v4922_v44, %v4921_v36  ;;  %v4891_v5 = vld [vmem:[%s7848_s23 + $0x6e0] sm:$0xff]  ;;  %v4892_v35 = vld [vmem:[%s7848_s23 + $0x6e8] sm:$0xff] }
0x13b5   : > { %5304 = vmatmul.mubr.f32.gmra.mrb[58].mxu1 %v4663_v39  ;;  %5379 = vmatmul.mubr.f32.gmra.mrb[52].mxu0 %v4665_v40  ;;  %v7183_v57 = vpack.c.bf16 %v4874_v51, %v4873_v12  ;;  %v7185_v39 = vpack.c.bf16 %v4892_v35, %v4891_v5  ;;  %v7217_v40 = vpack.c.bf16 %v4924_v3, %v4923_v34 }
0x13b6   : > { %5448 = vmatprep.mubr.f32.mxu1 %v4652_v47  ;;  %5523 = vmatprep.mubr.f32.mxu0 %v4654_v54  ;;  %v4925_v47 = vld [vmem:[%s7848_s23 + $0x7f0] sm:$0xff]  ;;  %v4926_v54 = vld [vmem:[%s7848_s23 + $0x7f8] sm:$0xff] }
0x13b7   : > { %7168 = vmatpush3.bf16.msra.mxu1 %v7167_v14  ;;  %7200 = vmatpush3.bf16.msra.mxu0 %v7199_v26  ;;  %v4907_v14 = vld [vmem:[%s7848_s23 + $0x760] sm:$0xff]  ;;  %v4908_v26 = vld [vmem:[%s7848_s23 + $0x768] sm:$0xff]  ;;  %v7221_v15 = vpack.c.bf16 %v4926_v54, %v4925_v47 }
0x13b8   : > { %7170 = vmatprep.subr.bf16.mxu1 %v7169_v61  ;;  %7202 = vmatprep.subr.bf16.mxu0 %v7201_v1  ;;  %v7187_v61 = vpack.c.bf16 %v4876_v38, %v4875_v0  ;;  %v7219_v1 = vpack.c.bf16 %v4908_v26, %v4907_v14 }
0x13bb   : > { %7172 = vmatpush3.bf16.msra.mxu1 %v7171_v48  ;;  %7204 = vmatpush3.bf16.msra.mxu0 %v7203_v16  ;;  %v7191_v48 = vpack.c.bf16 %v4878_v24, %v4877_v10  ;;  %v7223_v16 = vpack.c.bf16 %v4910_v25, %v4909_v43 }
0x13bc   : > { %7174 = vmatprep.subr.bf16.mxu1 %v7173_v8  ;;  %7206 = vmatprep.subr.bf16.mxu0 %v7205_v60  ;;  %v4668_v8 = vmax.f32 %v8107_v30, 0.0  ;;  %v4670_v60 = vmax.f32 %v8109_v32, 0.0 }
0x13bf   : > { %7176 = vmatpush3.bf16.msra.mxu1 %v7175_v50  ;;  %7208 = vmatpush3.bf16.msra.mxu0 %v7207_v53 }
0x13c0   : > { %7178 = vmatprep.subr.bf16.mxu1 %v7177_v18  ;;  %7210 = vmatprep.subr.bf16.mxu0 %v7209_v19 }
0x13c3   : > { %7180 = vmatpush3.bf16.msra.mxu1 %v7179_v28  ;;  %7212 = vmatpush3.bf16.msra.mxu0 %v7211_v11 }
0x13c4   : > { %7182 = vmatprep.subr.bf16.mxu1 %v7181_v52  ;;  %7214 = vmatprep.subr.bf16.mxu0 %v7213_v29 }
0x13c7   : > { %7184 = vmatpush3.bf16.msra.mxu1 %v7183_v57  ;;  %7216 = vmatpush3.bf16.msra.mxu0 %v7215_v41 }
0x13c8   : > { %7186 = vmatprep.subr.bf16.mxu1 %v7185_v39  ;;  %7218 = vmatprep.subr.bf16.mxu0 %v7217_v40 }
0x13cb   : > { %7188 = vmatpush3.bf16.msra.mxu1 %v7187_v61  ;;  %7220 = vmatpush3.bf16.msra.mxu0 %v7219_v1 }
0x13cc   : > { %7190 = vmatprep.subr.bf16.mxu1 %v7189_v2  ;;  %7222 = vmatprep.subr.bf16.mxu0 %v7221_v15 }
0x13cf   : > { %7192 = vmatpush3.bf16.msra.mxu1 %v7191_v48  ;;  %7224 = vmatpush3.bf16.msra.mxu0 %v7223_v16 }
0x13d2   : > { %5449 = vmatmul.mubr.f32.vlgmr.msra.gmra.mrb[60].mxu1 %v4651_v7  ;;  %5524 = vmatmul.mubr.f32.vlgmr.msra.gmra.mrb[54].mxu0 %v4653_v59 }
0x13d3   : > { %5453 = vmatprep.mubr.f32.mxu1 %v4668_v8  ;;  %5528 = vmatprep.mubr.f32.mxu0 %v4670_v60 }
0x13d6   : > { %5454 = vmatmul.mubr.f32.gmra.mrb[62].mxu1 %v4667_v9  ;;  %5529 = vmatmul.mubr.f32.gmra.mrb[56].mxu0 %v4669_v13 }
0x1443   : > { %v6305_v37 = vpop.f32.mrb[48].mxu1  ;;  %v6343_v21 = vpop.f32.mrb[42].mxu0 }
0x1444   : > { %v6306_v30 = vpop.f32.mrb[49].mxu1  ;;  %v6344_v56 = vpop.f32.mrb[43].mxu0 }
0x1445   : > { %v6307_v32 = vadd.f32 %v6306_v30, %v6305_v37  ;;  %v6345_v6 = vadd.f32 %v6344_v56, %v6343_v21 }
0x1447   : > { %v5001_v17 = vadd.f32 %v6307_v32, %v6142_v55  ;;  %v6308_v50 = vpop.f32.mrb[50].mxu1  ;;  %v6346_v53 = vpop.f32.mrb[44].mxu0 }
0x1448   : > { %v6309_v22 = vpop.f32.mrb[51].mxu1  ;;  %v6347_v49 = vpop.f32.mrb[45].mxu0 }
0x1449   : > { %v5076_v23 = vadd.f32 %v6345_v6, %v5001_v17  ;;  %v6310_v58 = vadd.f32 %v6309_v22, %v6308_v50  ;;  %v6348_v18 = vadd.f32 %v6347_v49, %v6346_v53 }
0x144b   : > { %v5006_v19 = vadd.f32 %v6310_v58, %v6142_v55 }
0x144d   : > { %v5081_v62 = vadd.f32 %v6348_v18, %v5006_v19 }
0x1463   : > { %v6381_v63 = vpop.f32.mrb[52].mxu1  ;;  %v6419_v27 = vpop.f32.mrb[46].mxu0 }
0x1464   : > { %v6382_v42 = vpop.f32.mrb[53].mxu1  ;;  %v6420_v36 = vpop.f32.mrb[47].mxu0 }
0x1465   : > { %v6383_v44 = vadd.f32 %v6382_v42, %v6381_v63  ;;  %v6421_v28 = vadd.f32 %v6420_v36, %v6419_v27 }
0x1467   : > { %v5151_v11 = vadd.f32 %v6383_v44, %v5076_v23  ;;  %v6384_v12 = vpop.f32.mrb[54].mxu1  ;;  %v6422_v51 = vpop.f32.mrb[48].mxu0 }
0x1468   : > { %v6385_v52 = vpop.f32.mrb[55].mxu1  ;;  %v6423_v29 = vpop.f32.mrb[49].mxu0 }
0x1469   : > { %v5226_v33 = vadd.f32 %v6421_v28, %v5151_v11  ;;  %v6386_v4 = vadd.f32 %v6385_v52, %v6384_v12  ;;  %v6424_v5 = vadd.f32 %v6423_v29, %v6422_v51  ;;  %v6143_v28 = vld [vmem:[%s1103_s29] ss:$0 sm:$0xff] }
0x146a   : > { %v6144_v12 = vld [vmem:[%s1109_s24] ss:$0 sm:$0xff] }
0x146b   : > { %v5156_v35 = vadd.f32 %v6386_v4, %v5081_v62 }
0x146d   : > { %v5231_v34 = vadd.f32 %v6424_v5, %v5156_v35 }
0x1484   : > { %v6457_v3 = vpop.f32.mrb[56].mxu1  ;;  %v6495_v57 = vpop.f32.mrb[50].mxu0 }
0x1485   : > { %v6458_v41 = vpop.f32.mrb[57].mxu1  ;;  %v6496_v0 = vpop.f32.mrb[51].mxu0 }
0x1486   : > { %v6459_v38 = vadd.f32 %v6458_v41, %v6457_v3  ;;  %v6497_v39 = vadd.f32 %v6496_v0, %v6495_v57 }
0x1488   : > { %v5301_v40 = vadd.f32 %v6459_v38, %v5226_v33  ;;  %v6460_v14 = vpop.f32.mrb[58].mxu1  ;;  %v6498_v26 = vpop.f32.mrb[52].mxu0 }
0x1489   : > { %v6461_v45 = vpop.f32.mrb[59].mxu1  ;;  %v6499_v46 = vpop.f32.mrb[53].mxu0 }
0x148a   : > { %v5376_v47 = vadd.f32 %v6497_v39, %v5301_v40  ;;  %v6462_v54 = vadd.f32 %v6461_v45, %v6460_v14  ;;  %v6500_v61 = vadd.f32 %v6499_v46, %v6498_v26 }
0x148c   : > { %v5306_v1 = vadd.f32 %v6462_v54, %v5231_v34 }
0x148e   : > { %v5381_v10 = vadd.f32 %v6500_v61, %v5306_v1 }
0x14a5   : > { %v6533_v2 = vpop.f32.mrb[60].mxu1  ;;  %v6571_v15 = vpop.f32.mrb[54].mxu0 }
0x14a6   : > { %v6534_v24 = vpop.f32.mrb[61].mxu1  ;;  %v6572_v43 = vpop.f32.mrb[55].mxu0 }
0x14a7   : > { %v6535_v25 = vadd.f32 %v6534_v24, %v6533_v2  ;;  %v6573_v48 = vadd.f32 %v6572_v43, %v6571_v15  ;;  %v6145_v15 = vld [vmem:[%s1112_s27] ss:$0 sm:$0xff] }
0x14a8   : > { %v6146_v43 = vld [vmem:[%s1115_s25] ss:$0 sm:$0xff] }
0x14a9   : > { %v5451_v16 = vadd.f32 %v6535_v25, %v5376_v47  ;;  %v6536_v7 = vpop.f32.mrb[62].mxu1  ;;  %v6574_v59 = vpop.f32.mrb[56].mxu0 }
0x14aa   : > { %v6537_v8 = vpop.f32.mrb[63].mxu1  ;;  %v6575_v60 = vpop.f32.mrb[57].mxu0 }
0x14ab   : > { %v5526_v9 = vadd.f32 %v6573_v48, %v5451_v16  ;;  %v6538_v13 = vadd.f32 %v6537_v8, %v6536_v7  ;;  %v6576_v37 = vadd.f32 %v6575_v60, %v6574_v59 }
0x14ad   : > { %v5456_v21 = vadd.f32 %v6538_v13, %v5381_v10  ;;  %v5534_v55 = vadd.f32 %v5526_v9, %v7787_v20 }
0x14af   : > { %v5531_v30 = vadd.f32 %v6576_v37, %v5456_v21  ;;  %v5538_v56 = vsel %vm1127_vm0, %v5534_v55, 0.0 }
0x14b0   : > { %5539 = vadd.xlane.f32.xlu0 %v5538_v56 }
0x14b1   : > { %v5535_v32 = vadd.f32 %v5531_v30, %v7801_v31 }
0x14b3   : > { %v5541_v6 = vsel %vm1127_vm0, %v5535_v32, 0.0 }
0x14b4   : > { %5542 = vadd.xlane.f32.xlu1 %v5541_v6 }
0x153d   : > { %v5540_v17 = vpop.xlane.xlu0 %5539 }
0x153e   : > { %v5544_v50 = vmul.f32 0.03125, %v5540_v17 }
0x1540   : > { %v5546_v53 = vsub.f32 %v5534_v55, %v5544_v50 }
0x1541   : > { %v5543_v22 = vpop.xlane.xlu1 %5542 }
0x1542   : > { %v5545_v49 = vmul.f32 0.03125, %v5543_v22  ;;  %v5548_v23 = vmul.f32 %v5546_v53, %v5546_v53 }
0x1544   : > { %v5547_v58 = vsub.f32 %v5535_v32, %v5545_v49  ;;  %v5550_v20 = vsel %vm1127_vm0, %v5548_v23, 0.0 }
0x1545   : > { %5551 = vadd.xlane.f32.xlu0 %v5550_v20 }
0x1546   : > { %v5549_v18 = vmul.f32 %v5547_v58, %v5547_v58 }
0x1548   : > { %v5553_v19 = vsel %vm1127_vm0, %v5549_v18, 0.0 }
0x1549   : > { %5554 = vadd.xlane.f32.xlu1 %v5553_v19 }
0x15d2   : > { %v5552_v31 = vpop.xlane.xlu0 %5551 }
0x15d3   : > { %v5556_v62 = vmul.f32 0.03125, %v5552_v31 }
0x15d5   : > { %v5558_v63 = vadd.f32 1e-05, %v5556_v62 }
0x15d6   : > { %v5555_v27 = vpop.xlane.xlu1 %5554 }
0x15d7   : > { %7293 = vrsqrt.f32 %v5558_v63  ;;  %v5557_v42 = vmul.f32 0.03125, %v5555_v27 }
0x15d9   : > { %v5559_v36 = vadd.f32 1e-05, %v5557_v42 }
0x15db   : > { %7295 = vrsqrt.f32 %v5559_v36 }
0x15e1   : > { %v7294_v44 = vpop.eup %7293 }
0x15e2   : > { %v5562_v11 = vmul.f32 %v7294_v44, %v5546_v53 }
0x15e4   : > { %v5570_v51 = vmul.f32 %v6143_v28, %v5562_v11 }
0x15e5   : > { %v7296_v52 = vpop.eup %7295 }
0x15e6   : > { %v5578_v29 = vadd.f32 %v6144_v12, %v5570_v51  ;;  %v5563_v33 = vmul.f32 %v7296_v52, %v5547_v58 }
0x15e8   : > { %v5587_v4 = vsel %vm1127_vm0, %v5578_v29, 0.0  ;;  %5580 = vst.msk [vmem:[#allocation2] sm:$0xff] %vm1127_vm0, %v5578_v29  ;;  %v5571_v5 = vmul.f32 %v6143_v28, %v5563_v33 }
0x15e9   : > { %5588 = vadd.xlane.f32.xlu0 %v5587_v4 }
0x15ea   : > { %v5579_v35 = vadd.f32 %v6144_v12, %v5571_v5 }
0x15ec   : > { %v5590_v34 = vsel %vm1127_vm0, %v5579_v35, 0.0  ;;  %5581 = vst.msk [vmem:[#allocation2 + $0x8] sm:$0xff] %vm1127_vm0, %v5579_v35 }
0x15ed   : > { %5591 = vadd.xlane.f32.xlu1 %v5590_v34 }
0x1676   : > { %v5589_v3 = vpop.xlane.xlu0 %5588 }
0x1677   : > { %v5593_v57 = vmul.f32 0.03125, %v5589_v3 }
0x1679   : > { %v5595_v41 = vsub.f32 %v5578_v29, %v5593_v57 }
0x167a   : > { %v5592_v0 = vpop.xlane.xlu1 %5591 }
0x167b   : > { %v5594_v38 = vmul.f32 0.03125, %v5592_v0  ;;  %v5597_v39 = vmul.f32 %v5595_v41, %v5595_v41 }
0x167d   : > { %v5596_v40 = vsub.f32 %v5579_v35, %v5594_v38  ;;  %v5599_v14 = vsel %vm1127_vm0, %v5597_v39, 0.0 }
0x167e   : > { %5600 = vadd.xlane.f32.xlu0 %v5599_v14 }
0x167f   : > { %v5598_v26 = vmul.f32 %v5596_v40, %v5596_v40 }
0x1681   : > { %v5602_v45 = vsel %vm1127_vm0, %v5598_v26, 0.0 }
0x1682   : > { %5603 = vadd.xlane.f32.xlu1 %v5602_v45 }
0x170b   : > { %v5601_v46 = vpop.xlane.xlu0 %5600 }
0x170c   : > { %v5605_v47 = vmul.f32 0.03125, %v5601_v46 }
0x170e   : > { %v5607_v54 = vadd.f32 1e-05, %v5605_v47 }
0x170f   : > { %v5604_v61 = vpop.xlane.xlu1 %5603 }
0x1710   : > { %7297 = vrsqrt.f32 %v5607_v54  ;;  %v5606_v1 = vmul.f32 0.03125, %v5604_v61 }
0x1712   : > { %v5608_v10 = vadd.f32 1e-05, %v5606_v1 }
0x1714   : > { %7299 = vrsqrt.f32 %v5608_v10 }
0x171a   : > { %v7298_v2 = vpop.eup %7297 }
0x171b   : > { %v5611_v24 = vmul.f32 %v7298_v2, %v5595_v41 }
0x171d   : > { %v5619_v25 = vmul.f32 %v6145_v15, %v5611_v24 }
0x171e   : > { %v7300_v48 = vpop.eup %7299 }
0x171f   : > { %v5627_v16 = vadd.f32 %v6146_v43, %v5619_v25  ;;  %v5612_v7 = vmul.f32 %v7300_v48, %v5596_v40 }
0x1721   : > { %5629 = vst.msk [vmem:[%s1120_s2] sm:$0xff] %vm1127_vm0, %v5627_v16  ;;  %v5620_v59 = vmul.f32 %v6145_v15, %v5612_v7 }
0x1723   : > { %v5628_v8 = vadd.f32 %v6146_v43, %v5620_v59 }
0x1725   : > { %5630 = vst.msk [vmem:[%s1120_s2 + $0x8] sm:$0xff] %vm1127_vm0, %v5628_v8 }
0x1726 PF: > { %s29_s20 = sadd.s32 1, %s7323_s20   ;;  %s8354_s23 = sld [smem:[#allocation3_spill]] }
0x1727   : > { %p26_p5 = scmp.ge.s32.totalorder %s29_s20, 4   ;;  %s8355_s0 = smov %s7319_s30 }
0x1729   :  { %28 = sbr.rel (!%p26_p5) target bundleno = 5 (0x5), region = 209 }
0x172c   : > { %s8356_s30 = smov %s8354_s23 }

// kernel: nar_transformer_fwd.3
= control target key start
LH: loop header
LB: loop body
LE: loop exit
PB: predicated region body
PF: predicated region fallthrough
CT: control target
= control target key end

     0   :  { %s11913_s6 = smov 1   ;;  %s11914_s10 = smov 2   ;;  %s13310_s0 = inlined_call_operand.smem [shape: u32[33], index: -1, kind: input, shape index: {}] }
   0x1   :  { %s11955_s5 = sld [smem:[%s13310_s0]]   ;;  %s11915_s14 = smov 3  }
   0x2   :  { %s11960_s9 = sld [smem:[%s13310_s0 + %s11913_s6]]   ;;  %s11916_s18 = smov 4  }
   0x3   :  { %s11965_s13 = sld [smem:[%s13310_s0 + %s11914_s10]]   ;;  %s11917_s22 = smov 5  }
   0x4   :  { %s11970_s17 = sld [smem:[%s13310_s0 + %s11915_s14]]   ;;  %s11918_s26 = smov 6  }
   0x5   :  { %s11975_s21 = sld [smem:[%s13310_s0 + %s11916_s18]]   ;;  %s11919_s30 = smov 7  }
   0x6   :  { %s11980_s25 = sld [smem:[%s13310_s0 + %s11917_s22]]   ;;  %s11920_s4 = smov 8  }
   0x7   :  { %13337 = sst [smem:[#allocation3_spill]] %s11955_s5  ;;  %s11921_s10 = smov 9  }
   0x8   :  { %13338 = sst [smem:[#allocation4_spill]] %s11960_s9  ;;  %s11922_s15 = smov 10  }
   0x9   :  { %13339 = sst [smem:[#allocation5_spill]] %s11965_s13  ;;  %s11923_s20 = smov 11  }
   0xa   :  { %13340 = sst [smem:[#allocation6_spill]] %s11970_s17  ;;  %s11925_s1 = smov 13  }
   0xb   :  { %13341 = sst [smem:[#allocation7_spill]] %s11975_s21  ;;  %s11926_s7 = smov 14  }
   0xc   :  { %13342 = sst [smem:[#allocation8_spill]] %s11980_s25  ;;  %s11928_s22 = smov 16  }
   0xd   :  { %s11985_s29 = sld [smem:[%s13310_s0 + %s11918_s26]]   ;;  %s11924_s26 = smov 12  }
   0xe   :  { %s11990_s3 = sld [smem:[%s13310_s0 + %s11919_s30]]   ;;  %s11929_s28 = smov 17  }
   0xf   :  { %s11995_s8 = sld [smem:[%s13310_s0 + %s11920_s4]]   ;;  %s12121_s2 = smov 0  }
  0x10   :  { %s12000_s14 = sld [smem:[%s13310_s0 + %s11921_s10]]   ;;  %s12125_s10 = smov 0  }
  0x11   :  { %s12005_s19 = sld [smem:[%s13310_s0 + %s11922_s15]]   ;;  %s11927_s15 = smov 15  }
  0x12   :  { %s12010_s24 = sld [smem:[%s13310_s0 + %s11923_s20]]  }
  0x13   :  { %13343 = sst [smem:[#allocation9_spill]] %s11985_s29 }
  0x14   :  { %13344 = sst [smem:[#allocation10_spill]] %s11990_s3 }
  0x15   :  { %13345 = sst [smem:[#allocation11_spill]] %s11995_s8 }
  0x16   :  { %13346 = sst [smem:[#allocation12_spill]] %s12000_s14 }
  0x17   :  { %13347 = sst [smem:[#allocation13_spill]] %s12005_s19 }
  0x18   :  { %13348 = sst [smem:[#allocation14_spill]] %s12010_s24 }
  0x19   :  { %s12015_s30 = sld [smem:[%s13310_s0 + %s11924_s26]]  }
  0x1a   :  { %s12020_s6 = sld [smem:[%s13310_s0 + %s11925_s1]]   ;;  %s12119_s1 = smov 0  }
  0x1b   :  { %s12025_s12 = sld [smem:[%s13310_s0 + %s11926_s7]]   ;;  %s11930_s7 = smov 18  }
  0x1c   :  { %s12030_s20 = sld [smem:[%s13310_s0 + %s11927_s15]]   ;;  %s11931_s15 = smov 19  }
  0x1d   :  { %s12035_s27 = sld [smem:[%s13310_s0 + %s11928_s22]]   ;;  %s11932_s22 = smov 20  }
  0x1e   :  { %s12040_s4 = sld [smem:[%s13310_s0 + %s11929_s28]]   ;;  %s11933_s28 = smov 21  }
  0x1f   :  { %13349 = sst [smem:[#allocation15_spill]] %s12015_s30 }
  0x20   :  { %13350 = sst [smem:[#allocation16_spill]] %s12020_s6 }
  0x21   :  { %13351 = sst [smem:[#allocation17_spill]] %s12025_s12 }
  0x22   :  { %13352 = sst [smem:[#allocation18_spill]] %s12030_s20 }
  0x23   :  { %13353 = sst [smem:[#allocation19_spill]] %s12035_s27 }
  0x24   :  { %13354 = sst [smem:[#allocation20_spill]] %s12040_s4 }
  0x25   :  { %s12045_s12 = sld [smem:[%s13310_s0 + %s11930_s7]]   ;;  %s11934_s7 = smov 22  }
  0x26   :  { %s12050_s20 = sld [smem:[%s13310_s0 + %s11931_s15]]   ;;  %s11935_s15 = smov 23  }
  0x27   :  { %s12055_s27 = sld [smem:[%s13310_s0 + %s11932_s22]]   ;;  %s11936_s22 = smov 24  }
  0x28   :  { %s12060_s4 = sld [smem:[%s13310_s0 + %s11933_s28]]   ;;  %s11937_s28 = smov 25  }
  0x2b   :  { %13355 = sst [smem:[#allocation21_spill]] %s12045_s12 }
  0x2c   :  { %13356 = sst [smem:[#allocation22_spill]] %s12050_s20 }
  0x2d   :  { %13357 = sst [smem:[#allocation23_spill]] %s12055_s27 }
  0x2e   :  { %13358 = sst [smem:[#allocation24_spill]] %s12060_s4 }
  0x2f   :  { %s12065_s12 = sld [smem:[%s13310_s0 + %s11934_s7]]   ;;  %s11938_s7 = smov 26  }
  0x30   :  { %s12070_s20 = sld [smem:[%s13310_s0 + %s11935_s15]]   ;;  %s11939_s15 = smov 27  }
  0x31   :  { %s12075_s27 = sld [smem:[%s13310_s0 + %s11936_s22]]   ;;  %s11940_s22 = smov 28  }
  0x32   :  { %s12080_s4 = sld [smem:[%s13310_s0 + %s11937_s28]]   ;;  %s11941_s28 = smov 29  }
  0x35   :  { %13359 = sst [smem:[#allocation25_spill]] %s12065_s12 }
  0x36   :  { %13360 = sst [smem:[#allocation26_spill]] %s12070_s20 }
  0x37   :  { %13361 = sst [smem:[#allocation27_spill]] %s12075_s27 }
  0x38   :  { %13362 = sst [smem:[#allocation28_spill]] %s12080_s4 }
  0x39   :  { %s12085_s12 = sld [smem:[%s13310_s0 + %s11938_s7]]   ;;  %s11942_s7 = smov 30  }
  0x3a   :  { %s12090_s20 = sld [smem:[%s13310_s0 + %s11939_s15]]   ;;  %s11943_s15 = smov 31  }
  0x3b   :  { %s12095_s27 = sld [smem:[%s13310_s0 + %s11940_s22]]   ;;  %s11944_s22 = smov 32  }
  0x3c   :  { %s12100_s4 = sld [smem:[%s13310_s0 + %s11941_s28]]   ;;  %s12117_s28 = smov 0  }
  0x3f   :  { %13363 = sst [smem:[#allocation29_spill]] %s12085_s12 }
  0x40   :  { %13364 = sst [smem:[#allocation30_spill]] %s12090_s20 }
  0x41   :  { %13365 = sst [smem:[#allocation31_spill]] %s12095_s27 }
  0x42   :  { %13366 = sst [smem:[#allocation32_spill]] %s12100_s4 }
  0x43   :  { %s12105_s12 = sld [smem:[%s13310_s0 + %s11942_s7]]   ;;  %s12123_s7 = smov 0  }
  0x44   :  { %s12110_s20 = sld [smem:[%s13310_s0 + %s11943_s15]]  }
  0x45   :  { %s12115_s27 = sld [smem:[%s13310_s0 + %s11944_s22]]  }
  0x49   :  { %13367 = sst [smem:[#allocation33_spill]] %s12105_s12 }
  0x4a   :  { %13368 = sst [smem:[#allocation34_spill]] %s12110_s20 }
  0x4b   :  { %13369 = sst [smem:[#allocation35_spill]] %s12115_s27 }
  0x4c LB: > { %13370 = sst [smem:[#allocation36_spill]] %s11895_s28  ;;  %s84_s0 = sadd.s32 1, %s11903_s2  ;;  %s11911_s10 = sphi %s12125_s10, %s75_s10   ;;  %s11907_s7 = sphi %s12123_s7, %s13474_s7   ;;  %s11903_s2 = sphi %s12121_s2, %s13473_s2   ;;  %s11899_s1 = sphi %s12119_s1, %s13472_s1   ;;  %s11895_s28 = sphi %s12117_s28, %s13471_s28  }
  0x4d   : > { %13371 = sst [smem:[#allocation37_spill]] %s11903_s2  ;;  %s87_s11 = sadd.s32 1, %s11907_s7 }
  0x4e   : > { %13372 = sst [smem:[#allocation38_spill]] %s11907_s7  ;;  %p85_p0 = scmp.ge.s32.totalorder %s84_s0, 6 }
  0x4f   : > { %13373 = sst [smem:[#allocation39_spill]] %s11911_s10  ;;  %p9859_p1 = scmp.ge.s32.totalorder %s11911_s10, 1 }
  0x50   : > { %p1342_p2 = scmp.lt.s32.totalorder %s11911_s10, 13  ;;  %s13476_s0 = smov (%p85_p0, %s84_s0), 0 }
  0x51   : > { %13374 = sst [smem:[#allocation40_spill]] %s13476_s0  ;;  %s13478_s11 = smov (!%p85_p0, %s87_s11), %s11907_s7 }
  0x52   : > { %p1343_p3 = pnand %p9859_p1, %p1342_p2  ;;  %p89_p4 = scmp.ge.s32.totalorder %s13478_s11, 2 }
  0x54   : > { %s13480_s11 = smov (%p89_p4, %s13478_s11), 0  ;;  %1346 = sbr.rel (%p1343_p3) target bundleno = 10479 (0x28ef), region = 148 }
  0x55   : > { %13375 = sst [smem:[#allocation41_spill]] %s13480_s11 }
  0x5b   : > { %p1652_p5 = scmp.lt.s32.totalorder %s11899_s1, 1  ;;  %s13376_s5 = sld [smem:[#allocation3_spill]] }
  0x5c   : > { %s13377_s9 = sld [smem:[#allocation4_spill]]  ;;  %s13378_s13 = sld [smem:[#allocation5_spill]] }
  0x5d   : > { %s13379_s17 = sld [smem:[#allocation6_spill]]  ;;  %p1664_p6 = scmp.lt.s32.totalorder %s11895_s28, 5 }
  0x5e   : > { %s13380_s21 = sld [smem:[#allocation7_spill]]  ;;  %s13482_s1 = smov (!%p1652_p5, %s11899_s1), 1 }
  0x5f   : > { %13381 = sst [smem:[#allocation42_spill]] %s13482_s1  ;;  %s13382_s25 = sld [smem:[#allocation8_spill]] }
  0x60   : > { %s12153_s15 = scalar_select %p1664_p6, %s11895_s28, 5 }
  0x61   : > { %s13383_s29 = sld [smem:[#allocation9_spill]]  ;;  %s12156_s16 = sshll.u32 %s13482_s1, 4 }
  0x62   : > { %13384 = sst [smem:[#allocation43_spill]] %s12156_s16  ;;  %s13385_s3 = sld [smem:[#allocation10_spill]] }
  0x63   : > { %s11714_s18 = smul.u32 96, %s13482_s1  ;;  %s12161_s22 = scalar_lea.vmem %s13376_s5, %s12156_s16 }
  0x64   : > { %13386 = sst [smem:[#allocation44_spill]] %s12161_s22  ;;  %s13387_s8 = sld [smem:[#allocation11_spill]] }
  0x65   : > { %s12165_s23 = scalar_lea.vmem %s13377_s9, %s12156_s16  ;;  %s9864_s26 = sshll.u32 %s12153_s15, 4 }
  0x66   : > { %13388 = sst [smem:[#allocation45_spill]] %s12165_s23  ;;  %s9866_s11 = sshll.u32 %s12153_s15, 2 }
  0x67   : > { %s12169_s0 = sadd.s32 %s11714_s18, %s9864_s26  ;;  %s11715_s7 = smul.u32 24, %s13482_s1 }
  0x68   : > { %13391 = sst [smem:[#allocation46_spill]] %s12169_s0  ;;  %s13393_s30 = sld [smem:[#allocation15_spill]] }
  0x69   : > { %s9865_s2 = sshll.u32 %s12169_s0, 3  ;;  %s13394_s6 = sld [smem:[#allocation16_spill]] }
  0x6a   : > { %s11716_s10 = smul.u32 6, %s13482_s1  ;;  %s13395_s28 = sld [smem:[#allocation17_spill]] }
  0x6b   : > { %s12175_s5 = scalar_lea.vmem %s13378_s13, %s9865_s2  ;;  %s13397_s22 = sld [smem:[#allocation18_spill]] }
  0x6c   : > { %13396 = sst [smem:[#allocation47_spill]] %s12175_s5  ;;  %s1677_s9 = sadd.s32 %s11715_s7, %s9866_s11 }
  0x6d   : > { %s13398_s23 = sld [smem:[#allocation19_spill]]  ;;  %s12178_s27 = scalar_lea.vmem %s13379_s17, %s1677_s9 }
  0x6e   : > { %13399 = sst [smem:[#allocation48_spill]] %s12178_s27  ;;  %s13400_s16 = sld [smem:[#allocation20_spill]] }
  0x6f   : > { %s12181_s20 = scalar_lea.vmem %s13380_s21, %s9865_s2  ;;  %s13402_s18 = sld [smem:[#allocation21_spill]] }
  0x70   : > { %13401 = sst [smem:[#allocation49_spill]] %s12181_s20  ;;  %s12184_s26 = scalar_lea.vmem %s13382_s25, %s1677_s9 }
  0x71   : > { %13403 = sst [smem:[#allocation50_spill]] %s12184_s26  ;;  %s12187_s4 = scalar_lea.vmem %s13383_s29, %s9865_s2 }
  0x72   : > { %13405 = sst [smem:[#allocation51_spill]] %s12187_s4  ;;  %s12190_s1 = scalar_lea.vmem %s13385_s3, %s1677_s9 }
  0x73   : > { %13407 = sst [smem:[#allocation52_spill]] %s12190_s1  ;;  %s9874_s5 = sshll.u32 %s1677_s9, 3 }
  0x74   : > { %s12193_s7 = scalar_lea.vmem %s13387_s8, %s9874_s5  ;;  %s13410_s11 = sld [smem:[#allocation42_spill]] }
  0x75   : > { %13409 = sst [smem:[#allocation53_spill]] %s12193_s7  ;;  %s12196_s17 = sadd.s32 %s11716_s10, %s12153_s15 }
  0x76   : > { %s13411_s21 = sld [smem:[#allocation46_spill]]  ;;  %s13412_s25 = sld [smem:[#allocation26_spill]] }
  0x77   : > { %s12205_s4 = scalar_lea.vmem %s13393_s30, %s9865_s2  ;;  %s13414_s8 = sld [smem:[#allocation28_spill]] }
  0x78   : > { %13413 = sst [smem:[#allocation46_spill]] %s12205_s4  ;;  %s12208_s7 = scalar_lea.vmem %s13394_s6, %s1677_s9 }
  0x79   : > { %13415 = sst [smem:[#allocation54_spill]] %s12208_s7  ;;  %s12211_s10 = scalar_lea.vmem %s13395_s28, %s9865_s2 }
  0x7a   : > { %13416 = sst [smem:[#allocation55_spill]] %s12211_s10  ;;  %s12214_s27 = scalar_lea.vmem %s13397_s22, %s1677_s9 }
  0x7b   : > { %13417 = sst [smem:[#allocation56_spill]] %s12214_s27  ;;  %s13418_s26 = sld [smem:[#allocation25_spill]] }
  0x7c   : > { %s12217_s20 = scalar_lea.vmem %s13398_s23, %s9865_s2  ;;  %s12220_s14 = scalar_lea.vmem %s13400_s16, %s1677_s9 }
  0x7d   : > { %13419 = sst [smem:[#allocation57_spill]] %s12217_s20  ;;  %s13421_s29 = sld [smem:[#allocation27_spill]] }
  0x7e   : > { %13420 = sst [smem:[#allocation58_spill]] %s12220_s14  ;;  %s12223_s3 = scalar_lea.vmem %s13402_s18, %s9874_s5 }
  0x7f   : > { %13422 = sst [smem:[#allocation59_spill]] %s12223_s3  ;;  %s13423_s1 = sld [smem:[#allocation29_spill]] }
  0x80   : > { %s13424_s24 = sld [smem:[#allocation30_spill]]  ;;  %s13425_s6 = sld [smem:[#allocation31_spill]] }
  0x81   : > { %s13426_s22 = sld [smem:[#allocation32_spill]]  ;;  %s9886_s7 = sshll.u32 %s12153_s15, 6 }
  0x82   : > { %s11717_s2 = smul.u32 384, %s13410_s11  ;;  %s13427_s23 = sld [smem:[#allocation33_spill]] }
  0x83   : > { %s12235_s9 = scalar_lea.vmem %s13412_s25, %s13411_s21  ;;  %s13429_s5 = sld [smem:[#allocation34_spill]] }
  0x84   : > { %13428 = sst [smem:[#allocation60_spill]] %s12235_s9  ;;  %s9889_s16 = sshll.u32 %s12153_s15, 8 }
  0x85   : > { %s13430_s18 = sld [smem:[#allocation43_spill]]  ;;  %s11718_s12 = smul.u32 1536, %s13410_s11 }
  0x86   : > { %s13431_s3 = sld [smem:[#allocation35_spill]]  ;;  %s1830_s30 = sadd.s32 %s11717_s2, %s9886_s7 }
  0x87   : > { %s1856_s14 = scalar_lea.vmem %s13414_s8, %s12196_s17  ;;  %s9887_s0 = sshll.u32 %s1830_s30, 3 }
  0x88   : > { %s1847_s19 = sadd.s32 %s11718_s12, %s9889_s16  ;;  %s12242_s20 = scalar_lea.vmem %s13418_s26, %s9887_s0 }
  0x89   : > { %s9890_s13 = sshll.u32 %s1847_s19, 3  ;;  %s1863_s27 = scalar_lea.vmem %s13423_s1, %s12196_s17 }
  0x8a   : > { %s12245_s28 = scalar_lea.vmem %s13421_s29, %s9890_s13  ;;  %s1870_s4 = scalar_lea.vmem %s13424_s24, %s12196_s17 }
  0x8b   : > { %s1873_s10 = scalar_lea.vmem %s13425_s6, %s13410_s11  ;;  %s1876_s21 = scalar_lea.vmem %s13426_s22, %s13410_s11 }
  0x8c   : > { %s10163_s25 = sshll.u32 %s13410_s11, 5  ;;  %s1884_s15 = scalar_lea.vmem %s13429_s5, %s13410_s11 }
  0x8d   : > { %s12257_s9 = scalar_lea.vmem %s13427_s23, %s10163_s25  ;;  %s12263_s2 = scalar_lea.vmem %s13431_s3, %s13430_s18 }
  0x8e   : > { %s13432_s7 = sld [smem:[#allocation36_spill]] }
  0x94   : > { %p9895_p7 = scmp.ne.s32.totalorder %s13432_s7, 0 }
  0x95   : > { %s13433_s8 = sld [smem:[#allocation44_spill]] (!%p9895_p7)  ;;  %vm1896_vm0 = vcmask (!%p9895_p7), 261120  }
  0x96   : > { %1893 = sbr.rel (%p9895_p7) target bundleno = 157 (0x9d), region = 152 }
  0x9b   : > { %v1894_v0 = vld [vmem:[%s13433_s8] sm:$0xff] (!%p9895_p7)  ;;  %v1895_v1 = vld [vmem:[%s13433_s8 + $0x8] sm:$0xff] (!%p9895_p7) }
  0x9c   : > { %1897 = vst.msk [vmem:[#allocation2] sm:$0xff] (!%p9895_p7), %vm1896_vm0, %v1894_v0  ;;  %1898 = vst.msk [vmem:[#allocation2 + $0x8] sm:$0xff] (!%p9895_p7), %vm1896_vm0, %v1895_v1 }
  0x9d PF: > { %s13434_s29 = sld [smem:[#allocation49_spill]]  ;;  %s13435_s19 = sld [smem:[#allocation47_spill]]  ;;  %vm1914_vm1 = vcmask 261120   ;;  %v11945_v16 = vmov 0.0   ;;  %vm11946_vm2 = vmmov 0   ;;  %vm2168_vm3 = vcmask 64512  }
  0x9e   : > { %s13436_s3 = sld [smem:[#allocation50_spill]]  ;;  %s13437_s24 = sld [smem:[#allocation48_spill]] }
  0x9f   : > { %s13438_s30 = sld [smem:[#allocation51_spill]]  ;;  %s13439_s6 = sld [smem:[#allocation52_spill]] }
  0xa0   : > { %s13440_s1 = sld [smem:[#allocation53_spill]]  ;;  %s13441_s26 = sld [smem:[#allocation12_spill]] }
  0xa1   : > { %s13443_s22 = sld [smem:[#allocation55_spill]]  ;;  %s13444_s23 = sld [smem:[#allocation46_spill]] }
  0xa2   : > { %s13445_s5 = sld [smem:[#allocation45_spill]]  ;;  %s13447_s18 = sld [smem:[#allocation14_spill]] }
  0xa3   : > { %v1996_v2 = vld [vmem:[%s13434_s29] sm:$0xff]  ;;  %v1997_v3 = vld [vmem:[%s13434_s29 + $0x8] sm:$0xff]  ;;  %v1998_v7 = vld [vmem:[%s13434_s29 + $0x10] sm:$0xff]  ;;  %s13446_s16 = sld [smem:[#allocation13_spill]]  ;;  %s13448_s12 = sld [smem:[#allocation56_spill]] }
  0xa4   : > { %v1903_v4 = vld [vmem:[%s13435_s19] sm:$0xff]  ;;  %v11190_v5 = vpack.c.bf16 %v1997_v3, %v1996_v2  ;;  %v1904_v6 = vld [vmem:[%s13435_s19 + $0x8] sm:$0xff]  ;;  %v1999_v8 = vld [vmem:[%s13434_s29 + $0x18] sm:$0xff]  ;;  %s13451_s25 = sld [smem:[#allocation54_spill]]  ;;  %s13452_s7 = sld [smem:[#allocation57_spill]] }
  0xa5   : > { %v11182_v9 = vpack.c.bf16 %v1904_v6, %v1903_v4  ;;  %v11194_v10 = vpack.c.bf16 %v1999_v8, %v1998_v7  ;;  %v1905_v11 = vld [vmem:[%s13435_s19 + $0x10] sm:$0xff]  ;;  %v1906_v12 = vld [vmem:[%s13435_s19 + $0x18] sm:$0xff]  ;;  %v12276_v13 = vld [vmem:[#allocation2] sm:$0xff]  ;;  %s13453_s8 = sld [smem:[#allocation58_spill]] }
  0xa6   : > { %11191 = vmatprep.subr.bf16.mxu1 %v11190_v5  ;;  %v11186_v14 = vpack.c.bf16 %v1906_v12, %v1905_v11  ;;  %10726 = vmatprep.mubr.msk.f32.mxu1 %vm1914_vm1, %v12276_v13  ;;  %v12282_v15 = vld [vmem:[#allocation2 + $0x8] sm:$0xff]  ;;  %v9899_v17 = vld [vmem:[%s13436_s3] ss:$0 sm:$0xff]  ;;  %v2084_v29 = vld [vmem:[%s13438_s30 + $0x10] sm:$0xff]  ;;  %s13442_s11 = scalar_lea.vmem %s13441_s26, %s12196_s17 }
  0xa7   : > { %11193 = vmatpush3.bf16.msra.mxu1 %v11190_v5  ;;  %11183 = vmatprep.subr.bf16.mxu0 %v11182_v9  ;;  %v9896_v18 = vld [vmem:[%s13437_s24] ss:$0 sm:$0xff]  ;;  %v2083_v28 = vld [vmem:[%s13438_s30 + $0x8] sm:$0xff]  ;;  %v2085_v31 = vld [vmem:[%s13438_s30 + $0x18] sm:$0xff] }
  0xa8   : > { %11185 = vmatpush3.bf16.msra.mxu0 %v11182_v9  ;;  %11195 = vmatprep.subr.bf16.mxu1 %v11194_v10  ;;  %v2082_v27 = vld [vmem:[%s13438_s30] sm:$0xff]  ;;  %v11202_v32 = vpack.c.bf16 %v2085_v31, %v2084_v29  ;;  %v9920_v62 = vld [vmem:[%s13434_s29 + $0x28] sm:$0xff]  ;;  %v9913_v3 = vld [vmem:[%s13435_s19 + $0x30] sm:$0xff]  ;;  %s13450_s13 = scalar_lea.vmem %s13447_s18, %s12196_s17 }
  0xa9   : > { %11187 = vmatprep.subr.bf16.mxu0 %v11186_v14  ;;  %10715 = vmatprep.mubr.msk.f32.mxu0 %vm1914_vm1, %v12276_v13  ;;  %v11198_v30 = vpack.c.bf16 %v2083_v28, %v2082_v27  ;;  %v9902_v43 = vld [vmem:[%s13439_s6] ss:$0 sm:$0xff]  ;;  %v9912_v1 = vld [vmem:[%s13435_s19 + $0x28] sm:$0xff]  ;;  %v9914_v4 = vld [vmem:[%s13435_s19 + $0x38] sm:$0xff]  ;;  %s13449_s0 = scalar_lea.vmem %s13446_s16, %s12196_s17 }
  0xaa   : > { %v9919_v61 = vld [vmem:[%s13434_s29 + $0x20] sm:$0xff]  ;;  %v11210_v5 = vpack.c.bf16 %v9914_v4, %v9913_v3  ;;  %v9928_v7 = vld [vmem:[%s13438_s30 + $0x28] sm:$0xff]  ;;  %v9922_v11 = vld [vmem:[%s13434_s29 + $0x38] sm:$0xff] }
  0xab   : > { %11197 = vmatpush3.bf16.msra.mxu1 %v11194_v10  ;;  %v11214_v63 = vpack.c.bf16 %v9920_v62, %v9919_v61  ;;  %v9911_v0 = vld [vmem:[%s13435_s19 + $0x20] sm:$0xff]  ;;  %v9921_v10 = vld [vmem:[%s13434_s29 + $0x30] sm:$0xff] }
  0xac   : > { %11189 = vmatpush3.bf16.msra.mxu0 %v11186_v14  ;;  %10740 = vmatprep.subr.mxu1 %v11945_v16  ;;  %v11206_v2 = vpack.c.bf16 %v9912_v1, %v9911_v0  ;;  %v9927_v6 = vld [vmem:[%s13438_s30 + $0x20] sm:$0xff]  ;;  %v9948_v4 = vld [vmem:[%s13435_s19 + $0x50] sm:$0xff] }
  0xad   : > { %11199 = vmatprep.subr.bf16.mxu0 %v11198_v30  ;;  %v11222_v8 = vpack.c.bf16 %v9928_v7, %v9927_v6  ;;  %v2491_v0 = vld [vmem:[%s13440_s1] sm:$0xff] }
  0xae   : > { %10727 = vmatmul.mubr.msk.f32.vlgmr.msra.gmra.mrb[0].mxu1 %vm1914_vm1, %v12282_v15  ;;  %v9946_v1 = vld [vmem:[%s13435_s19 + $0x40] sm:$0xff] }
  0xaf   : > { %10716 = vmatmul.mubr.msk.f32.vlgmr.msra.gmra.mrb[0].mxu0 %vm1914_vm1, %v12282_v15  ;;  %10742 = vmatprep.mubr.msk.f32.mxu1 %vm11946_vm2, %v11945_v16 }
  0xb0   : > { %10737 = vmatprep.mubr.msk.f32.mxu0 %vm1914_vm1, %v12276_v13  ;;  %11201 = vmatpush3.bf16.msra.mxu0 %v11198_v30 }
  0xb1   : > { %11203 = vmatprep.subr.bf16.mxu0 %v11202_v32 }
  0xb4   : > { %11205 = vmatpush3.bf16.msra.mxu0 %v11202_v32 }
  0xb5   : > { %11207 = vmatprep.subr.bf16.mxu0 %v11206_v2 }
  0xb7   : > { %10738 = vmatmul.mubr.msk.f32.vlgmr.msra.gmra.mrb[2].mxu0 %vm1914_vm1, %v12282_v15 }
  0xb8   : > { %10768 = vmatprep.mubr.msk.f32.mxu0 %vm1914_vm1, %v12276_v13  ;;  %11209 = vmatpush3.bf16.msra.mxu0 %v11206_v2  ;;  %v9947_v2 = vld [vmem:[%s13435_s19 + $0x48] sm:$0xff] }
  0xb9   : > { %11211 = vmatprep.subr.bf16.mxu0 %v11210_v5  ;;  %v11230_v3 = vpack.c.bf16 %v9947_v2, %v9946_v1  ;;  %v9976_v1 = vld [vmem:[%s13440_s1 + $0x10] sm:$0xff]  ;;  %v9987_v2 = vld [vmem:[%s13434_s29 + $0x60] sm:$0xff] }
  0xbc   : > { %11213 = vmatpush3.bf16.msra.mxu0 %v11210_v5  ;;  %v9949_v5 = vld [vmem:[%s13435_s19 + $0x58] sm:$0xff] }
  0xbd   : > { %11223 = vmatprep.subr.bf16.mxu0 %v11222_v8  ;;  %v11234_v6 = vpack.c.bf16 %v9949_v5, %v9948_v4  ;;  %v9979_v5 = vld [vmem:[%s13435_s19 + $0x60] sm:$0xff] }
  0xbf   : > { %10769 = vmatmul.mubr.msk.f32.vlgmr.msra.gmra.mrb[4].mxu0 %vm1914_vm1, %v12282_v15 }
  0xc0   : > { %10790 = vmatprep.mubr.msk.f32.mxu0 %vm1914_vm1, %v12276_v13  ;;  %11225 = vmatpush3.bf16.msra.mxu0 %v11222_v8  ;;  %v9954_v8 = vld [vmem:[%s13434_s29 + $0x40] sm:$0xff] }
 0x181   : > { %v10728_v19 = vpop.f32.mrb[0].mxu1 }
 0x182   : > { %v2079_v20 = vadd.f32 %v10728_v19, %v9899_v17  ;;  %v2073_v21 = vpop.f32.mrb[1].mxu1  ;;  %v10717_v22 = vpop.f32.mrb[0].mxu0  ;;  %v9930_v19 = vld [vmem:[%s13438_s30 + $0x38] sm:$0xff] }
 0x183   : > { %v2074_v23 = vadd.f32 %v9899_v17, %v2073_v21  ;;  %v1993_v24 = vadd.f32 %v10717_v22, %v9896_v18  ;;  %v1987_v25 = vpop.f32.mrb[1].mxu0  ;;  %v11218_v17 = vpack.c.bf16 %v9922_v11, %v9921_v10 }
 0x184   : > { %v1988_v26 = vadd.f32 %v9896_v18, %v1987_v25  ;;  %v9929_v18 = vld [vmem:[%s13438_s30 + $0x30] sm:$0xff]  ;;  %v9924_v25 = vld [vmem:[%s13436_s3 + $0x1] ss:$0 sm:$0xff] }
 0x185   : > { %10741 = vmatpush3.xpose.msk.msra.mxu1 %vm2168_vm3, %v2074_v23 }
 0x186   : > { %10745 = vmatprep.subr.mxu1 %v11945_v16 }
 0x188   : > { %10743 = vmatmul.mubr.msk.f32.vlgmr.msra.gmra.mrb[2].mxu1 %vm2168_vm3, %v1988_v26  ;;  %v9916_v26 = vld [vmem:[%s13437_s24 + $0x1] ss:$0 sm:$0xff] }
 0x189   : > { %10747 = vmatprep.mubr.msk.f32.mxu1 %vm11946_vm2, %v11945_v16 }
 0x18a   : > { %v10739_v42 = vpop.f32.mrb[2].mxu0 }
 0x18b   : > { %v2159_v44 = vpop.f32.mrb[3].mxu0  ;;  %v2165_v45 = vadd.f32 %v10739_v42, %v9902_v43 }
 0x18c   : > { %v2160_v46 = vadd.f32 %v9902_v43, %v2159_v44 }
 0x18e   : > { %10746 = vmatpush3.msra.mxu1 %v2160_v46 }
 0x18f   : > { %10750 = vmatprep.subr.mxu1 %v11945_v16 }
 0x192   : > { %v10770_v21 = vpop.f32.mrb[4].mxu0 }
 0x193   : > { %v2571_v22 = vpop.f32.mrb[5].mxu0  ;;  %v2577_v31 = vadd.f32 %v10770_v21, %v9916_v26  ;;  %v9959_v21 = vld [vmem:[%s13436_s3 + $0x2] ss:$0 sm:$0xff] }
 0x194   : > { %v2572_v32 = vadd.f32 %v9916_v26, %v2571_v22 }
 0x25b   : > { %v2241_v33 = vpop.f32.mrb[2].mxu1 }
 0x25c   : > { %v2245_v34 = vmul.f32 0.35355338, %v2241_v33  ;;  %v10744_v35 = vpop.f32.mrb[3].mxu1  ;;  %v9932_v33 = vld [vmem:[%s13439_s6 + $0x1] ss:$0 sm:$0xff] }
 0x25e   : > { %v2246_v36 = vsel %vm2168_vm3, %v2245_v34, -inf }
 0x25f   : > { %2247 = vmax.xlane.f32.xlu0 %v2246_v36 }
 0x2ec   : > { %v2248_v37 = vpop.xlane.xlu0 %2247 }
 0x2ed   : > { %v2249_v38 = vsub.f32 %v2245_v34, %v2248_v37 }
 0x2ef   : > { %v2250_v39 = vmul.f32 1.442695, %v2249_v38 }
 0x2f1   : > { %11793 = vpow2.f32 %v2250_v39 }
 0x2fb   : > { %v11794_v40 = vpop.eup %11793 }
 0x2fc   : > { %v2252_v41 = vsel %vm2168_vm3, %v11794_v40, 0.0 }
 0x2fd   : > { %2253 = vadd.xlane.f32.xlu0 %v2252_v41 }
 0x38a   : > { %v2254_v47 = vpop.xlane.xlu0 %2253 }
 0x38b   : > { %11795 = vrcp.f32 %v2254_v47 }
 0x395   : > { %v11796_v48 = vpop.eup %11795 }
 0x396   : > { %v2256_v49 = vmul.f32 %v11796_v48, %v11794_v40 }
 0x398   : > { %10748 = vmatmul.mubr.msk.f32.vlgmr.msra.gmra.mrb[4].mxu1 %vm2168_vm3, %v2256_v49 }
 0x399   : > { %10751 = vmatpush3.xpose.msk.msra.mxu1 %vm2168_vm3, %v2079_v20  ;;  %10752 = vmatprep.mubr.msk.f32.mxu1 %vm11946_vm2, %v11945_v16  ;;  %v11226_v20 = vpack.c.bf16 %v9930_v19, %v9929_v18  ;;  %v9957_v18 = vld [vmem:[%s13434_s29 + $0x58] sm:$0xff] }
 0x39a   : > { %10755 = vmatprep.subr.mxu1 %v11945_v16 }
 0x39b   : > { %11227 = vmatprep.subr.bf16.mxu0 %v11226_v20 }
 0x39c   : > { %10753 = vmatmul.mubr.msk.f32.vlgmr.msra.gmra.mrb[6].mxu1 %vm2168_vm3, %v1993_v24  ;;  %11229 = vmatpush3.bf16.msra.mxu0 %v11226_v20 }
 0x39d   : > { %10756 = vmatpush3.msra.mxu1 %v2165_v45  ;;  %10757 = vmatprep.mubr.msk.f32.mxu1 %vm11946_vm2, %v11945_v16 }
 0x39e   : > { %11215 = vmatprep.subr.bf16.mxu1 %v11214_v63  ;;  %10803 = vmatprep.subr.mxu0 %v11945_v16 }
 0x39f   : > { %10791 = vmatmul.mubr.msk.f32.vlgmr.msra.gmra.mrb[6].mxu0 %vm1914_vm1, %v12282_v15 }
 0x3a0   : > { %10805 = vmatprep.mubr.msk.f32.mxu0 %vm11946_vm2, %v11945_v16 }
 0x46b   : > { %v12320_v50 = vpop.f32.mrb[4].mxu1 }
 0x46c   : > { %v10749_v51 = vpop.f32.mrb[5].mxu1 }
 0x46f   : > { %v2402_v52 = vpop.f32.mrb[6].mxu1 }
 0x470   : > { %v2406_v53 = vmul.f32 0.35355338, %v2402_v52  ;;  %v10754_v54 = vpop.f32.mrb[7].mxu1 }
 0x472   : > { %v2407_v55 = vsel %vm2168_vm3, %v2406_v53, -inf  ;;  %v10792_v34 = vpop.f32.mrb[6].mxu0 }
 0x473   : > { %2408 = vmax.xlane.f32.xlu1 %v2407_v55  ;;  %v2753_v35 = vadd.f32 %v10792_v34, %v9932_v33  ;;  %v2747_v36 = vpop.f32.mrb[7].mxu0 }
 0x474   : > { %v2748_v37 = vadd.f32 %v9932_v33, %v2747_v36  ;;  %v9965_v33 = vld [vmem:[%s13438_s30 + $0x58] sm:$0xff] }
 0x500   : > { %v2409_v56 = vpop.xlane.xlu1 %2408 }
 0x501   : > { %v2410_v57 = vsub.f32 %v2406_v53, %v2409_v56 }
 0x503   : > { %v2411_v58 = vmul.f32 1.442695, %v2410_v57 }
 0x505   : > { %11797 = vpow2.f32 %v2411_v58 }
 0x50f   : > { %v11798_v59 = vpop.eup %11797 }
 0x510   : > { %v2413_v60 = vsel %vm2168_vm3, %v11798_v59, 0.0 }
 0x511   : > { %2414 = vadd.xlane.f32.xlu1 %v2413_v60 }
 0x59e   : > { %v2415_v9 = vpop.xlane.xlu1 %2414 }
 0x59f   : > { %11799 = vrcp.f32 %v2415_v9  ;;  %v9955_v9 = vld [vmem:[%s13434_s29 + $0x48] sm:$0xff] }
 0x5a0   : > { %v11238_v11 = vpack.c.bf16 %v9955_v9, %v9954_v8  ;;  %v9981_v8 = vld [vmem:[%s13435_s19 + $0x70] sm:$0xff]  ;;  %v9982_v9 = vld [vmem:[%s13435_s19 + $0x78] sm:$0xff] }
 0x5a9   : > { %v11800_v12 = vpop.eup %11799 }
 0x5aa   : > { %v2417_v14 = vmul.f32 %v11800_v12, %v11798_v59 }
 0x5ac   : > { %10758 = vmatmul.mubr.msk.f32.vlgmr.msra.gmra.mrb[8].mxu1 %vm2168_vm3, %v2417_v14 }
 0x5ad   : > { %11217 = vmatpush3.bf16.msra.mxu1 %v11214_v63  ;;  %10779 = vmatprep.mubr.msk.f32.mxu1 %vm1914_vm1, %v12276_v13  ;;  %v9941_v63 = vld [vmem:[%s13440_s1 + $0x8] sm:$0xff] }
 0x5ae   : > { %11219 = vmatprep.subr.bf16.mxu1 %v11218_v17 }
 0x5b1   : > { %11221 = vmatpush3.bf16.msra.mxu1 %v11218_v17  ;;  %v9956_v17 = vld [vmem:[%s13434_s29 + $0x50] sm:$0xff] }
 0x5b2   : > { %10793 = vmatprep.subr.mxu1 %v11945_v16  ;;  %v11242_v19 = vpack.c.bf16 %v9957_v18, %v9956_v17  ;;  %v9998_v18 = vld [vmem:[%s13438_s30 + $0x78] sm:$0xff] }
 0x5b4   : > { %10780 = vmatmul.mubr.msk.f32.vlgmr.msra.gmra.mrb[10].mxu1 %vm1914_vm1, %v12282_v15 }
 0x5b5   : > { %10795 = vmatprep.mubr.msk.f32.mxu1 %vm11946_vm2, %v11945_v16 }
 0x67f   : > { %v12353_v23 = vpop.f32.mrb[8].mxu1 }
 0x680   : > { %v10759_v24 = vpop.f32.mrb[9].mxu1 }
 0x687   : > { %v10781_v27 = vpop.f32.mrb[10].mxu1 }
 0x688   : > { %v2665_v28 = vadd.f32 %v10781_v27, %v9924_v25  ;;  %v2659_v29 = vpop.f32.mrb[11].mxu1 }
 0x689   : > { %v2660_v30 = vadd.f32 %v9924_v25, %v2659_v29  ;;  %v9962_v29 = vld [vmem:[%s13438_s30 + $0x40] sm:$0xff] }
 0x68a   : > { %10804 = vmatpush3.xpose.msk.msra.mxu0 %vm2168_vm3, %v2665_v28 }
 0x68b   : > { %10794 = vmatpush3.xpose.msk.msra.mxu1 %vm2168_vm3, %v2660_v30  ;;  %10813 = vmatprep.subr.mxu0 %v9941_v63  ;;  %v9963_v30 = vld [vmem:[%s13438_s30 + $0x48] sm:$0xff] }
 0x68c   : > { %10798 = vmatprep.subr.mxu1 %v11945_v16 }
 0x68d   : > { %10806 = vmatmul.mubr.msk.f32.vlgmr.msra.gmra.mrb[8].mxu0 %vm2168_vm3, %v2577_v31  ;;  %v9964_v31 = vld [vmem:[%s13438_s30 + $0x50] sm:$0xff] }
 0x68e   : > { %10796 = vmatmul.mubr.msk.f32.vlgmr.msra.gmra.mrb[12].mxu1 %vm2168_vm3, %v2572_v32  ;;  %10814 = vmatpush3.msra.mxu0 %v9941_v63  ;;  %v11246_v32 = vpack.c.bf16 %v9963_v30, %v9962_v29  ;;  %v11250_v34 = vpack.c.bf16 %v9965_v33, %v9964_v31  ;;  %v9984_v33 = vld [vmem:[%s13437_s24 + $0x3] ss:$0 sm:$0xff] }
 0x68f   : > { %10800 = vmatprep.mubr.msk.f32.mxu1 %vm11946_vm2, %v11945_v16  ;;  %10799 = vmatpush3.msra.mxu1 %v2748_v37 }
 0x690   : > { %10808 = vmatprep.subr.mxu1 %v11945_v16  ;;  %10818 = vmatprep.subr.mxu0 %v2491_v0 }
 0x760   : > { %v2989_v38 = vpop.f32.mrb[8].mxu0 }
 0x761   : > { %v2993_v39 = vmul.f32 0.35355338, %v2989_v38  ;;  %v2828_v40 = vpop.f32.mrb[12].mxu1  ;;  %v10807_v41 = vpop.f32.mrb[9].mxu0 }
 0x762   : > { %v2832_v42 = vmul.f32 0.35355338, %v2828_v40  ;;  %v10797_v43 = vpop.f32.mrb[13].mxu1 }
 0x763   : > { %v2994_v44 = vsel %vm2168_vm3, %v2993_v39, -inf }
 0x764   : > { %2995 = vmax.xlane.f32.xlu1 %v2994_v44  ;;  %v2833_v45 = vsel %vm2168_vm3, %v2832_v42, -inf }
 0x765   : > { %2834 = vmax.xlane.f32.xlu0 %v2833_v45 }
 0x7f1   : > { %v2996_v46 = vpop.xlane.xlu1 %2995 }
 0x7f2   : > { %v2997_v47 = vsub.f32 %v2993_v39, %v2996_v46  ;;  %v2835_v48 = vpop.xlane.xlu0 %2834 }
 0x7f3   : > { %v2836_v49 = vsub.f32 %v2832_v42, %v2835_v48 }
 0x7f4   : > { %v2998_v51 = vmul.f32 1.442695, %v2997_v47 }
 0x7f5   : > { %v2837_v52 = vmul.f32 1.442695, %v2836_v49 }
 0x7f6   : > { %11801 = vpow2.f32 %v2998_v51 }
 0x7f7   : > { %11803 = vpow2.f32 %v2837_v52 }
 0x800   : > { %v11802_v53 = vpop.eup %11801 }
 0x801   : > { %v11804_v54 = vpop.eup %11803  ;;  %v3000_v55 = vsel %vm2168_vm3, %v11802_v53, 0.0 }
 0x802   : > { %3001 = vadd.xlane.f32.xlu1 %v3000_v55  ;;  %v2839_v56 = vsel %vm2168_vm3, %v11804_v54, 0.0  ;;  %v9967_v55 = vld [vmem:[%s13439_s6 + $0x2] ss:$0 sm:$0xff] }
 0x803   : > { %2840 = vadd.xlane.f32.xlu0 %v2839_v56 }
 0x88f   : > { %v3002_v57 = vpop.xlane.xlu1 %3001 }
 0x890   : > { %v2841_v58 = vpop.xlane.xlu0 %2840 }
 0x891   : > { %11805 = vrcp.f32 %v2841_v58 }
 0x892   : > { %11807 = vrcp.f32 %v3002_v57 }
 0x89b   : > { %v11806_v59 = vpop.eup %11805 }
 0x89c   : > { %v2843_v60 = vmul.f32 %v11806_v59, %v11804_v54  ;;  %v11808_v61 = vpop.eup %11807 }
 0x89d   : > { %v3004_v62 = vmul.f32 %v11808_v61, %v11802_v53 }
 0x89e   : > { %10801 = vmatmul.mubr.msk.f32.vlgmr.msra.gmra.mrb[14].mxu1 %vm2168_vm3, %v2843_v60 }
 0x89f   : > { %10809 = vmatpush3.msra.mxu1 %v2753_v35  ;;  %10810 = vmatprep.mubr.msk.f32.mxu1 %vm11946_vm2, %v11945_v16 }
 0x8a0   : > { %11231 = vmatprep.subr.bf16.mxu1 %v11230_v3 }
 0x8a2   : > { %10811 = vmatmul.mubr.msk.f32.vlgmr.msra.gmra.mrb[16].mxu1 %vm2168_vm3, %v3004_v62 }
 0x8a3   : > { %10831 = vmatprep.mubr.msk.f32.mxu1 %vm1914_vm1, %v12276_v13  ;;  %11233 = vmatpush3.bf16.msra.mxu1 %v11230_v3  ;;  %v9988_v3 = vld [vmem:[%s13434_s29 + $0x68] sm:$0xff] }
 0x8a4   : > { %11235 = vmatprep.subr.bf16.mxu1 %v11234_v6  ;;  %v11262_v4 = vpack.c.bf16 %v9988_v3, %v9987_v2  ;;  %v10009_v2 = vld [vmem:[%s13440_s1 + $0x18] sm:$0xff] }
 0x8a7   : > { %11237 = vmatpush3.bf16.msra.mxu1 %v11234_v6  ;;  %v9980_v6 = vld [vmem:[%s13435_s19 + $0x68] sm:$0xff]  ;;  %s13455_s19 = sld [smem:[#allocation22_spill]] }
 0x8a8   : > { %11247 = vmatprep.subr.bf16.mxu1 %v11246_v32 }
 0x8aa   : > { %10832 = vmatmul.mubr.msk.f32.vlgmr.msra.gmra.mrb[18].mxu1 %vm1914_vm1, %v12282_v15 }
 0x8ab   : > { %10853 = vmatprep.mubr.msk.f32.mxu1 %vm1914_vm1, %v12276_v13  ;;  %11249 = vmatpush3.bf16.msra.mxu1 %v11246_v32  ;;  %v9992_v32 = vld [vmem:[%s13436_s3 + $0x3] ss:$0 sm:$0xff] }
 0x8ac   : > { %11251 = vmatprep.subr.bf16.mxu1 %v11250_v34 }
 0x8ad   : > { %s13456_s3 = scalar_lea.vmem %s13455_s19, %s12196_s17 }
 0x8af   : > { %11253 = vmatpush3.bf16.msra.mxu1 %v11250_v34 }
 0x8b0   : > { %10861 = vmatprep.subr.mxu1 %v11945_v16 }
 0x8b2   : > { %10854 = vmatmul.mubr.msk.f32.vlgmr.msra.gmra.mrb[20].mxu1 %vm1914_vm1, %v12282_v15 }
 0x8b3   : > { %10863 = vmatprep.mubr.msk.f32.mxu1 %vm11946_vm2, %v11945_v16 }
 0x971   : > { %v2913_v7 = vpop.f32.mrb[14].mxu1 }
 0x972   : > { %v10802_v10 = vpop.f32.mrb[15].mxu1  ;;  %10815 = vmatprep.mubr.msk.f32.mxu0 %vm2168_vm3, %v2913_v7  ;;  %v11254_v7 = vpack.c.bf16 %v9980_v6, %v9979_v5 }
 0x973   : > { %v11258_v10 = vpack.c.bf16 %v9982_v9, %v9981_v8 }
 0x975   : > { %v3074_v12 = vpop.f32.mrb[16].mxu1 }
 0x976   : > { %v10812_v14 = vpop.f32.mrb[17].mxu1  ;;  %10816 = vmatmul.mubr.msk.f32.vlgmr.msra.gmra.mrb[10].mxu0 %vm2168_vm3, %v3074_v12  ;;  %v9996_v12 = vld [vmem:[%s13438_s30 + $0x68] sm:$0xff] }
 0x977   : > { %10819 = vmatpush3.msra.mxu0 %v2491_v0  ;;  %10820 = vmatprep.mubr.msk.f32.mxu0 %vm2168_vm3, %v12320_v50  ;;  %v9997_v14 = vld [vmem:[%s13438_s30 + $0x70] sm:$0xff] }
 0x978   : > { %11239 = vmatprep.subr.bf16.mxu0 %v11238_v11 }
 0x97d   : > { %v10833_v50 = vpop.f32.mrb[18].mxu1 }
 0x97e   : > { %10821 = vmatmul.mubr.msk.f32.vlgmr.msra.gmra.mrb[10].mxu0 %vm2168_vm3, %v12353_v23  ;;  %v3321_v20 = vpop.f32.mrb[19].mxu1  ;;  %v9951_v23 = vld [vmem:[%s13437_s24 + $0x2] ss:$0 sm:$0xff]  ;;  %s13457_s24 = sld [smem:[#allocation23_spill]] }
 0x97f   : > { %11241 = vmatpush3.bf16.msra.mxu0 %v11238_v11  ;;  %10842 = vmatprep.mubr.msk.f32.mxu0 %vm1914_vm1, %v12276_v13  ;;  %v3322_v26 = vadd.f32 %v9951_v23, %v3321_v20  ;;  %v3327_v28 = vadd.f32 %v10833_v50, %v9951_v23  ;;  %v9995_v11 = vld [vmem:[%s13438_s30 + $0x60] sm:$0xff]  ;;  %v9989_v20 = vld [vmem:[%s13434_s29 + $0x70] sm:$0xff]  ;;  %s13458_s30 = sld [smem:[#allocation24_spill]] }
 0x980   : > { %11243 = vmatprep.subr.bf16.mxu0 %v11242_v19  ;;  %v11270_v17 = vpack.c.bf16 %v9996_v12, %v9995_v11 }
 0x983   : > { %11245 = vmatpush3.bf16.msra.mxu0 %v11242_v19  ;;  %v11274_v19 = vpack.c.bf16 %v9998_v18, %v9997_v14 }
 0x984   : > { %10856 = vmatprep.subr.mxu0 %v11945_v16 }
 0x985   : > { %v10855_v54 = vpop.f32.mrb[20].mxu1  ;;  %s13460_s1 = scalar_lea.vmem %s13458_s30, %s12196_s17 }
 0x986   : > { %10843 = vmatmul.mubr.msk.f32.vlgmr.msra.gmra.mrb[12].mxu0 %vm1914_vm1, %v12282_v15  ;;  %v3497_v56 = vpop.f32.mrb[21].mxu1  ;;  %v3503_v57 = vadd.f32 %v10855_v54, %v9967_v55 }
 0x987   : > { %10858 = vmatprep.mubr.msk.f32.mxu0 %vm11946_vm2, %v11945_v16  ;;  %v3498_v58 = vadd.f32 %v9967_v55, %v3497_v56 }
 0x989   : > { %10862 = vmatpush3.msra.mxu1 %v3498_v58 }
 0x98a   : > { %10871 = vmatprep.subr.mxu1 %v11945_v16 }
 0xa59   : > { %v10844_v22 = vpop.f32.mrb[12].mxu0 }
 0xa5a   : > { %v3409_v24 = vpop.f32.mrb[13].mxu0  ;;  %v3415_v27 = vadd.f32 %v10844_v22, %v9959_v21 }
 0xa5b   : > { %v3410_v25 = vadd.f32 %v9959_v21, %v3409_v24  ;;  %v9990_v21 = vld [vmem:[%s13434_s29 + $0x78] sm:$0xff]  ;;  %s13454_s29 = sld [smem:[#allocation59_spill]] }
 0xa5c   : > { %v11266_v23 = vpack.c.bf16 %v9990_v21, %v9989_v20 }
 0xa5d   : > { %10857 = vmatpush3.xpose.msk.msra.mxu0 %vm2168_vm3, %v3410_v25 }
 0xa5e   : > { %10866 = vmatprep.subr.mxu0 %v11945_v16 }
 0xa60   : > { %10859 = vmatmul.mubr.msk.f32.vlgmr.msra.gmra.mrb[14].mxu0 %vm2168_vm3, %v3322_v26 }
 0xa61   : > { %10867 = vmatpush3.xpose.msk.msra.mxu0 %vm2168_vm3, %v3415_v27  ;;  %10868 = vmatprep.mubr.msk.f32.mxu0 %vm11946_vm2, %v11945_v16 }
 0xa62   : > { %10876 = vmatprep.subr.mxu0 %v9976_v1 }
 0xa64   : > { %10869 = vmatmul.mubr.msk.f32.vlgmr.msra.gmra.mrb[16].mxu0 %vm2168_vm3, %v3327_v28  ;;  %v10000_v28 = vld [vmem:[%s13439_s6 + $0x3] ss:$0 sm:$0xff]  ;;  %s13459_s6 = scalar_lea.vmem %s13457_s24, %s12196_s17 }
 0xa65   : > { %10877 = vmatpush3.msra.mxu0 %v9976_v1 }
 0xa66   : > { %11263 = vmatprep.subr.bf16.mxu0 %v11262_v4 }
 0xb33   : > { %v3578_v35 = vpop.f32.mrb[14].mxu0 }
 0xb34   : > { %v3582_v36 = vmul.f32 0.35355338, %v3578_v35  ;;  %v10860_v37 = vpop.f32.mrb[15].mxu0 }
 0xb36   : > { %v3583_v38 = vsel %vm2168_vm3, %v3582_v36, -inf }
 0xb37   : > { %3584 = vmax.xlane.f32.xlu0 %v3583_v38  ;;  %v3739_v39 = vpop.f32.mrb[16].mxu0 }
 0xb38   : > { %v3743_v40 = vmul.f32 0.35355338, %v3739_v39  ;;  %v10870_v41 = vpop.f32.mrb[17].mxu0 }
 0xb3a   : > { %v3744_v42 = vsel %vm2168_vm3, %v3743_v40, -inf }
 0xb3b   : > { %3745 = vmax.xlane.f32.xlu1 %v3744_v42 }
 0xbc4   : > { %v3585_v43 = vpop.xlane.xlu0 %3584 }
 0xbc5   : > { %v3586_v44 = vsub.f32 %v3582_v36, %v3585_v43 }
 0xbc7   : > { %v3587_v45 = vmul.f32 1.442695, %v3586_v44 }
 0xbc8   : > { %v3746_v46 = vpop.xlane.xlu1 %3745 }
 0xbc9   : > { %11809 = vpow2.f32 %v3587_v45  ;;  %v3747_v47 = vsub.f32 %v3743_v40, %v3746_v46 }
 0xbcb   : > { %v3748_v48 = vmul.f32 1.442695, %v3747_v47 }
 0xbcd   : > { %11811 = vpow2.f32 %v3748_v48 }
 0xbd3   : > { %v11810_v49 = vpop.eup %11809 }
 0xbd4   : > { %v3589_v51 = vsel %vm2168_vm3, %v11810_v49, 0.0 }
 0xbd5   : > { %3590 = vadd.xlane.f32.xlu0 %v3589_v51 }
 0xbd7   : > { %v11812_v52 = vpop.eup %11811 }
 0xbd8   : > { %v3750_v53 = vsel %vm2168_vm3, %v11812_v52, 0.0 }
 0xbd9   : > { %3751 = vadd.xlane.f32.xlu1 %v3750_v53 }
 0xc62   : > { %v3591_v59 = vpop.xlane.xlu0 %3590 }
 0xc63   : > { %11813 = vrcp.f32 %v3591_v59 }
 0xc66   : > { %v3752_v60 = vpop.xlane.xlu1 %3751 }
 0xc67   : > { %11815 = vrcp.f32 %v3752_v60 }
 0xc6d   : > { %v11814_v61 = vpop.eup %11813 }
 0xc6e   : > { %v3593_v62 = vmul.f32 %v11814_v61, %v11810_v49 }
 0xc70   : > { %10864 = vmatmul.mubr.msk.f32.vlgmr.msra.gmra.mrb[22].mxu1 %vm2168_vm3, %v3593_v62 }
 0xc71   : > { %v11816_v63 = vpop.eup %11815  ;;  %10872 = vmatpush3.msra.mxu1 %v3503_v57  ;;  %10873 = vmatprep.mubr.msk.f32.mxu1 %vm11946_vm2, %v11945_v16 }
 0xc72   : > { %v3754_v0 = vmul.f32 %v11816_v63, %v11812_v52  ;;  %11255 = vmatprep.subr.bf16.mxu1 %v11254_v7 }
 0xc74   : > { %10874 = vmatmul.mubr.msk.f32.vlgmr.msra.gmra.mrb[24].mxu1 %vm2168_vm3, %v3754_v0 }
 0xc75   : > { %10889 = vmatprep.mubr.msk.f32.mxu1 %vm1914_vm1, %v12276_v13  ;;  %11257 = vmatpush3.bf16.msra.mxu1 %v11254_v7  ;;  %v10012_v7 = vld [vmem:[%s13442_s11] ss:$0 sm:$0xff]  ;;  %s13465_s11 = sld [smem:[#allocation36_spill]] }
 0xc76   : > { %11259 = vmatprep.subr.bf16.mxu1 %v11258_v10 }
 0xc79   : > { %11261 = vmatpush3.bf16.msra.mxu1 %v11258_v10 }
 0xc7a   : > { %11271 = vmatprep.subr.bf16.mxu1 %v11270_v17 }
 0xc7b   : > { %p10153_p8 = scmp.ne.s32.totalorder %s13465_s11, 5 }
 0xc7c   : > { %10890 = vmatmul.mubr.msk.f32.vlgmr.msra.gmra.mrb[26].mxu1 %vm1914_vm1, %v12282_v15 }
 0xc7d   : > { %10911 = vmatprep.mubr.msk.f32.mxu1 %vm1914_vm1, %v12276_v13  ;;  %11273 = vmatpush3.bf16.msra.mxu1 %v11270_v17 }
 0xc7e   : > { %11275 = vmatprep.subr.bf16.mxu1 %v11274_v19 }
 0xc81   : > { %11277 = vmatpush3.bf16.msra.mxu1 %v11274_v19 }
 0xc82   : > { %10924 = vmatprep.subr.mxu1 %v11945_v16 }
 0xc84   : > { %10912 = vmatmul.mubr.msk.f32.vlgmr.msra.gmra.mrb[28].mxu1 %vm1914_vm1, %v12282_v15 }
 0xc85   : > { %10926 = vmatprep.mubr.msk.f32.mxu1 %vm11946_vm2, %v11945_v16 }
 0xd43   : > { %v3663_v50 = vpop.f32.mrb[22].mxu1 }
 0xd44   : > { %v10865_v22 = vpop.f32.mrb[23].mxu1  ;;  %10878 = vmatprep.mubr.msk.f32.mxu0 %vm2168_vm3, %v3663_v50 }
 0xd47   : > { %v3824_v24 = vpop.f32.mrb[24].mxu1 }
 0xd48   : > { %v10875_v25 = vpop.f32.mrb[25].mxu1  ;;  %10879 = vmatmul.mubr.msk.f32.vlgmr.msra.gmra.mrb[10].mxu0 %vm2168_vm3, %v3824_v24 }
 0xd49   : > { %11265 = vmatpush3.bf16.msra.mxu0 %v11262_v4  ;;  %10900 = vmatprep.mubr.msk.f32.mxu0 %vm1914_vm1, %v12276_v13 }
 0xd4a   : > { %11267 = vmatprep.subr.bf16.mxu0 %v11266_v23 }
 0xd4d   : > { %11269 = vmatpush3.bf16.msra.mxu0 %v11266_v23 }
 0xd4e   : > { %10914 = vmatprep.subr.mxu0 %v11945_v16 }
 0xd4f   : > { %v10891_v26 = vpop.f32.mrb[26].mxu1 }
 0xd50   : > { %10901 = vmatmul.mubr.msk.f32.vlgmr.msra.gmra.mrb[18].mxu0 %vm1914_vm1, %v12282_v15  ;;  %v3992_v27 = vpop.f32.mrb[27].mxu1  ;;  %v3998_v38 = vadd.f32 %v10891_v26, %v9984_v33  ;;  %v4732_v26 = vld [vmem:[%s13443_s22] sm:$0xff] }
 0xd51   : > { %10916 = vmatprep.mubr.msk.f32.mxu0 %vm11946_vm2, %v11945_v16  ;;  %v3993_v39 = vadd.f32 %v9984_v33, %v3992_v27  ;;  %v4733_v27 = vld [vmem:[%s13443_s22 + $0x8] sm:$0xff]  ;;  %v4735_v33 = vld [vmem:[%s13443_s22 + $0x18] sm:$0xff] }
 0xd57   : > { %v10913_v29 = vpop.f32.mrb[28].mxu1 }
 0xd58   : > { %v4174_v30 = vadd.f32 %v10913_v29, %v10000_v28  ;;  %v4168_v31 = vpop.f32.mrb[29].mxu1  ;;  %v4640_v29 = vld [vmem:[%s13444_s23] sm:$0xff] }
 0xd59   : > { %v4169_v40 = vadd.f32 %v10000_v28, %v4168_v31  ;;  %v11286_v28 = vpack.c.bf16 %v4733_v27, %v4732_v26  ;;  %v4734_v31 = vld [vmem:[%s13443_s22 + $0x10] sm:$0xff] }
 0xe23   : > { %v10902_v34 = vpop.f32.mrb[18].mxu0 }
 0xe24   : > { %v4086_v35 = vadd.f32 %v10902_v34, %v9992_v32  ;;  %v4080_v36 = vpop.f32.mrb[19].mxu0  ;;  %v11290_v34 = vpack.c.bf16 %v4735_v33, %v4734_v31 }
 0xe25   : > { %v4081_v37 = vadd.f32 %v9992_v32, %v4080_v36  ;;  %v4642_v36 = vld [vmem:[%s13444_s23 + $0x10] sm:$0xff] }
 0xe26   : > { %10925 = vmatpush3.xpose.msk.msra.mxu1 %vm2168_vm3, %v4086_v35  ;;  %v12502_v35 = vld [vmem:[%s13445_s5] sm:$0xff] }
 0xe27   : > { %10915 = vmatpush3.xpose.msk.msra.mxu0 %vm2168_vm3, %v4081_v37  ;;  %v4643_v37 = vld [vmem:[%s13444_s23 + $0x18] sm:$0xff] }
 0xe28   : > { %10919 = vmatprep.subr.mxu0 %v11945_v16 }
 0xe29   : > { %10927 = vmatmul.mubr.msk.f32.vlgmr.msra.gmra.mrb[30].mxu1 %vm2168_vm3, %v3998_v38  ;;  %v11282_v38 = vpack.c.bf16 %v4643_v37, %v4642_v36  ;;  %v10021_v37 = vld [vmem:[%s13453_s8] ss:$0 sm:$0xff] }
 0xe2a   : > { %10917 = vmatmul.mubr.msk.f32.vlgmr.msra.gmra.mrb[20].mxu0 %vm2168_vm3, %v3993_v39  ;;  %v12509_v39 = vld [vmem:[%s13445_s5 + $0x8] sm:$0xff] }
 0xe2b   : > { %10920 = vmatpush3.msra.mxu0 %v4169_v40  ;;  %10921 = vmatprep.mubr.msk.f32.mxu0 %vm11946_vm2, %v11945_v16 }
 0xe2c   : > { %10929 = vmatprep.subr.mxu0 %v11945_v16 }
 0xefc   : > { %v4410_v41 = vpop.f32.mrb[30].mxu1 }
 0xefd   : > { %v4414_v42 = vmul.f32 0.35355338, %v4410_v41  ;;  %v4249_v43 = vpop.f32.mrb[20].mxu0  ;;  %v10928_v44 = vpop.f32.mrb[31].mxu1 }
 0xefe   : > { %v4253_v45 = vmul.f32 0.35355338, %v4249_v43  ;;  %v10918_v46 = vpop.f32.mrb[21].mxu0 }
 0xeff   : > { %v4415_v47 = vsel %vm2168_vm3, %v4414_v42, -inf }
 0xf00   : > { %4416 = vmax.xlane.f32.xlu1 %v4415_v47  ;;  %v4254_v48 = vsel %vm2168_vm3, %v4253_v45, -inf  ;;  %v10013_v47 = vld [vmem:[%s13449_s0] ss:$0 sm:$0xff] }
 0xf01   : > { %4255 = vmax.xlane.f32.xlu0 %v4254_v48 }
 0xf8d   : > { %v4417_v49 = vpop.xlane.xlu1 %4416 }
 0xf8e   : > { %v4418_v51 = vsub.f32 %v4414_v42, %v4417_v49  ;;  %v4256_v52 = vpop.xlane.xlu0 %4255 }
 0xf8f   : > { %v4257_v53 = vsub.f32 %v4253_v45, %v4256_v52  ;;  %v10014_v52 = vld [vmem:[%s13450_s13] ss:$0 sm:$0xff] }
 0xf90   : > { %v4419_v54 = vmul.f32 1.442695, %v4418_v51 }
 0xf91   : > { %v4258_v55 = vmul.f32 1.442695, %v4257_v53 }
 0xf92   : > { %11817 = vpow2.f32 %v4419_v54 }
 0xf93   : > { %11819 = vpow2.f32 %v4258_v55 }
 0xf9c   : > { %v11818_v56 = vpop.eup %11817 }
 0xf9d   : > { %v11820_v57 = vpop.eup %11819  ;;  %v4421_v58 = vsel %vm2168_vm3, %v11818_v56, 0.0 }
 0xf9e   : > { %4422 = vadd.xlane.f32.xlu1 %v4421_v58  ;;  %v4260_v59 = vsel %vm2168_vm3, %v11820_v57, 0.0 }
 0xf9f   : > { %4261 = vadd.xlane.f32.xlu0 %v4260_v59 }
0x102b   : > { %v4423_v60 = vpop.xlane.xlu1 %4422 }
0x102c   : > { %v4262_v61 = vpop.xlane.xlu0 %4261 }
0x102d   : > { %11821 = vrcp.f32 %v4262_v61 }
0x102e   : > { %11823 = vrcp.f32 %v4423_v60 }
0x1037   : > { %v11822_v62 = vpop.eup %11821 }
0x1038   : > { %v4264_v63 = vmul.f32 %v11822_v62, %v11820_v57  ;;  %v11824_v0 = vpop.eup %11823  ;;  %v10018_v57 = vld [vmem:[%s13448_s12] ss:$0 sm:$0xff] }
0x1039   : > { %v4425_v1 = vmul.f32 %v11824_v0, %v11818_v56  ;;  %v10015_v62 = vld [vmem:[%s13451_s25] ss:$0 sm:$0xff]  ;;  %v10031_v0 = vld [vmem:[%s13444_s23 + $0x28] sm:$0xff] }
0x103a   : > { %10922 = vmatmul.mubr.msk.f32.vlgmr.msra.gmra.mrb[22].mxu0 %vm2168_vm3, %v4264_v63  ;;  %v10030_v63 = vld [vmem:[%s13444_s23 + $0x20] sm:$0xff] }
0x103b   : > { %10930 = vmatpush3.msra.mxu0 %v4174_v30  ;;  %10931 = vmatprep.mubr.msk.f32.mxu0 %vm11946_vm2, %v11945_v16  ;;  %v4641_v30 = vld [vmem:[%s13444_s23 + $0x8] sm:$0xff] }
0x103c   : > { %10934 = vmatprep.subr.mxu0 %v10009_v2  ;;  %v11278_v32 = vpack.c.bf16 %v4641_v30, %v4640_v29 }
0x103e   : > { %10932 = vmatmul.mubr.msk.f32.vlgmr.msra.gmra.mrb[24].mxu0 %vm2168_vm3, %v4425_v1  ;;  %11279 = vmatprep.subr.bf16.mxu1 %v11278_v32 }
0x103f   : > { %10935 = vmatpush3.msra.mxu0 %v10009_v2  ;;  %11281 = vmatpush3.bf16.msra.mxu1 %v11278_v32 }
0x1040   : > { %11287 = vmatprep.subr.bf16.mxu0 %v11286_v28  ;;  %11283 = vmatprep.subr.bf16.mxu1 %v11282_v38 }
0x1043   : > { %11285 = vmatpush3.bf16.msra.mxu1 %v11282_v38 }
0x110d   : > { %v4334_v3 = vpop.f32.mrb[22].mxu0 }
0x110e   : > { %v10923_v4 = vpop.f32.mrb[23].mxu0  ;;  %10936 = vmatprep.mubr.msk.f32.mxu0 %vm2168_vm3, %v4334_v3 }
0x110f   : > { %v11302_v4 = vpack.c.bf16 %v10031_v0, %v10030_v63 }
0x1111   : > { %v4495_v5 = vpop.f32.mrb[24].mxu0 }
0x1112   : > { %v10933_v6 = vpop.f32.mrb[25].mxu0  ;;  %10937 = vmatmul.mubr.msk.f32.vlgmr.msra.gmra.mrb[10].mxu0 %vm2168_vm3, %v4495_v5  ;;  %v10032_v5 = vld [vmem:[%s13444_s23 + $0x30] sm:$0xff] }
0x1113   : > { %11289 = vmatpush3.bf16.msra.mxu0 %v11286_v28  ;;  %10958 = vmatprep.mubr.msk.f32.mxu0 %vm1914_vm1, %v12502_v35  ;;  %v10033_v6 = vld [vmem:[%s13444_s23 + $0x38] sm:$0xff] }
0x1114   : > { %11291 = vmatprep.subr.bf16.mxu0 %v11290_v34 }
0x1117   : > { %11293 = vmatpush3.bf16.msra.mxu0 %v11290_v34 }
0x1118   : > { %10972 = vmatprep.subr.mxu0 %v11945_v16 }
0x111a   : > { %10959 = vmatmul.mubr.msk.f32.vlgmr.msra.gmra.mrb[26].mxu0 %vm1914_vm1, %v12509_v39 }
0x111b   : > { %10974 = vmatprep.mubr.msk.f32.mxu0 %vm11946_vm2, %v11945_v16 }
0x11e5   : > { %v10938_v8 = vpop.f32.mrb[10].mxu0 }
0x11e6   : > { %v4592_v9 = vadd.f32 %v10938_v8, %v10012_v7  ;;  %v4573_v10 = vpop.f32.mrb[11].mxu0  ;;  %v11306_v8 = vpack.c.bf16 %v10033_v6, %v10032_v5  ;;  %v10035_v5 = vld [vmem:[%s13451_s25 + $0x1] ss:$0 sm:$0xff] }
0x11e7   : > { %v4591_v11 = vadd.f32 %v10012_v7, %v4573_v10  ;;  %v4825_v10 = vld [vmem:[%s13452_s7 + $0x8] sm:$0xff] }
0x11e8   : > { %v4594_v12 = vadd.f32 %v4592_v9, %v12282_v15  ;;  %v4824_v9 = vld [vmem:[%s13452_s7] sm:$0xff] }
0x11e9   : > { %v4593_v14 = vadd.f32 %v4591_v11, %v12276_v13  ;;  %v4826_v11 = vld [vmem:[%s13452_s7 + $0x10] sm:$0xff] }
0x11ea   : > { %v4600_v17 = vsel %vm1914_vm1, %v4594_v12, 0.0 }
0x11eb   : > { %4601 = vadd.xlane.f32.xlu1 %v4600_v17  ;;  %v4597_v18 = vsel %vm1914_vm1, %v4593_v14, 0.0 }
0x11ec   : > { %4598 = vadd.xlane.f32.xlu0 %v4597_v18 }
0x11ed   : > { %v10960_v58 = vpop.f32.mrb[26].mxu0 }
0x11ee   : > { %v4821_v59 = vadd.f32 %v10960_v58, %v10018_v57  ;;  %v4815_v60 = vpop.f32.mrb[27].mxu0  ;;  %v10047_v58 = vld [vmem:[%s13452_s7 + $0x28] sm:$0xff] }
0x11ef   : > { %v4816_v61 = vadd.f32 %v10018_v57, %v4815_v60  ;;  %v10046_v57 = vld [vmem:[%s13452_s7 + $0x20] sm:$0xff]  ;;  %v10048_v60 = vld [vmem:[%s13452_s7 + $0x30] sm:$0xff] }
0x11f1   : > { %10973 = vmatpush3.xpose.msk.msra.mxu0 %vm2168_vm3, %v4816_v61  ;;  %v10049_v61 = vld [vmem:[%s13452_s7 + $0x38] sm:$0xff] }
0x11f2   : > { %10982 = vmatprep.subr.mxu0 %v11945_v16 }
0x1278   : > { %v4602_v19 = vpop.xlane.xlu1 %4601 }
0x1279   : > { %v4605_v50 = vmul.f32 0.03125, %v4602_v19  ;;  %v4599_v20 = vpop.xlane.xlu0 %4598 }
0x127a   : > { %v4604_v21 = vmul.f32 0.03125, %v4599_v20 }
0x127b   : > { %v4607_v22 = vsub.f32 %v4594_v12, %v4605_v50  ;;  %v11294_v12 = vpack.c.bf16 %v4825_v10, %v4824_v9 }
0x127c   : > { %v4606_v23 = vsub.f32 %v4593_v14, %v4604_v21  ;;  %v4827_v14 = vld [vmem:[%s13452_s7 + $0x18] sm:$0xff] }
0x127d   : > { %v4609_v15 = vmul.f32 %v4607_v22, %v4607_v22  ;;  %v11298_v17 = vpack.c.bf16 %v4827_v14, %v4826_v11  ;;  %11295 = vmatprep.subr.bf16.mxu1 %v11294_v12  ;;  %v10051_v11 = vld [vmem:[%s13453_s8 + $0x1] ss:$0 sm:$0xff] }
0x127e   : > { %v4608_v13 = vmul.f32 %v4606_v23, %v4606_v23 }
0x127f   : > { %v4613_v24 = vsel %vm1914_vm1, %v4609_v15, 0.0 }
0x1280   : > { %4614 = vadd.xlane.f32.xlu1 %v4613_v24  ;;  %v4610_v25 = vsel %vm1914_vm1, %v4608_v13, 0.0 }
0x1281   : > { %4611 = vadd.xlane.f32.xlu0 %v4610_v25 }
0x130d   : > { %v4615_v40 = vpop.xlane.xlu1 %4614 }
0x130e   : > { %v4617_v41 = vmul.f32 0.03125, %v4615_v40  ;;  %v4612_v42 = vpop.xlane.xlu0 %4611 }
0x130f   : > { %v4616_v43 = vmul.f32 0.03125, %v4612_v42 }
0x1310   : > { %v4619_v44 = vadd.f32 1e-05, %v4617_v41 }
0x1311   : > { %v4618_v45 = vadd.f32 1e-05, %v4616_v43 }
0x1312   : > { %11825 = vrsqrt.f32 %v4619_v44  ;;  %v10038_v44 = vld [vmem:[%s13443_s22 + $0x20] sm:$0xff] }
0x1313   : > { %11827 = vrsqrt.f32 %v4618_v45  ;;  %v10039_v45 = vld [vmem:[%s13443_s22 + $0x28] sm:$0xff] }
0x131c   : > { %v11826_v46 = vpop.eup %11825 }
0x131d   : > { %v11828_v48 = vpop.eup %11827  ;;  %v4623_v49 = vmul.f32 %v11826_v46, %v4607_v22 }
0x131e   : > { %v4622_v51 = vmul.f32 %v11828_v48, %v4606_v23  ;;  %v11310_v48 = vpack.c.bf16 %v10039_v45, %v10038_v44  ;;  %v10067_v44 = vld [vmem:[%s13444_s23 + $0x50] sm:$0xff]  ;;  %v10068_v45 = vld [vmem:[%s13444_s23 + $0x58] sm:$0xff] }
0x131f   : > { %v4631_v53 = vmul.f32 %v10013_v47, %v4623_v49  ;;  %v10040_v49 = vld [vmem:[%s13443_s22 + $0x30] sm:$0xff] }
0x1320   : > { %v4630_v54 = vmul.f32 %v10013_v47, %v4622_v51  ;;  %v10041_v51 = vld [vmem:[%s13443_s22 + $0x38] sm:$0xff] }
0x1321   : > { %v12524_v56 = vadd.f32 %v10014_v52, %v4631_v53 }
0x1322   : > { %v12522_v55 = vadd.f32 %v10014_v52, %v4630_v54  ;;  %v11314_v54 = vpack.c.bf16 %v10041_v51, %v10040_v49  ;;  %v5232_v49 = vld [vmem:[%s13454_s29] sm:$0xff] }
0x1324   : > { %10947 = vmatprep.mubr.msk.f32.mxu1 %vm1914_vm1, %v12522_v55 }
0x1325   : > { %10948 = vmatmul.mubr.msk.f32.vlgmr.msra.gmra.mrb[32].mxu1 %vm1914_vm1, %v12524_v56 }
0x1326   : > { %10969 = vmatprep.mubr.msk.f32.mxu1 %vm1914_vm1, %v12502_v35  ;;  %11297 = vmatpush3.bf16.msra.mxu1 %v11294_v12 }
0x1327   : > { %11299 = vmatprep.subr.bf16.mxu1 %v11298_v17 }
0x132a   : > { %11301 = vmatpush3.bf16.msra.mxu1 %v11298_v17 }
0x132b   : > { %10977 = vmatprep.subr.mxu1 %v11945_v16 }
0x132d   : > { %10970 = vmatmul.mubr.msk.f32.vlgmr.msra.gmra.mrb[34].mxu1 %vm1914_vm1, %v12509_v39 }
0x132e   : > { %10979 = vmatprep.mubr.msk.f32.mxu1 %vm11946_vm2, %v11945_v16 }
0x13f8   : > { %v10949_v1 = vpop.f32.mrb[32].mxu1 }
0x13f9   : > { %v4723_v2 = vpop.f32.mrb[33].mxu1  ;;  %v4729_v7 = vadd.f32 %v10949_v1, %v10015_v62 }
0x13fa   : > { %v4724_v3 = vadd.f32 %v10015_v62, %v4723_v2  ;;  %v11322_v62 = vpack.c.bf16 %v10049_v61, %v10048_v60  ;;  %v10075_v60 = vld [vmem:[%s13443_s22 + $0x50] sm:$0xff]  ;;  %v10076_v61 = vld [vmem:[%s13443_s22 + $0x58] sm:$0xff] }
0x13fc   : > { %10975 = vmatmul.mubr.msk.f32.vlgmr.msra.gmra.mrb[28].mxu0 %vm2168_vm3, %v4724_v3  ;;  %v10043_v3 = vld [vmem:[%s13448_s12 + $0x1] ss:$0 sm:$0xff] }
0x13fd   : > { %10983 = vmatpush3.xpose.msk.msra.mxu0 %vm2168_vm3, %v4821_v59  ;;  %10984 = vmatprep.mubr.msk.f32.mxu0 %vm11946_vm2, %v11945_v16  ;;  %v11318_v59 = vpack.c.bf16 %v10047_v58, %v10046_v57 }
0x13fe   : > { %11303 = vmatprep.subr.bf16.mxu0 %v11302_v4 }
0x1400   : > { %10985 = vmatmul.mubr.msk.f32.vlgmr.msra.gmra.mrb[30].mxu0 %vm2168_vm3, %v4729_v7  ;;  %v10971_v36 = vpop.f32.mrb[34].mxu1 }
0x1401   : > { %11305 = vmatpush3.bf16.msra.mxu0 %v11302_v4  ;;  %11000 = vmatprep.mubr.msk.f32.mxu0 %vm1914_vm1, %v12522_v55  ;;  %v4901_v38 = vpop.f32.mrb[35].mxu1  ;;  %v4907_v40 = vadd.f32 %v10971_v36, %v10021_v37 }
0x1402   : > { %11307 = vmatprep.subr.bf16.mxu0 %v11306_v8  ;;  %v4902_v41 = vadd.f32 %v10021_v37, %v4901_v38  ;;  %v10065_v37 = vld [vmem:[%s13444_s23 + $0x40] sm:$0xff]  ;;  %v10066_v38 = vld [vmem:[%s13444_s23 + $0x48] sm:$0xff] }
0x1404   : > { %10978 = vmatpush3.msra.mxu1 %v4902_v41 }
0x1405   : > { %11309 = vmatpush3.bf16.msra.mxu0 %v11306_v8  ;;  %10987 = vmatprep.subr.mxu1 %v11945_v16 }
0x1406   : > { %11319 = vmatprep.subr.bf16.mxu0 %v11318_v59 }
0x1408   : > { %11001 = vmatmul.mubr.msk.f32.vlgmr.msra.gmra.mrb[32].mxu0 %vm1914_vm1, %v12524_v56 }
0x1409   : > { %11022 = vmatprep.mubr.msk.f32.mxu0 %vm1914_vm1, %v12502_v35  ;;  %11321 = vmatpush3.bf16.msra.mxu0 %v11318_v59 }
0x140a   : > { %11323 = vmatprep.subr.bf16.mxu0 %v11322_v62 }
0x140d   : > { %11325 = vmatpush3.bf16.msra.mxu0 %v11322_v62  ;;  %v11338_v62 = vpack.c.bf16 %v10076_v61, %v10075_v60  ;;  %v10115_v60 = vld [vmem:[%s13452_s7 + $0x68] sm:$0xff]  ;;  %v10116_v61 = vld [vmem:[%s13452_s7 + $0x70] sm:$0xff] }
0x140e   : > { %11035 = vmatprep.subr.mxu0 %v11945_v16 }
0x1410   : > { %11023 = vmatmul.mubr.msk.f32.vlgmr.msra.gmra.mrb[34].mxu0 %vm1914_vm1, %v12509_v39 }
0x1411   : > { %11037 = vmatprep.mubr.msk.f32.mxu0 %vm11946_vm2, %v11945_v16 }
0x14cf   : > { %v4982_v18 = vpop.f32.mrb[28].mxu0 }
0x14d0   : > { %v4986_v19 = vmul.f32 0.35355338, %v4982_v18  ;;  %v10976_v50 = vpop.f32.mrb[29].mxu0 }
0x14d2   : > { %v4987_v20 = vsel %vm2168_vm3, %v4986_v19, -inf }
0x14d3   : > { %4988 = vmax.xlane.f32.xlu0 %v4987_v20  ;;  %v5143_v21 = vpop.f32.mrb[30].mxu0 }
0x14d4   : > { %v5147_v22 = vmul.f32 0.35355338, %v5143_v21  ;;  %v10986_v23 = vpop.f32.mrb[31].mxu0 }
0x14d6   : > { %v5148_v15 = vsel %vm2168_vm3, %v5147_v22, -inf }
0x14d7   : > { %5149 = vmax.xlane.f32.xlu1 %v5148_v15 }
0x14db   : > { %v12562_v13 = vpop.f32.mrb[32].mxu0 }
0x14dc   : > { %v12564_v24 = vpop.f32.mrb[33].mxu0  ;;  %v5318_v9 = vadd.f32 %v12562_v13, %v10035_v5 }
0x14dd   : > { %v5313_v10 = vadd.f32 %v10035_v5, %v12564_v24 }
0x14e3   : > { %v11024_v12 = vpop.f32.mrb[34].mxu0 }
0x14e4   : > { %v5494_v14 = vadd.f32 %v11024_v12, %v10051_v11  ;;  %v5488_v17 = vpop.f32.mrb[35].mxu0 }
0x14e5   : > { %v5489_v18 = vadd.f32 %v10051_v11, %v5488_v17  ;;  %v10083_v11 = vld [vmem:[%s13452_s7 + $0x50] sm:$0xff] }
0x1560   : > { %v4989_v25 = vpop.xlane.xlu0 %4988 }
0x1561   : > { %v4990_v26 = vsub.f32 %v4986_v19, %v4989_v25 }
0x1563   : > { %v4991_v27 = vmul.f32 1.442695, %v4990_v26 }
0x1564   : > { %v5150_v28 = vpop.xlane.xlu1 %5149 }
0x1565   : > { %11829 = vpow2.f32 %v4991_v27  ;;  %v5151_v29 = vsub.f32 %v5147_v22, %v5150_v28 }
0x1567   : > { %v5152_v30 = vmul.f32 1.442695, %v5151_v29 }
0x1569   : > { %11831 = vpow2.f32 %v5152_v30 }
0x156f   : > { %v11830_v31 = vpop.eup %11829 }
0x1570   : > { %v4993_v32 = vsel %vm2168_vm3, %v11830_v31, 0.0 }
0x1571   : > { %4994 = vadd.xlane.f32.xlu0 %v4993_v32 }
0x1573   : > { %v11832_v33 = vpop.eup %11831 }
0x1574   : > { %v5154_v34 = vsel %vm2168_vm3, %v11832_v33, 0.0 }
0x1575   : > { %5155 = vadd.xlane.f32.xlu1 %v5154_v34 }
0x15fe   : > { %v4995_v42 = vpop.xlane.xlu0 %4994 }
0x15ff   : > { %11833 = vrcp.f32 %v4995_v42  ;;  %v11326_v42 = vpack.c.bf16 %v10066_v38, %v10065_v37 }
0x1602   : > { %v5156_v43 = vpop.xlane.xlu1 %5155 }
0x1603   : > { %11835 = vrcp.f32 %v5156_v43 }
0x1609   : > { %v11834_v46 = vpop.eup %11833 }
0x160a   : > { %v4997_v47 = vmul.f32 %v11834_v46, %v11830_v31 }
0x160c   : > { %10980 = vmatmul.mubr.msk.f32.vlgmr.msra.gmra.mrb[36].mxu1 %vm2168_vm3, %v4997_v47  ;;  %v11330_v47 = vpack.c.bf16 %v10068_v45, %v10067_v44 }
0x160d   : > { %v11836_v52 = vpop.eup %11835  ;;  %10988 = vmatpush3.msra.mxu1 %v4907_v40  ;;  %10989 = vmatprep.mubr.msk.f32.mxu1 %vm11946_vm2, %v11945_v16 }
0x160e   : > { %v5158_v53 = vmul.f32 %v11836_v52, %v11832_v33  ;;  %11311 = vmatprep.subr.bf16.mxu1 %v11310_v48  ;;  %v10073_v52 = vld [vmem:[%s13443_s22 + $0x40] sm:$0xff] }
0x1610   : > { %10990 = vmatmul.mubr.msk.f32.vlgmr.msra.gmra.mrb[38].mxu1 %vm2168_vm3, %v5158_v53  ;;  %v10074_v53 = vld [vmem:[%s13443_s22 + $0x48] sm:$0xff] }
0x1611   : > { %11313 = vmatpush3.bf16.msra.mxu1 %v11310_v48  ;;  %11011 = vmatprep.mubr.msk.f32.mxu1 %vm1914_vm1, %v12502_v35  ;;  %v10060_v48 = vld [vmem:[%s13454_s29 + $0x8] sm:$0xff]  ;;  %v11334_v57 = vpack.c.bf16 %v10074_v53, %v10073_v52  ;;  %v10095_v53 = vld [vmem:[%s13454_s29 + $0x10] sm:$0xff] }
0x1612   : > { %11315 = vmatprep.subr.bf16.mxu1 %v11314_v54 }
0x1615   : > { %11317 = vmatpush3.bf16.msra.mxu1 %v11314_v54 }
0x1616   : > { %11025 = vmatprep.subr.mxu1 %v11945_v16 }
0x1618   : > { %11012 = vmatmul.mubr.msk.f32.vlgmr.msra.gmra.mrb[40].mxu1 %vm1914_vm1, %v12509_v39 }
0x1619   : > { %11027 = vmatprep.mubr.msk.f32.mxu1 %vm11946_vm2, %v11945_v16 }
0x16df   : > { %v12594_v63 = vpop.f32.mrb[36].mxu1 }
0x16e0   : > { %v10981_v0 = vpop.f32.mrb[37].mxu1 }
0x16e3   : > { %v12596_v1 = vpop.f32.mrb[38].mxu1 }
0x16e4   : > { %v10991_v2 = vpop.f32.mrb[39].mxu1 }
0x16eb   : > { %v11013_v4 = vpop.f32.mrb[40].mxu1 }
0x16ec   : > { %v5406_v6 = vadd.f32 %v11013_v4, %v10043_v3  ;;  %v5400_v7 = vpop.f32.mrb[41].mxu1  ;;  %v10070_v4 = vld [vmem:[%s13451_s25 + $0x2] ss:$0 sm:$0xff] }
0x16ed   : > { %v5401_v8 = vadd.f32 %v10043_v3, %v5400_v7 }
0x16ee   : > { %11036 = vmatpush3.xpose.msk.msra.mxu0 %vm2168_vm3, %v5406_v6 }
0x16ef   : > { %11026 = vmatpush3.xpose.msk.msra.mxu1 %vm2168_vm3, %v5401_v8  ;;  %11045 = vmatprep.subr.mxu0 %v10060_v48 }
0x16f0   : > { %11030 = vmatprep.subr.mxu1 %v11945_v16 }
0x16f1   : > { %11038 = vmatmul.mubr.msk.f32.vlgmr.msra.gmra.mrb[36].mxu0 %vm2168_vm3, %v5318_v9  ;;  %v10081_v9 = vld [vmem:[%s13452_s7 + $0x40] sm:$0xff] }
0x16f2   : > { %11028 = vmatmul.mubr.msk.f32.vlgmr.msra.gmra.mrb[42].mxu1 %vm2168_vm3, %v5313_v10  ;;  %11046 = vmatpush3.msra.mxu0 %v10060_v48  ;;  %v10082_v10 = vld [vmem:[%s13452_s7 + $0x48] sm:$0xff]  ;;  %v10101_v48 = vld [vmem:[%s13444_s23 + $0x78] sm:$0xff] }
0x16f3   : > { %11032 = vmatprep.mubr.msk.f32.mxu1 %vm11946_vm2, %v11945_v16  ;;  %11031 = vmatpush3.msra.mxu1 %v5489_v18  ;;  %v11342_v12 = vpack.c.bf16 %v10082_v10, %v10081_v9  ;;  %v10119_v10 = vld [vmem:[%s13453_s8 + $0x3] ss:$0 sm:$0xff] }
0x16f4   : > { %11040 = vmatprep.subr.mxu1 %v11945_v16  ;;  %11050 = vmatprep.subr.mxu0 %v5232_v49 }
0x17c4   : > { %v5730_v19 = vpop.f32.mrb[36].mxu0 }
0x17c5   : > { %v5734_v50 = vmul.f32 0.35355338, %v5730_v19  ;;  %v5569_v20 = vpop.f32.mrb[42].mxu1  ;;  %v11039_v21 = vpop.f32.mrb[37].mxu0 }
0x17c6   : > { %v5573_v22 = vmul.f32 0.35355338, %v5569_v20  ;;  %v11029_v23 = vpop.f32.mrb[43].mxu1 }
0x17c7   : > { %v5735_v15 = vsel %vm2168_vm3, %v5734_v50, -inf }
0x17c8   : > { %5736 = vmax.xlane.f32.xlu1 %v5735_v15  ;;  %v5574_v13 = vsel %vm2168_vm3, %v5573_v22, -inf }
0x17c9   : > { %5575 = vmax.xlane.f32.xlu0 %v5574_v13 }
0x1855   : > { %v5737_v24 = vpop.xlane.xlu1 %5736 }
0x1856   : > { %v5738_v25 = vsub.f32 %v5734_v50, %v5737_v24  ;;  %v5576_v26 = vpop.xlane.xlu0 %5575 }
0x1857   : > { %v5577_v27 = vsub.f32 %v5573_v22, %v5576_v26 }
0x1858   : > { %v5739_v28 = vmul.f32 1.442695, %v5738_v25 }
0x1859   : > { %v5578_v29 = vmul.f32 1.442695, %v5577_v27 }
0x185a   : > { %11837 = vpow2.f32 %v5739_v28 }
0x185b   : > { %11839 = vpow2.f32 %v5578_v29 }
0x1864   : > { %v11838_v30 = vpop.eup %11837 }
0x1865   : > { %v11840_v31 = vpop.eup %11839  ;;  %v5741_v32 = vsel %vm2168_vm3, %v11838_v30, 0.0 }
0x1866   : > { %5742 = vadd.xlane.f32.xlu1 %v5741_v32  ;;  %v5580_v33 = vsel %vm2168_vm3, %v11840_v31, 0.0 }
0x1867   : > { %5581 = vadd.xlane.f32.xlu0 %v5580_v33 }
0x18f3   : > { %v5743_v34 = vpop.xlane.xlu1 %5742 }
0x18f4   : > { %v5582_v36 = vpop.xlane.xlu0 %5581 }
0x18f5   : > { %11841 = vrcp.f32 %v5582_v36 }
0x18f6   : > { %11843 = vrcp.f32 %v5743_v34  ;;  %v10086_v34 = vld [vmem:[%s13453_s8 + $0x2] ss:$0 sm:$0xff] }
0x18ff   : > { %v11842_v40 = vpop.eup %11841 }
0x1900   : > { %v5584_v41 = vmul.f32 %v11842_v40, %v11840_v31  ;;  %v11844_v43 = vpop.eup %11843 }
0x1901   : > { %v5745_v46 = vmul.f32 %v11844_v43, %v11838_v30  ;;  %v10099_v43 = vld [vmem:[%s13444_s23 + $0x68] sm:$0xff] }
0x1902   : > { %11033 = vmatmul.mubr.msk.f32.vlgmr.msra.gmra.mrb[44].mxu1 %vm2168_vm3, %v5584_v41 }
0x1903   : > { %11041 = vmatpush3.msra.mxu1 %v5494_v14  ;;  %11042 = vmatprep.mubr.msk.f32.mxu1 %vm11946_vm2, %v11945_v16  ;;  %v10084_v14 = vld [vmem:[%s13452_s7 + $0x58] sm:$0xff] }
0x1904   : > { %11327 = vmatprep.subr.bf16.mxu1 %v11326_v42  ;;  %v11346_v17 = vpack.c.bf16 %v10084_v14, %v10083_v11 }
0x1906   : > { %11043 = vmatmul.mubr.msk.f32.vlgmr.msra.gmra.mrb[46].mxu1 %vm2168_vm3, %v5745_v46 }
0x1907   : > { %11329 = vmatpush3.bf16.msra.mxu1 %v11326_v42  ;;  %11063 = vmatprep.mubr.msk.f32.mxu1 %vm1914_vm1, %v12522_v55  ;;  %v10098_v42 = vld [vmem:[%s13444_s23 + $0x60] sm:$0xff] }
0x1908   : > { %11331 = vmatprep.subr.bf16.mxu1 %v11330_v47  ;;  %v11350_v46 = vpack.c.bf16 %v10099_v43, %v10098_v42 }
0x190b   : > { %11333 = vmatpush3.bf16.msra.mxu1 %v11330_v47  ;;  %v10100_v47 = vld [vmem:[%s13444_s23 + $0x70] sm:$0xff] }
0x190c   : > { %11343 = vmatprep.subr.bf16.mxu1 %v11342_v12  ;;  %v11354_v52 = vpack.c.bf16 %v10101_v48, %v10100_v47  ;;  %v10128_v47 = vld [vmem:[%s13454_s29 + $0x18] sm:$0xff] }
0x190e   : > { %11064 = vmatmul.mubr.msk.f32.vlgmr.msra.gmra.mrb[48].mxu1 %vm1914_vm1, %v12524_v56 }
0x190f   : > { %11085 = vmatprep.mubr.msk.f32.mxu1 %vm1914_vm1, %v12502_v35  ;;  %11345 = vmatpush3.bf16.msra.mxu1 %v11342_v12 }
0x1910   : > { %11347 = vmatprep.subr.bf16.mxu1 %v11346_v17 }
0x1913   : > { %11349 = vmatpush3.bf16.msra.mxu1 %v11346_v17  ;;  %v10111_v17 = vld [vmem:[%s13448_s12 + $0x3] ss:$0 sm:$0xff] }
0x1914   : > { %11093 = vmatprep.subr.mxu1 %v11945_v16 }
0x1916   : > { %11086 = vmatmul.mubr.msk.f32.vlgmr.msra.gmra.mrb[50].mxu1 %vm1914_vm1, %v12509_v39 }
0x1917   : > { %11095 = vmatprep.mubr.msk.f32.mxu1 %vm11946_vm2, %v11945_v16 }
0x19d5   : > { %v5654_v51 = vpop.f32.mrb[44].mxu1 }
0x19d6   : > { %v11034_v54 = vpop.f32.mrb[45].mxu1  ;;  %11047 = vmatprep.mubr.msk.f32.mxu0 %vm2168_vm3, %v5654_v51 }
0x19d7   : > { %v10106_v54 = vld [vmem:[%s13443_s22 + $0x60] sm:$0xff] }
0x19d9   : > { %v5815_v58 = vpop.f32.mrb[46].mxu1 }
0x19da   : > { %v11044_v59 = vpop.f32.mrb[47].mxu1  ;;  %11048 = vmatmul.mubr.msk.f32.vlgmr.msra.gmra.mrb[38].mxu0 %vm2168_vm3, %v5815_v58 }
0x19db   : > { %11051 = vmatpush3.msra.mxu0 %v5232_v49  ;;  %11052 = vmatprep.mubr.msk.f32.mxu0 %vm2168_vm3, %v12594_v63  ;;  %v10078_v63 = vld [vmem:[%s13448_s12 + $0x2] ss:$0 sm:$0xff] }
0x19dc   : > { %11335 = vmatprep.subr.bf16.mxu0 %v11334_v57  ;;  %v10114_v59 = vld [vmem:[%s13452_s7 + $0x60] sm:$0xff] }
0x19e1   : > { %v11065_v0 = vpop.f32.mrb[48].mxu1 }
0x19e2   : > { %v6062_v2 = vpop.f32.mrb[49].mxu1  ;;  %11053 = vmatmul.mubr.msk.f32.vlgmr.msra.gmra.mrb[38].mxu0 %vm2168_vm3, %v12596_v1  ;;  %v6068_v8 = vadd.f32 %v11065_v0, %v10070_v4  ;;  %v10117_v0 = vld [vmem:[%s13452_s7 + $0x78] sm:$0xff] }
0x19e3   : > { %11337 = vmatpush3.bf16.msra.mxu0 %v11334_v57  ;;  %11074 = vmatprep.mubr.msk.f32.mxu0 %vm1914_vm1, %v12502_v35  ;;  %v6063_v6 = vadd.f32 %v10070_v4, %v6062_v2  ;;  %v10107_v57 = vld [vmem:[%s13443_s22 + $0x68] sm:$0xff]  ;;  %v11370_v2 = vpack.c.bf16 %v10117_v0, %v10116_v61 }
0x19e4   : > { %11339 = vmatprep.subr.bf16.mxu0 %v11338_v62  ;;  %v11358_v58 = vpack.c.bf16 %v10107_v57, %v10106_v54 }
0x19e7   : > { %11341 = vmatpush3.bf16.msra.mxu0 %v11338_v62  ;;  %v11366_v62 = vpack.c.bf16 %v10115_v60, %v10114_v59 }
0x19e8   : > { %11088 = vmatprep.subr.mxu0 %v11945_v16 }
0x19e9   : > { %v11087_v33 = vpop.f32.mrb[50].mxu1 }
0x19ea   : > { %11075 = vmatmul.mubr.msk.f32.vlgmr.msra.gmra.mrb[40].mxu0 %vm1914_vm1, %v12509_v39  ;;  %v6238_v36 = vpop.f32.mrb[51].mxu1  ;;  %v6244_v37 = vadd.f32 %v11087_v33, %v10086_v34 }
0x19eb   : > { %11090 = vmatprep.mubr.msk.f32.mxu0 %vm11946_vm2, %v11945_v16  ;;  %v6239_v38 = vadd.f32 %v10086_v34, %v6238_v36 }
0x19ed   : > { %11094 = vmatpush3.msra.mxu1 %v6239_v38 }
0x19ee   : > { %11103 = vmatprep.subr.mxu1 %v11945_v16 }
0x1abd   : > { %v11076_v3 = vpop.f32.mrb[40].mxu0 }
0x1abe   : > { %v6150_v1 = vpop.f32.mrb[41].mxu0  ;;  %v6156_v7 = vadd.f32 %v11076_v3, %v10078_v63  ;;  %v10108_v3 = vld [vmem:[%s13443_s22 + $0x70] sm:$0xff] }
0x1abf   : > { %v6151_v5 = vadd.f32 %v10078_v63, %v6150_v1  ;;  %v10109_v1 = vld [vmem:[%s13443_s22 + $0x78] sm:$0xff] }
0x1ac1   : > { %11089 = vmatpush3.xpose.msk.msra.mxu0 %vm2168_vm3, %v6151_v5  ;;  %v11362_v5 = vpack.c.bf16 %v10109_v1, %v10108_v3 }
0x1ac2   : > { %11098 = vmatprep.subr.mxu0 %v11945_v16 }
0x1ac4   : > { %11091 = vmatmul.mubr.msk.f32.vlgmr.msra.gmra.mrb[42].mxu0 %vm2168_vm3, %v6063_v6 }
0x1ac5   : > { %11099 = vmatpush3.xpose.msk.msra.mxu0 %vm2168_vm3, %v6156_v7  ;;  %11100 = vmatprep.mubr.msk.f32.mxu0 %vm11946_vm2, %v11945_v16 }
0x1ac6   : > { %11108 = vmatprep.subr.mxu0 %v10095_v53 }
0x1ac8   : > { %11101 = vmatmul.mubr.msk.f32.vlgmr.msra.gmra.mrb[44].mxu0 %vm2168_vm3, %v6068_v8 }
0x1ac9   : > { %11109 = vmatpush3.msra.mxu0 %v10095_v53  ;;  %v10131_v53 = vld [vmem:[%s13456_s3] ss:$0 sm:$0xff] }
0x1aca   : > { %11359 = vmatprep.subr.bf16.mxu0 %v11358_v58 }
0x1b97   : > { %v6319_v18 = vpop.f32.mrb[42].mxu0 }
0x1b98   : > { %v6323_v19 = vmul.f32 0.35355338, %v6319_v18  ;;  %v11092_v50 = vpop.f32.mrb[43].mxu0 }
0x1b9a   : > { %v6324_v20 = vsel %vm2168_vm3, %v6323_v19, -inf }
0x1b9b   : > { %6325 = vmax.xlane.f32.xlu0 %v6324_v20  ;;  %v6480_v21 = vpop.f32.mrb[44].mxu0 }
0x1b9c   : > { %v6484_v22 = vmul.f32 0.35355338, %v6480_v21  ;;  %v11102_v23 = vpop.f32.mrb[45].mxu0 }
0x1b9e   : > { %v6485_v15 = vsel %vm2168_vm3, %v6484_v22, -inf }
0x1b9f   : > { %6486 = vmax.xlane.f32.xlu1 %v6485_v15 }
0x1c28   : > { %v6326_v13 = vpop.xlane.xlu0 %6325 }
0x1c29   : > { %v6327_v24 = vsub.f32 %v6323_v19, %v6326_v13  ;;  %v10103_v19 = vld [vmem:[%s13451_s25 + $0x3] ss:$0 sm:$0xff] }
0x1c2b   : > { %v6328_v25 = vmul.f32 1.442695, %v6327_v24 }
0x1c2c   : > { %v6487_v26 = vpop.xlane.xlu1 %6486 }
0x1c2d   : > { %11845 = vpow2.f32 %v6328_v25  ;;  %v6488_v27 = vsub.f32 %v6484_v22, %v6487_v26 }
0x1c2f   : > { %v6489_v28 = vmul.f32 1.442695, %v6488_v27 }
0x1c31   : > { %11847 = vpow2.f32 %v6489_v28 }
0x1c37   : > { %v11846_v29 = vpop.eup %11845 }
0x1c38   : > { %v6330_v30 = vsel %vm2168_vm3, %v11846_v29, 0.0 }
0x1c39   : > { %6331 = vadd.xlane.f32.xlu0 %v6330_v30 }
0x1c3b   : > { %v11848_v31 = vpop.eup %11847 }
0x1c3c   : > { %v6491_v32 = vsel %vm2168_vm3, %v11848_v31, 0.0 }
0x1c3d   : > { %6492 = vadd.xlane.f32.xlu1 %v6491_v32 }
0x1cc6   : > { %v6332_v40 = vpop.xlane.xlu0 %6331 }
0x1cc7   : > { %11849 = vrcp.f32 %v6332_v40 }
0x1cca   : > { %v6493_v41 = vpop.xlane.xlu1 %6492 }
0x1ccb   : > { %11851 = vrcp.f32 %v6493_v41 }
0x1cd1   : > { %v11850_v44 = vpop.eup %11849 }
0x1cd2   : > { %v6334_v45 = vmul.f32 %v11850_v44, %v11846_v29 }
0x1cd4   : > { %11096 = vmatmul.mubr.msk.f32.vlgmr.msra.gmra.mrb[52].mxu1 %vm2168_vm3, %v6334_v45 }
0x1cd5   : > { %v11852_v49 = vpop.eup %11851  ;;  %11104 = vmatpush3.msra.mxu1 %v6244_v37  ;;  %11105 = vmatprep.mubr.msk.f32.mxu1 %vm11946_vm2, %v11945_v16 }
0x1cd6   : > { %v6495_v51 = vmul.f32 %v11852_v49, %v11848_v31  ;;  %11351 = vmatprep.subr.bf16.mxu1 %v11350_v46 }
0x1cd8   : > { %11106 = vmatmul.mubr.msk.f32.vlgmr.msra.gmra.mrb[54].mxu1 %vm2168_vm3, %v6495_v51 }
0x1cd9   : > { %11353 = vmatpush3.bf16.msra.mxu1 %v11350_v46  ;;  %11121 = vmatprep.mubr.msk.f32.mxu1 %vm1914_vm1, %v12522_v55 }
0x1cda   : > { %11355 = vmatprep.subr.bf16.mxu1 %v11354_v52 }
0x1cdd   : > { %11357 = vmatpush3.bf16.msra.mxu1 %v11354_v52 }
0x1cde   : > { %11367 = vmatprep.subr.bf16.mxu1 %v11366_v62 }
0x1ce0   : > { %11122 = vmatmul.mubr.msk.f32.vlgmr.msra.gmra.mrb[56].mxu1 %vm1914_vm1, %v12524_v56 }
0x1ce1   : > { %11143 = vmatprep.mubr.msk.f32.mxu1 %vm1914_vm1, %v12502_v35  ;;  %11369 = vmatpush3.bf16.msra.mxu1 %v11366_v62 }
0x1ce2   : > { %11371 = vmatprep.subr.bf16.mxu1 %v11370_v2 }
0x1ce5   : > { %11373 = vmatpush3.bf16.msra.mxu1 %v11370_v2 }
0x1ce6   : > { %11156 = vmatprep.subr.mxu1 %v11945_v16 }
0x1ce8   : > { %11144 = vmatmul.mubr.msk.f32.vlgmr.msra.gmra.mrb[58].mxu1 %vm1914_vm1, %v12509_v39 }
0x1ce9   : > { %11158 = vmatprep.mubr.msk.f32.mxu1 %vm11946_vm2, %v11945_v16 }
0x1da7   : > { %v6404_v63 = vpop.f32.mrb[52].mxu1 }
0x1da8   : > { %v11097_v4 = vpop.f32.mrb[53].mxu1  ;;  %11110 = vmatprep.mubr.msk.f32.mxu0 %vm2168_vm3, %v6404_v63 }
0x1dab   : > { %v6565_v6 = vpop.f32.mrb[54].mxu1 }
0x1dac   : > { %v11107_v7 = vpop.f32.mrb[55].mxu1  ;;  %11111 = vmatmul.mubr.msk.f32.vlgmr.msra.gmra.mrb[38].mxu0 %vm2168_vm3, %v6565_v6 }
0x1dad   : > { %11361 = vmatpush3.bf16.msra.mxu0 %v11358_v58  ;;  %11132 = vmatprep.mubr.msk.f32.mxu0 %vm1914_vm1, %v12502_v35 }
0x1dae   : > { %11363 = vmatprep.subr.bf16.mxu0 %v11362_v5 }
0x1db1   : > { %11365 = vmatpush3.bf16.msra.mxu0 %v11362_v5 }
0x1db2   : > { %11146 = vmatprep.subr.mxu0 %v11945_v16 }
0x1db3   : > { %v11123_v8 = vpop.f32.mrb[56].mxu1 }
0x1db4   : > { %v6733_v9 = vpop.f32.mrb[57].mxu1  ;;  %11133 = vmatmul.mubr.msk.f32.vlgmr.msra.gmra.mrb[46].mxu0 %vm1914_vm1, %v12509_v39  ;;  %v6739_v21 = vadd.f32 %v11123_v8, %v10103_v19  ;;  %v7381_v8 = vld [vmem:[%s12242_s20 + $0x8] sm:$0xff] }
0x1db5   : > { %11148 = vmatprep.mubr.msk.f32.mxu0 %vm11946_vm2, %v11945_v16  ;;  %v6734_v39 = vadd.f32 %v10103_v19, %v6733_v9  ;;  %v7397_v9 = vld [vmem:[%s12242_s20 + $0x88] sm:$0xff] }
0x1dbb   : > { %v11145_v11 = vpop.f32.mrb[58].mxu1 }
0x1dbc   : > { %v6915_v12 = vadd.f32 %v11145_v11, %v10119_v10  ;;  %v6909_v14 = vpop.f32.mrb[59].mxu1  ;;  %v11374_v11 = vpack.c.bf16 %v7397_v9, %v7381_v8  ;;  %v7391_v8 = vld [vmem:[%s12242_s20 + $0x58] sm:$0xff] }
0x1dbd   : > { %v6910_v22 = vadd.f32 %v10119_v10, %v6909_v14  ;;  %v7383_v10 = vld [vmem:[%s12242_s20 + $0x18] sm:$0xff]  ;;  %v7380_v14 = vld [vmem:[%s12242_s20] sm:$0xff] }
0x1dbe   : > { %v7407_v9 = vld [vmem:[%s12242_s20 + $0xd8] sm:$0xff] }
0x1e87   : > { %v11134_v18 = vpop.f32.mrb[46].mxu0 }
0x1e88   : > { %v6827_v35 = vadd.f32 %v11134_v18, %v10111_v17  ;;  %v6821_v50 = vpop.f32.mrb[47].mxu0 }
0x1e89   : > { %v6822_v20 = vadd.f32 %v10111_v17, %v6821_v50  ;;  %v7396_v17 = vld [vmem:[%s12242_s20 + $0x80] sm:$0xff]  ;;  %v7398_v50 = vld [vmem:[%s12242_s20 + $0x90] sm:$0xff] }
0x1e8a   : > { %11157 = vmatpush3.xpose.msk.msra.mxu1 %vm2168_vm3, %v6827_v35  ;;  %v11376_v19 = vpack.c.bf16 %v7396_v17, %v7380_v14  ;;  %v7382_v35 = vld [vmem:[%s12242_s20 + $0x10] sm:$0xff]  ;;  %v7404_v17 = vld [vmem:[%s12242_s20 + $0xc0] sm:$0xff] }
0x1e8b   : > { %11147 = vmatpush3.xpose.msk.msra.mxu0 %vm2168_vm3, %v6822_v20  ;;  %11375 = vmatprep.subr.bf16.mxu1 %v11374_v11  ;;  %v11384_v20 = vpack.c.bf16 %v7398_v50, %v7382_v35  ;;  %v11414_v50 = vpack.c.bf16 %v7407_v9, %v7391_v8  ;;  %v8233_v8 = vld [vmem:[%s12245_s28 + $0x198] sm:$0xff] }
0x1e8c   : > { %11151 = vmatprep.subr.mxu0 %v11945_v16 }
0x1e8d   : > { %11159 = vmatmul.mubr.msk.f32.vlgmr.msra.gmra.mrb[60].mxu1 %vm2168_vm3, %v6739_v21  ;;  %v7413_v21 = vld [vmem:[%s12242_s20 + $0x108] sm:$0xff] }
0x1e8e   : > { %11149 = vmatmul.mubr.msk.f32.vlgmr.msra.gmra.mrb[48].mxu0 %vm2168_vm3, %v6734_v39  ;;  %7598 = vmatprep.mubr.f32.mxu1 %v11945_v16  ;;  %v7415_v39 = vld [vmem:[%s12242_s20 + $0x118] sm:$0xff] }
0x1e8f   : > { %11152 = vmatpush3.msra.mxu0 %v6910_v22  ;;  %11153 = vmatprep.mubr.msk.f32.mxu0 %vm11946_vm2, %v11945_v16  ;;  %v7429_v22 = vld [vmem:[%s12242_s20 + $0x188] sm:$0xff] }
0x1e90   : > { %11161 = vmatprep.subr.mxu0 %v11945_v16  ;;  %11377 = vmatpush1.bf16.msra.mxu1 %v11376_v19  ;;  %v7406_v19 = vld [vmem:[%s12242_s20 + $0xd0] sm:$0xff] }
0x1f60   : > { %v7151_v23 = vpop.f32.mrb[60].mxu1 }
0x1f61   : > { %v7155_v15 = vmul.f32 0.35355338, %v7151_v23  ;;  %v6990_v13 = vpop.f32.mrb[48].mxu0  ;;  %v11160_v24 = vpop.f32.mrb[61].mxu1  ;;  %v11378_v23 = vpack.c.bf16 %v7429_v22, %v7413_v21  ;;  %v7437_v21 = vld [vmem:[%s12242_s20 + $0x1c8] sm:$0xff]  ;;  %v7423_v22 = vld [vmem:[%s12242_s20 + $0x158] sm:$0xff] }
0x1f62   : > { %v6994_v25 = vmul.f32 0.35355338, %v6990_v13  ;;  %v11150_v26 = vpop.f32.mrb[49].mxu0  ;;  %v7412_v13 = vld [vmem:[%s12242_s20 + $0x100] sm:$0xff] }
0x1f63   : > { %v7156_v27 = vsel %vm2168_vm3, %v7155_v15, -inf  ;;  %v7428_v24 = vld [vmem:[%s12242_s20 + $0x180] sm:$0xff]  ;;  %11379 = vmatprep.subr.bf16.mxu1 %v11378_v23 }
0x1f64   : > { %7157 = vmax.xlane.f32.xlu1 %v7156_v27  ;;  %v6995_v28 = vsel %vm2168_vm3, %v6994_v25, -inf  ;;  %v11380_v26 = vpack.c.bf16 %v7428_v24, %v7412_v13  ;;  %v7414_v27 = vld [vmem:[%s12242_s20 + $0x110] sm:$0xff]  ;;  %v7420_v13 = vld [vmem:[%s12242_s20 + $0x140] sm:$0xff] }
0x1f65   : > { %6996 = vmax.xlane.f32.xlu0 %v6995_v28  ;;  %v7430_v28 = vld [vmem:[%s12242_s20 + $0x190] sm:$0xff]  ;;  %v7436_v24 = vld [vmem:[%s12242_s20 + $0x1c0] sm:$0xff] }
0x1f66   : > { %11381 = vmatpush1.bf16.msra.mxu1 %v11380_v26  ;;  %v7438_v26 = vld [vmem:[%s12242_s20 + $0x1d0] sm:$0xff] }
0x1ff1   : > { %v7158_v29 = vpop.xlane.xlu1 %7157 }
0x1ff2   : > { %v7159_v30 = vsub.f32 %v7155_v15, %v7158_v29  ;;  %v6997_v31 = vpop.xlane.xlu0 %6996  ;;  %v7431_v15 = vld [vmem:[%s12242_s20 + $0x198] sm:$0xff]  ;;  %v11388_v29 = vpack.c.bf16 %v7430_v28, %v7414_v27 }
0x1ff3   : > { %v6998_v32 = vsub.f32 %v6994_v25, %v6997_v31  ;;  %v11386_v25 = vpack.c.bf16 %v7431_v15, %v7415_v39  ;;  %v7401_v31 = vld [vmem:[%s12242_s20 + $0xa8] sm:$0xff]  ;;  %v7439_v39 = vld [vmem:[%s12242_s20 + $0x1d8] sm:$0xff] }
0x1ff4   : > { %v7160_v33 = vmul.f32 1.442695, %v7159_v30  ;;  %v7385_v30 = vld [vmem:[%s12242_s20 + $0x28] sm:$0xff]  ;;  %v11418_v28 = vpack.c.bf16 %v7439_v39, %v7423_v22 }
0x1ff5   : > { %v6999_v34 = vmul.f32 1.442695, %v6998_v32  ;;  %v7387_v32 = vld [vmem:[%s12242_s20 + $0x38] sm:$0xff]  ;;  %v8235_v22 = vld [vmem:[%s12245_s28 + $0x1a8] sm:$0xff] }
0x1ff6   : > { %11853 = vpow2.f32 %v7160_v33  ;;  %v11390_v33 = vpack.c.bf16 %v7401_v31, %v7385_v30  ;;  %v7409_v30 = vld [vmem:[%s12242_s20 + $0xe8] sm:$0xff]  ;;  %v7395_v31 = vld [vmem:[%s12242_s20 + $0x78] sm:$0xff] }
0x1ff7   : > { %11855 = vpow2.f32 %v6999_v34  ;;  %v7403_v34 = vld [vmem:[%s12242_s20 + $0xb8] sm:$0xff] }
0x1ff8   : > { %11391 = vmatprep.subr.bf16.mxu1 %v11390_v33  ;;  %v11412_v33 = vpack.c.bf16 %v7436_v24, %v7420_v13  ;;  %v8187_v13 = vld [vmem:[%s12245_s28 + $0x28] sm:$0xff] }
0x2000   : > { %v11854_v36 = vpop.eup %11853 }
0x2001   : > { %v11856_v37 = vpop.eup %11855  ;;  %v7162_v38 = vsel %vm2168_vm3, %v11854_v36, 0.0 }
0x2002   : > { %7163 = vadd.xlane.f32.xlu1 %v7162_v38  ;;  %v7001_v40 = vsel %vm2168_vm3, %v11856_v37, 0.0 }
0x2003   : > { %7002 = vadd.xlane.f32.xlu0 %v7001_v40 }
0x208f   : > { %v7164_v41 = vpop.xlane.xlu1 %7163 }
0x2090   : > { %v7003_v42 = vpop.xlane.xlu0 %7002 }
0x2091   : > { %11857 = vrcp.f32 %v7003_v42 }
0x2092   : > { %11859 = vrcp.f32 %v7164_v41 }
0x209b   : > { %v11858_v43 = vpop.eup %11857 }
0x209c   : > { %v7005_v44 = vmul.f32 %v11858_v43, %v11856_v37  ;;  %v11860_v45 = vpop.eup %11859 }
0x209d   : > { %v7166_v46 = vmul.f32 %v11860_v45, %v11854_v36  ;;  %v11398_v36 = vpack.c.bf16 %v7403_v34, %v7387_v32  ;;  %v7411_v32 = vld [vmem:[%s12242_s20 + $0xf8] sm:$0xff] }
0x209e   : > { %11154 = vmatmul.mubr.msk.f32.vlgmr.msra.gmra.mrb[50].mxu0 %vm2168_vm3, %v7005_v44 }
0x209f   : > { %11162 = vmatpush3.msra.mxu0 %v6915_v12  ;;  %11163 = vmatprep.mubr.msk.f32.mxu0 %vm11946_vm2, %v11945_v16  ;;  %v7399_v12 = vld [vmem:[%s12242_s20 + $0x98] sm:$0xff] }
0x20a0   : > { %11166 = vmatprep.subr.mxu0 %v10128_v47  ;;  %v11382_v18 = vpack.c.bf16 %v7399_v12, %v7383_v10  ;;  %v7388_v12 = vld [vmem:[%s12242_s20 + $0x40] sm:$0xff] }
0x20a1   : > { %v11408_v23 = vpack.c.bf16 %v7404_v17, %v7388_v12  ;;  %v8185_v12 = vld [vmem:[%s12245_s28 + $0x18] sm:$0xff] }
0x20a2   : > { %11164 = vmatmul.mubr.msk.f32.vlgmr.msra.gmra.mrb[52].mxu0 %vm2168_vm3, %v7166_v46  ;;  %v10132_v46 = vld [vmem:[%s13459_s6] ss:$0 sm:$0xff] }
0x20a3   : > { %11167 = vmatpush3.msra.mxu0 %v10128_v47  ;;  %v7384_v47 = vld [vmem:[%s12242_s20 + $0x20] sm:$0xff] }
0x20a4   : > { %11383 = vmatprep.subr.bf16.mxu0 %v11382_v18  ;;  %v7390_v18 = vld [vmem:[%s12242_s20 + $0x50] sm:$0xff] }
0x20a5   : > { %v11416_v15 = vpack.c.bf16 %v7406_v19, %v7390_v18  ;;  %v8216_v19 = vld [vmem:[%s12245_s28 + $0x110] sm:$0xff] }
0x2171   : > { %v7075_v48 = vpop.f32.mrb[50].mxu0 }
0x2172   : > { %v11155_v49 = vpop.f32.mrb[51].mxu0  ;;  %11168 = vmatprep.mubr.msk.f32.mxu0 %vm2168_vm3, %v7075_v48 }
0x2175   : > { %v7236_v51 = vpop.f32.mrb[52].mxu0 }
0x2176   : > { %v11165_v52 = vpop.f32.mrb[53].mxu0  ;;  %11169 = vmatmul.mubr.msk.f32.vlgmr.msra.gmra.mrb[38].mxu0 %vm2168_vm3, %v7236_v51  ;;  %v7400_v51 = vld [vmem:[%s12242_s20 + $0xa0] sm:$0xff] }
0x2177   : > { %7675 = vmatprep.mubr.f32.mxu0 %v11945_v16  ;;  %11385 = vmatpush1.bf16.msra.mxu0 %v11384_v20  ;;  %v7386_v52 = vld [vmem:[%s12242_s20 + $0x30] sm:$0xff]  ;;  %v7421_v20 = vld [vmem:[%s12242_s20 + $0x148] sm:$0xff] }
0x2178   : > { %11387 = vmatprep.subr.bf16.mxu0 %v11386_v25  ;;  %v7422_v25 = vld [vmem:[%s12242_s20 + $0x150] sm:$0xff]  ;;  %v11410_v27 = vpack.c.bf16 %v7437_v21, %v7421_v20  ;;  %v8203_v20 = vld [vmem:[%s12245_s28 + $0xa8] sm:$0xff]  ;;  %v8234_v21 = vld [vmem:[%s12245_s28 + $0x1a0] sm:$0xff] }
0x2179   : > { %v11420_v34 = vpack.c.bf16 %v7438_v26, %v7422_v25  ;;  %v11478_v25 = vpack.c.bf16 %v8235_v22, %v8234_v21  ;;  %v8218_v26 = vld [vmem:[%s12245_s28 + $0x120] sm:$0xff]  ;;  %v8244_v21 = vld [vmem:[%s12245_s28 + $0x1f0] sm:$0xff] }
0x217b   : > { %11389 = vmatpush1.bf16.msra.mxu0 %v11388_v29  ;;  %v7393_v29 = vld [vmem:[%s12242_s20 + $0x68] sm:$0xff] }
0x217c   : > { %11399 = vmatprep.subr.bf16.mxu0 %v11398_v36  ;;  %v7392_v36 = vld [vmem:[%s12242_s20 + $0x60] sm:$0xff] }
0x2249   : > { %v11170_v54 = vpop.f32.mrb[38].mxu0 }
0x224a   : > { %v7333_v57 = vadd.f32 %v11170_v54, %v10131_v53  ;;  %v7314_v58 = vpop.f32.mrb[39].mxu0  ;;  %v10133_v54 = vld [vmem:[%s13460_s1] ss:$0 sm:$0xff] }
0x224b   : > { %v7332_v59 = vadd.f32 %v10131_v53, %v7314_v58  ;;  %v7402_v53 = vld [vmem:[%s12242_s20 + $0xb0] sm:$0xff] }
0x224c   : > { %v7335_v60 = vadd.f32 %v7333_v57, %v12524_v56  ;;  %v7417_v57 = vld [vmem:[%s12242_s20 + $0x128] sm:$0xff] }
0x224d   : > { %v7334_v61 = vadd.f32 %v7332_v59, %v12522_v55  ;;  %v7433_v59 = vld [vmem:[%s12242_s20 + $0x1a8] sm:$0xff] }
0x224e   : > { %v7341_v62 = vsel %vm1914_vm1, %v7335_v60, 0.0 }
0x224f   : > { %7342 = vadd.xlane.f32.xlu1 %v7341_v62  ;;  %v7338_v0 = vsel %vm1914_vm1, %v7334_v61, 0.0  ;;  %v11392_v62 = vpack.c.bf16 %v7400_v51, %v7384_v47  ;;  %v7440_v51 = vld [vmem:[%s12242_s20 + $0x1e0] sm:$0xff] }
0x2250   : > { %7339 = vadd.xlane.f32.xlu0 %v7338_v0  ;;  %v11400_v0 = vpack.c.bf16 %v7402_v53, %v7386_v52  ;;  %v7426_v52 = vld [vmem:[%s12242_s20 + $0x170] sm:$0xff] }
0x2251   : > { %v7442_v53 = vld [vmem:[%s12242_s20 + $0x1f0] sm:$0xff] }
0x22dc   : > { %v7343_v2 = vpop.xlane.xlu1 %7342 }
0x22dd   : > { %v7345_v63 = vmul.f32 0.03125, %v7343_v2  ;;  %v7340_v3 = vpop.xlane.xlu0 %7339  ;;  %v7416_v2 = vld [vmem:[%s12242_s20 + $0x120] sm:$0xff] }
0x22de   : > { %v7344_v1 = vmul.f32 0.03125, %v7340_v3 }
0x22df   : > { %v7347_v4 = vsub.f32 %v7335_v60, %v7345_v63  ;;  %v7419_v60 = vld [vmem:[%s12242_s20 + $0x138] sm:$0xff] }
0x22e0   : > { %v7346_v56 = vsub.f32 %v7334_v61, %v7344_v1  ;;  %v7435_v61 = vld [vmem:[%s12242_s20 + $0x1b8] sm:$0xff]  ;;  %v7432_v1 = vld [vmem:[%s12242_s20 + $0x1a0] sm:$0xff] }
0x22e1   : > { %v7349_v55 = vmul.f32 %v7347_v4, %v7347_v4  ;;  %v11396_v10 = vpack.c.bf16 %v7432_v1, %v7416_v2  ;;  %v8182_v2 = vld [vmem:[%s12245_s28] sm:$0xff] }
0x22e2   : > { %v7348_v5 = vmul.f32 %v7346_v56, %v7346_v56 }
0x22e3   : > { %v7353_v6 = vsel %vm1914_vm1, %v7349_v55, 0.0  ;;  %v11394_v55 = vpack.c.bf16 %v7433_v59, %v7417_v57  ;;  %v8199_v59 = vld [vmem:[%s12245_s28 + $0x88] sm:$0xff] }
0x22e4   : > { %7354 = vadd.xlane.f32.xlu1 %v7353_v6  ;;  %v7350_v7 = vsel %vm1914_vm1, %v7348_v5, 0.0  ;;  %v11402_v5 = vpack.c.bf16 %v7435_v61, %v7419_v60  ;;  %v7389_v6 = vld [vmem:[%s12242_s20 + $0x48] sm:$0xff]  ;;  %v8230_v60 = vld [vmem:[%s12245_s28 + $0x180] sm:$0xff] }
0x22e5   : > { %7351 = vadd.xlane.f32.xlu0 %v7350_v7  ;;  %v7405_v7 = vld [vmem:[%s12242_s20 + $0xc8] sm:$0xff] }
0x22e6   : > { %v11406_v35 = vpack.c.bf16 %v7405_v7, %v7389_v6  ;;  %v8231_v61 = vld [vmem:[%s12245_s28 + $0x188] sm:$0xff]  ;;  %v8201_v6 = vld [vmem:[%s12245_s28 + $0x98] sm:$0xff]  ;;  %v8232_v7 = vld [vmem:[%s12245_s28 + $0x190] sm:$0xff] }
0x22e7   : > { %v11474_v18 = vpack.c.bf16 %v8233_v8, %v8232_v7 }
0x2371   : > { %v7355_v37 = vpop.xlane.xlu1 %7354 }
0x2372   : > { %v7357_v38 = vmul.f32 0.03125, %v7355_v37  ;;  %v7352_v40 = vpop.xlane.xlu0 %7351  ;;  %v7408_v37 = vld [vmem:[%s12242_s20 + $0xe0] sm:$0xff] }
0x2373   : > { %v7356_v41 = vmul.f32 0.03125, %v7352_v40  ;;  %v7410_v40 = vld [vmem:[%s12242_s20 + $0xf0] sm:$0xff]  ;;  %v11424_v47 = vpack.c.bf16 %v7408_v37, %v7392_v36 }
0x2374   : > { %v7359_v42 = vadd.f32 1e-05, %v7357_v38  ;;  %v7394_v38 = vld [vmem:[%s12242_s20 + $0x70] sm:$0xff] }
0x2375   : > { %v7358_v43 = vadd.f32 1e-05, %v7356_v41  ;;  %v11422_v41 = vpack.c.bf16 %v7409_v30, %v7393_v29  ;;  %v8236_v29 = vld [vmem:[%s12245_s28 + $0x1b0] sm:$0xff]  ;;  %v8237_v30 = vld [vmem:[%s12245_s28 + $0x1b8] sm:$0xff] }
0x2376   : > { %11861 = vrsqrt.f32 %v7359_v42  ;;  %v11430_v42 = vpack.c.bf16 %v7411_v32, %v7395_v31  ;;  %v11482_v37 = vpack.c.bf16 %v8237_v30, %v8236_v29  ;;  %v8294_v29 = vld [vmem:[%s12245_s28 + $0x380] sm:$0xff] }
0x2377   : > { %11863 = vrsqrt.f32 %v7358_v43  ;;  %v7425_v43 = vld [vmem:[%s12242_s20 + $0x168] sm:$0xff] }
0x2380   : > { %v11862_v44 = vpop.eup %11861 }
0x2381   : > { %v11864_v45 = vpop.eup %11863  ;;  %v7363_v48 = vmul.f32 %v11862_v44, %v7347_v4  ;;  %v7418_v4 = vld [vmem:[%s12242_s20 + $0x130] sm:$0xff]  ;;  %v7441_v44 = vld [vmem:[%s12242_s20 + $0x1e8] sm:$0xff] }
0x2382   : > { %v7362_v49 = vmul.f32 %v11864_v45, %v7346_v56  ;;  %v7434_v56 = vld [vmem:[%s12242_s20 + $0x1b0] sm:$0xff]  ;;  %v7427_v45 = vld [vmem:[%s12242_s20 + $0x178] sm:$0xff] }
0x2383   : > { %v7371_v63 = vmul.f32 %v10132_v46, %v7363_v48  ;;  %v11404_v11 = vpack.c.bf16 %v7434_v56, %v7418_v4  ;;  %v11432_v48 = vpack.c.bf16 %v7410_v40, %v7394_v38  ;;  %v11470_v4 = vpack.c.bf16 %v8231_v61, %v8230_v60  ;;  %v8214_v56 = vld [vmem:[%s12245_s28 + $0x100] sm:$0xff]  ;;  %v8220_v38 = vld [vmem:[%s12245_s28 + $0x130] sm:$0xff]  ;;  %v8221_v40 = vld [vmem:[%s12245_s28 + $0x138] sm:$0xff] }
0x2384   : > { %v7370_v58 = vmul.f32 %v10132_v46, %v7362_v49  ;;  %v7443_v46 = vld [vmem:[%s12242_s20 + $0x1f8] sm:$0xff]  ;;  %v7424_v49 = vld [vmem:[%s12242_s20 + $0x160] sm:$0xff]  ;;  %s13461_s20 = sld [smem:[#allocation60_spill]] }
0x2385   : > { %v12791_v14 = vadd.f32 %v10133_v54, %v7371_v63  ;;  %v11434_v57 = vpack.c.bf16 %v7443_v46, %v7427_v45  ;;  %v8183_v63 = vld [vmem:[%s12245_s28 + $0x8] sm:$0xff]  ;;  %v11484_v46 = vpack.c.bf16 %v8221_v40, %v8220_v38 }
0x2386   : > { %v12777_v3 = vadd.f32 %v10133_v54, %v7370_v58  ;;  %v11426_v54 = vpack.c.bf16 %v7441_v44, %v7425_v43  ;;  %v8198_v58 = vld [vmem:[%s12245_s28 + $0x80] sm:$0xff]  ;;  %v11440_v9 = vpack.c.bf16 %v8183_v63, %v8182_v2  ;;  %v8239_v44 = vld [vmem:[%s12245_s28 + $0x1c8] sm:$0xff] }
0x2387   : > { %v11438_v1 = vpack.c.bf16 %v8199_v59, %v8198_v58  ;;  %v8238_v43 = vld [vmem:[%s12245_s28 + $0x1c0] sm:$0xff]  ;;  %v8240_v58 = vld [vmem:[%s12245_s28 + $0x1d0] sm:$0xff]  ;;  %v8241_v59 = vld [vmem:[%s12245_s28 + $0x1d8] sm:$0xff] }
0x2388   : > { %10134 = vmatmul.mubr.msk.f32.vlgmr.msra.gmra.mrb[62].mxu1 %vm1914_vm1, %v12777_v3  ;;  %10136 = vmatmul.mubr.msk.f32.vlgmr.msra.gmra.mrb[54].mxu0 %vm1914_vm1, %v12777_v3  ;;  %v11490_v63 = vpack.c.bf16 %v8241_v59, %v8240_v58 }
0x2389   : > { %11393 = vmatpush1.bf16.msra.mxu1 %v11392_v62  ;;  %11401 = vmatpush1.bf16.msra.mxu0 %v11400_v0  ;;  %v11428_v62 = vpack.c.bf16 %v7440_v51, %v7424_v49  ;;  %v11436_v0 = vpack.c.bf16 %v7442_v53, %v7426_v52  ;;  %v11486_v51 = vpack.c.bf16 %v8239_v44, %v8238_v43  ;;  %v8222_v52 = vld [vmem:[%s12245_s28 + $0x140] sm:$0xff]  ;;  %v8223_v53 = vld [vmem:[%s12245_s28 + $0x148] sm:$0xff] }
0x238a   : > { %7604 = vmatprep.mubr.f32.mxu1 %v11945_v16  ;;  %7681 = vmatprep.mubr.f32.mxu0 %v11945_v16  ;;  %v11488_v61 = vpack.c.bf16 %v8223_v53, %v8222_v52  ;;  %v12935_v38 = vld [vmem:[%s13461_s20] sm:$0xff]  ;;  %v8279_v53 = vld [vmem:[%s12245_s28 + $0x308] sm:$0xff] }
0x238b   : > { %11395 = vmatprep.subr.bf16.mxu1 %v11394_v55  ;;  %11403 = vmatprep.subr.bf16.mxu0 %v11402_v5  ;;  %v8215_v55 = vld [vmem:[%s12245_s28 + $0x108] sm:$0xff]  ;;  %v8200_v5 = vld [vmem:[%s12245_s28 + $0x90] sm:$0xff]  ;;  %v8278_v52 = vld [vmem:[%s12245_s28 + $0x300] sm:$0xff] }
0x238c   : > { %10135 = vmatmul.mubr.msk.f32.gmra.mrb[64].mxu1 %vm1914_vm1, %v12791_v14  ;;  %10137 = vmatmul.mubr.msk.f32.gmra.mrb[56].mxu0 %vm1914_vm1, %v12791_v14  ;;  %v11442_v17 = vpack.c.bf16 %v8201_v6, %v8200_v5  ;;  %v8242_v5 = vld [vmem:[%s12245_s28 + $0x1e0] sm:$0xff]  ;;  %v8243_v6 = vld [vmem:[%s12245_s28 + $0x1e8] sm:$0xff] }
0x238d   : > { %11397 = vmatpush1.bf16.msra.mxu1 %v11396_v10  ;;  %11405 = vmatpush1.bf16.msra.mxu0 %v11404_v11  ;;  %v11472_v10 = vpack.c.bf16 %v8215_v55, %v8214_v56  ;;  %v8184_v11 = vld [vmem:[%s12245_s28 + $0x10] sm:$0xff]  ;;  %v8210_v56 = vld [vmem:[%s12245_s28 + $0xe0] sm:$0xff]  ;;  %v8211_v55 = vld [vmem:[%s12245_s28 + $0xe8] sm:$0xff] }
0x238e   : > { %7752 = vmatprep.mubr.f32.mxu1 %v11945_v16  ;;  %7829 = vmatprep.mubr.f32.mxu0 %v11945_v16  ;;  %v11444_v39 = vpack.c.bf16 %v8185_v12, %v8184_v11  ;;  %v11494_v11 = vpack.c.bf16 %v8243_v6, %v8242_v5  ;;  %v8195_v12 = vld [vmem:[%s12245_s28 + $0x68] sm:$0xff]  ;;  %v8248_v5 = vld [vmem:[%s12245_s28 + $0x210] sm:$0xff] }
0x238f   : > { %11407 = vmatprep.subr.bf16.mxu1 %v11406_v35  ;;  %11415 = vmatprep.subr.bf16.mxu0 %v11414_v50  ;;  %v8217_v35 = vld [vmem:[%s12245_s28 + $0x118] sm:$0xff]  ;;  %v8202_v50 = vld [vmem:[%s12245_s28 + $0xa0] sm:$0xff] }
0x2390   : > { %10138 = vmatmul.mubr.msk.f32.vlgmr.msra.gmra.mrb[66].mxu1 %vm1914_vm1, %v12777_v3  ;;  %10140 = vmatmul.mubr.msk.f32.vlgmr.msra.gmra.mrb[58].mxu0 %vm1914_vm1, %v12777_v3  ;;  %v11446_v24 = vpack.c.bf16 %v8203_v20, %v8202_v50  ;;  %v8212_v50 = vld [vmem:[%s12245_s28 + $0xf0] sm:$0xff]  ;;  %v8213_v20 = vld [vmem:[%s12245_s28 + $0xf8] sm:$0xff] }
0x2391   : > { %11409 = vmatpush1.bf16.msra.mxu1 %v11408_v23  ;;  %11417 = vmatpush1.bf16.msra.mxu0 %v11416_v15  ;;  %v11476_v23 = vpack.c.bf16 %v8217_v35, %v8216_v19  ;;  %v8186_v15 = vld [vmem:[%s12245_s28 + $0x20] sm:$0xff]  ;;  %v11466_v22 = vpack.c.bf16 %v8213_v20, %v8212_v50 }
0x2392   : > { %7758 = vmatprep.mubr.f32.mxu1 %v11945_v16  ;;  %7835 = vmatprep.mubr.f32.mxu0 %v11945_v16  ;;  %v11448_v31 = vpack.c.bf16 %v8187_v13, %v8186_v15  ;;  %v8197_v15 = vld [vmem:[%s12245_s28 + $0x78] sm:$0xff] }
0x2393   : > { %11411 = vmatprep.subr.bf16.mxu1 %v11410_v27  ;;  %11419 = vmatprep.subr.bf16.mxu0 %v11418_v28  ;;  %v8219_v27 = vld [vmem:[%s12245_s28 + $0x128] sm:$0xff]  ;;  %v8204_v28 = vld [vmem:[%s12245_s28 + $0xb0] sm:$0xff] }
0x2394   : > { %10139 = vmatmul.mubr.msk.f32.gmra.mrb[68].mxu1 %vm1914_vm1, %v12791_v14  ;;  %10141 = vmatmul.mubr.msk.f32.gmra.mrb[60].mxu0 %vm1914_vm1, %v12791_v14  ;;  %v11480_v32 = vpack.c.bf16 %v8219_v27, %v8218_v26  ;;  %v8229_v26 = vld [vmem:[%s12245_s28 + $0x178] sm:$0xff] }
0x2395   : > { %11413 = vmatpush1.bf16.msra.mxu1 %v11412_v33  ;;  %11421 = vmatpush1.bf16.msra.mxu0 %v11420_v34  ;;  %v8188_v33 = vld [vmem:[%s12245_s28 + $0x30] sm:$0xff]  ;;  %v8189_v34 = vld [vmem:[%s12245_s28 + $0x38] sm:$0xff] }
0x2396   : > { %7906 = vmatprep.mubr.f32.mxu1 %v11945_v16  ;;  %7983 = vmatprep.mubr.f32.mxu0 %v11945_v16  ;;  %v11452_v45 = vpack.c.bf16 %v8189_v34, %v8188_v33  ;;  %v7448_v33 = vlaneseq }
0x2397   : > { %11423 = vmatprep.subr.bf16.mxu1 %v11422_v41  ;;  %11431 = vmatprep.subr.bf16.mxu0 %v11430_v42  ;;  %v8206_v41 = vld [vmem:[%s12245_s28 + $0xc0] sm:$0xff]  ;;  %v8207_v42 = vld [vmem:[%s12245_s28 + $0xc8] sm:$0xff] }
0x2398   : > { %10142 = vmatmul.mubr.msk.f32.vlgmr.msra.gmra.mrb[70].mxu1 %vm1914_vm1, %v12777_v3  ;;  %10144 = vmatmul.mubr.msk.f32.vlgmr.msra.gmra.mrb[62].mxu0 %vm1914_vm1, %v12777_v3  ;;  %v11454_v49 = vpack.c.bf16 %v8207_v42, %v8206_v41  ;;  %v12930_v34 = vshrl.u32 %v7448_v33, 7 }
0x2399   : > { %11425 = vmatpush1.bf16.msra.mxu1 %v11424_v47  ;;  %11433 = vmatpush1.bf16.msra.mxu0 %v11432_v48  ;;  %v8190_v47 = vld [vmem:[%s12245_s28 + $0x40] sm:$0xff]  ;;  %v8191_v48 = vld [vmem:[%s12245_s28 + $0x48] sm:$0xff] }
0x239a   : > { %7912 = vmatprep.mubr.f32.mxu1 %v11945_v16  ;;  %7989 = vmatprep.mubr.f32.mxu0 %v11945_v16  ;;  %v11456_v60 = vpack.c.bf16 %v8191_v48, %v8190_v47  ;;  %v7454_v40 = vsub.s32 1, %v12930_v34  ;;  %v7462_v41 = vsub.s32 3, %v12930_v34  ;;  %v8247_v47 = vld [vmem:[%s12245_s28 + $0x208] sm:$0xff]  ;;  %v7470_v48 = vsub.s32 5, %v12930_v34 }
0x239b   : > { %11427 = vmatprep.subr.bf16.mxu1 %v11426_v54  ;;  %11435 = vmatprep.subr.bf16.mxu0 %v11434_v57  ;;  %v8208_v54 = vld [vmem:[%s12245_s28 + $0xd0] sm:$0xff]  ;;  %v8209_v57 = vld [vmem:[%s12245_s28 + $0xd8] sm:$0xff] }
0x239c   : > { %10143 = vmatmul.mubr.msk.f32.gmra.mrb[72].mxu1 %vm1914_vm1, %v12791_v14  ;;  %10145 = vmatmul.mubr.msk.f32.gmra.mrb[64].mxu0 %vm1914_vm1, %v12791_v14  ;;  %v11458_v2 = vpack.c.bf16 %v8209_v57, %v8208_v54  ;;  %v7455_v44 = vrot.slane %v12935_v38, %v7454_v40  ;;  %v8264_v54 = vld [vmem:[%s12245_s28 + $0x290] sm:$0xff] }
0x239d   : > { %11429 = vmatpush1.bf16.msra.mxu1 %v11428_v62  ;;  %11437 = vmatpush1.bf16.msra.mxu0 %v11436_v0  ;;  %v8192_v62 = vld [vmem:[%s12245_s28 + $0x50] sm:$0xff]  ;;  %v8193_v0 = vld [vmem:[%s12245_s28 + $0x58] sm:$0xff] }
0x239e   : > { %8060 = vmatprep.mubr.f32.mxu1 %v11945_v16  ;;  %8137 = vmatprep.mubr.f32.mxu0 %v11945_v16  ;;  %v11460_v7 = vpack.c.bf16 %v8193_v0, %v8192_v62  ;;  %v8296_v62 = vld [vmem:[%s12245_s28 + $0x390] sm:$0xff]  ;;  %v8297_v0 = vld [vmem:[%s12245_s28 + $0x398] sm:$0xff] }
0x239f   : > { %11439 = vmatprep.subr.bf16.mxu1 %v11438_v1  ;;  %11471 = vmatprep.subr.bf16.mxu0 %v11470_v4  ;;  %v8224_v1 = vld [vmem:[%s12245_s28 + $0x150] sm:$0xff]  ;;  %v8225_v4 = vld [vmem:[%s12245_s28 + $0x158] sm:$0xff] }
0x23a0   : > { %10146 = vmatmul.mubr.msk.f32.vlgmr.msra.gmra.mrb[74].mxu1 %vm1914_vm1, %v12777_v3  ;;  %10148 = vmatmul.mubr.msk.f32.vlgmr.msra.gmra.mrb[66].mxu0 %vm1914_vm1, %v12777_v3  ;;  %v11492_v8 = vpack.c.bf16 %v8225_v4, %v8224_v1  ;;  %v7478_v1 = vsub.s32 7, %v12930_v34 }
0x23a1   : > { %8066 = vmatprep.mubr.f32.mxu1 %v11945_v16  ;;  %8143 = vmatprep.mubr.f32.mxu0 %v11945_v16  ;;  %v8205_v16 = vld [vmem:[%s12245_s28 + $0xb8] sm:$0xff] }
0x23a2   : > { %11441 = vmatpush3.bf16.msra.mxu1 %v11440_v9  ;;  %11473 = vmatpush3.bf16.msra.mxu0 %v11472_v10  ;;  %v11450_v36 = vpack.c.bf16 %v8205_v16, %v8204_v28  ;;  %v8194_v9 = vld [vmem:[%s12245_s28 + $0x60] sm:$0xff]  ;;  %v11462_v10 = vpack.c.bf16 %v8211_v55, %v8210_v56  ;;  %v8263_v16 = vld [vmem:[%s12245_s28 + $0x288] sm:$0xff]  ;;  %v11536_v56 = vpack.c.bf16 %v8279_v53, %v8278_v52  ;;  %v8268_v53 = vld [vmem:[%s12245_s28 + $0x2b0] sm:$0xff] }
0x23a3   : > { %11443 = vmatprep.subr.bf16.mxu1 %v11442_v17  ;;  %11475 = vmatprep.subr.bf16.mxu0 %v11474_v18  ;;  %v8226_v17 = vld [vmem:[%s12245_s28 + $0x160] sm:$0xff]  ;;  %v8227_v18 = vld [vmem:[%s12245_s28 + $0x168] sm:$0xff]  ;;  %v11464_v19 = vpack.c.bf16 %v8195_v12, %v8194_v9  ;;  %v12964_v55 = vrot.slane %v12935_v38, %v7470_v48  ;;  %v8249_v12 = vld [vmem:[%s12245_s28 + $0x218] sm:$0xff] }
0x23a4   : > { %10147 = vmatmul.mubr.msk.f32.gmra.mrb[76].mxu1 %vm1914_vm1, %v12791_v14  ;;  %10149 = vmatmul.mubr.msk.f32.gmra.mrb[68].mxu0 %vm1914_vm1, %v12791_v14  ;;  %v11496_v35 = vpack.c.bf16 %v8227_v18, %v8226_v17  ;;  %v8262_v28 = vld [vmem:[%s12245_s28 + $0x280] sm:$0xff]  ;;  %v8280_v17 = vld [vmem:[%s12245_s28 + $0x310] sm:$0xff]  ;;  %v12988_v52 = vld [vmem:[%s13461_s20 + $0x8] sm:$0xff] }
0x23a5   : > { %v11502_v30 = vpack.c.bf16 %v8263_v16, %v8262_v28  ;;  %v8251_v28 = vld [vmem:[%s12245_s28 + $0x228] sm:$0xff] }
0x23a6   : > { %11445 = vmatpush3.bf16.msra.mxu1 %v11444_v39  ;;  %11477 = vmatpush3.bf16.msra.mxu0 %v11476_v23  ;;  %v8245_v39 = vld [vmem:[%s12245_s28 + $0x1f8] sm:$0xff]  ;;  %v8196_v23 = vld [vmem:[%s12245_s28 + $0x70] sm:$0xff] }
0x23a7   : > { %11447 = vmatprep.subr.bf16.mxu1 %v11446_v24  ;;  %11479 = vmatprep.subr.bf16.mxu0 %v11478_v25  ;;  %v11498_v13 = vpack.c.bf16 %v8245_v39, %v8244_v21  ;;  %v11468_v24 = vpack.c.bf16 %v8197_v15, %v8196_v23  ;;  %v8228_v25 = vld [vmem:[%s12245_s28 + $0x170] sm:$0xff]  ;;  %v8266_v39 = vld [vmem:[%s12245_s28 + $0x2a0] sm:$0xff] }
0x23a8   : > { %v11500_v27 = vpack.c.bf16 %v8229_v26, %v8228_v25  ;;  %v8298_v25 = vld [vmem:[%s12245_s28 + $0x3a0] sm:$0xff]  ;;  %v8299_v26 = vld [vmem:[%s12245_s28 + $0x3a8] sm:$0xff] }
0x23aa   : > { %11449 = vmatpush3.bf16.msra.mxu1 %v11448_v31  ;;  %11481 = vmatpush3.bf16.msra.mxu0 %v11480_v32  ;;  %v8295_v31 = vld [vmem:[%s12245_s28 + $0x388] sm:$0xff] }
0x23ab   : > { %11451 = vmatprep.subr.bf16.mxu1 %v11450_v36  ;;  %11483 = vmatprep.subr.bf16.mxu0 %v11482_v37  ;;  %v11534_v32 = vpack.c.bf16 %v8295_v31, %v8294_v29  ;;  %v7450_v36 = vsub.s32 0, %v12930_v34  ;;  %v7458_v37 = vsub.s32 2, %v12930_v34 }
0x23ad   : > { %v7451_v42 = vrot.slane %v12935_v38, %v7450_v36  ;;  %v7459_v43 = vrot.slane %v12935_v38, %v7458_v37 }
0x23ae   : > { %11453 = vmatpush3.bf16.msra.mxu1 %v11452_v45  ;;  %11485 = vmatpush3.bf16.msra.mxu0 %v11484_v46  ;;  %v7463_v45 = vrot.slane %v12935_v38, %v7462_v41  ;;  %v8246_v46 = vld [vmem:[%s12245_s28 + $0x200] sm:$0xff] }
0x23af   : > { %11455 = vmatprep.subr.bf16.mxu1 %v11454_v49  ;;  %11487 = vmatprep.subr.bf16.mxu0 %v11486_v51  ;;  %v11504_v4 = vpack.c.bf16 %v8247_v47, %v8246_v46 }
0x23b2   : > { %11457 = vmatpush3.bf16.msra.mxu1 %v11456_v60  ;;  %11489 = vmatpush3.bf16.msra.mxu0 %v11488_v61  ;;  %v8265_v61 = vld [vmem:[%s12245_s28 + $0x298] sm:$0xff] }
0x23b3   : > { %11459 = vmatprep.subr.bf16.mxu1 %v11458_v2  ;;  %11491 = vmatprep.subr.bf16.mxu0 %v11490_v63 }
0x23b6   : > { %11461 = vmatpush3.bf16.msra.mxu1 %v11460_v7  ;;  %11493 = vmatpush3.bf16.msra.mxu0 %v11492_v8 }
0x23b7   : > { %11463 = vmatprep.subr.bf16.mxu1 %v11462_v10  ;;  %11495 = vmatprep.subr.bf16.mxu0 %v11494_v11  ;;  %v11506_v10 = vpack.c.bf16 %v8265_v61, %v8264_v54  ;;  %v11538_v11 = vpack.c.bf16 %v8297_v0, %v8296_v62 }
0x23ba   : > { %11465 = vmatpush3.bf16.msra.mxu1 %v11464_v19  ;;  %11497 = vmatpush3.bf16.msra.mxu0 %v11496_v35 }
0x23bb   : > { %11467 = vmatprep.subr.bf16.mxu1 %v11466_v22  ;;  %11499 = vmatprep.subr.bf16.mxu0 %v11498_v13  ;;  %v8281_v22 = vld [vmem:[%s12245_s28 + $0x318] sm:$0xff]  ;;  %v12974_v13 = vrot.slane %v12935_v38, %v7478_v1 }
0x23bc   : > { %v11540_v33 = vpack.c.bf16 %v8281_v22, %v8280_v17  ;;  %v8270_v17 = vld [vmem:[%s12245_s28 + $0x2c0] sm:$0xff] }
0x23bd   : > { %v8254_v22 = vld [vmem:[%s12245_s28 + $0x240] sm:$0xff] }
0x23be   : > { %11469 = vmatpush3.bf16.msra.mxu1 %v11468_v24  ;;  %11501 = vmatpush3.bf16.msra.mxu0 %v11500_v27  ;;  %v8267_v24 = vld [vmem:[%s12245_s28 + $0x2a8] sm:$0xff]  ;;  %v8250_v27 = vld [vmem:[%s12245_s28 + $0x220] sm:$0xff] }
0x23bf   : > { %11503 = vmatprep.subr.bf16.mxu1 %v11502_v30  ;;  %11535 = vmatprep.subr.bf16.mxu0 %v11534_v32  ;;  %v11508_v32 = vpack.c.bf16 %v8249_v12, %v8248_v5  ;;  %v8253_v5 = vld [vmem:[%s12245_s28 + $0x238] sm:$0xff] }
0x23c0   : > { %v8285_v12 = vld [vmem:[%s12245_s28 + $0x338] sm:$0xff] }
0x245b   : > { %v7600_v49 = vpop.f32.mrb[62].mxu1  ;;  %v7677_v51 = vpop.f32.mrb[54].mxu0 }
0x245c   : > { %v7601_v57 = vadd.f32 %v7600_v49, %v7451_v42  ;;  %v7678_v58 = vadd.f32 %v7677_v51, %v7459_v43  ;;  %v7602_v59 = vpop.f32.mrb[63].mxu1  ;;  %v7679_v60 = vpop.f32.mrb[55].mxu0  ;;  %v11510_v49 = vpack.c.bf16 %v8267_v24, %v8266_v39  ;;  %v11542_v51 = vpack.c.bf16 %v8299_v26, %v8298_v25  ;;  %v8255_v39 = vld [vmem:[%s12245_s28 + $0x248] sm:$0xff] }
0x245d   : > { %v7603_v2 = vadd.f32 %v7602_v59, %v7455_v44  ;;  %v7680_v63 = vadd.f32 %v7679_v60, %v7463_v45  ;;  %v8300_v59 = vld [vmem:[%s12245_s28 + $0x3b0] sm:$0xff]  ;;  %v8301_v60 = vld [vmem:[%s12245_s28 + $0x3b8] sm:$0xff] }
0x245e   : > { %v8150_v18 = vmax.f32 %v7601_v57, 0.0  ;;  %v8152_v19 = vmax.f32 %v7678_v58, 0.0  ;;  %v8269_v58 = vld [vmem:[%s12245_s28 + $0x2b8] sm:$0xff] }
0x245f   : > { %v8151_v6 = vmax.f32 %v7603_v2, 0.0  ;;  %v8153_v7 = vmax.f32 %v7680_v63, 0.0  ;;  %v7606_v8 = vpop.f32.mrb[64].mxu1  ;;  %v7683_v9 = vpop.f32.mrb[56].mxu0  ;;  %v11512_v63 = vpack.c.bf16 %v8251_v28, %v8250_v27  ;;  %v8286_v27 = vld [vmem:[%s12245_s28 + $0x340] sm:$0xff]  ;;  %v8287_v28 = vld [vmem:[%s12245_s28 + $0x348] sm:$0xff] }
0x2460   : > { %v7607_v35 = vadd.f32 %v7606_v8, %v7451_v42  ;;  %v7684_v50 = vadd.f32 %v7683_v9, %v7459_v43  ;;  %v7608_v20 = vpop.f32.mrb[65].mxu1  ;;  %v7685_v21 = vpop.f32.mrb[57].mxu0  ;;  %v8282_v42 = vld [vmem:[%s12245_s28 + $0x320] sm:$0xff]  ;;  %v8283_v43 = vld [vmem:[%s12245_s28 + $0x328] sm:$0xff]  ;;  %v7491_v8 = vrot.slane %v12988_v52, %v7458_v37  ;;  %v11514_v9 = vpack.c.bf16 %v8269_v58, %v8268_v53  ;;  %v8256_v53 = vld [vmem:[%s12245_s28 + $0x250] sm:$0xff] }
0x2461   : > { %v7609_v23 = vadd.f32 %v7608_v20, %v7455_v44  ;;  %v7686_v15 = vadd.f32 %v7685_v21, %v7463_v45  ;;  %8509 = vmatprep.mubr.f32.mxu1 %v8151_v6  ;;  %8584 = vmatprep.mubr.f32.mxu0 %v8153_v7 }
0x2462   : > { %8510 = vmatmul.mubr.f32.vlgmr.msra.gmra.mrb[78].mxu1 %v8150_v18  ;;  %8585 = vmatmul.mubr.f32.vlgmr.msra.gmra.mrb[70].mxu0 %v8152_v19  ;;  %v8166_v44 = vmax.f32 %v7607_v35, 0.0  ;;  %v8168_v45 = vmax.f32 %v7684_v50, 0.0  ;;  %v8271_v18 = vld [vmem:[%s12245_s28 + $0x2c8] sm:$0xff]  ;;  %v8302_v19 = vld [vmem:[%s12245_s28 + $0x3c0] sm:$0xff] }
0x2463   : > { %v8167_v16 = vmax.f32 %v7609_v23, 0.0  ;;  %v8169_v29 = vmax.f32 %v7686_v15, 0.0  ;;  %11505 = vmatpush3.bf16.msra.mxu1 %v11504_v4  ;;  %11537 = vmatpush3.bf16.msra.mxu0 %v11536_v56  ;;  %v12981_v30 = vpop.f32.mrb[66].mxu1  ;;  %v12983_v31 = vpop.f32.mrb[58].mxu0  ;;  %v11544_v4 = vpack.c.bf16 %v8283_v43, %v8282_v42  ;;  %v8252_v56 = vld [vmem:[%s12245_s28 + $0x230] sm:$0xff]  ;;  %v8303_v35 = vld [vmem:[%s12245_s28 + $0x3c8] sm:$0xff]  ;;  %v11518_v25 = vpack.c.bf16 %v8271_v18, %v8270_v17 }
0x2464   : > { %v7756_v46 = vpop.f32.mrb[67].mxu1  ;;  %v7833_v47 = vpop.f32.mrb[59].mxu0  ;;  %11507 = vmatprep.subr.bf16.mxu1 %v11506_v10  ;;  %11539 = vmatprep.subr.bf16.mxu0 %v11538_v11  ;;  %v11546_v10 = vpack.c.bf16 %v8301_v60, %v8300_v59  ;;  %v8284_v11 = vld [vmem:[%s12245_s28 + $0x330] sm:$0xff]  ;;  %v11516_v20 = vpack.c.bf16 %v8253_v5, %v8252_v56  ;;  %v11550_v26 = vpack.c.bf16 %v8303_v35, %v8302_v19  ;;  %v8305_v43 = vld [vmem:[%s12245_s28 + $0x3d8] sm:$0xff]  ;;  %v8275_v56 = vld [vmem:[%s12245_s28 + $0x2e8] sm:$0xff] }
0x2465   : > { %v7757_v54 = vadd.f32 %v7756_v46, %v12964_v55  ;;  %v7834_v57 = vadd.f32 %v7833_v47, %v12974_v13  ;;  %8514 = vmatprep.mubr.f32.mxu1 %v8167_v16  ;;  %8589 = vmatprep.mubr.f32.mxu0 %v8169_v29  ;;  %v11548_v21 = vpack.c.bf16 %v8285_v12, %v8284_v11  ;;  %v8272_v16 = vld [vmem:[%s12245_s28 + $0x2d0] sm:$0xff]  ;;  %v7466_v29 = vsub.s32 4, %v12930_v34  ;;  %v8258_v35 = vld [vmem:[%s12245_s28 + $0x260] sm:$0xff] }
0x2466   : > { %8515 = vmatmul.mubr.f32.gmra.mrb[80].mxu1 %v8166_v44  ;;  %8590 = vmatmul.mubr.f32.gmra.mrb[72].mxu0 %v8168_v45  ;;  %v8304_v42 = vld [vmem:[%s12245_s28 + $0x3d0] sm:$0xff]  ;;  %v11520_v44 = vpack.c.bf16 %v8255_v39, %v8254_v22  ;;  %v11552_v47 = vpack.c.bf16 %v8287_v28, %v8286_v27  ;;  %v7503_v5 = vrot.slane %v12988_v52, %v7470_v48  ;;  %v8259_v48 = vld [vmem:[%s12245_s28 + $0x268] sm:$0xff]  ;;  %v8277_v27 = vld [vmem:[%s12245_s28 + $0x2f8] sm:$0xff] }
0x2467   : > { %v8155_v61 = vmax.f32 %v7757_v54, 0.0  ;;  %v8157_v62 = vmax.f32 %v7834_v57, 0.0  ;;  %11509 = vmatpush3.bf16.msra.mxu1 %v11508_v32  ;;  %11541 = vmatpush3.bf16.msra.mxu0 %v11540_v33  ;;  %v12996_v0 = vpop.f32.mrb[68].mxu1  ;;  %v12998_v2 = vpop.f32.mrb[60].mxu0  ;;  %v7474_v32 = vsub.s32 6, %v12930_v34  ;;  %v8273_v33 = vld [vmem:[%s12245_s28 + $0x2d8] sm:$0xff] }
0x2468   : > { %v13002_v6 = vpop.f32.mrb[69].mxu1  ;;  %v13004_v7 = vpop.f32.mrb[61].mxu0  ;;  %11511 = vmatprep.subr.bf16.mxu1 %v11510_v49  ;;  %11543 = vmatprep.subr.bf16.mxu0 %v11542_v51  ;;  %v7499_v49 = vrot.slane %v12988_v52, %v7466_v29  ;;  %v8257_v54 = vld [vmem:[%s12245_s28 + $0x258] sm:$0xff]  ;;  %v8288_v57 = vld [vmem:[%s12245_s28 + $0x350] sm:$0xff] }
0x2469   : > { %8659 = vmatprep.mubr.f32.mxu1 %v8155_v61  ;;  %8734 = vmatprep.mubr.f32.mxu0 %v8157_v62  ;;  %v7507_v51 = vrot.slane %v12988_v52, %v7474_v32  ;;  %v11522_v61 = vpack.c.bf16 %v8273_v33, %v8272_v16  ;;  %v11554_v62 = vpack.c.bf16 %v8305_v43, %v8304_v42  ;;  %v8308_v33 = vld [vmem:[%s12245_s28 + $0x3f0] sm:$0xff]  ;;  %v8309_v42 = vld [vmem:[%s12245_s28 + $0x3f8] sm:$0xff] }
0x246a   : > { %v11524_v17 = vpack.c.bf16 %v8257_v54, %v8256_v53  ;;  %v7467_v43 = vrot.slane %v12935_v38, %v7466_v29  ;;  %v11528_v53 = vpack.c.bf16 %v8259_v48, %v8258_v35  ;;  %v8311_v35 = vld [vmem:[%s12245_s28 + $0x408] sm:$0xff] }
0x246b   : > { %11513 = vmatpush3.bf16.msra.mxu1 %v11512_v63  ;;  %11545 = vmatpush3.bf16.msra.mxu0 %v11544_v4  ;;  %v13015_v50 = vpop.f32.mrb[70].mxu1  ;;  %v7985_v37 = vpop.f32.mrb[62].mxu0  ;;  %v8289_v63 = vld [vmem:[%s12245_s28 + $0x358] sm:$0xff]  ;;  %v8274_v4 = vld [vmem:[%s12245_s28 + $0x2e0] sm:$0xff] }
0x246c   : > { %v13019_v23 = vadd.f32 %v7985_v37, %v7491_v8  ;;  %v13021_v15 = vpop.f32.mrb[71].mxu1  ;;  %v13023_v24 = vpop.f32.mrb[63].mxu0  ;;  %11515 = vmatprep.subr.bf16.mxu1 %v11514_v9  ;;  %11547 = vmatprep.subr.bf16.mxu0 %v11546_v10  ;;  %v8306_v9 = vld [vmem:[%s12245_s28 + $0x3e0] sm:$0xff]  ;;  %v8307_v10 = vld [vmem:[%s12245_s28 + $0x3e8] sm:$0xff]  ;;  %v11556_v18 = vpack.c.bf16 %v8289_v63, %v8288_v57  ;;  %v11526_v19 = vpack.c.bf16 %v8275_v56, %v8274_v4  ;;  %v8292_v63 = vld [vmem:[%s12245_s28 + $0x370] sm:$0xff] }
0x246d   : > { %v8290_v37 = vld [vmem:[%s12245_s28 + $0x360] sm:$0xff]  ;;  %v11558_v39 = vpack.c.bf16 %v8307_v10, %v8306_v9  ;;  %v11562_v56 = vpack.c.bf16 %v8309_v42, %v8308_v33  ;;  %v8293_v9 = vld [vmem:[%s12245_s28 + $0x378] sm:$0xff]  ;;  %v7763_v42 = vadd.f32 %v13002_v6, %v12964_v55 }
0x246e   : > { %v8326_v10 = vld [vmem:[%s12245_s28 + $0x480] sm:$0xff]  ;;  %v11564_v48 = vpack.c.bf16 %v8293_v9, %v8292_v63  ;;  %v8361_v33 = vld [vmem:[%s12245_s28 + $0x598] sm:$0xff] }
0x246f   : > { %11517 = vmatpush3.bf16.msra.mxu1 %v11516_v20  ;;  %11549 = vmatpush3.bf16.msra.mxu0 %v11548_v21  ;;  %v13033_v45 = vpop.f32.mrb[72].mxu1  ;;  %v7991_v46 = vpop.f32.mrb[64].mxu0 }
0x2470   : > { %v13040_v58 = vadd.f32 %v7991_v46, %v7491_v8  ;;  %v13042_v59 = vpop.f32.mrb[73].mxu1  ;;  %v13044_v60 = vpop.f32.mrb[65].mxu0  ;;  %11519 = vmatprep.subr.bf16.mxu1 %v11518_v25  ;;  %11551 = vmatprep.subr.bf16.mxu0 %v11550_v26  ;;  %v7511_v8 = vrot.slane %v12988_v52, %v7478_v1  ;;  %v8291_v25 = vld [vmem:[%s12245_s28 + $0x368] sm:$0xff]  ;;  %v8276_v26 = vld [vmem:[%s12245_s28 + $0x2f0] sm:$0xff] }
0x2471   : > { %v11560_v54 = vpack.c.bf16 %v8291_v25, %v8290_v37  ;;  %v11530_v57 = vpack.c.bf16 %v8277_v27, %v8276_v26  ;;  %v8329_v26 = vld [vmem:[%s12245_s28 + $0x498] sm:$0xff]  ;;  %v8360_v27 = vld [vmem:[%s12245_s28 + $0x590] sm:$0xff] }
0x2473   : > { %11521 = vmatpush3.bf16.msra.mxu1 %v11520_v44  ;;  %11553 = vmatpush3.bf16.msra.mxu0 %v11552_v47  ;;  %v8062_v11 = vpop.f32.mrb[74].mxu1  ;;  %v8139_v12 = vpop.f32.mrb[66].mxu0  ;;  %v7475_v44 = vrot.slane %v12935_v38, %v7474_v32 }
0x2474   : > { %v13060_v20 = vadd.f32 %v8062_v11, %v7499_v49  ;;  %v13062_v1 = vadd.f32 %v8139_v12, %v7507_v51  ;;  %v8064_v21 = vpop.f32.mrb[75].mxu1  ;;  %v8141_v22 = vpop.f32.mrb[67].mxu0  ;;  %11523 = vmatprep.subr.bf16.mxu1 %v11522_v61  ;;  %11555 = vmatprep.subr.bf16.mxu0 %v11554_v62  ;;  %v8260_v61 = vld [vmem:[%s12245_s28 + $0x270] sm:$0xff]  ;;  %v8261_v62 = vld [vmem:[%s12245_s28 + $0x278] sm:$0xff]  ;;  %v8327_v11 = vld [vmem:[%s12245_s28 + $0x488] sm:$0xff] }
0x2475   : > { %v13067_v28 = vadd.f32 %v8064_v21, %v7503_v5  ;;  %v13069_v16 = vadd.f32 %v8141_v22, %v7511_v8  ;;  %v11566_v37 = vpack.c.bf16 %v8327_v11, %v8326_v10  ;;  %v8342_v21 = vld [vmem:[%s12245_s28 + $0x500] sm:$0xff]  ;;  %v8343_v22 = vld [vmem:[%s12245_s28 + $0x508] sm:$0xff] }
0x2476   : > { %v11600_v55 = vpack.c.bf16 %v8343_v22, %v8342_v21  ;;  %v8314_v11 = vld [vmem:[%s12245_s28 + $0x420] sm:$0xff]  ;;  %v8332_v21 = vld [vmem:[%s12245_s28 + $0x4b0] sm:$0xff]  ;;  %v8333_v22 = vld [vmem:[%s12245_s28 + $0x4b8] sm:$0xff] }
0x2477   : > { %11525 = vmatpush3.bf16.msra.mxu1 %v11524_v17  ;;  %11557 = vmatpush3.bf16.msra.mxu0 %v11556_v18  ;;  %v8068_v46 = vpop.f32.mrb[76].mxu1  ;;  %v8145_v47 = vpop.f32.mrb[68].mxu0  ;;  %v8358_v18 = vld [vmem:[%s12245_s28 + $0x580] sm:$0xff] }
0x2478   : > { %v13078_v29 = vadd.f32 %v8068_v46, %v7499_v49  ;;  %v13080_v38 = vadd.f32 %v8145_v47, %v7507_v51  ;;  %v8070_v32 = vpop.f32.mrb[77].mxu1  ;;  %v8147_v4 = vpop.f32.mrb[69].mxu0  ;;  %11527 = vmatprep.subr.bf16.mxu1 %v11526_v19  ;;  %11559 = vmatprep.subr.bf16.mxu0 %v11558_v39  ;;  %v8359_v49 = vld [vmem:[%s12245_s28 + $0x588] sm:$0xff]  ;;  %v8310_v51 = vld [vmem:[%s12245_s28 + $0x400] sm:$0xff]  ;;  %v11532_v19 = vpack.c.bf16 %v8261_v62, %v8260_v61  ;;  %v8328_v39 = vld [vmem:[%s12245_s28 + $0x490] sm:$0xff]  ;;  %v8171_v61 = vmax.f32 %v7763_v42, 0.0 }
0x2479   : > { %v13085_v12 = vadd.f32 %v8070_v32, %v7503_v5  ;;  %v13087_v17 = vadd.f32 %v8147_v4, %v7511_v8  ;;  %v7755_v5 = vadd.f32 %v12981_v30, %v7467_v43  ;;  %v7832_v8 = vadd.f32 %v12983_v31, %v7475_v44  ;;  %v8344_v4 = vld [vmem:[%s12245_s28 + $0x510] sm:$0xff] }
0x247a   : > { %v11598_v25 = vpack.c.bf16 %v8359_v49, %v8358_v18  ;;  %v7840_v46 = vadd.f32 %v13004_v7, %v12974_v13  ;;  %v13108_v30 = vrot.slane %v12988_v52, %v7454_v40  ;;  %v13113_v31 = vrot.slane %v12988_v52, %v7462_v41  ;;  %v8312_v41 = vld [vmem:[%s12245_s28 + $0x410] sm:$0xff]  ;;  %v8315_v18 = vld [vmem:[%s12245_s28 + $0x428] sm:$0xff] }
0x247b   : > { %11529 = vmatpush3.bf16.msra.mxu1 %v11528_v53  ;;  %11561 = vmatpush3.bf16.msra.mxu0 %v11560_v54  ;;  %v11568_v47 = vpack.c.bf16 %v8311_v35, %v8310_v51  ;;  %v11570_v6 = vpack.c.bf16 %v8329_v26, %v8328_v39  ;;  %v11602_v13 = vpack.c.bf16 %v8361_v33, %v8360_v27  ;;  %v8154_v7 = vmax.f32 %v7755_v5, 0.0  ;;  %v8364_v39 = vld [vmem:[%s12245_s28 + $0x5b0] sm:$0xff]  ;;  %v8365_v5 = vld [vmem:[%s12245_s28 + $0x5b8] sm:$0xff] }
0x247c   : > { %11531 = vmatprep.subr.bf16.mxu1 %v11530_v57  ;;  %11563 = vmatprep.subr.bf16.mxu0 %v11562_v56  ;;  %v8156_v53 = vmax.f32 %v7832_v8, 0.0  ;;  %v7761_v40 = vadd.f32 %v12996_v0, %v7467_v43  ;;  %v7838_v54 = vadd.f32 %v12998_v2, %v7475_v44  ;;  %v8313_v57 = vld [vmem:[%s12245_s28 + $0x418] sm:$0xff]  ;;  %v8173_v62 = vmax.f32 %v7840_v46, 0.0  ;;  %v8330_v0 = vld [vmem:[%s12245_s28 + $0x4a0] sm:$0xff]  ;;  %v8331_v2 = vld [vmem:[%s12245_s28 + $0x4a8] sm:$0xff] }
0x247d   : > { %v7911_v63 = vadd.f32 %v13021_v15, %v13108_v30  ;;  %v7988_v32 = vadd.f32 %v13023_v24, %v13113_v31  ;;  %v8345_v56 = vld [vmem:[%s12245_s28 + $0x518] sm:$0xff]  ;;  %v8362_v43 = vld [vmem:[%s12245_s28 + $0x5a0] sm:$0xff]  ;;  %v8363_v44 = vld [vmem:[%s12245_s28 + $0x5a8] sm:$0xff]  ;;  %v11572_v24 = vpack.c.bf16 %v8313_v57, %v8312_v41  ;;  %v11574_v35 = vpack.c.bf16 %v8331_v2, %v8330_v0 }
0x247e   : > { %v8170_v9 = vmax.f32 %v7761_v40, 0.0  ;;  %v8172_v15 = vmax.f32 %v7838_v54, 0.0  ;;  %v11604_v10 = vpack.c.bf16 %v8345_v56, %v8344_v4  ;;  %v11576_v8 = vpack.c.bf16 %v8315_v18, %v8314_v11  ;;  %v8316_v26 = vld [vmem:[%s12245_s28 + $0x430] sm:$0xff]  ;;  %v8317_v27 = vld [vmem:[%s12245_s28 + $0x438] sm:$0xff]  ;;  %v8318_v54 = vld [vmem:[%s12245_s28 + $0x440] sm:$0xff] }
0x247f   : > { %11533 = vmatpush3.bf16.msra.mxu1 %v11532_v19  ;;  %11565 = vmatpush3.bf16.msra.mxu0 %v11564_v48  ;;  %v8159_v49 = vmax.f32 %v7911_v63, 0.0  ;;  %v8161_v51 = vmax.f32 %v7988_v32, 0.0  ;;  %v11606_v19 = vpack.c.bf16 %v8363_v44, %v8362_v43  ;;  %v8346_v48 = vld [vmem:[%s12245_s28 + $0x520] sm:$0xff]  ;;  %v11578_v33 = vpack.c.bf16 %v8333_v22, %v8332_v21  ;;  %v8348_v46 = vld [vmem:[%s12245_s28 + $0x530] sm:$0xff]  ;;  %v8319_v41 = vld [vmem:[%s12245_s28 + $0x448] sm:$0xff] }
0x2480   : > { %11567 = vmatprep.subr.bf16.mxu1 %v11566_v37  ;;  %11599 = vmatprep.subr.bf16.mxu0 %v11598_v25  ;;  %v8347_v37 = vld [vmem:[%s12245_s28 + $0x528] sm:$0xff]  ;;  %v11610_v42 = vpack.c.bf16 %v8365_v5, %v8364_v39  ;;  %v8336_v32 = vld [vmem:[%s12245_s28 + $0x4d0] sm:$0xff]  ;;  %v8337_v4 = vld [vmem:[%s12245_s28 + $0x4d8] sm:$0xff]  ;;  %v11584_v2 = vpack.c.bf16 %v8319_v41, %v8318_v54 }
0x2481   : > { %v11608_v25 = vpack.c.bf16 %v8347_v37, %v8346_v48  ;;  %v8351_v63 = vld [vmem:[%s12245_s28 + $0x548] sm:$0xff]  ;;  %v8368_v56 = vld [vmem:[%s12245_s28 + $0x5d0] sm:$0xff]  ;;  %v8369_v0 = vld [vmem:[%s12245_s28 + $0x5d8] sm:$0xff] }
0x2482   : > { %8660 = vmatmul.mubr.f32.vlgmr.msra.gmra.mrb[82].mxu1 %v8154_v7  ;;  %8735 = vmatmul.mubr.f32.vlgmr.msra.gmra.mrb[74].mxu0 %v8156_v53  ;;  %v8367_v7 = vld [vmem:[%s12245_s28 + $0x5c8] sm:$0xff]  ;;  %v11580_v53 = vpack.c.bf16 %v8317_v27, %v8316_v26  ;;  %v8320_v44 = vld [vmem:[%s12245_s28 + $0x450] sm:$0xff]  ;;  %v8353_v11 = vld [vmem:[%s12245_s28 + $0x558] sm:$0xff] }
0x2483   : > { %8664 = vmatprep.mubr.f32.mxu1 %v8171_v61  ;;  %8739 = vmatprep.mubr.f32.mxu0 %v8173_v62  ;;  %v8350_v62 = vld [vmem:[%s12245_s28 + $0x540] sm:$0xff]  ;;  %v8323_v21 = vld [vmem:[%s12245_s28 + $0x468] sm:$0xff]  ;;  %v8341_v26 = vld [vmem:[%s12245_s28 + $0x4f8] sm:$0xff] }
0x2484   : > { %11569 = vmatpush3.bf16.msra.mxu1 %v11568_v47  ;;  %11601 = vmatpush3.bf16.msra.mxu0 %v11600_v55  ;;  %v8349_v47 = vld [vmem:[%s12245_s28 + $0x538] sm:$0xff]  ;;  %v8334_v55 = vld [vmem:[%s12245_s28 + $0x4c0] sm:$0xff]  ;;  %v11616_v43 = vpack.c.bf16 %v8351_v63, %v8350_v62  ;;  %v8372_v27 = vld [vmem:[%s12245_s28 + $0x5f0] sm:$0xff] }
0x2485   : > { %11571 = vmatprep.subr.bf16.mxu1 %v11570_v6  ;;  %11603 = vmatprep.subr.bf16.mxu0 %v11602_v13  ;;  %v8335_v6 = vld [vmem:[%s12245_s28 + $0x4c8] sm:$0xff]  ;;  %v8366_v13 = vld [vmem:[%s12245_s28 + $0x5c0] sm:$0xff]  ;;  %v11612_v40 = vpack.c.bf16 %v8349_v47, %v8348_v46  ;;  %v8324_v47 = vld [vmem:[%s12245_s28 + $0x470] sm:$0xff] }
0x2486   : > { %8665 = vmatmul.mubr.f32.gmra.mrb[84].mxu1 %v8170_v9  ;;  %8740 = vmatmul.mubr.f32.gmra.mrb[76].mxu0 %v8172_v15  ;;  %v11582_v57 = vpack.c.bf16 %v8335_v6, %v8334_v55  ;;  %v11614_v61 = vpack.c.bf16 %v8367_v7, %v8366_v13  ;;  %v8321_v9 = vld [vmem:[%s12245_s28 + $0x458] sm:$0xff]  ;;  %v11586_v15 = vpack.c.bf16 %v8337_v4, %v8336_v32  ;;  %v8338_v18 = vld [vmem:[%s12245_s28 + $0x4e0] sm:$0xff]  ;;  %v8391_v41 = vld [vmem:[%s12245_s28 + $0x688] sm:$0xff] }
0x2487   : > { %8809 = vmatprep.mubr.f32.mxu1 %v8159_v49  ;;  %8884 = vmatprep.mubr.f32.mxu0 %v8161_v51  ;;  %v8339_v49 = vld [vmem:[%s12245_s28 + $0x4e8] sm:$0xff]  ;;  %v8370_v51 = vld [vmem:[%s12245_s28 + $0x5e0] sm:$0xff]  ;;  %v8325_v55 = vld [vmem:[%s12245_s28 + $0x478] sm:$0xff]  ;;  %v7483_v6 = vrot.slane %v12988_v52, %v7450_v36 }
0x2488   : > { %11573 = vmatpush3.bf16.msra.mxu1 %v11572_v24  ;;  %11605 = vmatpush3.bf16.msra.mxu0 %v11604_v10  ;;  %v11618_v24 = vpack.c.bf16 %v8369_v0, %v8368_v56  ;;  %v8352_v10 = vld [vmem:[%s12245_s28 + $0x550] sm:$0xff]  ;;  %v8322_v37 = vld [vmem:[%s12245_s28 + $0x460] sm:$0xff]  ;;  %v11590_v22 = vpack.c.bf16 %v8339_v49, %v8338_v18  ;;  %v11596_v34 = vpack.c.bf16 %v8325_v55, %v8324_v47  ;;  %v8375_v4 = vld [vmem:[%s12245_s28 + $0x608] sm:$0xff] }
0x2489   : > { %11575 = vmatprep.subr.bf16.mxu1 %v11574_v35  ;;  %11607 = vmatprep.subr.bf16.mxu0 %v11606_v19  ;;  %v8371_v35 = vld [vmem:[%s12245_s28 + $0x5e8] sm:$0xff]  ;;  %v11588_v19 = vpack.c.bf16 %v8321_v9, %v8320_v44  ;;  %v11620_v48 = vpack.c.bf16 %v8353_v11, %v8352_v10  ;;  %v8354_v5 = vld [vmem:[%s12245_s28 + $0x560] sm:$0xff]  ;;  %v7909_v52 = vadd.f32 %v13015_v50, %v7483_v6  ;;  %v8392_v44 = vld [vmem:[%s12245_s28 + $0x690] sm:$0xff] }
0x248a   : > { %v11622_v39 = vpack.c.bf16 %v8371_v35, %v8370_v51  ;;  %v8390_v54 = vld [vmem:[%s12245_s28 + $0x680] sm:$0xff]  ;;  %v7917_v56 = vadd.f32 %v13042_v59, %v13108_v30  ;;  %v7994_v0 = vadd.f32 %v13044_v60, %v13113_v31  ;;  %v8393_v9 = vld [vmem:[%s12245_s28 + $0x698] sm:$0xff]  ;;  %v8160_v59 = vmax.f32 %v13019_v23, 0.0  ;;  %v8376_v31 = vld [vmem:[%s12245_s28 + $0x610] sm:$0xff] }
0x248b   : > { %v11630_v62 = vpack.c.bf16 %v8391_v41, %v8390_v54  ;;  %v8374_v32 = vld [vmem:[%s12245_s28 + $0x600] sm:$0xff]  ;;  %v8425_v50 = vld [vmem:[%s12245_s28 + $0x798] sm:$0xff]  ;;  %v8158_v10 = vmax.f32 %v7909_v52, 0.0  ;;  %v7915_v60 = vadd.f32 %v13033_v45, %v7483_v6  ;;  %v11634_v51 = vpack.c.bf16 %v8393_v9, %v8392_v44  ;;  %v8395_v23 = vld [vmem:[%s12245_s28 + $0x6a8] sm:$0xff] }
0x248c   : > { %11577 = vmatpush3.bf16.msra.mxu1 %v11576_v8  ;;  %11609 = vmatpush3.bf16.msra.mxu0 %v11608_v25  ;;  %v8355_v8 = vld [vmem:[%s12245_s28 + $0x568] sm:$0xff]  ;;  %v8340_v25 = vld [vmem:[%s12245_s28 + $0x4f0] sm:$0xff]  ;;  %v8377_v11 = vld [vmem:[%s12245_s28 + $0x618] sm:$0xff]  ;;  %v8175_v18 = vmax.f32 %v7917_v56, 0.0  ;;  %v8177_v49 = vmax.f32 %v7994_v0, 0.0 }
0x248d   : > { %11579 = vmatprep.subr.bf16.mxu1 %v11578_v33  ;;  %11611 = vmatprep.subr.bf16.mxu0 %v11610_v42  ;;  %v8373_v33 = vld [vmem:[%s12245_s28 + $0x5f8] sm:$0xff]  ;;  %v11592_v42 = vpack.c.bf16 %v8323_v21, %v8322_v37  ;;  %v11624_v46 = vpack.c.bf16 %v8355_v8, %v8354_v5  ;;  %v11594_v13 = vpack.c.bf16 %v8341_v26, %v8340_v25  ;;  %v8394_v37 = vld [vmem:[%s12245_s28 + $0x6a0] sm:$0xff]  ;;  %v8427_v21 = vld [vmem:[%s12245_s28 + $0x7a8] sm:$0xff] }
0x248e   : > { %v11626_v7 = vpack.c.bf16 %v8373_v33, %v8372_v27  ;;  %v8426_v45 = vld [vmem:[%s12245_s28 + $0x7a0] sm:$0xff]  ;;  %v11636_v5 = vpack.c.bf16 %v8377_v11, %v8376_v31  ;;  %v8379_v26 = vld [vmem:[%s12245_s28 + $0x628] sm:$0xff]  ;;  %v8163_v27 = vmax.f32 %v13067_v28, 0.0  ;;  %v8165_v33 = vmax.f32 %v13069_v16, 0.0  ;;  %v8396_v55 = vld [vmem:[%s12245_s28 + $0x6b0] sm:$0xff] }
0x248f   : > { %v8378_v25 = vld [vmem:[%s12245_s28 + $0x620] sm:$0xff]  ;;  %v8411_v47 = vld [vmem:[%s12245_s28 + $0x728] sm:$0xff]  ;;  %v8397_v6 = vld [vmem:[%s12245_s28 + $0x6b8] sm:$0xff] }
0x2490   : > { %11581 = vmatpush3.bf16.msra.mxu1 %v11580_v53  ;;  %11613 = vmatpush3.bf16.msra.mxu0 %v11612_v40  ;;  %v8356_v53 = vld [vmem:[%s12245_s28 + $0x570] sm:$0xff]  ;;  %v8357_v40 = vld [vmem:[%s12245_s28 + $0x578] sm:$0xff]  ;;  %v11640_v28 = vpack.c.bf16 %v8379_v26, %v8378_v25  ;;  %v11642_v54 = vpack.c.bf16 %v8397_v6, %v8396_v55  ;;  %v8430_v52 = vld [vmem:[%s12245_s28 + $0x7c0] sm:$0xff] }
0x2491   : > { %11583 = vmatprep.subr.bf16.mxu1 %v11582_v57  ;;  %11615 = vmatprep.subr.bf16.mxu0 %v11614_v61  ;;  %v8422_v57 = vld [vmem:[%s12245_s28 + $0x780] sm:$0xff]  ;;  %v8423_v61 = vld [vmem:[%s12245_s28 + $0x788] sm:$0xff]  ;;  %v11628_v36 = vpack.c.bf16 %v8357_v40, %v8356_v53  ;;  %v8380_v53 = vld [vmem:[%s12245_s28 + $0x630] sm:$0xff] }
0x2492   : > { %v11662_v63 = vpack.c.bf16 %v8423_v61, %v8422_v57  ;;  %v8381_v40 = vld [vmem:[%s12245_s28 + $0x638] sm:$0xff]  ;;  %v8412_v57 = vld [vmem:[%s12245_s28 + $0x730] sm:$0xff]  ;;  %v8383_v56 = vld [vmem:[%s12245_s28 + $0x648] sm:$0xff] }
0x2493   : > { %v8413_v61 = vld [vmem:[%s12245_s28 + $0x738] sm:$0xff]  ;;  %v8415_v44 = vld [vmem:[%s12245_s28 + $0x748] sm:$0xff]  ;;  %v8400_v9 = vld [vmem:[%s12245_s28 + $0x6d0] sm:$0xff] }
0x2494   : > { %11585 = vmatpush3.bf16.msra.mxu1 %v11584_v2  ;;  %11617 = vmatpush3.bf16.msra.mxu0 %v11616_v43  ;;  %v8406_v2 = vld [vmem:[%s12245_s28 + $0x700] sm:$0xff]  ;;  %v8407_v43 = vld [vmem:[%s12245_s28 + $0x708] sm:$0xff]  ;;  %v8404_v25 = vld [vmem:[%s12245_s28 + $0x6f0] sm:$0xff] }
0x2495   : > { %11587 = vmatprep.subr.bf16.mxu1 %v11586_v15  ;;  %11619 = vmatprep.subr.bf16.mxu0 %v11618_v24  ;;  %v8424_v15 = vld [vmem:[%s12245_s28 + $0x790] sm:$0xff]  ;;  %v11632_v24 = vpack.c.bf16 %v8375_v4, %v8374_v32  ;;  %v11664_v30 = vpack.c.bf16 %v8407_v43, %v8406_v2  ;;  %v11676_v32 = vpack.c.bf16 %v8413_v61, %v8412_v57  ;;  %v8382_v4 = vld [vmem:[%s12245_s28 + $0x640] sm:$0xff]  ;;  %v8405_v26 = vld [vmem:[%s12245_s28 + $0x6f8] sm:$0xff]  ;;  %v8178_v57 = vmax.f32 %v13078_v29, 0.0 }
0x2496   : > { %v11666_v35 = vpack.c.bf16 %v8425_v50, %v8424_v15  ;;  %v8414_v43 = vld [vmem:[%s12245_s28 + $0x740] sm:$0xff]  ;;  %v8401_v15 = vld [vmem:[%s12245_s28 + $0x6d8] sm:$0xff]  ;;  %v8432_v50 = vld [vmem:[%s12245_s28 + $0x7d0] sm:$0xff]  ;;  %v8180_v61 = vmax.f32 %v13080_v38, 0.0 }
0x2497   : > { %v11650_v31 = vpack.c.bf16 %v8401_v15, %v8400_v9  ;;  %v8389_v6 = vld [vmem:[%s12245_s28 + $0x678] sm:$0xff] }
0x2498   : > { %11589 = vmatpush3.bf16.msra.mxu1 %v11588_v19  ;;  %11621 = vmatpush3.bf16.msra.mxu0 %v11620_v48  ;;  %v8408_v19 = vld [vmem:[%s12245_s28 + $0x710] sm:$0xff]  ;;  %v8409_v48 = vld [vmem:[%s12245_s28 + $0x718] sm:$0xff] }
0x2499   : > { %11591 = vmatprep.subr.bf16.mxu1 %v11590_v22  ;;  %11623 = vmatprep.subr.bf16.mxu0 %v11622_v39  ;;  %v8174_v22 = vmax.f32 %v7915_v60, 0.0  ;;  %v8176_v39 = vmax.f32 %v13040_v58, 0.0  ;;  %v11668_v8 = vpack.c.bf16 %v8409_v48, %v8408_v19  ;;  %v8410_v58 = vld [vmem:[%s12245_s28 + $0x720] sm:$0xff]  ;;  %v8384_v60 = vld [vmem:[%s12245_s28 + $0x650] sm:$0xff]  ;;  %v8435_v48 = vld [vmem:[%s12245_s28 + $0x7e8] sm:$0xff] }
0x249a   : > { %v11672_v16 = vpack.c.bf16 %v8411_v47, %v8410_v58  ;;  %v8434_v19 = vld [vmem:[%s12245_s28 + $0x7e0] sm:$0xff]  ;;  %v8388_v58 = vld [vmem:[%s12245_s28 + $0x670] sm:$0xff]  ;;  %v11658_v47 = vpack.c.bf16 %v8405_v26, %v8404_v25 }
0x249c   : > { %11593 = vmatpush3.bf16.msra.mxu1 %v11592_v42  ;;  %11625 = vmatpush3.bf16.msra.mxu0 %v11624_v46  ;;  %v11638_v42 = vpack.c.bf16 %v8395_v23, %v8394_v37  ;;  %v11670_v46 = vpack.c.bf16 %v8427_v21, %v8426_v45  ;;  %v8386_v45 = vld [vmem:[%s12245_s28 + $0x660] sm:$0xff]  ;;  %v8387_v21 = vld [vmem:[%s12245_s28 + $0x668] sm:$0xff] }
0x249d   : > { %11595 = vmatprep.subr.bf16.mxu1 %v11594_v13  ;;  %11627 = vmatprep.subr.bf16.mxu0 %v11626_v7  ;;  %v8428_v13 = vld [vmem:[%s12245_s28 + $0x7b0] sm:$0xff]  ;;  %v8429_v7 = vld [vmem:[%s12245_s28 + $0x7b8] sm:$0xff] }
0x249e   : > { %v11674_v41 = vpack.c.bf16 %v8429_v7, %v8428_v13  ;;  %v8420_v13 = vld [vmem:[%s12245_s28 + $0x770] sm:$0xff]  ;;  %v8421_v7 = vld [vmem:[%s12245_s28 + $0x778] sm:$0xff] }
0x24a0   : > { %11597 = vmatpush3.bf16.msra.mxu1 %v11596_v34  ;;  %11629 = vmatpush3.bf16.msra.mxu0 %v11628_v36  ;;  %v8398_v34 = vld [vmem:[%s12245_s28 + $0x6c0] sm:$0xff]  ;;  %v8399_v36 = vld [vmem:[%s12245_s28 + $0x6c8] sm:$0xff] }
0x24a1   : > { %11631 = vmatprep.subr.bf16.mxu1 %v11630_v62  ;;  %11663 = vmatprep.subr.bf16.mxu0 %v11662_v63  ;;  %v8431_v62 = vld [vmem:[%s12245_s28 + $0x7c8] sm:$0xff]  ;;  %v11644_v63 = vpack.c.bf16 %v8381_v40, %v8380_v53  ;;  %v11646_v0 = vpack.c.bf16 %v8399_v36, %v8398_v34  ;;  %v8162_v53 = vmax.f32 %v13060_v20, 0.0  ;;  %v8164_v40 = vmax.f32 %v13062_v1, 0.0  ;;  %v10150_v20 = vld [vmem:[%s1856_s14] ss:$0 sm:$0xff] }
0x24a2   : > { %v11678_v2 = vpack.c.bf16 %v8431_v62, %v8430_v52 }
0x24a3   : > { %8810 = vmatmul.mubr.f32.vlgmr.msra.gmra.mrb[86].mxu1 %v8158_v10  ;;  %8885 = vmatmul.mubr.f32.vlgmr.msra.gmra.mrb[78].mxu0 %v8160_v59  ;;  %v11648_v10 = vpack.c.bf16 %v8383_v56, %v8382_v4  ;;  %v11680_v59 = vpack.c.bf16 %v8415_v44, %v8414_v43 }
0x24a4   : > { %8814 = vmatprep.mubr.f32.mxu1 %v8175_v18  ;;  %8889 = vmatprep.mubr.f32.mxu0 %v8177_v49  ;;  %v8416_v18 = vld [vmem:[%s12245_s28 + $0x750] sm:$0xff]  ;;  %v8417_v49 = vld [vmem:[%s12245_s28 + $0x758] sm:$0xff] }
0x24a5   : > { %11633 = vmatpush3.bf16.msra.mxu1 %v11632_v24  ;;  %11665 = vmatpush3.bf16.msra.mxu0 %v11664_v30  ;;  %v8433_v24 = vld [vmem:[%s12245_s28 + $0x7d8] sm:$0xff]  ;;  %v11684_v23 = vpack.c.bf16 %v8417_v49, %v8416_v18 }
0x24a6   : > { %11635 = vmatprep.subr.bf16.mxu1 %v11634_v51  ;;  %11667 = vmatprep.subr.bf16.mxu0 %v11666_v35  ;;  %v8385_v30 = vld [vmem:[%s12245_s28 + $0x658] sm:$0xff]  ;;  %v11682_v11 = vpack.c.bf16 %v8433_v24, %v8432_v50  ;;  %v8402_v51 = vld [vmem:[%s12245_s28 + $0x6e0] sm:$0xff]  ;;  %v8403_v35 = vld [vmem:[%s12245_s28 + $0x6e8] sm:$0xff] }
0x24a7   : > { %8815 = vmatmul.mubr.f32.gmra.mrb[88].mxu1 %v8174_v22  ;;  %8890 = vmatmul.mubr.f32.gmra.mrb[80].mxu0 %v8176_v39  ;;  %v11652_v37 = vpack.c.bf16 %v8385_v30, %v8384_v60  ;;  %v11654_v22 = vpack.c.bf16 %v8403_v35, %v8402_v51  ;;  %v11686_v39 = vpack.c.bf16 %v8435_v48, %v8434_v19 }
0x24a8   : > { %8959 = vmatprep.mubr.f32.mxu1 %v8163_v27  ;;  %9034 = vmatprep.mubr.f32.mxu0 %v8165_v33  ;;  %v8436_v27 = vld [vmem:[%s12245_s28 + $0x7f0] sm:$0xff]  ;;  %v8437_v33 = vld [vmem:[%s12245_s28 + $0x7f8] sm:$0xff] }
0x24a9   : > { %11637 = vmatpush3.bf16.msra.mxu1 %v11636_v5  ;;  %11669 = vmatpush3.bf16.msra.mxu0 %v11668_v8  ;;  %v8418_v5 = vld [vmem:[%s12245_s28 + $0x760] sm:$0xff]  ;;  %v8419_v8 = vld [vmem:[%s12245_s28 + $0x768] sm:$0xff]  ;;  %v11690_v55 = vpack.c.bf16 %v8437_v33, %v8436_v27 }
0x24aa   : > { %11639 = vmatprep.subr.bf16.mxu1 %v11638_v42  ;;  %11671 = vmatprep.subr.bf16.mxu0 %v11670_v46  ;;  %v11656_v42 = vpack.c.bf16 %v8387_v21, %v8386_v45  ;;  %v11688_v46 = vpack.c.bf16 %v8419_v8, %v8418_v5 }
0x24ad   : > { %11641 = vmatpush3.bf16.msra.mxu1 %v11640_v28  ;;  %11673 = vmatpush3.bf16.msra.mxu0 %v11672_v16  ;;  %v11660_v28 = vpack.c.bf16 %v8389_v6, %v8388_v58  ;;  %v11692_v16 = vpack.c.bf16 %v8421_v7, %v8420_v13 }
0x24ae   : > { %11643 = vmatprep.subr.bf16.mxu1 %v11642_v54  ;;  %11675 = vmatprep.subr.bf16.mxu0 %v11674_v41  ;;  %v8179_v54 = vmax.f32 %v13085_v12, 0.0  ;;  %v8181_v41 = vmax.f32 %v13087_v17, 0.0 }
0x24b1   : > { %11645 = vmatpush3.bf16.msra.mxu1 %v11644_v63  ;;  %11677 = vmatpush3.bf16.msra.mxu0 %v11676_v32 }
0x24b2   : > { %11647 = vmatprep.subr.bf16.mxu1 %v11646_v0  ;;  %11679 = vmatprep.subr.bf16.mxu0 %v11678_v2 }
0x24b5   : > { %11649 = vmatpush3.bf16.msra.mxu1 %v11648_v10  ;;  %11681 = vmatpush3.bf16.msra.mxu0 %v11680_v59 }
0x24b6   : > { %11651 = vmatprep.subr.bf16.mxu1 %v11650_v31  ;;  %11683 = vmatprep.subr.bf16.mxu0 %v11682_v11 }
0x24b9   : > { %11653 = vmatpush3.bf16.msra.mxu1 %v11652_v37  ;;  %11685 = vmatpush3.bf16.msra.mxu0 %v11684_v23 }
0x24ba   : > { %11655 = vmatprep.subr.bf16.mxu1 %v11654_v22  ;;  %11687 = vmatprep.subr.bf16.mxu0 %v11686_v39 }
0x24bd   : > { %11657 = vmatpush3.bf16.msra.mxu1 %v11656_v42  ;;  %11689 = vmatpush3.bf16.msra.mxu0 %v11688_v46 }
0x24be   : > { %11659 = vmatprep.subr.bf16.mxu1 %v11658_v47  ;;  %11691 = vmatprep.subr.bf16.mxu0 %v11690_v55 }
0x24c1   : > { %11661 = vmatpush3.bf16.msra.mxu1 %v11660_v28  ;;  %11693 = vmatpush3.bf16.msra.mxu0 %v11692_v16 }
0x24c4   : > { %8960 = vmatmul.mubr.f32.vlgmr.msra.gmra.mrb[90].mxu1 %v8162_v53  ;;  %9035 = vmatmul.mubr.f32.vlgmr.msra.gmra.mrb[82].mxu0 %v8164_v40 }
0x24c5   : > { %8964 = vmatprep.mubr.f32.mxu1 %v8179_v54  ;;  %9039 = vmatprep.mubr.f32.mxu0 %v8181_v41 }
0x24c8   : > { %8965 = vmatmul.mubr.f32.gmra.mrb[92].mxu1 %v8178_v57  ;;  %9040 = vmatmul.mubr.f32.gmra.mrb[84].mxu0 %v8180_v61 }
0x2535   : > { %v10429_v34 = vpop.f32.mrb[78].mxu1  ;;  %v10467_v36 = vpop.f32.mrb[70].mxu0 }
0x2536   : > { %v10430_v52 = vpop.f32.mrb[79].mxu1  ;;  %v10468_v1 = vpop.f32.mrb[71].mxu0 }
0x2537   : > { %v10431_v62 = vadd.f32 %v10430_v52, %v10429_v34  ;;  %v10469_v12 = vadd.f32 %v10468_v1, %v10467_v36 }
0x2539   : > { %v8512_v63 = vadd.f32 %v10431_v62, %v10150_v20  ;;  %v10432_v17 = vpop.f32.mrb[80].mxu1  ;;  %v10470_v32 = vpop.f32.mrb[72].mxu0 }
0x253a   : > { %v10433_v4 = vpop.f32.mrb[81].mxu1  ;;  %v10471_v56 = vpop.f32.mrb[73].mxu0 }
0x253b   : > { %v8587_v0 = vadd.f32 %v10469_v12, %v8512_v63  ;;  %v10434_v2 = vadd.f32 %v10433_v4, %v10432_v17  ;;  %v10472_v29 = vadd.f32 %v10471_v56, %v10470_v32 }
0x253d   : > { %v8517_v43 = vadd.f32 %v10434_v2, %v10150_v20 }
0x253f   : > { %v8592_v38 = vadd.f32 %v10472_v29, %v8517_v43 }
0x2555   : > { %v10505_v44 = vpop.f32.mrb[82].mxu1  ;;  %v10543_v9 = vpop.f32.mrb[74].mxu0 }
0x2556   : > { %v10506_v15 = vpop.f32.mrb[83].mxu1  ;;  %v10544_v50 = vpop.f32.mrb[75].mxu0 }
0x2557   : > { %v10507_v24 = vadd.f32 %v10506_v15, %v10505_v44  ;;  %v10545_v10 = vadd.f32 %v10544_v50, %v10543_v9 }
0x2559   : > { %v8662_v59 = vadd.f32 %v10507_v24, %v8587_v0  ;;  %v10508_v60 = vpop.f32.mrb[84].mxu1  ;;  %v10546_v30 = vpop.f32.mrb[76].mxu0 }
0x255a   : > { %v10509_v31 = vpop.f32.mrb[85].mxu1  ;;  %v10547_v11 = vpop.f32.mrb[77].mxu0 }
0x255b   : > { %v8737_v18 = vadd.f32 %v10545_v10, %v8662_v59  ;;  %v10510_v49 = vadd.f32 %v10509_v31, %v10508_v60  ;;  %v10548_v51 = vadd.f32 %v10547_v11, %v10546_v30  ;;  %v10151_v10 = vld [vmem:[%s1863_s27] ss:$0 sm:$0xff] }
0x255c   : > { %v10152_v60 = vld [vmem:[%s1870_s4] ss:$0 sm:$0xff] }
0x255d   : > { %v8667_v35 = vadd.f32 %v10510_v49, %v8592_v38 }
0x255f   : > { %v8742_v19 = vadd.f32 %v10548_v51, %v8667_v35 }
0x2576   : > { %v10581_v48 = vpop.f32.mrb[86].mxu1  ;;  %v10619_v37 = vpop.f32.mrb[78].mxu0 }
0x2577   : > { %v10582_v23 = vpop.f32.mrb[87].mxu1  ;;  %v10620_v45 = vpop.f32.mrb[79].mxu0 }
0x2578   : > { %v10583_v21 = vadd.f32 %v10582_v23, %v10581_v48  ;;  %v10621_v22 = vadd.f32 %v10620_v45, %v10619_v37 }
0x257a   : > { %v8812_v39 = vadd.f32 %v10583_v21, %v8737_v18  ;;  %v10584_v5 = vpop.f32.mrb[88].mxu1  ;;  %v10622_v8 = vpop.f32.mrb[80].mxu0 }
0x257b   : > { %v10585_v25 = vpop.f32.mrb[89].mxu1  ;;  %v10623_v26 = vpop.f32.mrb[81].mxu0 }
0x257c   : > { %v8887_v27 = vadd.f32 %v10621_v22, %v8812_v39  ;;  %v10586_v33 = vadd.f32 %v10585_v25, %v10584_v5  ;;  %v10624_v42 = vadd.f32 %v10623_v26, %v10622_v8  ;;  %v9141_v26 = vld [vmem:[%s12257_s9] sm:$0xff] (!%p10153_p8) }
0x257e   : > { %v8817_v46 = vadd.f32 %v10586_v33, %v8742_v19  ;;  %v9143_v33 = vld [vmem:[%s12257_s9 + $0x10] sm:$0xff] (!%p10153_p8) }
0x2580   : > { %v8892_v58 = vadd.f32 %v10624_v42, %v8817_v46  ;;  %v9144_v46 = vld [vmem:[%s12257_s9 + $0x18] sm:$0xff] (!%p10153_p8) }
0x2597   : > { %v10657_v47 = vpop.f32.mrb[90].mxu1  ;;  %v10695_v55 = vpop.f32.mrb[82].mxu0 }
0x2598   : > { %v10658_v6 = vpop.f32.mrb[91].mxu1  ;;  %v10696_v13 = vpop.f32.mrb[83].mxu0 }
0x2599   : > { %v10659_v7 = vadd.f32 %v10658_v6, %v10657_v47  ;;  %v10697_v28 = vadd.f32 %v10696_v13, %v10695_v55 }
0x259b   : > { %v8962_v16 = vadd.f32 %v10659_v7, %v8887_v27  ;;  %v10660_v53 = vpop.f32.mrb[92].mxu1  ;;  %v10698_v40 = vpop.f32.mrb[84].mxu0  ;;  %v9142_v27 = vld [vmem:[%s12257_s9 + $0x8] sm:$0xff] (!%p10153_p8) }
0x259c   : > { %v10661_v54 = vpop.f32.mrb[93].mxu1  ;;  %v10699_v41 = vpop.f32.mrb[85].mxu0  ;;  %v11694_v42 = vpack.c.bf16 (!%p10153_p8), %v9142_v27, %v9141_v26 }
0x259d   : > { %v9037_v57 = vadd.f32 %v10697_v28, %v8962_v16  ;;  %v10662_v61 = vadd.f32 %v10661_v54, %v10660_v53  ;;  %v10700_v34 = vadd.f32 %v10699_v41, %v10698_v40  ;;  %v10154_v53 = vld [vmem:[%s1873_s10] ss:$0 sm:$0xff] (!%p10153_p8) }
0x259e   : > { %11695 = vmatprep.subr.bf16.mxu0 (!%p10153_p8), %v11694_v42  ;;  %v10155_v54 = vld [vmem:[%s1876_s21] ss:$0 sm:$0xff] (!%p10153_p8) }
0x259f   : > { %v8967_v36 = vadd.f32 %v10662_v61, %v8892_v58  ;;  %v9045_v20 = vadd.f32 %v9037_v57, %v12777_v3  ;;  %v11698_v58 = vpack.c.bf16 (!%p10153_p8), %v9144_v46, %v9143_v33  ;;  %11697 = vmatpush3.bf16.msra.mxu0 (!%p10153_p8), %v11694_v42 }
0x25a1   : > { %v9042_v52 = vadd.f32 %v10700_v34, %v8967_v36  ;;  %v9049_v1 = vsel %vm1914_vm1, %v9045_v20, 0.0  ;;  %11699 = vmatprep.subr.bf16.mxu0 (!%p10153_p8), %v11698_v58 }
0x25a2   : > { %9050 = vadd.xlane.f32.xlu0 %v9049_v1 }
0x25a3   : > { %v9046_v62 = vadd.f32 %v9042_v52, %v12791_v14  ;;  %11701 = vmatpush3.bf16.msra.mxu0 (!%p10153_p8), %v11698_v58  ;;  %v10156_v52 = vld [vmem:[%s1884_s15] ss:$0 sm:$0xff] (!%p10153_p8) }
0x25a5   : > { %v9052_v12 = vsel %vm1914_vm1, %v9046_v62, 0.0 }
0x25a6   : > { %9053 = vadd.xlane.f32.xlu1 %v9052_v12 }
0x262f   : > { %v9051_v63 = vpop.xlane.xlu0 %9050 }
0x2630   : > { %v9055_v17 = vmul.f32 0.03125, %v9051_v63 }
0x2632   : > { %v9057_v32 = vsub.f32 %v9045_v20, %v9055_v17 }
0x2633   : > { %v9054_v4 = vpop.xlane.xlu1 %9053 }
0x2634   : > { %v9056_v56 = vmul.f32 0.03125, %v9054_v4  ;;  %v9059_v0 = vmul.f32 %v9057_v32, %v9057_v32 }
0x2636   : > { %v9058_v2 = vsub.f32 %v9046_v62, %v9056_v56  ;;  %v9061_v3 = vsel %vm1914_vm1, %v9059_v0, 0.0 }
0x2637   : > { %9062 = vadd.xlane.f32.xlu0 %v9061_v3 }
0x2638   : > { %v9060_v29 = vmul.f32 %v9058_v2, %v9058_v2 }
0x263a   : > { %v9064_v14 = vsel %vm1914_vm1, %v9060_v29, 0.0 }
0x263b   : > { %9065 = vadd.xlane.f32.xlu1 %v9064_v14 }
0x26c4   : > { %v9063_v43 = vpop.xlane.xlu0 %9062 }
0x26c5   : > { %v9067_v38 = vmul.f32 0.03125, %v9063_v43 }
0x26c7   : > { %v9069_v44 = vadd.f32 1e-05, %v9067_v38 }
0x26c8   : > { %v9066_v9 = vpop.xlane.xlu1 %9065 }
0x26c9   : > { %11865 = vrsqrt.f32 %v9069_v44  ;;  %v9068_v15 = vmul.f32 0.03125, %v9066_v9 }
0x26cb   : > { %v9070_v50 = vadd.f32 1e-05, %v9068_v15 }
0x26cd   : > { %11867 = vrsqrt.f32 %v9070_v50 }
0x26d3   : > { %v11866_v24 = vpop.eup %11865 }
0x26d4   : > { %v9073_v59 = vmul.f32 %v11866_v24, %v9057_v32 }
0x26d6   : > { %v9081_v30 = vmul.f32 %v10151_v10, %v9073_v59 }
0x26d7   : > { %v11868_v31 = vpop.eup %11867 }
0x26d8   : > { %v9089_v11 = vadd.f32 %v10152_v60, %v9081_v30  ;;  %v9074_v18 = vmul.f32 %v11868_v31, %v9058_v2  ;;  %9096 = sbr.rel (%p10153_p8) target bundleno = 10479 (0x28ef), region = 156 }
0x26da   : > { %9091 = vst.msk [vmem:[#allocation2] sm:$0xff] %vm1914_vm1, %v9089_v11  ;;  %v9082_v49 = vmul.f32 %v10151_v10, %v9074_v18  ;;  %v9099_v35 = vsel (!%p10153_p8), %vm1914_vm1, %v9089_v11, 0.0 }
0x26db   : > { %9100 = vadd.xlane.f32.xlu0 (!%p10153_p8), %v9099_v35 }
0x26dc   : > { %v9090_v51 = vadd.f32 %v10152_v60, %v9082_v49 }
0x26de   : > { %9092 = vst.msk [vmem:[#allocation2 + $0x8] sm:$0xff] %vm1914_vm1, %v9090_v51  ;;  %v9102_v19 = vsel (!%p10153_p8), %vm1914_vm1, %v9090_v51, 0.0 }
0x26df   : > { %9103 = vadd.xlane.f32.xlu0 %v9102_v19 }
0x2768   : > { %v9101_v48 = vpop.xlane.xlu0 %9100 }
0x2769   : > { %v9105_v37 = vmul.f32 0.03125, %v9101_v48 }
0x276b   : > { %v9107_v23 = vsub.f32 %v9089_v11, %v9105_v37 }
0x276c   : > { %v9104_v45 = vpop.xlane.xlu0 %9103 }
0x276d   : > { %v9106_v21 = vmul.f32 0.03125, %v9104_v45  ;;  %v9109_v22 = vmul.f32 %v9107_v23, %v9107_v23 }
0x276f   : > { %v9108_v39 = vsub.f32 %v9090_v51, %v9106_v21  ;;  %v9111_v5 = vsel %vm1914_vm1, %v9109_v22, 0.0 }
0x2770   : > { %9112 = vadd.xlane.f32.xlu1 %v9111_v5 }
0x2771   : > { %v9110_v8 = vmul.f32 %v9108_v39, %v9108_v39 }
0x2773   : > { %v9114_v25 = vsel %vm1914_vm1, %v9110_v8, 0.0 }
0x2774   : > { %9115 = vadd.xlane.f32.xlu1 %v9114_v25 }
0x27fd   : > { %v9113_v47 = vpop.xlane.xlu1 %9112 }
0x27fe   : > { %v9117_v55 = vmul.f32 0.03125, %v9113_v47 }
0x2800   : > { %v9119_v6 = vadd.f32 1e-05, %v9117_v55 }
0x2801   : > { %v9116_v13 = vpop.xlane.xlu1 %9115 }
0x2802   : > { %11869 = vrsqrt.f32 %v9119_v6  ;;  %v9118_v7 = vmul.f32 0.03125, %v9116_v13 }
0x2804   : > { %v9120_v28 = vadd.f32 1e-05, %v9118_v7 }
0x2806   : > { %11871 = vrsqrt.f32 %v9120_v28 }
0x280c   : > { %v11870_v16 = vpop.eup %11869 }
0x280d   : > { %v9123_v40 = vmul.f32 %v11870_v16, %v9107_v23 }
0x280f   : > { %v9131_v41 = vmul.f32 %v10154_v53, %v9123_v40 }
0x2810   : > { %v11872_v57 = vpop.eup %11871 }
0x2811   : > { %v9124_v61 = vmul.f32 %v11872_v57, %v9108_v39  ;;  %v9139_v34 = vadd.f32 %v10155_v54, %v9131_v41 }
0x2813   : > { %v9132_v36 = vmul.f32 %v10154_v53, %v9124_v61  ;;  %11179 = vmatprep.mubr.msk.f32.mxu0 %vm1914_vm1, %v9139_v34 }
0x2815   : > { %v9140_v20 = vadd.f32 %v10155_v54, %v9132_v36 }
0x2817   : > { %11180 = vmatmul.mubr.msk.f32.vlgmr.msra.gmra.mrb[0].mxu0 %vm1914_vm1, %v9140_v20 }
0x28ea   : > { %v11181_v1 = vpop.f32.mrb[0].mxu0 }
0x28eb   : > { %v9230_v62 = vadd.f32 %v11181_v1, %v10156_v52  ;;  %v9224_v12 = vpop.f32.mrb[1].mxu0 }
0x28ec   : > { %v9225_v63 = vadd.f32 %v10156_v52, %v9224_v12 }
0x28ed   : > { %9234 = vst [vmem:[%s12263_s2 + $0x8] sm:$0xff] %v9230_v62 }
0x28ee   : > { %9233 = vst [vmem:[%s12263_s2] sm:$0xff] %v9225_v63 }
0x28ef PF: > { %s13470_s10 = sld [smem:[#allocation39_spill]]  ;;  %s13471_s28 = sld [smem:[#allocation37_spill]] }
0x28f0   : > { %s13472_s1 = sld [smem:[#allocation38_spill]]  ;;  %s13473_s2 = sld [smem:[#allocation40_spill]] }
0x28f1   : > { %s13474_s7 = sld [smem:[#allocation41_spill]] }
0x28f5   : > { %s75_s10 = sadd.s32 1, %s13470_s10  }
0x28f6   : > { %p72_p9 = scmp.ge.s32.totalorder %s75_s10, 14  }
0x28f8   :  { %74 = sbr.rel (!%p72_p9) target bundleno = 76 (0x4c), region = 353 }

</bundles_post_ra>
